<compile_context>
chip_gen: v7x
topology: tpu7x:2x2x1
jax: 0.10.0
libtpu: 0.0.40
codegen_flags: <defaults>
</compile_context>

<pallas_src>
import functools

import jax
import jax.numpy as jnp
from jax.experimental import pallas as pl
from jax.experimental.pallas import tpu as pltpu


# ------------------------------------------------------------------ kernels --
def _dense_bn_relu_kernel(xw_ref, wt_ref, g_ref, b_ref, o_ref, *, eps):
    """Fused ConvTranspose3d(z, C0, k=4, s=1, p=0) on a 1x1x1 input (== dense
    layer) + training-mode BatchNorm3d + ReLU.

    xw: (z, M) f32 with xw[ci, n*64 + t] = x[n, ci]      (M = N*64)
    wt: (z, C0, M) f32 with wt[ci, co, n*64 + t] = w[ci, co, t]
    o : (C0, M) f32 channels-first, lane-dense.
    """
    z = wt_ref.shape[0]
    h = xw_ref[0:1, :] * wt_ref[0]
    for ci in range(1, z):
        h = h + xw_ref[ci:ci + 1, :] * wt_ref[ci]
    inv_count = 1.0 / float(h.shape[1])
    s = jnp.sum(h, axis=1, keepdims=True)
    ss = jnp.sum(h * h, axis=1, keepdims=True)
    mean = s * inv_count
    var = jnp.maximum(ss * inv_count - mean * mean, 0.0)   # clamp >= 0
    scale = g_ref[...] * jax.lax.rsqrt(var + eps)
    shift = b_ref[...] - mean * scale
    o_ref[...] = jnp.maximum(h * scale + shift, 0.0)


def _deconv_bn_relu_kernel(a_ref, b_ref, g_ref, be_ref, o_ref, *, eps, cout,
                           n_phase):
    """Fused stride-2 deconv (stacked-phase matmul) + BatchNorm3d + ReLU.

    a : (27*Cin, M) bf16 union patch matrix
    b : (8*Cout, 27*Cin) bf16 stacked phase weights (rows phase-major)
    o : (8*Cout, M) f32 (phase-major rows)
    """
    h = jnp.dot(b_ref[...], a_ref[...], preferred_element_type=jnp.float32)
    inv_count = 1.0 / float(n_phase * h.shape[1])
    # One vectorized lane reduction over the resident block ...
    s_rows = jnp.sum(h, axis=1, keepdims=True)              # (8*Cout, 1)
    ss_rows = jnp.sum(h * h, axis=1, keepdims=True)
    # ... then pool the tiny per-row sums over the 8 phases per channel.
    s = s_rows[0:cout]
    ss = ss_rows[0:cout]
    for p in range(1, n_phase):
        s = s + s_rows[p * cout:(p + 1) * cout]
        ss = ss + ss_rows[p * cout:(p + 1) * cout]
    mean = s * inv_count
    var = jnp.maximum(ss * inv_count - mean * mean, 0.0)    # clamp >= 0
    scale = g_ref[...] * jax.lax.rsqrt(var + eps)
    shift = be_ref[...] - mean * scale
    # Single store pass: normalize + ReLU straight from the matmul result.
    for p in range(n_phase):
        hp = h[p * cout:(p + 1) * cout, :]
        o_ref[p * cout:(p + 1) * cout, :] = jnp.maximum(hp * scale + shift,
                                                        0.0)


def _deconv_sigmoid_kernel(a_ref, b_ref, o_ref):
    """Final stride-2 deconv (8 phase rows of the single channel) + Sigmoid."""
    h = jnp.dot(b_ref[...], a_ref[...], preferred_element_type=jnp.float32)
    o_ref[...] = jax.nn.sigmoid(h)


# ----------------------------------------------- phase / union patch helpers --
def _union_patches(x_int):
    """x_int: (Cin, N, S, S, S) f32 -> (27*Cin, M) bf16, M = N*S^3.
    Row block (a, b, c) in {0,1,2}^3 is the activation shifted by that
    spatial offset in the 1-padded volume; shared by all 8 output phases."""
    Cin, N, S = x_int.shape[0], x_int.shape[1], x_int.shape[2]
    M = N * S * S * S
    xp = jnp.pad(x_int, ((0, 0), (0, 0), (1, 1), (1, 1), (1, 1)))
    rows = []
    for a in (0, 1, 2):
        for b in (0, 1, 2):
            for c in (0, 1, 2):
                rows.append(xp[:, :, a:a + S, b:b + S, c:c + S].reshape(Cin, M))
    return jnp.concatenate(rows, axis=0).astype(jnp.bfloat16)


def _stacked_phase_weights(w):
    """w: (Cin, Cout, 4, 4, 4) (PyTorch ConvTranspose3d layout) ->
    (8*Cout, 27*Cin) bf16.  Row block p = (pd, ph, pw) holds the weights of
    the equivalent stride-1 conv for output parity p, laid out against the
    27-tap union-patch columns (zeros for taps that phase does not use)."""
    Cin, Cout = w.shape[0], w.shape[1]
    zeros = jnp.zeros((Cout, Cin), w.dtype)
    row_blocks = []
    for pd in (0, 1):
        for ph in (0, 1):
            for pw in (0, 1):
                cols = []
                for a in (0, 1, 2):
                    for b in (0, 1, 2):
                        for c in (0, 1, 2):
                            dd, dh, dw = a - pd, b - ph, c - pw
                            if dd in (0, 1) and dh in (0, 1) and dw in (0, 1):
                                cols.append(w[:, :, 3 - pd - 2 * dd,
                                                    3 - ph - 2 * dh,
                                                    3 - pw - 2 * dw].T)
                            else:
                                cols.append(zeros)
                row_blocks.append(jnp.concatenate(cols, axis=1))
    return jnp.concatenate(row_blocks, axis=0).astype(jnp.bfloat16)


def _interleave_phases(O, cout, n, s):
    """O: (8*cout, n*s^3) phase-major rows -> (cout, n, 2s, 2s, 2s)."""
    o = O.reshape(2, 2, 2, cout, n, s, s, s)
    o = jnp.transpose(o, (3, 4, 5, 0, 6, 1, 7, 2))
    return o.reshape(cout, n, 2 * s, 2 * s, 2 * s)


# ------------------------------------------------------------- layer wrappers --
def dense_bn_relu(x, w, gamma, beta, eps=1e-5):
    """x: (N, z, 1, 1, 1) -> (C0, N, 4, 4, 4) channels-first, fused BN+ReLU."""
    N, z = x.shape[0], x.shape[1]
    C0, k = w.shape[1], w.shape[2]
    kk = k ** 3
    M = N * kk
    xw = jnp.repeat(x.reshape(N, z).T.astype(jnp.float32), kk, axis=1)   # (z, M)
    wt = jnp.tile(w.reshape(z, C0, kk).astype(jnp.float32), (1, 1, N))   # (z, C0, M)
    kernel = functools.partial(_dense_bn_relu_kernel, eps=eps)
    y = pl.pallas_call(
        kernel,
        out_shape=jax.ShapeDtypeStruct((C0, M), jnp.float32),
        grid=(1,),
        in_specs=[pl.BlockSpec((z, M), lambda i: (0, 0)),
                  pl.BlockSpec((z, C0, M), lambda i: (0, 0, 0)),
                  pl.BlockSpec((C0, 1), lambda i: (0, 0)),
                  pl.BlockSpec((C0, 1), lambda i: (0, 0))],
        out_specs=pl.BlockSpec((C0, M), lambda i: (0, 0)),
        compiler_params=pltpu.CompilerParams(
            dimension_semantics=("arbitrary",)),
    )(xw, wt, gamma.reshape(C0, 1).astype(jnp.float32),
      beta.reshape(C0, 1).astype(jnp.float32))
    return y.reshape(C0, N, k, k, k)


def deconv_s2_bn_relu(x_int, w, gamma, beta, eps=1e-5):
    """Fused ConvTranspose3d(k=4, s=2, p=1, bias=False) + BatchNorm3d + ReLU.
    x_int: (Cin, N, S, S, S) f32 -> (Cout, N, 2S, 2S, 2S) f32.

    NOTE: at much larger batch this layer should adopt the same M-tiled grid
    as deconv_s2_sigmoid (BN sums accumulated in scratch, normalize at the
    last step) to stay within v7x's 64 MiB VMEM; at these sizes the whole
    layer fits in a single grid step.
    """
    Cin, N, S = x_int.shape[0], x_int.shape[1], x_int.shape[2]
    Cout = w.shape[1]
    M = N * S * S * S
    K = 27 * Cin
    R = 8 * Cout
    A = _union_patches(x_int)            # (K, M) bf16
    B = _stacked_phase_weights(w)        # (R, K) bf16
    kernel = functools.partial(_deconv_bn_relu_kernel, eps=eps, cout=Cout,
                               n_phase=8)
    O = pl.pallas_call(
        kernel,
        out_shape=jax.ShapeDtypeStruct((R, M), jnp.float32),
        grid=(1,),
        in_specs=[pl.BlockSpec((K, M), lambda i: (0, 0)),
                  pl.BlockSpec((R, K), lambda i: (0, 0)),
                  pl.BlockSpec((Cout, 1), lambda i: (0, 0)),
                  pl.BlockSpec((Cout, 1), lambda i: (0, 0))],
        out_specs=pl.BlockSpec((R, M), lambda i: (0, 0)),
        compiler_params=pltpu.CompilerParams(
            dimension_semantics=("arbitrary",)),
    )(A, B, gamma.reshape(Cout, 1).astype(jnp.float32),
      beta.reshape(Cout, 1).astype(jnp.float32))
    return _interleave_phases(O, Cout, N, S)


def deconv_s2_sigmoid(x_int, w):
    """Fused final ConvTranspose3d(k=4, s=2, p=1, bias=False) + Sigmoid.
    M-tiled 'parallel' grid: the union-patch DMA double-buffers behind the
    MXU work (and both TensorCores can run on v7x); output rows are exactly
    the 8 phases of the single output channel (no padded channels)."""
    Cin, N, S = x_int.shape[0], x_int.shape[1], x_int.shape[2]
    Cout = w.shape[1]
    M = N * S * S * S
    K = 27 * Cin
    R = 8 * Cout
    A = _union_patches(x_int)            # (K, M) bf16
    B = _stacked_phase_weights(w)        # (R, K) bf16
    mt = M                               # fall back to a single step
    for cand in (2048, 1024, 512, 256, 128):
        if M % cand == 0:
            mt = cand
            break
    O = pl.pallas_call(
        _deconv_sigmoid_kernel,
        out_shape=jax.ShapeDtypeStruct((R, M), jnp.float32),
        grid=(M // mt,),
        in_specs=[pl.BlockSpec((K, mt), lambda m: (0, m)),
                  pl.BlockSpec((R, K), lambda m: (0, 0))],
        out_specs=pl.BlockSpec((R, mt), lambda m: (0, m)),
        compiler_params=pltpu.CompilerParams(
            dimension_semantics=("parallel",)),
    )(A, B)
    return _interleave_phases(O, Cout, N, S)


# ----------------------------------------------------------------- generator --
def generator_forward(x, params):
    """x: (N, z_dim, 1, 1, 1) NCDHW -> (N, 1, 32, 32, 32) NCDHW."""
    h = dense_bn_relu(x, params["w1"], params["g1"], params["b1"])       # 4^3
    h = deconv_s2_bn_relu(h, params["w2"], params["g2"], params["b2"])   # 8^3
    h = deconv_s2_bn_relu(h, params["w3"], params["g3"], params["b3"])   # 16^3
    y = deconv_s2_sigmoid(h, params["w4"])                # (1, N, 32, 32, 32)
    return jnp.transpose(y, (1, 0, 2, 3, 4))              # free (dim0 == 1)


# ------------------------------------------------------- pure-JAX reference --
def _conv_transpose3d_ref(x, w, stride, padding):
    k = w.shape[2]
    rhs = jnp.flip(jnp.transpose(w, (1, 0, 2, 3, 4)), axis=(2, 3, 4))
    p = k - 1 - padding
    return jax.lax.conv_general_dilated(
        x, rhs, window_strides=(1, 1, 1), padding=[(p, p)] * 3,
        lhs_dilation=(stride,) * 3,
        dimension_numbers=("NCDHW", "OIDHW", "NCDHW"))


def generator_reference(x, params, eps=1e-5):
    def bn_relu_ref(h, g, b):
        mean = jnp.mean(h, axis=(0, 2, 3, 4), keepdims=True)
        var = jnp.mean(jnp.square(h - mean), axis=(0, 2, 3, 4), keepdims=True)
        hn = (h - mean) * jax.lax.rsqrt(var + eps)
        return jnp.maximum(hn * g.reshape(1, -1, 1, 1, 1)
                           + b.reshape(1, -1, 1, 1, 1), 0.0)

    h = _conv_transpose3d_ref(x, params["w1"], 1, 0)
    h = bn_relu_ref(h, params["g1"], params["b1"])
    h = _conv_transpose3d_ref(h, params["w2"], 2, 1)
    h = bn_relu_ref(h, params["g2"], params["b2"])
    h = _conv_transpose3d_ref(h, params["w3"], 2, 1)
    h = bn_relu_ref(h, params["g3"], params["b3"])
    h = _conv_transpose3d_ref(h, params["w4"], 2, 1)
    return jax.nn.sigmoid(h)


# ---------------------------------------------------------------------- main --
if __name__ == "__main__":
    key = jax.random.PRNGKey(0)
    ks = jax.random.split(key, 5)

    N, z_dim, k = 2, 8, 4
    C0, C1, C2 = 32, 16, 8   # init_out_channels=32 -> 32, 16, 8

    params = {
        # ConvTranspose3d weights, PyTorch layout (Cin, Cout, kD, kH, kW)
        "w1": 0.02 * jax.random.normal(ks[0], (z_dim, C0, k, k, k), jnp.float32),
        "w2": 0.02 * jax.random.normal(ks[1], (C0, C1, k, k, k), jnp.float32),
        "w3": 0.02 * jax.random.normal(ks[2], (C1, C2, k, k, k), jnp.float32),
        "w4": 0.02 * jax.random.normal(ks[3], (C2, 1, k, k, k), jnp.float32),
        # BatchNorm3d affine params (PyTorch default init: weight=1, bias=0)
        "g1": jnp.ones((C0,), jnp.float32), "b1": jnp.zeros((C0,), jnp.float32),
        "g2": jnp.ones((C1,), jnp.float32), "b2": jnp.zeros((C1,), jnp.float32),
        "g3": jnp.ones((C2,), jnp.float32), "b3": jnp.zeros((C2,), jnp.float32),
    }

    x = jax.random.normal(ks[4], (N, z_dim, 1, 1, 1), jnp.float32)

    y = jax.block_until_ready(jax.jit(generator_forward)(x, params))
    assert y.shape == (N, 1, 32, 32, 32), y.shape
    assert bool(jnp.all(jnp.isfinite(y)))
    assert bool(jnp.all((y >= 0.0) & (y <= 1.0)))   # sigmoid output range

    # Correctness vs a pure-JAX/XLA f32 reference (bf16 MXU operands give
    # ~1e-3-level differences after the sigmoid).
    y_ref = jax.block_until_ready(jax.jit(generator_reference)(x, params))
    err = float(jnp.max(jnp.abs(y - y_ref)))
    assert err < 5e-2, f"max abs err vs reference: {err}"

    print("KERNEL_OK")
</pallas_src>

<mosaic_0001>
module attributes {stable_mosaic.version = 11 : i64} {
  func.func @_dense_bn_relu_kernel(%arg0: i32, %arg1: memref<8x128xf32, #tpu.memory_space<vmem>>, %arg2: memref<8x32x128xf32, #tpu.memory_space<vmem>>, %arg3: memref<32x1xf32, #tpu.memory_space<vmem>>, %arg4: memref<32x1xf32, #tpu.memory_space<vmem>>, %arg5: memref<32x128xf32, #tpu.memory_space<vmem>>) attributes {dimension_semantics = [#tpu.dimension_semantics<arbitrary>], iteration_bounds = array<i64: 1>, scalar_prefetch = 0 : i64, scratch_operands = 0 : i64, tpu.core_type = #tpu.core_type<tc>, window_params = [{pipeline_mode = #tpu.pipeline_mode<synchronous>, transform_indices = @transform_0, window_bounds = array<i64: 8, 128>}, {pipeline_mode = #tpu.pipeline_mode<synchronous>, transform_indices = @transform_1, window_bounds = array<i64: 8, 32, 128>}, {pipeline_mode = #tpu.pipeline_mode<synchronous>, transform_indices = @transform_2, window_bounds = array<i64: 32, 1>}, {pipeline_mode = #tpu.pipeline_mode<synchronous>, transform_indices = @transform_3, window_bounds = array<i64: 32, 1>}, {pipeline_mode = #tpu.pipeline_mode<synchronous>, transform_indices = @transform_4, window_bounds = array<i64: 32, 128>}]} {
    %c0 = arith.constant 0 : index
    %c0_0 = arith.constant 0 : index
    %0 = vector.load %arg1[%c0, %c0_0] : memref<8x128xf32, #tpu.memory_space<vmem>>, vector<1x128xf32>
    %c0_1 = arith.constant 0 : index
    %c0_2 = arith.constant 0 : index
    %c0_3 = arith.constant 0 : index
    %1 = vector.load %arg2[%c0_1, %c0_2, %c0_3] : memref<8x32x128xf32, #tpu.memory_space<vmem>>, vector<1x32x128xf32>
    %2 = vector.shape_cast %1 : vector<1x32x128xf32> to vector<32x128xf32>
    %3 = vector.broadcast %0 : vector<1x128xf32> to vector<32x128xf32>
    %4 = arith.mulf %3, %2 : vector<32x128xf32>
    %c1 = arith.constant 1 : index
    %c0_4 = arith.constant 0 : index
    %5 = vector.load %arg1[%c1, %c0_4] : memref<8x128xf32, #tpu.memory_space<vmem>>, vector<1x128xf32>
    %c1_5 = arith.constant 1 : index
    %c0_6 = arith.constant 0 : index
    %c0_7 = arith.constant 0 : index
    %6 = vector.load %arg2[%c1_5, %c0_6, %c0_7] : memref<8x32x128xf32, #tpu.memory_space<vmem>>, vector<1x32x128xf32>
    %7 = vector.shape_cast %6 : vector<1x32x128xf32> to vector<32x128xf32>
    %8 = vector.broadcast %5 : vector<1x128xf32> to vector<32x128xf32>
    %9 = arith.mulf %8, %7 : vector<32x128xf32>
    %10 = arith.addf %4, %9 : vector<32x128xf32>
    %c2 = arith.constant 2 : index
    %c0_8 = arith.constant 0 : index
    %11 = vector.load %arg1[%c2, %c0_8] : memref<8x128xf32, #tpu.memory_space<vmem>>, vector<1x128xf32>
    %c2_9 = arith.constant 2 : index
    %c0_10 = arith.constant 0 : index
    %c0_11 = arith.constant 0 : index
    %12 = vector.load %arg2[%c2_9, %c0_10, %c0_11] : memref<8x32x128xf32, #tpu.memory_space<vmem>>, vector<1x32x128xf32>
    %13 = vector.shape_cast %12 : vector<1x32x128xf32> to vector<32x128xf32>
    %14 = vector.broadcast %11 : vector<1x128xf32> to vector<32x128xf32>
    %15 = arith.mulf %14, %13 : vector<32x128xf32>
    %16 = arith.addf %10, %15 : vector<32x128xf32>
    %c3 = arith.constant 3 : index
    %c0_12 = arith.constant 0 : index
    %17 = vector.load %arg1[%c3, %c0_12] : memref<8x128xf32, #tpu.memory_space<vmem>>, vector<1x128xf32>
    %c3_13 = arith.constant 3 : index
    %c0_14 = arith.constant 0 : index
    %c0_15 = arith.constant 0 : index
    %18 = vector.load %arg2[%c3_13, %c0_14, %c0_15] : memref<8x32x128xf32, #tpu.memory_space<vmem>>, vector<1x32x128xf32>
    %19 = vector.shape_cast %18 : vector<1x32x128xf32> to vector<32x128xf32>
    %20 = vector.broadcast %17 : vector<1x128xf32> to vector<32x128xf32>
    %21 = arith.mulf %20, %19 : vector<32x128xf32>
    %22 = arith.addf %16, %21 : vector<32x128xf32>
    %c4 = arith.constant 4 : index
    %c0_16 = arith.constant 0 : index
    %23 = vector.load %arg1[%c4, %c0_16] : memref<8x128xf32, #tpu.memory_space<vmem>>, vector<1x128xf32>
    %c4_17 = arith.constant 4 : index
    %c0_18 = arith.constant 0 : index
    %c0_19 = arith.constant 0 : index
    %24 = vector.load %arg2[%c4_17, %c0_18, %c0_19] : memref<8x32x128xf32, #tpu.memory_space<vmem>>, vector<1x32x128xf32>
    %25 = vector.shape_cast %24 : vector<1x32x128xf32> to vector<32x128xf32>
    %26 = vector.broadcast %23 : vector<1x128xf32> to vector<32x128xf32>
    %27 = arith.mulf %26, %25 : vector<32x128xf32>
    %28 = arith.addf %22, %27 : vector<32x128xf32>
    %c5 = arith.constant 5 : index
    %c0_20 = arith.constant 0 : index
    %29 = vector.load %arg1[%c5, %c0_20] : memref<8x128xf32, #tpu.memory_space<vmem>>, vector<1x128xf32>
    %c5_21 = arith.constant 5 : index
    %c0_22 = arith.constant 0 : index
    %c0_23 = arith.constant 0 : index
    %30 = vector.load %arg2[%c5_21, %c0_22, %c0_23] : memref<8x32x128xf32, #tpu.memory_space<vmem>>, vector<1x32x128xf32>
    %31 = vector.shape_cast %30 : vector<1x32x128xf32> to vector<32x128xf32>
    %32 = vector.broadcast %29 : vector<1x128xf32> to vector<32x128xf32>
    %33 = arith.mulf %32, %31 : vector<32x128xf32>
    %34 = arith.addf %28, %33 : vector<32x128xf32>
    %c6 = arith.constant 6 : index
    %c0_24 = arith.constant 0 : index
    %35 = vector.load %arg1[%c6, %c0_24] : memref<8x128xf32, #tpu.memory_space<vmem>>, vector<1x128xf32>
    %c6_25 = arith.constant 6 : index
    %c0_26 = arith.constant 0 : index
    %c0_27 = arith.constant 0 : index
    %36 = vector.load %arg2[%c6_25, %c0_26, %c0_27] : memref<8x32x128xf32, #tpu.memory_space<vmem>>, vector<1x32x128xf32>
    %37 = vector.shape_cast %36 : vector<1x32x128xf32> to vector<32x128xf32>
    %38 = vector.broadcast %35 : vector<1x128xf32> to vector<32x128xf32>
    %39 = arith.mulf %38, %37 : vector<32x128xf32>
    %40 = arith.addf %34, %39 : vector<32x128xf32>
    %c7 = arith.constant 7 : index
    %c0_28 = arith.constant 0 : index
    %41 = vector.load %arg1[%c7, %c0_28] : memref<8x128xf32, #tpu.memory_space<vmem>>, vector<1x128xf32>
    %c7_29 = arith.constant 7 : index
    %c0_30 = arith.constant 0 : index
    %c0_31 = arith.constant 0 : index
    %42 = vector.load %arg2[%c7_29, %c0_30, %c0_31] : memref<8x32x128xf32, #tpu.memory_space<vmem>>, vector<1x32x128xf32>
    %43 = vector.shape_cast %42 : vector<1x32x128xf32> to vector<32x128xf32>
    %44 = vector.broadcast %41 : vector<1x128xf32> to vector<32x128xf32>
    %45 = arith.mulf %44, %43 : vector<32x128xf32>
    %46 = arith.addf %40, %45 : vector<32x128xf32>
    %cst = arith.constant dense<0.000000e+00> : vector<32xf32>
    %47 = vector.multi_reduction <add>, %46, %cst [1] : vector<32x128xf32> to vector<32xf32>
    %48 = vector.shape_cast %47 : vector<32xf32> to vector<32x1xf32>
    %49 = arith.mulf %46, %46 : vector<32x128xf32>
    %cst_32 = arith.constant dense<0.000000e+00> : vector<32xf32>
    %50 = vector.multi_reduction <add>, %49, %cst_32 [1] : vector<32x128xf32> to vector<32xf32>
    %51 = vector.shape_cast %50 : vector<32xf32> to vector<32x1xf32>
    %cst_33 = arith.constant 7.812500e-03 : f32
    %52 = vector.broadcast %cst_33 : f32 to vector<32x1xf32>
    %53 = arith.mulf %48, %52 : vector<32x1xf32>
    %cst_34 = arith.constant 7.812500e-03 : f32
    %54 = vector.broadcast %cst_34 : f32 to vector<32x1xf32>
    %55 = arith.mulf %51, %54 : vector<32x1xf32>
    %56 = arith.mulf %53, %53 : vector<32x1xf32>
    %57 = arith.subf %55, %56 : vector<32x1xf32>
    %cst_35 = arith.constant 0.000000e+00 : f32
    %58 = vector.broadcast %cst_35 : f32 to vector<32x1xf32>
    %59 = arith.maximumf %57, %58 : vector<32x1xf32>
    %c0_36 = arith.constant 0 : index
    %c0_37 = arith.constant 0 : index
    %60 = vector.load %arg3[%c0_36, %c0_37] : memref<32x1xf32, #tpu.memory_space<vmem>>, vector<32x1xf32>
    %cst_38 = arith.constant 9.99999974E-6 : f32
    %61 = vector.broadcast %cst_38 : f32 to vector<32x1xf32>
    %62 = arith.addf %59, %61 : vector<32x1xf32>
    %63 = math.rsqrt %62 : vector<32x1xf32>
    %64 = arith.mulf %60, %63 : vector<32x1xf32>
    %c0_39 = arith.constant 0 : index
    %c0_40 = arith.constant 0 : index
    %65 = vector.load %arg4[%c0_39, %c0_40] : memref<32x1xf32, #tpu.memory_space<vmem>>, vector<32x1xf32>
    %66 = arith.mulf %53, %64 : vector<32x1xf32>
    %67 = arith.subf %65, %66 : vector<32x1xf32>
    %68 = vector.broadcast %64 : vector<32x1xf32> to vector<32x128xf32>
    %69 = arith.mulf %46, %68 : vector<32x128xf32>
    %70 = vector.broadcast %67 : vector<32x1xf32> to vector<32x128xf32>
    %71 = arith.addf %69, %70 : vector<32x128xf32>
    %cst_41 = arith.constant 0.000000e+00 : f32
    %72 = vector.broadcast %cst_41 : f32 to vector<32x128xf32>
    %73 = arith.maximumf %71, %72 : vector<32x128xf32>
    %c0_42 = arith.constant 0 : index
    %c0_43 = arith.constant 0 : index
    %74 = vector.load %arg5[%c0_42, %c0_43] : memref<32x128xf32, #tpu.memory_space<vmem>>, vector<32x128xf32>
    tpu.vector_store %arg5[%c0_42, %c0_43], %73 {strides = array<i32>} : memref<32x128xf32, #tpu.memory_space<vmem>>, vector<32x128xf32>,
    return
  }
  func.func @transform_0(%arg0: i32) -> (i32, i32) {
    %c0_i32 = arith.constant 0 : i32
    %c0_i32_0 = arith.constant 0 : i32
    %c0_i32_1 = arith.constant 0 : i32
    return %c0_i32, %c0_i32_0 : i32, i32
  }
  func.func @transform_1(%arg0: i32) -> (i32, i32, i32) {
    %c0_i32 = arith.constant 0 : i32
    %c0_i32_0 = arith.constant 0 : i32
    %c0_i32_1 = arith.constant 0 : i32
    %c0_i32_2 = arith.constant 0 : i32
    return %c0_i32, %c0_i32_0, %c0_i32_1 : i32, i32, i32
  }
  func.func @transform_2(%arg0: i32) -> (i32, i32) {
    %c0_i32 = arith.constant 0 : i32
    %c0_i32_0 = arith.constant 0 : i32
    %c0_i32_1 = arith.constant 0 : i32
    return %c0_i32, %c0_i32_0 : i32, i32
  }
  func.func @transform_3(%arg0: i32) -> (i32, i32) {
    %c0_i32 = arith.constant 0 : i32
    %c0_i32_0 = arith.constant 0 : i32
    %c0_i32_1 = arith.constant 0 : i32
    return %c0_i32, %c0_i32_0 : i32, i32
  }
  func.func @transform_4(%arg0: i32) -> (i32, i32) {
    %c0_i32 = arith.constant 0 : i32
    %c0_i32_0 = arith.constant 0 : i32
    %c0_i32_1 = arith.constant 0 : i32
    return %c0_i32, %c0_i32_0 : i32, i32
  }
}

module attributes {stable_mosaic.version = 11 : i64} {
  func.func @_deconv_bn_relu_kernel(%arg0: i32, %arg1: memref<864x128xbf16, #tpu.memory_space<vmem>>, %arg2: memref<128x864xbf16, #tpu.memory_space<vmem>>, %arg3: memref<16x1xf32, #tpu.memory_space<vmem>>, %arg4: memref<16x1xf32, #tpu.memory_space<vmem>>, %arg5: memref<128x128xf32, #tpu.memory_space<vmem>>) attributes {dimension_semantics = [#tpu.dimension_semantics<arbitrary>], iteration_bounds = array<i64: 1>, scalar_prefetch = 0 : i64, scratch_operands = 0 : i64, tpu.core_type = #tpu.core_type<tc>, window_params = [{pipeline_mode = #tpu.pipeline_mode<synchronous>, transform_indices = @transform_0, window_bounds = array<i64: 864, 128>}, {pipeline_mode = #tpu.pipeline_mode<synchronous>, transform_indices = @transform_1, window_bounds = array<i64: 128, 864>}, {pipeline_mode = #tpu.pipeline_mode<synchronous>, transform_indices = @transform_2, window_bounds = array<i64: 16, 1>}, {pipeline_mode = #tpu.pipeline_mode<synchronous>, transform_indices = @transform_3, window_bounds = array<i64: 16, 1>}, {pipeline_mode = #tpu.pipeline_mode<synchronous>, transform_indices = @transform_4, window_bounds = array<i64: 128, 128>}]} {
    %c0 = arith.constant 0 : index
    %c0_0 = arith.constant 0 : index
    %0 = vector.load %arg2[%c0, %c0_0] : memref<128x864xbf16, #tpu.memory_space<vmem>>, vector<128x864xbf16>
    %c0_1 = arith.constant 0 : index
    %c0_2 = arith.constant 0 : index
    %1 = vector.load %arg1[%c0_1, %c0_2] : memref<864x128xbf16, #tpu.memory_space<vmem>>, vector<864x128xbf16>
    %cst = arith.constant dense<0.000000e+00> : vector<128x128xf32>
    %2 = tpu.matmul %0, %1, %cst {dimension_numbers = #tpu.dot_dimension_numbers<[1], [0], [0], [1], [0, 0, 1, 1], [], []>} : vector<128x864xbf16>, vector<864x128xbf16>, vector<128x128xf32> -> vector<128x128xf32>
    %cst_3 = arith.constant dense<0.000000e+00> : vector<128xf32>
    %3 = vector.multi_reduction <add>, %2, %cst_3 [1] : vector<128x128xf32> to vector<128xf32>
    %4 = vector.shape_cast %3 : vector<128xf32> to vector<128x1xf32>
    %5 = arith.mulf %2, %2 : vector<128x128xf32>
    %cst_4 = arith.constant dense<0.000000e+00> : vector<128xf32>
    %6 = vector.multi_reduction <add>, %5, %cst_4 [1] : vector<128x128xf32> to vector<128xf32>
    %7 = vector.shape_cast %6 : vector<128xf32> to vector<128x1xf32>
    %8 = vector.extract_strided_slice %4 {offsets = [0, 0], sizes = [16, 1], strides = [1, 1]} : vector<128x1xf32> to vector<16x1xf32>
    %9 = vector.extract_strided_slice %7 {offsets = [0, 0], sizes = [16, 1], strides = [1, 1]} : vector<128x1xf32> to vector<16x1xf32>
    %10 = vector.extract_strided_slice %4 {offsets = [16, 0], sizes = [16, 1], strides = [1, 1]} : vector<128x1xf32> to vector<16x1xf32>
    %11 = arith.addf %8, %10 : vector<16x1xf32>
    %12 = vector.extract_strided_slice %7 {offsets = [16, 0], sizes = [16, 1], strides = [1, 1]} : vector<128x1xf32> to vector<16x1xf32>
    %13 = arith.addf %9, %12 : vector<16x1xf32>
    %14 = vector.extract_strided_slice %4 {offsets = [32, 0], sizes = [16, 1], strides = [1, 1]} : vector<128x1xf32> to vector<16x1xf32>
    %15 = arith.addf %11, %14 : vector<16x1xf32>
    %16 = vector.extract_strided_slice %7 {offsets = [32, 0], sizes = [16, 1], strides = [1, 1]} : vector<128x1xf32> to vector<16x1xf32>
    %17 = arith.addf %13, %16 : vector<16x1xf32>
    %18 = vector.extract_strided_slice %4 {offsets = [48, 0], sizes = [16, 1], strides = [1, 1]} : vector<128x1xf32> to vector<16x1xf32>
    %19 = arith.addf %15, %18 : vector<16x1xf32>
    %20 = vector.extract_strided_slice %7 {offsets = [48, 0], sizes = [16, 1], strides = [1, 1]} : vector<128x1xf32> to vector<16x1xf32>
    %21 = arith.addf %17, %20 : vector<16x1xf32>
    %22 = vector.extract_strided_slice %4 {offsets = [64, 0], sizes = [16, 1], strides = [1, 1]} : vector<128x1xf32> to vector<16x1xf32>
    %23 = arith.addf %19, %22 : vector<16x1xf32>
    %24 = vector.extract_strided_slice %7 {offsets = [64, 0], sizes = [16, 1], strides = [1, 1]} : vector<128x1xf32> to vector<16x1xf32>
    %25 = arith.addf %21, %24 : vector<16x1xf32>
    %26 = vector.extract_strided_slice %4 {offsets = [80, 0], sizes = [16, 1], strides = [1, 1]} : vector<128x1xf32> to vector<16x1xf32>
    %27 = arith.addf %23, %26 : vector<16x1xf32>
    %28 = vector.extract_strided_slice %7 {offsets = [80, 0], sizes = [16, 1], strides = [1, 1]} : vector<128x1xf32> to vector<16x1xf32>
    %29 = arith.addf %25, %28 : vector<16x1xf32>
    %30 = vector.extract_strided_slice %4 {offsets = [96, 0], sizes = [16, 1], strides = [1, 1]} : vector<128x1xf32> to vector<16x1xf32>
    %31 = arith.addf %27, %30 : vector<16x1xf32>
    %32 = vector.extract_strided_slice %7 {offsets = [96, 0], sizes = [16, 1], strides = [1, 1]} : vector<128x1xf32> to vector<16x1xf32>
    %33 = arith.addf %29, %32 : vector<16x1xf32>
    %34 = vector.extract_strided_slice %4 {offsets = [112, 0], sizes = [16, 1], strides = [1, 1]} : vector<128x1xf32> to vector<16x1xf32>
    %35 = arith.addf %31, %34 : vector<16x1xf32>
    %36 = vector.extract_strided_slice %7 {offsets = [112, 0], sizes = [16, 1], strides = [1, 1]} : vector<128x1xf32> to vector<16x1xf32>
    %37 = arith.addf %33, %36 : vector<16x1xf32>
    %cst_5 = arith.constant 9.765625E-4 : f32
    %38 = vector.broadcast %cst_5 : f32 to vector<16x1xf32>
    %39 = arith.mulf %35, %38 : vector<16x1xf32>
    %cst_6 = arith.constant 9.765625E-4 : f32
    %40 = vector.broadcast %cst_6 : f32 to vector<16x1xf32>
    %41 = arith.mulf %37, %40 : vector<16x1xf32>
    %42 = arith.mulf %39, %39 : vector<16x1xf32>
    %43 = arith.subf %41, %42 : vector<16x1xf32>
    %cst_7 = arith.constant 0.000000e+00 : f32
    %44 = vector.broadcast %cst_7 : f32 to vector<16x1xf32>
    %45 = arith.maximumf %43, %44 : vector<16x1xf32>
    %c0_8 = arith.constant 0 : index
    %c0_9 = arith.constant 0 : index
    %46 = vector.load %arg3[%c0_8, %c0_9] : memref<16x1xf32, #tpu.memory_space<vmem>>, vector<16x1xf32>
    %cst_10 = arith.constant 9.99999974E-6 : f32
    %47 = vector.broadcast %cst_10 : f32 to vector<16x1xf32>
    %48 = arith.addf %45, %47 : vector<16x1xf32>
    %49 = math.rsqrt %48 : vector<16x1xf32>
    %50 = arith.mulf %46, %49 : vector<16x1xf32>
    %c0_11 = arith.constant 0 : index
    %c0_12 = arith.constant 0 : index
    %51 = vector.load %arg4[%c0_11, %c0_12] : memref<16x1xf32, #tpu.memory_space<vmem>>, vector<16x1xf32>
    %52 = arith.mulf %39, %50 : vector<16x1xf32>
    %53 = arith.subf %51, %52 : vector<16x1xf32>
    %54 = vector.extract_strided_slice %2 {offsets = [0, 0], sizes = [16, 128], strides = [1, 1]} : vector<128x128xf32> to vector<16x128xf32>
    %55 = vector.broadcast %50 : vector<16x1xf32> to vector<16x128xf32>
    %56 = arith.mulf %54, %55 : vector<16x128xf32>
    %57 = vector.broadcast %53 : vector<16x1xf32> to vector<16x128xf32>
    %58 = arith.addf %56, %57 : vector<16x128xf32>
    %cst_13 = arith.constant 0.000000e+00 : f32
    %59 = vector.broadcast %cst_13 : f32 to vector<16x128xf32>
    %60 = arith.maximumf %58, %59 : vector<16x128xf32>
    %c0_14 = arith.constant 0 : index
    %c0_15 = arith.constant 0 : index
    %61 = vector.load %arg5[%c0_14, %c0_15] : memref<128x128xf32, #tpu.memory_space<vmem>>, vector<16x128xf32>
    tpu.vector_store %arg5[%c0_14, %c0_15], %60 {strides = array<i32>} : memref<128x128xf32, #tpu.memory_space<vmem>>, vector<16x128xf32>,
    %62 = vector.extract_strided_slice %2 {offsets = [16, 0], sizes = [16, 128], strides = [1, 1]} : vector<128x128xf32> to vector<16x128xf32>
    %63 = vector.broadcast %50 : vector<16x1xf32> to vector<16x128xf32>
    %64 = arith.mulf %62, %63 : vector<16x128xf32>
    %65 = vector.broadcast %53 : vector<16x1xf32> to vector<16x128xf32>
    %66 = arith.addf %64, %65 : vector<16x128xf32>
    %cst_16 = arith.constant 0.000000e+00 : f32
    %67 = vector.broadcast %cst_16 : f32 to vector<16x128xf32>
    %68 = arith.maximumf %66, %67 : vector<16x128xf32>
    %c16 = arith.constant 16 : index
    %c0_17 = arith.constant 0 : index
    %69 = vector.load %arg5[%c16, %c0_17] : memref<128x128xf32, #tpu.memory_space<vmem>>, vector<16x128xf32>
    tpu.vector_store %arg5[%c16, %c0_17], %68 {strides = array<i32>} : memref<128x128xf32, #tpu.memory_space<vmem>>, vector<16x128xf32>,
    %70 = vector.extract_strided_slice %2 {offsets = [32, 0], sizes = [16, 128], strides = [1, 1]} : vector<128x128xf32> to vector<16x128xf32>
    %71 = vector.broadcast %50 : vector<16x1xf32> to vector<16x128xf32>
    %72 = arith.mulf %70, %71 : vector<16x128xf32>
    %73 = vector.broadcast %53 : vector<16x1xf32> to vector<16x128xf32>
    %74 = arith.addf %72, %73 : vector<16x128xf32>
    %cst_18 = arith.constant 0.000000e+00 : f32
    %75 = vector.broadcast %cst_18 : f32 to vector<16x128xf32>
    %76 = arith.maximumf %74, %75 : vector<16x128xf32>
    %c32 = arith.constant 32 : index
    %c0_19 = arith.constant 0 : index
    %77 = vector.load %arg5[%c32, %c0_19] : memref<128x128xf32, #tpu.memory_space<vmem>>, vector<16x128xf32>
    tpu.vector_store %arg5[%c32, %c0_19], %76 {strides = array<i32>} : memref<128x128xf32, #tpu.memory_space<vmem>>, vector<16x128xf32>,
    %78 = vector.extract_strided_slice %2 {offsets = [48, 0], sizes = [16, 128], strides = [1, 1]} : vector<128x128xf32> to vector<16x128xf32>
    %79 = vector.broadcast %50 : vector<16x1xf32> to vector<16x128xf32>
    %80 = arith.mulf %78, %79 : vector<16x128xf32>
    %81 = vector.broadcast %53 : vector<16x1xf32> to vector<16x128xf32>
    %82 = arith.addf %80, %81 : vector<16x128xf32>
    %cst_20 = arith.constant 0.000000e+00 : f32
    %83 = vector.broadcast %cst_20 : f32 to vector<16x128xf32>
    %84 = arith.maximumf %82, %83 : vector<16x128xf32>
    %c48 = arith.constant 48 : index
    %c0_21 = arith.constant 0 : index
    %85 = vector.load %arg5[%c48, %c0_21] : memref<128x128xf32, #tpu.memory_space<vmem>>, vector<16x128xf32>
    tpu.vector_store %arg5[%c48, %c0_21], %84 {strides = array<i32>} : memref<128x128xf32, #tpu.memory_space<vmem>>, vector<16x128xf32>,
    %86 = vector.extract_strided_slice %2 {offsets = [64, 0], sizes = [16, 128], strides = [1, 1]} : vector<128x128xf32> to vector<16x128xf32>
    %87 = vector.broadcast %50 : vector<16x1xf32> to vector<16x128xf32>
    %88 = arith.mulf %86, %87 : vector<16x128xf32>
    %89 = vector.broadcast %53 : vector<16x1xf32> to vector<16x128xf32>
    %90 = arith.addf %88, %89 : vector<16x128xf32>
    %cst_22 = arith.constant 0.000000e+00 : f32
    %91 = vector.broadcast %cst_22 : f32 to vector<16x128xf32>
    %92 = arith.maximumf %90, %91 : vector<16x128xf32>
    %c64 = arith.constant 64 : index
    %c0_23 = arith.constant 0 : index
    %93 = vector.load %arg5[%c64, %c0_23] : memref<128x128xf32, #tpu.memory_space<vmem>>, vector<16x128xf32>
    tpu.vector_store %arg5[%c64, %c0_23], %92 {strides = array<i32>} : memref<128x128xf32, #tpu.memory_space<vmem>>, vector<16x128xf32>,
    %94 = vector.extract_strided_slice %2 {offsets = [80, 0], sizes = [16, 128], strides = [1, 1]} : vector<128x128xf32> to vector<16x128xf32>
    %95 = vector.broadcast %50 : vector<16x1xf32> to vector<16x128xf32>
    %96 = arith.mulf %94, %95 : vector<16x128xf32>
    %97 = vector.broadcast %53 : vector<16x1xf32> to vector<16x128xf32>
    %98 = arith.addf %96, %97 : vector<16x128xf32>
    %cst_24 = arith.constant 0.000000e+00 : f32
    %99 = vector.broadcast %cst_24 : f32 to vector<16x128xf32>
    %100 = arith.maximumf %98, %99 : vector<16x128xf32>
    %c80 = arith.constant 80 : index
    %c0_25 = arith.constant 0 : index
    %101 = vector.load %arg5[%c80, %c0_25] : memref<128x128xf32, #tpu.memory_space<vmem>>, vector<16x128xf32>
    tpu.vector_store %arg5[%c80, %c0_25], %100 {strides = array<i32>} : memref<128x128xf32, #tpu.memory_space<vmem>>, vector<16x128xf32>,
    %102 = vector.extract_strided_slice %2 {offsets = [96, 0], sizes = [16, 128], strides = [1, 1]} : vector<128x128xf32> to vector<16x128xf32>
    %103 = vector.broadcast %50 : vector<16x1xf32> to vector<16x128xf32>
    %104 = arith.mulf %102, %103 : vector<16x128xf32>
    %105 = vector.broadcast %53 : vector<16x1xf32> to vector<16x128xf32>
    %106 = arith.addf %104, %105 : vector<16x128xf32>
    %cst_26 = arith.constant 0.000000e+00 : f32
    %107 = vector.broadcast %cst_26 : f32 to vector<16x128xf32>
    %108 = arith.maximumf %106, %107 : vector<16x128xf32>
    %c96 = arith.constant 96 : index
    %c0_27 = arith.constant 0 : index
    %109 = vector.load %arg5[%c96, %c0_27] : memref<128x128xf32, #tpu.memory_space<vmem>>, vector<16x128xf32>
    tpu.vector_store %arg5[%c96, %c0_27], %108 {strides = array<i32>} : memref<128x128xf32, #tpu.memory_space<vmem>>, vector<16x128xf32>,
    %110 = vector.extract_strided_slice %2 {offsets = [112, 0], sizes = [16, 128], strides = [1, 1]} : vector<128x128xf32> to vector<16x128xf32>
    %111 = vector.broadcast %50 : vector<16x1xf32> to vector<16x128xf32>
    %112 = arith.mulf %110, %111 : vector<16x128xf32>
    %113 = vector.broadcast %53 : vector<16x1xf32> to vector<16x128xf32>
    %114 = arith.addf %112, %113 : vector<16x128xf32>
    %cst_28 = arith.constant 0.000000e+00 : f32
    %115 = vector.broadcast %cst_28 : f32 to vector<16x128xf32>
    %116 = arith.maximumf %114, %115 : vector<16x128xf32>
    %c112 = arith.constant 112 : index
    %c0_29 = arith.constant 0 : index
    %117 = vector.load %arg5[%c112, %c0_29] : memref<128x128xf32, #tpu.memory_space<vmem>>, vector<16x128xf32>
    tpu.vector_store %arg5[%c112, %c0_29], %116 {strides = array<i32>} : memref<128x128xf32, #tpu.memory_space<vmem>>, vector<16x128xf32>,
    return
  }
  func.func @transform_0(%arg0: i32) -> (i32, i32) {
    %c0_i32 = arith.constant 0 : i32
    %c0_i32_0 = arith.constant 0 : i32
    %c0_i32_1 = arith.constant 0 : i32
    return %c0_i32, %c0_i32_0 : i32, i32
  }
  func.func @transform_1(%arg0: i32) -> (i32, i32) {
    %c0_i32 = arith.constant 0 : i32
    %c0_i32_0 = arith.constant 0 : i32
    %c0_i32_1 = arith.constant 0 : i32
    return %c0_i32, %c0_i32_0 : i32, i32
  }
  func.func @transform_2(%arg0: i32) -> (i32, i32) {
    %c0_i32 = arith.constant 0 : i32
    %c0_i32_0 = arith.constant 0 : i32
    %c0_i32_1 = arith.constant 0 : i32
    return %c0_i32, %c0_i32_0 : i32, i32
  }
  func.func @transform_3(%arg0: i32) -> (i32, i32) {
    %c0_i32 = arith.constant 0 : i32
    %c0_i32_0 = arith.constant 0 : i32
    %c0_i32_1 = arith.constant 0 : i32
    return %c0_i32, %c0_i32_0 : i32, i32
  }
  func.func @transform_4(%arg0: i32) -> (i32, i32) {
    %c0_i32 = arith.constant 0 : i32
    %c0_i32_0 = arith.constant 0 : i32
    %c0_i32_1 = arith.constant 0 : i32
    return %c0_i32, %c0_i32_0 : i32, i32
  }
}

module attributes {stable_mosaic.version = 11 : i64} {
  func.func @_deconv_bn_relu_kernel(%arg0: i32, %arg1: memref<432x1024xbf16, #tpu.memory_space<vmem>>, %arg2: memref<64x432xbf16, #tpu.memory_space<vmem>>, %arg3: memref<8x1xf32, #tpu.memory_space<vmem>>, %arg4: memref<8x1xf32, #tpu.memory_space<vmem>>, %arg5: memref<64x1024xf32, #tpu.memory_space<vmem>>) attributes {dimension_semantics = [#tpu.dimension_semantics<arbitrary>], iteration_bounds = array<i64: 1>, scalar_prefetch = 0 : i64, scratch_operands = 0 : i64, tpu.core_type = #tpu.core_type<tc>, window_params = [{pipeline_mode = #tpu.pipeline_mode<synchronous>, transform_indices = @transform_0, window_bounds = array<i64: 432, 1024>}, {pipeline_mode = #tpu.pipeline_mode<synchronous>, transform_indices = @transform_1, window_bounds = array<i64: 64, 432>}, {pipeline_mode = #tpu.pipeline_mode<synchronous>, transform_indices = @transform_2, window_bounds = array<i64: 8, 1>}, {pipeline_mode = #tpu.pipeline_mode<synchronous>, transform_indices = @transform_3, window_bounds = array<i64: 8, 1>}, {pipeline_mode = #tpu.pipeline_mode<synchronous>, transform_indices = @transform_4, window_bounds = array<i64: 64, 1024>}]} {
    %c0 = arith.constant 0 : index
    %c0_0 = arith.constant 0 : index
    %0 = vector.load %arg2[%c0, %c0_0] : memref<64x432xbf16, #tpu.memory_space<vmem>>, vector<64x432xbf16>
    %c0_1 = arith.constant 0 : index
    %c0_2 = arith.constant 0 : index
    %1 = vector.load %arg1[%c0_1, %c0_2] : memref<432x1024xbf16, #tpu.memory_space<vmem>>, vector<432x1024xbf16>
    %cst = arith.constant dense<0.000000e+00> : vector<64x1024xf32>
    %2 = tpu.matmul %0, %1, %cst {dimension_numbers = #tpu.dot_dimension_numbers<[1], [0], [0], [1], [0, 0, 1, 1], [], []>} : vector<64x432xbf16>, vector<432x1024xbf16>, vector<64x1024xf32> -> vector<64x1024xf32>
    %cst_3 = arith.constant dense<0.000000e+00> : vector<64xf32>
    %3 = vector.multi_reduction <add>, %2, %cst_3 [1] : vector<64x1024xf32> to vector<64xf32>
    %4 = vector.shape_cast %3 : vector<64xf32> to vector<64x1xf32>
    %5 = arith.mulf %2, %2 : vector<64x1024xf32>
    %cst_4 = arith.constant dense<0.000000e+00> : vector<64xf32>
    %6 = vector.multi_reduction <add>, %5, %cst_4 [1] : vector<64x1024xf32> to vector<64xf32>
    %7 = vector.shape_cast %6 : vector<64xf32> to vector<64x1xf32>
    %8 = vector.extract_strided_slice %4 {offsets = [0, 0], sizes = [8, 1], strides = [1, 1]} : vector<64x1xf32> to vector<8x1xf32>
    %9 = vector.extract_strided_slice %7 {offsets = [0, 0], sizes = [8, 1], strides = [1, 1]} : vector<64x1xf32> to vector<8x1xf32>
    %10 = vector.extract_strided_slice %4 {offsets = [8, 0], sizes = [8, 1], strides = [1, 1]} : vector<64x1xf32> to vector<8x1xf32>
    %11 = arith.addf %8, %10 : vector<8x1xf32>
    %12 = vector.extract_strided_slice %7 {offsets = [8, 0], sizes = [8, 1], strides = [1, 1]} : vector<64x1xf32> to vector<8x1xf32>
    %13 = arith.addf %9, %12 : vector<8x1xf32>
    %14 = vector.extract_strided_slice %4 {offsets = [16, 0], sizes = [8, 1], strides = [1, 1]} : vector<64x1xf32> to vector<8x1xf32>
    %15 = arith.addf %11, %14 : vector<8x1xf32>
    %16 = vector.extract_strided_slice %7 {offsets = [16, 0], sizes = [8, 1], strides = [1, 1]} : vector<64x1xf32> to vector<8x1xf32>
    %17 = arith.addf %13, %16 : vector<8x1xf32>
    %18 = vector.extract_strided_slice %4 {offsets = [24, 0], sizes = [8, 1], strides = [1, 1]} : vector<64x1xf32> to vector<8x1xf32>
    %19 = arith.addf %15, %18 : vector<8x1xf32>
    %20 = vector.extract_strided_slice %7 {offsets = [24, 0], sizes = [8, 1], strides = [1, 1]} : vector<64x1xf32> to vector<8x1xf32>
    %21 = arith.addf %17, %20 : vector<8x1xf32>
    %22 = vector.extract_strided_slice %4 {offsets = [32, 0], sizes = [8, 1], strides = [1, 1]} : vector<64x1xf32> to vector<8x1xf32>
    %23 = arith.addf %19, %22 : vector<8x1xf32>
    %24 = vector.extract_strided_slice %7 {offsets = [32, 0], sizes = [8, 1], strides = [1, 1]} : vector<64x1xf32> to vector<8x1xf32>
    %25 = arith.addf %21, %24 : vector<8x1xf32>
    %26 = vector.extract_strided_slice %4 {offsets = [40, 0], sizes = [8, 1], strides = [1, 1]} : vector<64x1xf32> to vector<8x1xf32>
    %27 = arith.addf %23, %26 : vector<8x1xf32>
    %28 = vector.extract_strided_slice %7 {offsets = [40, 0], sizes = [8, 1], strides = [1, 1]} : vector<64x1xf32> to vector<8x1xf32>
    %29 = arith.addf %25, %28 : vector<8x1xf32>
    %30 = vector.extract_strided_slice %4 {offsets = [48, 0], sizes = [8, 1], strides = [1, 1]} : vector<64x1xf32> to vector<8x1xf32>
    %31 = arith.addf %27, %30 : vector<8x1xf32>
    %32 = vector.extract_strided_slice %7 {offsets = [48, 0], sizes = [8, 1], strides = [1, 1]} : vector<64x1xf32> to vector<8x1xf32>
    %33 = arith.addf %29, %32 : vector<8x1xf32>
    %34 = vector.extract_strided_slice %4 {offsets = [56, 0], sizes = [8, 1], strides = [1, 1]} : vector<64x1xf32> to vector<8x1xf32>
    %35 = arith.addf %31, %34 : vector<8x1xf32>
    %36 = vector.extract_strided_slice %7 {offsets = [56, 0], sizes = [8, 1], strides = [1, 1]} : vector<64x1xf32> to vector<8x1xf32>
    %37 = arith.addf %33, %36 : vector<8x1xf32>
    %cst_5 = arith.constant 1.22070313E-4 : f32
    %38 = vector.broadcast %cst_5 : f32 to vector<8x1xf32>
    %39 = arith.mulf %35, %38 : vector<8x1xf32>
    %cst_6 = arith.constant 1.22070313E-4 : f32
    %40 = vector.broadcast %cst_6 : f32 to vector<8x1xf32>
    %41 = arith.mulf %37, %40 : vector<8x1xf32>
    %42 = arith.mulf %39, %39 : vector<8x1xf32>
    %43 = arith.subf %41, %42 : vector<8x1xf32>
    %cst_7 = arith.constant 0.000000e+00 : f32
    %44 = vector.broadcast %cst_7 : f32 to vector<8x1xf32>
    %45 = arith.maximumf %43, %44 : vector<8x1xf32>
    %c0_8 = arith.constant 0 : index
    %c0_9 = arith.constant 0 : index
    %46 = vector.load %arg3[%c0_8, %c0_9] : memref<8x1xf32, #tpu.memory_space<vmem>>, vector<8x1xf32>
    %cst_10 = arith.constant 9.99999974E-6 : f32
    %47 = vector.broadcast %cst_10 : f32 to vector<8x1xf32>
    %48 = arith.addf %45, %47 : vector<8x1xf32>
    %49 = math.rsqrt %48 : vector<8x1xf32>
    %50 = arith.mulf %46, %49 : vector<8x1xf32>
    %c0_11 = arith.constant 0 : index
    %c0_12 = arith.constant 0 : index
    %51 = vector.load %arg4[%c0_11, %c0_12] : memref<8x1xf32, #tpu.memory_space<vmem>>, vector<8x1xf32>
    %52 = arith.mulf %39, %50 : vector<8x1xf32>
    %53 = arith.subf %51, %52 : vector<8x1xf32>
    %54 = vector.extract_strided_slice %2 {offsets = [0, 0], sizes = [8, 1024], strides = [1, 1]} : vector<64x1024xf32> to vector<8x1024xf32>
    %55 = vector.broadcast %50 : vector<8x1xf32> to vector<8x1024xf32>
    %56 = arith.mulf %54, %55 : vector<8x1024xf32>
    %57 = vector.broadcast %53 : vector<8x1xf32> to vector<8x1024xf32>
    %58 = arith.addf %56, %57 : vector<8x1024xf32>
    %cst_13 = arith.constant 0.000000e+00 : f32
    %59 = vector.broadcast %cst_13 : f32 to vector<8x1024xf32>
    %60 = arith.maximumf %58, %59 : vector<8x1024xf32>
    %c0_14 = arith.constant 0 : index
    %c0_15 = arith.constant 0 : index
    %61 = vector.load %arg5[%c0_14, %c0_15] : memref<64x1024xf32, #tpu.memory_space<vmem>>, vector<8x1024xf32>
    tpu.vector_store %arg5[%c0_14, %c0_15], %60 {strides = array<i32>} : memref<64x1024xf32, #tpu.memory_space<vmem>>, vector<8x1024xf32>,
    %62 = vector.extract_strided_slice %2 {offsets = [8, 0], sizes = [8, 1024], strides = [1, 1]} : vector<64x1024xf32> to vector<8x1024xf32>
    %63 = vector.broadcast %50 : vector<8x1xf32> to vector<8x1024xf32>
    %64 = arith.mulf %62, %63 : vector<8x1024xf32>
    %65 = vector.broadcast %53 : vector<8x1xf32> to vector<8x1024xf32>
    %66 = arith.addf %64, %65 : vector<8x1024xf32>
    %cst_16 = arith.constant 0.000000e+00 : f32
    %67 = vector.broadcast %cst_16 : f32 to vector<8x1024xf32>
    %68 = arith.maximumf %66, %67 : vector<8x1024xf32>
    %c8 = arith.constant 8 : index
    %c0_17 = arith.constant 0 : index
    %69 = vector.load %arg5[%c8, %c0_17] : memref<64x1024xf32, #tpu.memory_space<vmem>>, vector<8x1024xf32>
    tpu.vector_store %arg5[%c8, %c0_17], %68 {strides = array<i32>} : memref<64x1024xf32, #tpu.memory_space<vmem>>, vector<8x1024xf32>,
    %70 = vector.extract_strided_slice %2 {offsets = [16, 0], sizes = [8, 1024], strides = [1, 1]} : vector<64x1024xf32> to vector<8x1024xf32>
    %71 = vector.broadcast %50 : vector<8x1xf32> to vector<8x1024xf32>
    %72 = arith.mulf %70, %71 : vector<8x1024xf32>
    %73 = vector.broadcast %53 : vector<8x1xf32> to vector<8x1024xf32>
    %74 = arith.addf %72, %73 : vector<8x1024xf32>
    %cst_18 = arith.constant 0.000000e+00 : f32
    %75 = vector.broadcast %cst_18 : f32 to vector<8x1024xf32>
    %76 = arith.maximumf %74, %75 : vector<8x1024xf32>
    %c16 = arith.constant 16 : index
    %c0_19 = arith.constant 0 : index
    %77 = vector.load %arg5[%c16, %c0_19] : memref<64x1024xf32, #tpu.memory_space<vmem>>, vector<8x1024xf32>
    tpu.vector_store %arg5[%c16, %c0_19], %76 {strides = array<i32>} : memref<64x1024xf32, #tpu.memory_space<vmem>>, vector<8x1024xf32>,
    %78 = vector.extract_strided_slice %2 {offsets = [24, 0], sizes = [8, 1024], strides = [1, 1]} : vector<64x1024xf32> to vector<8x1024xf32>
    %79 = vector.broadcast %50 : vector<8x1xf32> to vector<8x1024xf32>
    %80 = arith.mulf %78, %79 : vector<8x1024xf32>
    %81 = vector.broadcast %53 : vector<8x1xf32> to vector<8x1024xf32>
    %82 = arith.addf %80, %81 : vector<8x1024xf32>
    %cst_20 = arith.constant 0.000000e+00 : f32
    %83 = vector.broadcast %cst_20 : f32 to vector<8x1024xf32>
    %84 = arith.maximumf %82, %83 : vector<8x1024xf32>
    %c24 = arith.constant 24 : index
    %c0_21 = arith.constant 0 : index
    %85 = vector.load %arg5[%c24, %c0_21] : memref<64x1024xf32, #tpu.memory_space<vmem>>, vector<8x1024xf32>
    tpu.vector_store %arg5[%c24, %c0_21], %84 {strides = array<i32>} : memref<64x1024xf32, #tpu.memory_space<vmem>>, vector<8x1024xf32>,
    %86 = vector.extract_strided_slice %2 {offsets = [32, 0], sizes = [8, 1024], strides = [1, 1]} : vector<64x1024xf32> to vector<8x1024xf32>
    %87 = vector.broadcast %50 : vector<8x1xf32> to vector<8x1024xf32>
    %88 = arith.mulf %86, %87 : vector<8x1024xf32>
    %89 = vector.broadcast %53 : vector<8x1xf32> to vector<8x1024xf32>
    %90 = arith.addf %88, %89 : vector<8x1024xf32>
    %cst_22 = arith.constant 0.000000e+00 : f32
    %91 = vector.broadcast %cst_22 : f32 to vector<8x1024xf32>
    %92 = arith.maximumf %90, %91 : vector<8x1024xf32>
    %c32 = arith.constant 32 : index
    %c0_23 = arith.constant 0 : index
    %93 = vector.load %arg5[%c32, %c0_23] : memref<64x1024xf32, #tpu.memory_space<vmem>>, vector<8x1024xf32>
    tpu.vector_store %arg5[%c32, %c0_23], %92 {strides = array<i32>} : memref<64x1024xf32, #tpu.memory_space<vmem>>, vector<8x1024xf32>,
    %94 = vector.extract_strided_slice %2 {offsets = [40, 0], sizes = [8, 1024], strides = [1, 1]} : vector<64x1024xf32> to vector<8x1024xf32>
    %95 = vector.broadcast %50 : vector<8x1xf32> to vector<8x1024xf32>
    %96 = arith.mulf %94, %95 : vector<8x1024xf32>
    %97 = vector.broadcast %53 : vector<8x1xf32> to vector<8x1024xf32>
    %98 = arith.addf %96, %97 : vector<8x1024xf32>
    %cst_24 = arith.constant 0.000000e+00 : f32
    %99 = vector.broadcast %cst_24 : f32 to vector<8x1024xf32>
    %100 = arith.maximumf %98, %99 : vector<8x1024xf32>
    %c40 = arith.constant 40 : index
    %c0_25 = arith.constant 0 : index
    %101 = vector.load %arg5[%c40, %c0_25] : memref<64x1024xf32, #tpu.memory_space<vmem>>, vector<8x1024xf32>
    tpu.vector_store %arg5[%c40, %c0_25], %100 {strides = array<i32>} : memref<64x1024xf32, #tpu.memory_space<vmem>>, vector<8x1024xf32>,
    %102 = vector.extract_strided_slice %2 {offsets = [48, 0], sizes = [8, 1024], strides = [1, 1]} : vector<64x1024xf32> to vector<8x1024xf32>
    %103 = vector.broadcast %50 : vector<8x1xf32> to vector<8x1024xf32>
    %104 = arith.mulf %102, %103 : vector<8x1024xf32>
    %105 = vector.broadcast %53 : vector<8x1xf32> to vector<8x1024xf32>
    %106 = arith.addf %104, %105 : vector<8x1024xf32>
    %cst_26 = arith.constant 0.000000e+00 : f32
    %107 = vector.broadcast %cst_26 : f32 to vector<8x1024xf32>
    %108 = arith.maximumf %106, %107 : vector<8x1024xf32>
    %c48 = arith.constant 48 : index
    %c0_27 = arith.constant 0 : index
    %109 = vector.load %arg5[%c48, %c0_27] : memref<64x1024xf32, #tpu.memory_space<vmem>>, vector<8x1024xf32>
    tpu.vector_store %arg5[%c48, %c0_27], %108 {strides = array<i32>} : memref<64x1024xf32, #tpu.memory_space<vmem>>, vector<8x1024xf32>,
    %110 = vector.extract_strided_slice %2 {offsets = [56, 0], sizes = [8, 1024], strides = [1, 1]} : vector<64x1024xf32> to vector<8x1024xf32>
    %111 = vector.broadcast %50 : vector<8x1xf32> to vector<8x1024xf32>
    %112 = arith.mulf %110, %111 : vector<8x1024xf32>
    %113 = vector.broadcast %53 : vector<8x1xf32> to vector<8x1024xf32>
    %114 = arith.addf %112, %113 : vector<8x1024xf32>
    %cst_28 = arith.constant 0.000000e+00 : f32
    %115 = vector.broadcast %cst_28 : f32 to vector<8x1024xf32>
    %116 = arith.maximumf %114, %115 : vector<8x1024xf32>
    %c56 = arith.constant 56 : index
    %c0_29 = arith.constant 0 : index
    %117 = vector.load %arg5[%c56, %c0_29] : memref<64x1024xf32, #tpu.memory_space<vmem>>, vector<8x1024xf32>
    tpu.vector_store %arg5[%c56, %c0_29], %116 {strides = array<i32>} : memref<64x1024xf32, #tpu.memory_space<vmem>>, vector<8x1024xf32>,
    return
  }
  func.func @transform_0(%arg0: i32) -> (i32, i32) {
    %c0_i32 = arith.constant 0 : i32
    %c0_i32_0 = arith.constant 0 : i32
    %c0_i32_1 = arith.constant 0 : i32
    return %c0_i32, %c0_i32_0 : i32, i32
  }
  func.func @transform_1(%arg0: i32) -> (i32, i32) {
    %c0_i32 = arith.constant 0 : i32
    %c0_i32_0 = arith.constant 0 : i32
    %c0_i32_1 = arith.constant 0 : i32
    return %c0_i32, %c0_i32_0 : i32, i32
  }
  func.func @transform_2(%arg0: i32) -> (i32, i32) {
    %c0_i32 = arith.constant 0 : i32
    %c0_i32_0 = arith.constant 0 : i32
    %c0_i32_1 = arith.constant 0 : i32
    return %c0_i32, %c0_i32_0 : i32, i32
  }
  func.func @transform_3(%arg0: i32) -> (i32, i32) {
    %c0_i32 = arith.constant 0 : i32
    %c0_i32_0 = arith.constant 0 : i32
    %c0_i32_1 = arith.constant 0 : i32
    return %c0_i32, %c0_i32_0 : i32, i32
  }
  func.func @transform_4(%arg0: i32) -> (i32, i32) {
    %c0_i32 = arith.constant 0 : i32
    %c0_i32_0 = arith.constant 0 : i32
    %c0_i32_1 = arith.constant 0 : i32
    return %c0_i32, %c0_i32_0 : i32, i32
  }
}

module attributes {stable_mosaic.version = 11 : i64} {
  func.func @_deconv_sigmoid_kernel(%arg0: i32, %arg1: memref<216x2048xbf16, #tpu.memory_space<vmem>>, %arg2: memref<8x216xbf16, #tpu.memory_space<vmem>>, %arg3: memref<8x2048xf32, #tpu.memory_space<vmem>>) attributes {dimension_semantics = [#tpu.dimension_semantics<parallel>], iteration_bounds = array<i64: 4>, scalar_prefetch = 0 : i64, scratch_operands = 0 : i64, tpu.core_type = #tpu.core_type<tc>, window_params = [{transform_indices = @transform_0, window_bounds = array<i64: 216, 2048>}, {pipeline_mode = #tpu.pipeline_mode<synchronous>, transform_indices = @transform_1, window_bounds = array<i64: 8, 216>}, {transform_indices = @transform_2, window_bounds = array<i64: 8, 2048>}]} {
    %c0 = arith.constant 0 : index
    %c0_0 = arith.constant 0 : index
    %0 = vector.load %arg2[%c0, %c0_0] : memref<8x216xbf16, #tpu.memory_space<vmem>>, vector<8x216xbf16>
    %c0_1 = arith.constant 0 : index
    %c0_2 = arith.constant 0 : index
    %1 = vector.load %arg1[%c0_1, %c0_2] : memref<216x2048xbf16, #tpu.memory_space<vmem>>, vector<216x2048xbf16>
    %cst = arith.constant dense<0.000000e+00> : vector<8x2048xf32>
    %2 = tpu.matmul %0, %1, %cst {dimension_numbers = #tpu.dot_dimension_numbers<[1], [0], [0], [1], [0, 0, 1, 1], [], []>} : vector<8x216xbf16>, vector<216x2048xbf16>, vector<8x2048xf32> -> vector<8x2048xf32>
    %3 = arith.negf %2 : vector<8x2048xf32>
    %4 = math.exp %3 : vector<8x2048xf32>
    %cst_3 = arith.constant 1.000000e+00 : f32
    %5 = vector.broadcast %cst_3 : f32 to vector<8x2048xf32>
    %6 = arith.addf %5, %4 : vector<8x2048xf32>
    %7 = arith.divf %5, %6 : vector<8x2048xf32>
    %c0_4 = arith.constant 0 : index
    %c0_5 = arith.constant 0 : index
    %8 = vector.load %arg3[%c0_4, %c0_5] : memref<8x2048xf32, #tpu.memory_space<vmem>>, vector<8x2048xf32>
    tpu.vector_store %arg3[%c0_4, %c0_5], %7 {strides = array<i32>} : memref<8x2048xf32, #tpu.memory_space<vmem>>, vector<8x2048xf32>,
    return
  }
  func.func @transform_0(%arg0: i32) -> (i32, i32) {
    %c0_i32 = arith.constant 0 : i32
    %c0_i32_0 = arith.constant 0 : i32
    return %c0_i32, %arg0 : i32, i32
  }
  func.func @transform_1(%arg0: i32) -> (i32, i32) {
    %c0_i32 = arith.constant 0 : i32
    %c0_i32_0 = arith.constant 0 : i32
    %c0_i32_1 = arith.constant 0 : i32
    return %c0_i32, %c0_i32_0 : i32, i32
  }
  func.func @transform_2(%arg0: i32) -> (i32, i32) {
    %c0_i32 = arith.constant 0 : i32
    %c0_i32_0 = arith.constant 0 : i32
    return %c0_i32, %arg0 : i32, i32
  }
}

</mosaic_0001>

<bundles_post_ra>
// kernel: tile.7
= control target key start
LH: loop header
LB: loop body
LE: loop exit
PB: predicated region body
PF: predicated region fallthrough
CT: control target
= control target key end

     0   :  { %vm1282_vm0 = vcmask 1047556   ;;  %s2488_s10 = smov 64   ;;  %vm1284_vm1 = vcmask 523264   ;;  %vm1573_vm2 = vcmask 1048064   ;;  %s3619_s0 = inlined_call_operand.vmem [shape: f32[8,32,2,64], index: 0, kind: input, shape index: {}]   ;;  %s3620_s1 = inlined_call_operand.vmem [shape: f32[8,32,128], index: 1, kind: output, shape index: {}]  }
   0x1   :  { %v2418_v0 = vld [vmem:[%s3619_s0 + $0xe] sm:$0x3]  ;;  %v2419_v1 = vld [vmem:[%s3619_s0 + $0xc] sm:$0x3]  ;;  %v2420_v2 = vld [vmem:[%s3619_s0 + $0xa] sm:$0x3] }
   0x2   :  { %1248 = vst [vmem:[#allocation0 + $0x38] sm:$0x3] %v2418_v0  ;;  %1253 = vst [vmem:[#allocation0 + $0x30] sm:$0x3] %v2419_v1  ;;  %v2421_v3 = vld [vmem:[%s3619_s0 + $0x8] sm:$0x3] }
   0x3   :  { %1258 = vst [vmem:[#allocation0 + $0x28] sm:$0x3] %v2420_v2  ;;  %v2422_v4 = vld [vmem:[%s3619_s0 + $0x6] sm:$0x3]  ;;  %v2423_v5 = vld [vmem:[%s3619_s0 + $0x4] sm:$0x3] }
   0x4   :  { %1263 = vst [vmem:[#allocation0 + $0x20] sm:$0x3] %v2421_v3  ;;  %1268 = vst [vmem:[#allocation0 + $0x18] sm:$0x3] %v2422_v4  ;;  %v2424_v6 = vld [vmem:[%s3619_s0 + $0x2] sm:$0x3] }
   0x5   :  { %1273 = vst [vmem:[#allocation0 + $0x10] sm:$0x3] %v2423_v5  ;;  %v1278_v7 = vld [vmem:[%s3619_s0] sm:$0x3]  ;;  %1277 = vst [vmem:[#allocation0 + $0x8] sm:$0x3] %v2424_v6 }
   0x6   :  { %1279 = vst [vmem:[#allocation0] sm:$0x3] %v1278_v7  ;;  %v2354_v8 = vld [vmem:[%s3619_s0 + $0x8e] sm:$0x3]  ;;  %v2355_v9 = vld [vmem:[%s3619_s0 + $0x8c] sm:$0x3] }
   0x7   :  { %v2356_v10 = vld [vmem:[%s3619_s0 + $0x8a] sm:$0x3]  ;;  %928 = vst [vmem:[#allocation0 + $0x238] sm:$0x3] %v2354_v8  ;;  %933 = vst [vmem:[#allocation0 + $0x230] sm:$0x3] %v2355_v9 }
   0x8   :  { %938 = vst [vmem:[#allocation0 + $0x228] sm:$0x3] %v2356_v10  ;;  %v2357_v11 = vld [vmem:[%s3619_s0 + $0x88] sm:$0x3]  ;;  %v2358_v12 = vld [vmem:[%s3619_s0 + $0x86] sm:$0x3] }
   0x9   :  { %v2359_v13 = vld [vmem:[%s3619_s0 + $0x84] sm:$0x3]  ;;  %943 = vst [vmem:[#allocation0 + $0x220] sm:$0x3] %v2357_v11  ;;  %948 = vst [vmem:[#allocation0 + $0x218] sm:$0x3] %v2358_v12 }
   0xa   :  { %953 = vst [vmem:[#allocation0 + $0x210] sm:$0x3] %v2359_v13  ;;  %v2360_v14 = vld [vmem:[%s3619_s0 + $0x82] sm:$0x3]  ;;  %v2361_v15 = vld [vmem:[%s3619_s0 + $0x80] sm:$0x3] }
   0xb   :  { %v2386_v16 = vld [vmem:[%s3619_s0 + $0x4e] sm:$0x3]  ;;  %958 = vst [vmem:[#allocation0 + $0x208] sm:$0x3] %v2360_v14  ;;  %963 = vst [vmem:[#allocation0 + $0x200] sm:$0x3] %v2361_v15 }
   0xc   :  { %1088 = vst [vmem:[#allocation0 + $0x138] sm:$0x3] %v2386_v16  ;;  %v2387_v17 = vld [vmem:[%s3619_s0 + $0x4c] sm:$0x3]  ;;  %v2388_v18 = vld [vmem:[%s3619_s0 + $0x4a] sm:$0x3] }
   0xd   :  { %v2389_v19 = vld [vmem:[%s3619_s0 + $0x48] sm:$0x3]  ;;  %1093 = vst [vmem:[#allocation0 + $0x130] sm:$0x3] %v2387_v17  ;;  %1098 = vst [vmem:[#allocation0 + $0x128] sm:$0x3] %v2388_v18 }
   0xe   :  { %1103 = vst [vmem:[#allocation0 + $0x120] sm:$0x3] %v2389_v19  ;;  %v2390_v20 = vld [vmem:[%s3619_s0 + $0x46] sm:$0x3]  ;;  %v2391_v21 = vld [vmem:[%s3619_s0 + $0x44] sm:$0x3] }
   0xf   :  { %v2392_v22 = vld [vmem:[%s3619_s0 + $0x42] sm:$0x3]  ;;  %1108 = vst [vmem:[#allocation0 + $0x118] sm:$0x3] %v2390_v20  ;;  %1113 = vst [vmem:[#allocation0 + $0x110] sm:$0x3] %v2391_v21 }
  0x10   :  { %1118 = vst [vmem:[#allocation0 + $0x108] sm:$0x3] %v2392_v22  ;;  %v2393_v23 = vld [vmem:[%s3619_s0 + $0x40] sm:$0x3]  ;;  %v2322_v24 = vld [vmem:[%s3619_s0 + $0xce] sm:$0x3] }
  0x11   :  { %v2323_v25 = vld [vmem:[%s3619_s0 + $0xcc] sm:$0x3]  ;;  %v1568_v26 = vld [vmem:[#allocation0 + $0x1] ss:$8 sm:$0xf0]  }
  0x12   :  { %1123 = vst [vmem:[#allocation0 + $0x100] sm:$0x3] %v2393_v23  ;;  %768 = vst [vmem:[#allocation0 + $0x338] sm:$0x3] %v2322_v24  ;;  %v2324_v27 = vld [vmem:[%s3619_s0 + $0xca] sm:$0x3] }
  0x13   :  { %773 = vst [vmem:[#allocation0 + $0x330] sm:$0x3] %v2323_v25  ;;  %v1566_v28 = vld [vmem:[#allocation0 + $0x1] ss:$8 sm:$0xf]  }
  0x14   :  { %778 = vst [vmem:[#allocation0 + $0x328] sm:$0x3] %v2324_v27  ;;  %v2325_v29 = vld [vmem:[%s3619_s0 + $0xc8] sm:$0x3]  ;;  %v1570_v30 = vsel %vm1282_vm0, %v1568_v26, %v1566_v28  ;;  %v2326_v31 = vld [vmem:[%s3619_s0 + $0xc6] sm:$0x3] }
  0x15   :  { %783 = vst [vmem:[#allocation0 + $0x320] sm:$0x3] %v2325_v29  ;;  %v2327_v32 = vld [vmem:[%s3619_s0 + $0xc4] sm:$0x3]  ;;  %v2328_v33 = vld [vmem:[%s3619_s0 + $0xc2] sm:$0x3]  ;;  %1571 = vrot.lane.b32.xlu0 %v1570_v30, %s2488_s10 }
  0x16   :  { %v1589_v34 = vld [vmem:[#allocation0 + $0x201] ss:$8 sm:$0xf0]   ;;  %788 = vst [vmem:[#allocation0 + $0x318] sm:$0x3] %v2326_v31 }
  0x17   :  { %793 = vst [vmem:[#allocation0 + $0x310] sm:$0x3] %v2327_v32  ;;  %798 = vst [vmem:[#allocation0 + $0x308] sm:$0x3] %v2328_v33  ;;  %v2329_v35 = vld [vmem:[%s3619_s0 + $0xc0] sm:$0x3] }
  0x18   :  { %v1587_v36 = vld [vmem:[#allocation0 + $0x201] ss:$8 sm:$0xf]   ;;  %803 = vst [vmem:[#allocation0 + $0x300] sm:$0x3] %v2329_v35 }
  0x19   :  { %v2290_v37 = vld [vmem:[%s3619_s0 + $0x10e] sm:$0x3]  ;;  %v1591_v38 = vsel %vm1282_vm0, %v1589_v34, %v1587_v36  ;;  %v1578_v39 = vld [vmem:[#allocation0 + $0x101] ss:$8 sm:$0xf0]  }
  0x1a   :  { %608 = vst [vmem:[#allocation0 + $0x438] sm:$0x3] %v2290_v37  ;;  %v2291_v40 = vld [vmem:[%s3619_s0 + $0x10c] sm:$0x3]  ;;  %1592 = vrot.lane.b32.xlu1 %v1591_v38, %s2488_s10  ;;  %v2292_v41 = vld [vmem:[%s3619_s0 + $0x10a] sm:$0x3] }
  0x1b   :  { %613 = vst [vmem:[#allocation0 + $0x430] sm:$0x3] %v2291_v40  ;;  %v2293_v42 = vld [vmem:[%s3619_s0 + $0x108] sm:$0x3]  ;;  %v2294_v43 = vld [vmem:[%s3619_s0 + $0x106] sm:$0x3] }
  0x1c   :  { %v1576_v44 = vld [vmem:[#allocation0 + $0x101] ss:$8 sm:$0xf]   ;;  %618 = vst [vmem:[#allocation0 + $0x428] sm:$0x3] %v2292_v41 }
  0x1d   :  { %623 = vst [vmem:[#allocation0 + $0x420] sm:$0x3] %v2293_v42  ;;  %628 = vst [vmem:[#allocation0 + $0x418] sm:$0x3] %v2294_v43  ;;  %v2295_v45 = vld [vmem:[%s3619_s0 + $0x104] sm:$0x3]  ;;  %v1580_v46 = vsel %vm1282_vm0, %v1578_v39, %v1576_v44 }
  0x1e   :  { %633 = vst [vmem:[#allocation0 + $0x410] sm:$0x3] %v2295_v45  ;;  %v2296_v47 = vld [vmem:[%s3619_s0 + $0x102] sm:$0x3]  ;;  %v2297_v48 = vld [vmem:[%s3619_s0 + $0x100] sm:$0x3]  ;;  %1581 = vrot.lane.b32.xlu0 %v1580_v46, %s2488_s10 }
  0x1f   :  { %v2258_v49 = vld [vmem:[%s3619_s0 + $0x14e] sm:$0x3]  ;;  %v1600_v50 = vld [vmem:[#allocation0 + $0x301] ss:$8 sm:$0xf0]  }
  0x20   :  { %638 = vst [vmem:[#allocation0 + $0x408] sm:$0x3] %v2296_v47  ;;  %643 = vst [vmem:[#allocation0 + $0x400] sm:$0x3] %v2297_v48  ;;  %v2259_v51 = vld [vmem:[%s3619_s0 + $0x14c] sm:$0x3] }
  0x21   :  { %448 = vst [vmem:[#allocation0 + $0x538] sm:$0x3] %v2258_v49  ;;  %453 = vst [vmem:[#allocation0 + $0x530] sm:$0x3] %v2259_v51  ;;  %v2260_v52 = vld [vmem:[%s3619_s0 + $0x14a] sm:$0x3] }
  0x22   :  { %v2261_v53 = vld [vmem:[%s3619_s0 + $0x148] sm:$0x3]  ;;  %v2262_v54 = vld [vmem:[%s3619_s0 + $0x146] sm:$0x3]  ;;  %458 = vst [vmem:[#allocation0 + $0x528] sm:$0x3] %v2260_v52 }
  0x23   :  { %v1598_v55 = vld [vmem:[#allocation0 + $0x301] ss:$8 sm:$0xf]   ;;  %463 = vst [vmem:[#allocation0 + $0x520] sm:$0x3] %v2261_v53 }
  0x24   :  { %468 = vst [vmem:[#allocation0 + $0x518] sm:$0x3] %v2262_v54  ;;  %v2263_v56 = vld [vmem:[%s3619_s0 + $0x144] sm:$0x3]  ;;  %v1602_v57 = vsel %vm1282_vm0, %v1600_v50, %v1598_v55  ;;  %v2264_v58 = vld [vmem:[%s3619_s0 + $0x142] sm:$0x3] }
  0x25   :  { %473 = vst [vmem:[#allocation0 + $0x510] sm:$0x3] %v2263_v56  ;;  %v2265_v59 = vld [vmem:[%s3619_s0 + $0x140] sm:$0x3]  ;;  %v2226_v60 = vld [vmem:[%s3619_s0 + $0x18e] sm:$0x3]  ;;  %1603 = vrot.lane.b32.xlu1 %v1602_v57, %s2488_s10 }
  0x26   :  { %478 = vst [vmem:[#allocation0 + $0x508] sm:$0x3] %v2264_v58  ;;  %483 = vst [vmem:[#allocation0 + $0x500] sm:$0x3] %v2265_v59  ;;  %v2227_v61 = vld [vmem:[%s3619_s0 + $0x18c] sm:$0x3] }
  0x27   :  { %288 = vst [vmem:[#allocation0 + $0x638] sm:$0x3] %v2226_v60  ;;  %v2228_v62 = vld [vmem:[%s3619_s0 + $0x18a] sm:$0x3]  ;;  %v2229_v63 = vld [vmem:[%s3619_s0 + $0x188] sm:$0x3] }
  0x28   :  { %v1611_v0 = vld [vmem:[#allocation0 + $0x401] ss:$8 sm:$0xf0]   ;;  %293 = vst [vmem:[#allocation0 + $0x630] sm:$0x3] %v2227_v61 }
  0x29   :  { %298 = vst [vmem:[#allocation0 + $0x628] sm:$0x3] %v2228_v62  ;;  %303 = vst [vmem:[#allocation0 + $0x620] sm:$0x3] %v2229_v63  ;;  %v2230_v1 = vld [vmem:[%s3619_s0 + $0x186] sm:$0x3] }
  0x2a   :  { %308 = vst [vmem:[#allocation0 + $0x618] sm:$0x3] %v2230_v1  ;;  %v2231_v2 = vld [vmem:[%s3619_s0 + $0x184] sm:$0x3]  ;;  %v2232_v3 = vld [vmem:[%s3619_s0 + $0x182] sm:$0x3] }
  0x2b   :  { %v2233_v4 = vld [vmem:[%s3619_s0 + $0x180] sm:$0x3]  ;;  %313 = vst [vmem:[#allocation0 + $0x610] sm:$0x3] %v2231_v2  ;;  %318 = vst [vmem:[#allocation0 + $0x608] sm:$0x3] %v2232_v3 }
  0x2c   :  { %v1609_v5 = vld [vmem:[#allocation0 + $0x401] ss:$8 sm:$0xf]   ;;  %323 = vst [vmem:[#allocation0 + $0x600] sm:$0x3] %v2233_v4 }
  0x2d   :  { %v2194_v6 = vld [vmem:[%s3619_s0 + $0x1ce] sm:$0x3]  ;;  %v1613_v7 = vsel %vm1282_vm0, %v1611_v0, %v1609_v5  ;;  %v2195_v8 = vld [vmem:[%s3619_s0 + $0x1cc] sm:$0x3]  ;;  %v2196_v9 = vld [vmem:[%s3619_s0 + $0x1ca] sm:$0x3] }
  0x2e   :  { %128 = vst [vmem:[#allocation0 + $0x738] sm:$0x3] %v2194_v6  ;;  %v2197_v10 = vld [vmem:[%s3619_s0 + $0x1c8] sm:$0x3]  ;;  %1614 = vrot.lane.b32.xlu0 %v1613_v7, %s2488_s10  ;;  %133 = vst [vmem:[#allocation0 + $0x730] sm:$0x3] %v2195_v8 }
  0x2f   :  { %v1622_v11 = vld [vmem:[#allocation0 + $0x501] ss:$8 sm:$0xf0]   ;;  %138 = vst [vmem:[#allocation0 + $0x728] sm:$0x3] %v2196_v9 }
  0x30   :  { %143 = vst [vmem:[#allocation0 + $0x720] sm:$0x3] %v2197_v10  ;;  %v2198_v12 = vld [vmem:[%s3619_s0 + $0x1c6] sm:$0x3]  ;;  %v2199_v13 = vld [vmem:[%s3619_s0 + $0x1c4] sm:$0x3] }
  0x31   :  { %148 = vst [vmem:[#allocation0 + $0x718] sm:$0x3] %v2198_v12  ;;  %v2200_v14 = vld [vmem:[%s3619_s0 + $0x1c2] sm:$0x3]  ;;  %v2201_v15 = vld [vmem:[%s3619_s0 + $0x1c0] sm:$0x3] }
  0x32   :  { %v1620_v16 = vld [vmem:[#allocation0 + $0x501] ss:$8 sm:$0xf]   ;;  %153 = vst [vmem:[#allocation0 + $0x710] sm:$0x3] %v2199_v13 }
  0x33   :  { %158 = vst [vmem:[#allocation0 + $0x708] sm:$0x3] %v2200_v14  ;;  %163 = vst [vmem:[#allocation0 + $0x700] sm:$0x3] %v2201_v15  ;;  %v2410_v17 = vld [vmem:[%s3619_s0 + $0x1e] sm:$0x3]  ;;  %v1624_v18 = vsel %vm1282_vm0, %v1622_v11, %v1620_v16 }
  0x34   :  { %v1633_v19 = vld [vmem:[#allocation0 + $0x601] ss:$8 sm:$0xf0]   ;;  %1208 = vst [vmem:[#allocation0 + $0x78] sm:$0x3] %v2410_v17  ;;  %1625 = vrot.lane.b32.xlu1 %v1624_v18, %s2488_s10 }
  0x35   :  { %v2411_v20 = vld [vmem:[%s3619_s0 + $0x1c] sm:$0x3]  ;;  %v2412_v21 = vld [vmem:[%s3619_s0 + $0x1a] sm:$0x3]  ;;  %v2413_v22 = vld [vmem:[%s3619_s0 + $0x18] sm:$0x3] }
  0x36   :  { %1213 = vst [vmem:[#allocation0 + $0x70] sm:$0x3] %v2411_v20  ;;  %v2414_v23 = vld [vmem:[%s3619_s0 + $0x16] sm:$0x3]  ;;  %1218 = vst [vmem:[#allocation0 + $0x68] sm:$0x3] %v2412_v21 }
  0x37   :  { %v1631_v24 = vld [vmem:[#allocation0 + $0x601] ss:$8 sm:$0xf]   ;;  %1223 = vst [vmem:[#allocation0 + $0x60] sm:$0x3] %v2413_v22 }
  0x38   :  { %1228 = vst [vmem:[#allocation0 + $0x58] sm:$0x3] %v2414_v23  ;;  %v2415_v25 = vld [vmem:[%s3619_s0 + $0x14] sm:$0x3]  ;;  %v1635_v26 = vsel %vm1282_vm0, %v1633_v19, %v1631_v24  ;;  %v2416_v27 = vld [vmem:[%s3619_s0 + $0x12] sm:$0x3] }
  0x39   :  { %1233 = vst [vmem:[#allocation0 + $0x50] sm:$0x3] %v2415_v25  ;;  %v2417_v28 = vld [vmem:[%s3619_s0 + $0x10] sm:$0x3]  ;;  %v2378_v29 = vld [vmem:[%s3619_s0 + $0x5e] sm:$0x3]  ;;  %1636 = vrot.lane.b32.xlu0 %v1635_v26, %s2488_s10 }
  0x3a   :  { %v1644_v30 = vld [vmem:[#allocation0 + $0x701] ss:$8 sm:$0xf0]   ;;  %1238 = vst [vmem:[#allocation0 + $0x48] sm:$0x3] %v2416_v27 }
  0x3b   :  { %1243 = vst [vmem:[#allocation0 + $0x40] sm:$0x3] %v2417_v28  ;;  %1048 = vst [vmem:[#allocation0 + $0x178] sm:$0x3] %v2378_v29  ;;  %v2379_v31 = vld [vmem:[%s3619_s0 + $0x5c] sm:$0x3] }
  0x3c   :  { %1053 = vst [vmem:[#allocation0 + $0x170] sm:$0x3] %v2379_v31  ;;  %v2380_v32 = vld [vmem:[%s3619_s0 + $0x5a] sm:$0x3]  ;;  %v2381_v33 = vld [vmem:[%s3619_s0 + $0x58] sm:$0x3] }
  0x3d   :  { %v2382_v34 = vld [vmem:[%s3619_s0 + $0x56] sm:$0x3]  ;;  %v1642_v35 = vld [vmem:[#allocation0 + $0x701] ss:$8 sm:$0xf]  }
  0x3e   :  { %1058 = vst [vmem:[#allocation0 + $0x168] sm:$0x3] %v2380_v32  ;;  %1063 = vst [vmem:[#allocation0 + $0x160] sm:$0x3] %v2381_v33  ;;  %v2383_v36 = vld [vmem:[%s3619_s0 + $0x54] sm:$0x3]  ;;  %v1646_v37 = vsel %vm1282_vm0, %v1644_v30, %v1642_v35 }
  0x3f   :  { %1068 = vst [vmem:[#allocation0 + $0x158] sm:$0x3] %v2382_v34  ;;  %1073 = vst [vmem:[#allocation0 + $0x150] sm:$0x3] %v2383_v36  ;;  %v2384_v38 = vld [vmem:[%s3619_s0 + $0x52] sm:$0x3]  ;;  %1647 = vrot.lane.b32.xlu1 %v1646_v37, %s2488_s10 }
  0x40   :  { %v2385_v39 = vld [vmem:[%s3619_s0 + $0x50] sm:$0x3]  ;;  %v2346_v40 = vld [vmem:[%s3619_s0 + $0x9e] sm:$0x3]  ;;  %1078 = vst [vmem:[#allocation0 + $0x148] sm:$0x3] %v2384_v38 }
  0x41   :  { %1083 = vst [vmem:[#allocation0 + $0x140] sm:$0x3] %v2385_v39  ;;  %888 = vst [vmem:[#allocation0 + $0x278] sm:$0x3] %v2346_v40  ;;  %v2347_v41 = vld [vmem:[%s3619_s0 + $0x9c] sm:$0x3] }
  0x42   :  { %v2348_v42 = vld [vmem:[%s3619_s0 + $0x9a] sm:$0x3]  ;;  %v2349_v43 = vld [vmem:[%s3619_s0 + $0x98] sm:$0x3]  ;;  %893 = vst [vmem:[#allocation0 + $0x270] sm:$0x3] %v2347_v41 }
  0x43   :  { %v1655_v44 = vld [vmem:[#allocation0 + $0x41] ss:$8 sm:$0xf0]   ;;  %898 = vst [vmem:[#allocation0 + $0x268] sm:$0x3] %v2348_v42 }
  0x44   :  { %903 = vst [vmem:[#allocation0 + $0x260] sm:$0x3] %v2349_v43  ;;  %v2350_v45 = vld [vmem:[%s3619_s0 + $0x96] sm:$0x3]  ;;  %v2351_v46 = vld [vmem:[%s3619_s0 + $0x94] sm:$0x3] }
  0x45   :  { %908 = vst [vmem:[#allocation0 + $0x258] sm:$0x3] %v2350_v45  ;;  %v2352_v47 = vld [vmem:[%s3619_s0 + $0x92] sm:$0x3]  ;;  %v2353_v48 = vld [vmem:[%s3619_s0 + $0x90] sm:$0x3] }
  0x46   :  { %v1653_v49 = vld [vmem:[#allocation0 + $0x41] ss:$8 sm:$0xf]   ;;  %913 = vst [vmem:[#allocation0 + $0x250] sm:$0x3] %v2351_v46 }
  0x47   :  { %918 = vst [vmem:[#allocation0 + $0x248] sm:$0x3] %v2352_v47  ;;  %923 = vst [vmem:[#allocation0 + $0x240] sm:$0x3] %v2353_v48  ;;  %v2314_v50 = vld [vmem:[%s3619_s0 + $0xde] sm:$0x3]  ;;  %v1657_v51 = vsel %vm1282_vm0, %v1655_v44, %v1653_v49 }
  0x48   :  { %728 = vst [vmem:[#allocation0 + $0x378] sm:$0x3] %v2314_v50  ;;  %v2315_v52 = vld [vmem:[%s3619_s0 + $0xdc] sm:$0x3]  ;;  %v2316_v53 = vld [vmem:[%s3619_s0 + $0xda] sm:$0x3]  ;;  %1658 = vrot.lane.b32.xlu0 %v1657_v51, %s2488_s10 }
  0x49   :  { %v2317_v54 = vld [vmem:[%s3619_s0 + $0xd8] sm:$0x3]  ;;  %733 = vst [vmem:[#allocation0 + $0x370] sm:$0x3] %v2315_v52  ;;  %738 = vst [vmem:[#allocation0 + $0x368] sm:$0x3] %v2316_v53 }
  0x4a   :  { %v1666_v55 = vld [vmem:[#allocation0 + $0x141] ss:$8 sm:$0xf0]   ;;  %743 = vst [vmem:[#allocation0 + $0x360] sm:$0x3] %v2317_v54 }
  0x4b   :  { %v2318_v56 = vld [vmem:[%s3619_s0 + $0xd6] sm:$0x3]  ;;  %v2319_v57 = vld [vmem:[%s3619_s0 + $0xd4] sm:$0x3]  ;;  %v2320_v58 = vld [vmem:[%s3619_s0 + $0xd2] sm:$0x3] }
  0x4c   :  { %748 = vst [vmem:[#allocation0 + $0x358] sm:$0x3] %v2318_v56  ;;  %v2321_v59 = vld [vmem:[%s3619_s0 + $0xd0] sm:$0x3]  ;;  %753 = vst [vmem:[#allocation0 + $0x350] sm:$0x3] %v2319_v57 }
  0x4d   :  { %v1664_v60 = vld [vmem:[#allocation0 + $0x141] ss:$8 sm:$0xf]   ;;  %758 = vst [vmem:[#allocation0 + $0x348] sm:$0x3] %v2320_v58 }
  0x4e   :  { %763 = vst [vmem:[#allocation0 + $0x340] sm:$0x3] %v2321_v59  ;;  %v2282_v61 = vld [vmem:[%s3619_s0 + $0x11e] sm:$0x3]  ;;  %v1668_v62 = vsel %vm1282_vm0, %v1666_v55, %v1664_v60  ;;  %v2283_v0 = vld [vmem:[%s3619_s0 + $0x11c] sm:$0x3] }
  0x4f   :  { %v1677_v63 = vld [vmem:[#allocation0 + $0x241] ss:$8 sm:$0xf0]   ;;  %568 = vst [vmem:[#allocation0 + $0x478] sm:$0x3] %v2282_v61  ;;  %1669 = vrot.lane.b32.xlu1 %v1668_v62, %s2488_s10 }
  0x50   :  { %573 = vst [vmem:[#allocation0 + $0x470] sm:$0x3] %v2283_v0  ;;  %v2284_v1 = vld [vmem:[%s3619_s0 + $0x11a] sm:$0x3]  ;;  %v2285_v2 = vld [vmem:[%s3619_s0 + $0x118] sm:$0x3] }
  0x51   :  { %v2286_v3 = vld [vmem:[%s3619_s0 + $0x116] sm:$0x3]  ;;  %v1675_v4 = vld [vmem:[#allocation0 + $0x241] ss:$8 sm:$0xf]  }
  0x52   :  { %578 = vst [vmem:[#allocation0 + $0x468] sm:$0x3] %v2284_v1  ;;  %583 = vst [vmem:[#allocation0 + $0x460] sm:$0x3] %v2285_v2  ;;  %v2287_v5 = vld [vmem:[%s3619_s0 + $0x114] sm:$0x3]  ;;  %v1679_v6 = vsel %vm1282_vm0, %v1677_v63, %v1675_v4 }
  0x53   :  { %588 = vst [vmem:[#allocation0 + $0x458] sm:$0x3] %v2286_v3  ;;  %593 = vst [vmem:[#allocation0 + $0x450] sm:$0x3] %v2287_v5  ;;  %v2288_v7 = vld [vmem:[%s3619_s0 + $0x112] sm:$0x3]  ;;  %1680 = vrot.lane.b32.xlu0 %v1679_v6, %s2488_s10 }
  0x54   :  { %v2289_v8 = vld [vmem:[%s3619_s0 + $0x110] sm:$0x3]  ;;  %v2250_v9 = vld [vmem:[%s3619_s0 + $0x15e] sm:$0x3]  ;;  %598 = vst [vmem:[#allocation0 + $0x448] sm:$0x3] %v2288_v7 }
  0x55   :  { %v1688_v10 = vld [vmem:[#allocation0 + $0x341] ss:$8 sm:$0xf0]   ;;  %603 = vst [vmem:[#allocation0 + $0x440] sm:$0x3] %v2289_v8 }
  0x56   :  { %408 = vst [vmem:[#allocation0 + $0x578] sm:$0x3] %v2250_v9  ;;  %v2251_v11 = vld [vmem:[%s3619_s0 + $0x15c] sm:$0x3]  ;;  %v2252_v12 = vld [vmem:[%s3619_s0 + $0x15a] sm:$0x3] }
  0x57   :  { %413 = vst [vmem:[#allocation0 + $0x570] sm:$0x3] %v2251_v11  ;;  %v2253_v13 = vld [vmem:[%s3619_s0 + $0x158] sm:$0x3]  ;;  %v2254_v14 = vld [vmem:[%s3619_s0 + $0x156] sm:$0x3] }
  0x58   :  { %v1686_v15 = vld [vmem:[#allocation0 + $0x341] ss:$8 sm:$0xf]   ;;  %418 = vst [vmem:[#allocation0 + $0x568] sm:$0x3] %v2252_v12 }
  0x59   :  { %423 = vst [vmem:[#allocation0 + $0x560] sm:$0x3] %v2253_v13  ;;  %428 = vst [vmem:[#allocation0 + $0x558] sm:$0x3] %v2254_v14  ;;  %v2255_v16 = vld [vmem:[%s3619_s0 + $0x154] sm:$0x3]  ;;  %v1690_v17 = vsel %vm1282_vm0, %v1688_v10, %v1686_v15 }
  0x5a   :  { %433 = vst [vmem:[#allocation0 + $0x550] sm:$0x3] %v2255_v16  ;;  %v2256_v18 = vld [vmem:[%s3619_s0 + $0x152] sm:$0x3]  ;;  %v2257_v19 = vld [vmem:[%s3619_s0 + $0x150] sm:$0x3]  ;;  %1691 = vrot.lane.b32.xlu1 %v1690_v17, %s2488_s10 }
  0x5b   :  { %v2218_v20 = vld [vmem:[%s3619_s0 + $0x19e] sm:$0x3]  ;;  %438 = vst [vmem:[#allocation0 + $0x548] sm:$0x3] %v2256_v18  ;;  %443 = vst [vmem:[#allocation0 + $0x540] sm:$0x3] %v2257_v19 }
  0x5c   :  { %248 = vst [vmem:[#allocation0 + $0x678] sm:$0x3] %v2218_v20  ;;  %v2219_v21 = vld [vmem:[%s3619_s0 + $0x19c] sm:$0x3]  ;;  %v2220_v22 = vld [vmem:[%s3619_s0 + $0x19a] sm:$0x3] }
  0x5d   :  { %v2221_v23 = vld [vmem:[%s3619_s0 + $0x198] sm:$0x3]  ;;  %253 = vst [vmem:[#allocation0 + $0x670] sm:$0x3] %v2219_v21  ;;  %258 = vst [vmem:[#allocation0 + $0x668] sm:$0x3] %v2220_v22 }
  0x5e   :  { %v1699_v24 = vld [vmem:[#allocation0 + $0x441] ss:$8 sm:$0xf0]   ;;  %263 = vst [vmem:[#allocation0 + $0x660] sm:$0x3] %v2221_v23 }
  0x5f   :  { %v2222_v25 = vld [vmem:[%s3619_s0 + $0x196] sm:$0x3]  ;;  %v2223_v26 = vld [vmem:[%s3619_s0 + $0x194] sm:$0x3]  ;;  %v2224_v27 = vld [vmem:[%s3619_s0 + $0x192] sm:$0x3] }
  0x60   :  { %268 = vst [vmem:[#allocation0 + $0x658] sm:$0x3] %v2222_v25  ;;  %v2225_v28 = vld [vmem:[%s3619_s0 + $0x190] sm:$0x3]  ;;  %273 = vst [vmem:[#allocation0 + $0x650] sm:$0x3] %v2223_v26 }
  0x61   :  { %v1697_v29 = vld [vmem:[#allocation0 + $0x441] ss:$8 sm:$0xf]   ;;  %278 = vst [vmem:[#allocation0 + $0x648] sm:$0x3] %v2224_v27 }
  0x62   :  { %283 = vst [vmem:[#allocation0 + $0x640] sm:$0x3] %v2225_v28  ;;  %v2186_v30 = vld [vmem:[%s3619_s0 + $0x1de] sm:$0x3]  ;;  %v1701_v31 = vsel %vm1282_vm0, %v1699_v24, %v1697_v29  ;;  %v2187_v32 = vld [vmem:[%s3619_s0 + $0x1dc] sm:$0x3] }
  0x63   :  { %88 = vst [vmem:[#allocation0 + $0x778] sm:$0x3] %v2186_v30  ;;  %v2188_v33 = vld [vmem:[%s3619_s0 + $0x1da] sm:$0x3]  ;;  %v2189_v34 = vld [vmem:[%s3619_s0 + $0x1d8] sm:$0x3]  ;;  %1702 = vrot.lane.b32.xlu0 %v1701_v31, %s2488_s10 }
  0x64   :  { %v1710_v35 = vld [vmem:[#allocation0 + $0x541] ss:$8 sm:$0xf0]   ;;  %93 = vst [vmem:[#allocation0 + $0x770] sm:$0x3] %v2187_v32 }
  0x65   :  { %98 = vst [vmem:[#allocation0 + $0x768] sm:$0x3] %v2188_v33  ;;  %103 = vst [vmem:[#allocation0 + $0x760] sm:$0x3] %v2189_v34  ;;  %v2190_v36 = vld [vmem:[%s3619_s0 + $0x1d6] sm:$0x3] }
  0x66   :  { %108 = vst [vmem:[#allocation0 + $0x758] sm:$0x3] %v2190_v36  ;;  %v2191_v37 = vld [vmem:[%s3619_s0 + $0x1d4] sm:$0x3]  ;;  %v2192_v38 = vld [vmem:[%s3619_s0 + $0x1d2] sm:$0x3] }
  0x67   :  { %v2193_v39 = vld [vmem:[%s3619_s0 + $0x1d0] sm:$0x3]  ;;  %113 = vst [vmem:[#allocation0 + $0x750] sm:$0x3] %v2191_v37  ;;  %118 = vst [vmem:[#allocation0 + $0x748] sm:$0x3] %v2192_v38 }
  0x68   :  { %v1708_v40 = vld [vmem:[#allocation0 + $0x541] ss:$8 sm:$0xf]   ;;  %123 = vst [vmem:[#allocation0 + $0x740] sm:$0x3] %v2193_v39 }
  0x69   :  { %v2402_v41 = vld [vmem:[%s3619_s0 + $0x2e] sm:$0x3]  ;;  %v1712_v42 = vsel %vm1282_vm0, %v1710_v35, %v1708_v40  ;;  %v1721_v43 = vld [vmem:[#allocation0 + $0x641] ss:$8 sm:$0xf0]  }
  0x6a   :  { %1168 = vst [vmem:[#allocation0 + $0xb8] sm:$0x3] %v2402_v41  ;;  %v2403_v44 = vld [vmem:[%s3619_s0 + $0x2c] sm:$0x3]  ;;  %1713 = vrot.lane.b32.xlu1 %v1712_v42, %s2488_s10  ;;  %v2404_v45 = vld [vmem:[%s3619_s0 + $0x2a] sm:$0x3] }
  0x6b   :  { %1173 = vst [vmem:[#allocation0 + $0xb0] sm:$0x3] %v2403_v44  ;;  %v2405_v46 = vld [vmem:[%s3619_s0 + $0x28] sm:$0x3]  ;;  %v2406_v47 = vld [vmem:[%s3619_s0 + $0x26] sm:$0x3] }
  0x6c   :  { %v1719_v48 = vld [vmem:[#allocation0 + $0x641] ss:$8 sm:$0xf]   ;;  %1178 = vst [vmem:[#allocation0 + $0xa8] sm:$0x3] %v2404_v45 }
  0x6d   :  { %1183 = vst [vmem:[#allocation0 + $0xa0] sm:$0x3] %v2405_v46  ;;  %1188 = vst [vmem:[#allocation0 + $0x98] sm:$0x3] %v2406_v47  ;;  %v2407_v49 = vld [vmem:[%s3619_s0 + $0x24] sm:$0x3]  ;;  %v1723_v50 = vsel %vm1282_vm0, %v1721_v43, %v1719_v48 }
  0x6e   :  { %1193 = vst [vmem:[#allocation0 + $0x90] sm:$0x3] %v2407_v49  ;;  %v2408_v51 = vld [vmem:[%s3619_s0 + $0x22] sm:$0x3]  ;;  %v2409_v52 = vld [vmem:[%s3619_s0 + $0x20] sm:$0x3]  ;;  %1724 = vrot.lane.b32.xlu0 %v1723_v50, %s2488_s10 }
  0x6f   :  { %v2370_v53 = vld [vmem:[%s3619_s0 + $0x6e] sm:$0x3]  ;;  %v1732_v54 = vld [vmem:[#allocation0 + $0x741] ss:$8 sm:$0xf0]  }
  0x70   :  { %1198 = vst [vmem:[#allocation0 + $0x88] sm:$0x3] %v2408_v51  ;;  %1203 = vst [vmem:[#allocation0 + $0x80] sm:$0x3] %v2409_v52  ;;  %v2371_v55 = vld [vmem:[%s3619_s0 + $0x6c] sm:$0x3] }
  0x71   :  { %1008 = vst [vmem:[#allocation0 + $0x1b8] sm:$0x3] %v2370_v53  ;;  %1013 = vst [vmem:[#allocation0 + $0x1b0] sm:$0x3] %v2371_v55  ;;  %v2372_v56 = vld [vmem:[%s3619_s0 + $0x6a] sm:$0x3] }
  0x72   :  { %v2373_v57 = vld [vmem:[%s3619_s0 + $0x68] sm:$0x3]  ;;  %v2374_v58 = vld [vmem:[%s3619_s0 + $0x66] sm:$0x3]  ;;  %1018 = vst [vmem:[#allocation0 + $0x1a8] sm:$0x3] %v2372_v56 }
  0x73   :  { %v1730_v59 = vld [vmem:[#allocation0 + $0x741] ss:$8 sm:$0xf]   ;;  %1023 = vst [vmem:[#allocation0 + $0x1a0] sm:$0x3] %v2373_v57 }
  0x74   :  { %1028 = vst [vmem:[#allocation0 + $0x198] sm:$0x3] %v2374_v58  ;;  %v2375_v60 = vld [vmem:[%s3619_s0 + $0x64] sm:$0x3]  ;;  %v1734_v61 = vsel %vm1282_vm0, %v1732_v54, %v1730_v59  ;;  %v2376_v62 = vld [vmem:[%s3619_s0 + $0x62] sm:$0x3] }
  0x75   :  { %1033 = vst [vmem:[#allocation0 + $0x190] sm:$0x3] %v2375_v60  ;;  %v2377_v63 = vld [vmem:[%s3619_s0 + $0x60] sm:$0x3]  ;;  %v2338_v0 = vld [vmem:[%s3619_s0 + $0xae] sm:$0x3]  ;;  %1735 = vrot.lane.b32.xlu1 %v1734_v61, %s2488_s10 }
  0x76   :  { %1038 = vst [vmem:[#allocation0 + $0x188] sm:$0x3] %v2376_v62  ;;  %1043 = vst [vmem:[#allocation0 + $0x180] sm:$0x3] %v2377_v63  ;;  %v2339_v1 = vld [vmem:[%s3619_s0 + $0xac] sm:$0x3] }
  0x77   :  { %848 = vst [vmem:[#allocation0 + $0x2b8] sm:$0x3] %v2338_v0  ;;  %v2340_v2 = vld [vmem:[%s3619_s0 + $0xaa] sm:$0x3]  ;;  %v2341_v3 = vld [vmem:[%s3619_s0 + $0xa8] sm:$0x3] }
  0x78   :  { %v1743_v4 = vld [vmem:[#allocation0 + $0x81] ss:$8 sm:$0xf0]   ;;  %853 = vst [vmem:[#allocation0 + $0x2b0] sm:$0x3] %v2339_v1 }
  0x79   :  { %858 = vst [vmem:[#allocation0 + $0x2a8] sm:$0x3] %v2340_v2  ;;  %863 = vst [vmem:[#allocation0 + $0x2a0] sm:$0x3] %v2341_v3  ;;  %v2342_v5 = vld [vmem:[%s3619_s0 + $0xa6] sm:$0x3] }
  0x7a   :  { %868 = vst [vmem:[#allocation0 + $0x298] sm:$0x3] %v2342_v5  ;;  %v2343_v6 = vld [vmem:[%s3619_s0 + $0xa4] sm:$0x3]  ;;  %v2344_v7 = vld [vmem:[%s3619_s0 + $0xa2] sm:$0x3] }
  0x7b   :  { %v2345_v8 = vld [vmem:[%s3619_s0 + $0xa0] sm:$0x3]  ;;  %873 = vst [vmem:[#allocation0 + $0x290] sm:$0x3] %v2343_v6  ;;  %878 = vst [vmem:[#allocation0 + $0x288] sm:$0x3] %v2344_v7 }
  0x7c   :  { %v1741_v9 = vld [vmem:[#allocation0 + $0x81] ss:$8 sm:$0xf]   ;;  %883 = vst [vmem:[#allocation0 + $0x280] sm:$0x3] %v2345_v8 }
  0x7d   :  { %v2306_v10 = vld [vmem:[%s3619_s0 + $0xee] sm:$0x3]  ;;  %v1745_v11 = vsel %vm1282_vm0, %v1743_v4, %v1741_v9  ;;  %v2307_v12 = vld [vmem:[%s3619_s0 + $0xec] sm:$0x3]  ;;  %v2308_v13 = vld [vmem:[%s3619_s0 + $0xea] sm:$0x3] }
  0x7e   :  { %688 = vst [vmem:[#allocation0 + $0x3b8] sm:$0x3] %v2306_v10  ;;  %v2309_v14 = vld [vmem:[%s3619_s0 + $0xe8] sm:$0x3]  ;;  %1746 = vrot.lane.b32.xlu0 %v1745_v11, %s2488_s10  ;;  %693 = vst [vmem:[#allocation0 + $0x3b0] sm:$0x3] %v2307_v12 }
  0x7f   :  { %v1754_v15 = vld [vmem:[#allocation0 + $0x181] ss:$8 sm:$0xf0]   ;;  %698 = vst [vmem:[#allocation0 + $0x3a8] sm:$0x3] %v2308_v13 }
  0x80   :  { %703 = vst [vmem:[#allocation0 + $0x3a0] sm:$0x3] %v2309_v14  ;;  %v2310_v16 = vld [vmem:[%s3619_s0 + $0xe6] sm:$0x3]  ;;  %v2311_v17 = vld [vmem:[%s3619_s0 + $0xe4] sm:$0x3] }
  0x81   :  { %708 = vst [vmem:[#allocation0 + $0x398] sm:$0x3] %v2310_v16  ;;  %v2312_v18 = vld [vmem:[%s3619_s0 + $0xe2] sm:$0x3]  ;;  %v2313_v19 = vld [vmem:[%s3619_s0 + $0xe0] sm:$0x3] }
  0x82   :  { %v1752_v20 = vld [vmem:[#allocation0 + $0x181] ss:$8 sm:$0xf]   ;;  %713 = vst [vmem:[#allocation0 + $0x390] sm:$0x3] %v2311_v17 }
  0x83   :  { %718 = vst [vmem:[#allocation0 + $0x388] sm:$0x3] %v2312_v18  ;;  %723 = vst [vmem:[#allocation0 + $0x380] sm:$0x3] %v2313_v19  ;;  %v2274_v21 = vld [vmem:[%s3619_s0 + $0x12e] sm:$0x3]  ;;  %v1756_v22 = vsel %vm1282_vm0, %v1754_v15, %v1752_v20 }
  0x84   :  { %v1765_v23 = vld [vmem:[#allocation0 + $0x281] ss:$8 sm:$0xf0]   ;;  %528 = vst [vmem:[#allocation0 + $0x4b8] sm:$0x3] %v2274_v21  ;;  %1757 = vrot.lane.b32.xlu1 %v1756_v22, %s2488_s10 }
  0x85   :  { %v2275_v24 = vld [vmem:[%s3619_s0 + $0x12c] sm:$0x3]  ;;  %v2276_v25 = vld [vmem:[%s3619_s0 + $0x12a] sm:$0x3]  ;;  %v2277_v26 = vld [vmem:[%s3619_s0 + $0x128] sm:$0x3] }
  0x86   :  { %533 = vst [vmem:[#allocation0 + $0x4b0] sm:$0x3] %v2275_v24  ;;  %v2278_v27 = vld [vmem:[%s3619_s0 + $0x126] sm:$0x3]  ;;  %538 = vst [vmem:[#allocation0 + $0x4a8] sm:$0x3] %v2276_v25 }
  0x87   :  { %v1763_v28 = vld [vmem:[#allocation0 + $0x281] ss:$8 sm:$0xf]   ;;  %543 = vst [vmem:[#allocation0 + $0x4a0] sm:$0x3] %v2277_v26 }
  0x88   :  { %548 = vst [vmem:[#allocation0 + $0x498] sm:$0x3] %v2278_v27  ;;  %v2279_v29 = vld [vmem:[%s3619_s0 + $0x124] sm:$0x3]  ;;  %v1767_v30 = vsel %vm1282_vm0, %v1765_v23, %v1763_v28  ;;  %v2280_v31 = vld [vmem:[%s3619_s0 + $0x122] sm:$0x3] }
  0x89   :  { %553 = vst [vmem:[#allocation0 + $0x490] sm:$0x3] %v2279_v29  ;;  %v2281_v32 = vld [vmem:[%s3619_s0 + $0x120] sm:$0x3]  ;;  %v2242_v33 = vld [vmem:[%s3619_s0 + $0x16e] sm:$0x3]  ;;  %1768 = vrot.lane.b32.xlu0 %v1767_v30, %s2488_s10 }
  0x8a   :  { %v1776_v34 = vld [vmem:[#allocation0 + $0x381] ss:$8 sm:$0xf0]   ;;  %558 = vst [vmem:[#allocation0 + $0x488] sm:$0x3] %v2280_v31 }
  0x8b   :  { %563 = vst [vmem:[#allocation0 + $0x480] sm:$0x3] %v2281_v32  ;;  %368 = vst [vmem:[#allocation0 + $0x5b8] sm:$0x3] %v2242_v33  ;;  %v2243_v35 = vld [vmem:[%s3619_s0 + $0x16c] sm:$0x3] }
  0x8c   :  { %373 = vst [vmem:[#allocation0 + $0x5b0] sm:$0x3] %v2243_v35  ;;  %v2244_v36 = vld [vmem:[%s3619_s0 + $0x16a] sm:$0x3]  ;;  %v2245_v37 = vld [vmem:[%s3619_s0 + $0x168] sm:$0x3] }
  0x8d   :  { %v2246_v38 = vld [vmem:[%s3619_s0 + $0x166] sm:$0x3]  ;;  %v1774_v39 = vld [vmem:[#allocation0 + $0x381] ss:$8 sm:$0xf]  }
  0x8e   :  { %378 = vst [vmem:[#allocation0 + $0x5a8] sm:$0x3] %v2244_v36  ;;  %383 = vst [vmem:[#allocation0 + $0x5a0] sm:$0x3] %v2245_v37  ;;  %v2247_v40 = vld [vmem:[%s3619_s0 + $0x164] sm:$0x3]  ;;  %v1778_v41 = vsel %vm1282_vm0, %v1776_v34, %v1774_v39 }
  0x8f   :  { %388 = vst [vmem:[#allocation0 + $0x598] sm:$0x3] %v2246_v38  ;;  %393 = vst [vmem:[#allocation0 + $0x590] sm:$0x3] %v2247_v40  ;;  %v2248_v42 = vld [vmem:[%s3619_s0 + $0x162] sm:$0x3]  ;;  %1779 = vrot.lane.b32.xlu1 %v1778_v41, %s2488_s10 }
  0x90   :  { %v2249_v43 = vld [vmem:[%s3619_s0 + $0x160] sm:$0x3]  ;;  %v2210_v44 = vld [vmem:[%s3619_s0 + $0x1ae] sm:$0x3]  ;;  %398 = vst [vmem:[#allocation0 + $0x588] sm:$0x3] %v2248_v42 }
  0x91   :  { %403 = vst [vmem:[#allocation0 + $0x580] sm:$0x3] %v2249_v43  ;;  %208 = vst [vmem:[#allocation0 + $0x6b8] sm:$0x3] %v2210_v44  ;;  %v2211_v45 = vld [vmem:[%s3619_s0 + $0x1ac] sm:$0x3] }
  0x92   :  { %v2212_v46 = vld [vmem:[%s3619_s0 + $0x1aa] sm:$0x3]  ;;  %v2213_v47 = vld [vmem:[%s3619_s0 + $0x1a8] sm:$0x3]  ;;  %213 = vst [vmem:[#allocation0 + $0x6b0] sm:$0x3] %v2211_v45 }
  0x93   :  { %v1787_v48 = vld [vmem:[#allocation0 + $0x481] ss:$8 sm:$0xf0]   ;;  %218 = vst [vmem:[#allocation0 + $0x6a8] sm:$0x3] %v2212_v46 }
  0x94   :  { %223 = vst [vmem:[#allocation0 + $0x6a0] sm:$0x3] %v2213_v47  ;;  %v2214_v49 = vld [vmem:[%s3619_s0 + $0x1a6] sm:$0x3]  ;;  %v2215_v50 = vld [vmem:[%s3619_s0 + $0x1a4] sm:$0x3] }
  0x95   :  { %228 = vst [vmem:[#allocation0 + $0x698] sm:$0x3] %v2214_v49  ;;  %v2216_v51 = vld [vmem:[%s3619_s0 + $0x1a2] sm:$0x3]  ;;  %v2217_v52 = vld [vmem:[%s3619_s0 + $0x1a0] sm:$0x3] }
  0x96   :  { %v1785_v53 = vld [vmem:[#allocation0 + $0x481] ss:$8 sm:$0xf]   ;;  %233 = vst [vmem:[#allocation0 + $0x690] sm:$0x3] %v2215_v50 }
  0x97   :  { %238 = vst [vmem:[#allocation0 + $0x688] sm:$0x3] %v2216_v51  ;;  %243 = vst [vmem:[#allocation0 + $0x680] sm:$0x3] %v2217_v52  ;;  %v2178_v54 = vld [vmem:[%s3619_s0 + $0x1ee] sm:$0x3]  ;;  %v1789_v55 = vsel %vm1282_vm0, %v1787_v48, %v1785_v53 }
  0x98   :  { %48 = vst [vmem:[#allocation0 + $0x7b8] sm:$0x3] %v2178_v54  ;;  %v2179_v56 = vld [vmem:[%s3619_s0 + $0x1ec] sm:$0x3]  ;;  %v2180_v57 = vld [vmem:[%s3619_s0 + $0x1ea] sm:$0x3]  ;;  %1790 = vrot.lane.b32.xlu0 %v1789_v55, %s2488_s10 }
  0x99   :  { %v2181_v58 = vld [vmem:[%s3619_s0 + $0x1e8] sm:$0x3]  ;;  %53 = vst [vmem:[#allocation0 + $0x7b0] sm:$0x3] %v2179_v56  ;;  %58 = vst [vmem:[#allocation0 + $0x7a8] sm:$0x3] %v2180_v57 }
  0x9a   :  { %v1798_v59 = vld [vmem:[#allocation0 + $0x581] ss:$8 sm:$0xf0]   ;;  %63 = vst [vmem:[#allocation0 + $0x7a0] sm:$0x3] %v2181_v58 }
  0x9b   :  { %v2182_v60 = vld [vmem:[%s3619_s0 + $0x1e6] sm:$0x3]  ;;  %v2183_v61 = vld [vmem:[%s3619_s0 + $0x1e4] sm:$0x3]  ;;  %v2184_v62 = vld [vmem:[%s3619_s0 + $0x1e2] sm:$0x3] }
  0x9c   :  { %68 = vst [vmem:[#allocation0 + $0x798] sm:$0x3] %v2182_v60  ;;  %v2185_v63 = vld [vmem:[%s3619_s0 + $0x1e0] sm:$0x3]  ;;  %73 = vst [vmem:[#allocation0 + $0x790] sm:$0x3] %v2183_v61 }
  0x9d   :  { %v1796_v0 = vld [vmem:[#allocation0 + $0x581] ss:$8 sm:$0xf]   ;;  %78 = vst [vmem:[#allocation0 + $0x788] sm:$0x3] %v2184_v62 }
  0x9e   :  { %83 = vst [vmem:[#allocation0 + $0x780] sm:$0x3] %v2185_v63  ;;  %v2394_v1 = vld [vmem:[%s3619_s0 + $0x3e] sm:$0x3]  ;;  %v1800_v2 = vsel %vm1282_vm0, %v1798_v59, %v1796_v0  ;;  %v2395_v4 = vld [vmem:[%s3619_s0 + $0x3c] sm:$0x3] }
  0x9f   :  { %v1809_v3 = vld [vmem:[#allocation0 + $0x681] ss:$8 sm:$0xf0]   ;;  %1128 = vst [vmem:[#allocation0 + $0xf8] sm:$0x3] %v2394_v1  ;;  %1801 = vrot.lane.b32.xlu1 %v1800_v2, %s2488_s10 }
  0xa0   :  { %1133 = vst [vmem:[#allocation0 + $0xf0] sm:$0x3] %v2395_v4  ;;  %v2396_v5 = vld [vmem:[%s3619_s0 + $0x3a] sm:$0x3]  ;;  %v2397_v6 = vld [vmem:[%s3619_s0 + $0x38] sm:$0x3] }
  0xa1   :  { %v2398_v7 = vld [vmem:[%s3619_s0 + $0x36] sm:$0x3]  ;;  %v1807_v8 = vld [vmem:[#allocation0 + $0x681] ss:$8 sm:$0xf]  }
  0xa2   :  { %1138 = vst [vmem:[#allocation0 + $0xe8] sm:$0x3] %v2396_v5  ;;  %1143 = vst [vmem:[#allocation0 + $0xe0] sm:$0x3] %v2397_v6  ;;  %v2399_v9 = vld [vmem:[%s3619_s0 + $0x34] sm:$0x3]  ;;  %v1811_v10 = vsel %vm1282_vm0, %v1809_v3, %v1807_v8 }
  0xa3   :  { %1148 = vst [vmem:[#allocation0 + $0xd8] sm:$0x3] %v2398_v7  ;;  %1153 = vst [vmem:[#allocation0 + $0xd0] sm:$0x3] %v2399_v9  ;;  %v2400_v11 = vld [vmem:[%s3619_s0 + $0x32] sm:$0x3]  ;;  %1812 = vrot.lane.b32.xlu0 %v1811_v10, %s2488_s10 }
  0xa4   :  { %v2401_v12 = vld [vmem:[%s3619_s0 + $0x30] sm:$0x3]  ;;  %v2362_v13 = vld [vmem:[%s3619_s0 + $0x7e] sm:$0x3]  ;;  %1158 = vst [vmem:[#allocation0 + $0xc8] sm:$0x3] %v2400_v11 }
  0xa5   :  { %v1820_v14 = vld [vmem:[#allocation0 + $0x781] ss:$8 sm:$0xf0]   ;;  %1163 = vst [vmem:[#allocation0 + $0xc0] sm:$0x3] %v2401_v12 }
  0xa6   :  { %968 = vst [vmem:[#allocation0 + $0x1f8] sm:$0x3] %v2362_v13  ;;  %v2363_v15 = vld [vmem:[%s3619_s0 + $0x7c] sm:$0x3]  ;;  %v2364_v16 = vld [vmem:[%s3619_s0 + $0x7a] sm:$0x3] }
  0xa7   :  { %973 = vst [vmem:[#allocation0 + $0x1f0] sm:$0x3] %v2363_v15  ;;  %v2365_v17 = vld [vmem:[%s3619_s0 + $0x78] sm:$0x3]  ;;  %v2366_v18 = vld [vmem:[%s3619_s0 + $0x76] sm:$0x3] }
  0xa8   :  { %v1818_v19 = vld [vmem:[#allocation0 + $0x781] ss:$8 sm:$0xf]   ;;  %978 = vst [vmem:[#allocation0 + $0x1e8] sm:$0x3] %v2364_v16 }
  0xa9   :  { %983 = vst [vmem:[#allocation0 + $0x1e0] sm:$0x3] %v2365_v17  ;;  %988 = vst [vmem:[#allocation0 + $0x1d8] sm:$0x3] %v2366_v18  ;;  %v2367_v20 = vld [vmem:[%s3619_s0 + $0x74] sm:$0x3]  ;;  %v1822_v21 = vsel %vm1282_vm0, %v1820_v14, %v1818_v19 }
  0xaa   :  { %993 = vst [vmem:[#allocation0 + $0x1d0] sm:$0x3] %v2367_v20  ;;  %v2368_v22 = vld [vmem:[%s3619_s0 + $0x72] sm:$0x3]  ;;  %v2369_v23 = vld [vmem:[%s3619_s0 + $0x70] sm:$0x3]  ;;  %1823 = vrot.lane.b32.xlu1 %v1822_v21, %s2488_s10 }
  0xab   :  { %v2330_v24 = vld [vmem:[%s3619_s0 + $0xbe] sm:$0x3]  ;;  %998 = vst [vmem:[#allocation0 + $0x1c8] sm:$0x3] %v2368_v22  ;;  %1003 = vst [vmem:[#allocation0 + $0x1c0] sm:$0x3] %v2369_v23 }
  0xac   :  { %808 = vst [vmem:[#allocation0 + $0x2f8] sm:$0x3] %v2330_v24  ;;  %v2331_v25 = vld [vmem:[%s3619_s0 + $0xbc] sm:$0x3]  ;;  %v2332_v26 = vld [vmem:[%s3619_s0 + $0xba] sm:$0x3] }
  0xad   :  { %v2333_v27 = vld [vmem:[%s3619_s0 + $0xb8] sm:$0x3]  ;;  %813 = vst [vmem:[#allocation0 + $0x2f0] sm:$0x3] %v2331_v25  ;;  %818 = vst [vmem:[#allocation0 + $0x2e8] sm:$0x3] %v2332_v26 }
  0xae   :  { %v1831_v28 = vld [vmem:[#allocation0 + $0xc1] ss:$8 sm:$0xf0]   ;;  %823 = vst [vmem:[#allocation0 + $0x2e0] sm:$0x3] %v2333_v27 }
  0xaf   :  { %v2334_v29 = vld [vmem:[%s3619_s0 + $0xb6] sm:$0x3]  ;;  %v2335_v30 = vld [vmem:[%s3619_s0 + $0xb4] sm:$0x3]  ;;  %v2336_v31 = vld [vmem:[%s3619_s0 + $0xb2] sm:$0x3] }
  0xb0   :  { %828 = vst [vmem:[#allocation0 + $0x2d8] sm:$0x3] %v2334_v29  ;;  %v2337_v32 = vld [vmem:[%s3619_s0 + $0xb0] sm:$0x3]  ;;  %833 = vst [vmem:[#allocation0 + $0x2d0] sm:$0x3] %v2335_v30 }
  0xb1   :  { %v1829_v33 = vld [vmem:[#allocation0 + $0xc1] ss:$8 sm:$0xf]   ;;  %838 = vst [vmem:[#allocation0 + $0x2c8] sm:$0x3] %v2336_v31 }
  0xb2   :  { %843 = vst [vmem:[#allocation0 + $0x2c0] sm:$0x3] %v2337_v32  ;;  %v2298_v34 = vld [vmem:[%s3619_s0 + $0xfe] sm:$0x3]  ;;  %v1833_v35 = vsel %vm1282_vm0, %v1831_v28, %v1829_v33  ;;  %v2299_v36 = vld [vmem:[%s3619_s0 + $0xfc] sm:$0x3]  ;;  %v1572_v28 = vpop.permute.xlu0 %1571  }
  0xb3   :  { %648 = vst [vmem:[#allocation0 + $0x3f8] sm:$0x3] %v2298_v34  ;;  %v2300_v37 = vld [vmem:[%s3619_s0 + $0xfa] sm:$0x3]  ;;  %v2301_v38 = vld [vmem:[%s3619_s0 + $0xf8] sm:$0x3]  ;;  %1834 = vrot.lane.b32.xlu0 %v1833_v35, %s2488_s10 }
  0xb4   :  { %v1842_v39 = vld [vmem:[#allocation0 + $0x1c1] ss:$8 sm:$0xf0]   ;;  %653 = vst [vmem:[#allocation0 + $0x3f0] sm:$0x3] %v2299_v36 }
  0xb5   :  { %658 = vst [vmem:[#allocation0 + $0x3e8] sm:$0x3] %v2300_v37  ;;  %663 = vst [vmem:[#allocation0 + $0x3e0] sm:$0x3] %v2301_v38  ;;  %v2302_v40 = vld [vmem:[%s3619_s0 + $0xf6] sm:$0x3]  ;;  %v1593_v37 = vpop.permute.xlu1 %1592  }
  0xb6   :  { %668 = vst [vmem:[#allocation0 + $0x3d8] sm:$0x3] %v2302_v40  ;;  %v2303_v41 = vld [vmem:[%s3619_s0 + $0xf4] sm:$0x3]  ;;  %v2304_v42 = vld [vmem:[%s3619_s0 + $0xf2] sm:$0x3] }
  0xb7   :  { %v2305_v43 = vld [vmem:[%s3619_s0 + $0xf0] sm:$0x3]  ;;  %673 = vst [vmem:[#allocation0 + $0x3d0] sm:$0x3] %v2303_v41  ;;  %678 = vst [vmem:[#allocation0 + $0x3c8] sm:$0x3] %v2304_v42 }
  0xb8   :  { %v1840_v44 = vld [vmem:[#allocation0 + $0x1c1] ss:$8 sm:$0xf]   ;;  %683 = vst [vmem:[#allocation0 + $0x3c0] sm:$0x3] %v2305_v43 }
  0xb9   :  { %v2266_v45 = vld [vmem:[%s3619_s0 + $0x13e] sm:$0x3]  ;;  %v1844_v46 = vsel %vm1282_vm0, %v1842_v39, %v1840_v44  ;;  %v1853_v47 = vld [vmem:[#allocation0 + $0x2c1] ss:$8 sm:$0xf0]  }
  0xba   :  { %488 = vst [vmem:[#allocation0 + $0x4f8] sm:$0x3] %v2266_v45  ;;  %v2267_v48 = vld [vmem:[%s3619_s0 + $0x13c] sm:$0x3]  ;;  %1845 = vrot.lane.b32.xlu1 %v1844_v46, %s2488_s10  ;;  %v2268_v49 = vld [vmem:[%s3619_s0 + $0x13a] sm:$0x3] }
  0xbb   :  { %493 = vst [vmem:[#allocation0 + $0x4f0] sm:$0x3] %v2267_v48  ;;  %v2269_v50 = vld [vmem:[%s3619_s0 + $0x138] sm:$0x3]  ;;  %v2270_v51 = vld [vmem:[%s3619_s0 + $0x136] sm:$0x3] }
  0xbc   :  { %v1851_v52 = vld [vmem:[#allocation0 + $0x2c1] ss:$8 sm:$0xf]   ;;  %498 = vst [vmem:[#allocation0 + $0x4e8] sm:$0x3] %v2268_v49 }
  0xbd   :  { %503 = vst [vmem:[#allocation0 + $0x4e0] sm:$0x3] %v2269_v50  ;;  %508 = vst [vmem:[#allocation0 + $0x4d8] sm:$0x3] %v2270_v51  ;;  %v2271_v53 = vld [vmem:[%s3619_s0 + $0x134] sm:$0x3]  ;;  %v1855_v54 = vsel %vm1282_vm0, %v1853_v47, %v1851_v52  ;;  %v1582_v47 = vpop.permute.xlu0 %1581  }
  0xbe   :  { %513 = vst [vmem:[#allocation0 + $0x4d0] sm:$0x3] %v2271_v53  ;;  %v2272_v55 = vld [vmem:[%s3619_s0 + $0x132] sm:$0x3]  ;;  %v2273_v56 = vld [vmem:[%s3619_s0 + $0x130] sm:$0x3]  ;;  %1856 = vrot.lane.b32.xlu0 %v1855_v54, %s2488_s10 }
  0xbf   :  { %v2234_v57 = vld [vmem:[%s3619_s0 + $0x17e] sm:$0x3]  ;;  %v1864_v58 = vld [vmem:[#allocation0 + $0x3c1] ss:$8 sm:$0xf0]  }
  0xc0   :  { %518 = vst [vmem:[#allocation0 + $0x4c8] sm:$0x3] %v2272_v55  ;;  %523 = vst [vmem:[#allocation0 + $0x4c0] sm:$0x3] %v2273_v56  ;;  %v2235_v59 = vld [vmem:[%s3619_s0 + $0x17c] sm:$0x3] }
  0xc1   :  { %328 = vst [vmem:[#allocation0 + $0x5f8] sm:$0x3] %v2234_v57  ;;  %333 = vst [vmem:[#allocation0 + $0x5f0] sm:$0x3] %v2235_v59  ;;  %v2236_v60 = vld [vmem:[%s3619_s0 + $0x17a] sm:$0x3]  ;;  %v1604_v59 = vpop.permute.xlu1 %1603  }
  0xc2   :  { %v2237_v61 = vld [vmem:[%s3619_s0 + $0x178] sm:$0x3]  ;;  %v2238_v62 = vld [vmem:[%s3619_s0 + $0x176] sm:$0x3]  ;;  %338 = vst [vmem:[#allocation0 + $0x5e8] sm:$0x3] %v2236_v60 }
  0xc3   :  { %v1862_v63 = vld [vmem:[#allocation0 + $0x3c1] ss:$8 sm:$0xf]   ;;  %343 = vst [vmem:[#allocation0 + $0x5e0] sm:$0x3] %v2237_v61 }
  0xc4   :  { %348 = vst [vmem:[#allocation0 + $0x5d8] sm:$0x3] %v2238_v62  ;;  %v2239_v0 = vld [vmem:[%s3619_s0 + $0x174] sm:$0x3]  ;;  %v1866_v1 = vsel %vm1282_vm0, %v1864_v58, %v1862_v63  ;;  %v2240_v2 = vld [vmem:[%s3619_s0 + $0x172] sm:$0x3] }
  0xc5   :  { %353 = vst [vmem:[#allocation0 + $0x5d0] sm:$0x3] %v2239_v0  ;;  %v2241_v3 = vld [vmem:[%s3619_s0 + $0x170] sm:$0x3]  ;;  %v2202_v4 = vld [vmem:[%s3619_s0 + $0x1be] sm:$0x3]  ;;  %1867 = vrot.lane.b32.xlu1 %v1866_v1, %s2488_s10 }
  0xc6   :  { %358 = vst [vmem:[#allocation0 + $0x5c8] sm:$0x3] %v2240_v2  ;;  %363 = vst [vmem:[#allocation0 + $0x5c0] sm:$0x3] %v2241_v3  ;;  %v2203_v5 = vld [vmem:[%s3619_s0 + $0x1bc] sm:$0x3] }
  0xc7   :  { %168 = vst [vmem:[#allocation0 + $0x6f8] sm:$0x3] %v2202_v4  ;;  %v2204_v6 = vld [vmem:[%s3619_s0 + $0x1ba] sm:$0x3]  ;;  %v2205_v7 = vld [vmem:[%s3619_s0 + $0x1b8] sm:$0x3] }
  0xc8   :  { %v1875_v8 = vld [vmem:[#allocation0 + $0x4c1] ss:$8 sm:$0xf0]   ;;  %173 = vst [vmem:[#allocation0 + $0x6f0] sm:$0x3] %v2203_v5 }
  0xc9   :  { %178 = vst [vmem:[#allocation0 + $0x6e8] sm:$0x3] %v2204_v6  ;;  %183 = vst [vmem:[#allocation0 + $0x6e0] sm:$0x3] %v2205_v7  ;;  %v2206_v9 = vld [vmem:[%s3619_s0 + $0x1b6] sm:$0x3] }
  0xca   :  { %188 = vst [vmem:[#allocation0 + $0x6d8] sm:$0x3] %v2206_v9  ;;  %v2207_v10 = vld [vmem:[%s3619_s0 + $0x1b4] sm:$0x3]  ;;  %v2208_v11 = vld [vmem:[%s3619_s0 + $0x1b2] sm:$0x3] }
  0xcb   :  { %v2209_v12 = vld [vmem:[%s3619_s0 + $0x1b0] sm:$0x3]  ;;  %193 = vst [vmem:[#allocation0 + $0x6d0] sm:$0x3] %v2207_v10  ;;  %198 = vst [vmem:[#allocation0 + $0x6c8] sm:$0x3] %v2208_v11  ;;  %v1615_v11 = vpop.permute.xlu0 %1614  }
  0xcc   :  { %v1873_v13 = vld [vmem:[#allocation0 + $0x4c1] ss:$8 sm:$0xf]   ;;  %203 = vst [vmem:[#allocation0 + $0x6c0] sm:$0x3] %v2209_v12 }
  0xcd   :  { %v2170_v14 = vld [vmem:[%s3619_s0 + $0x1fe] sm:$0x3]  ;;  %v1877_v15 = vsel %vm1282_vm0, %v1875_v8, %v1873_v13  ;;  %v2171_v16 = vld [vmem:[%s3619_s0 + $0x1fc] sm:$0x3]  ;;  %v2172_v17 = vld [vmem:[%s3619_s0 + $0x1fa] sm:$0x3] }
  0xce   :  { %8 = vst [vmem:[#allocation0 + $0x7f8] sm:$0x3] %v2170_v14  ;;  %v2173_v18 = vld [vmem:[%s3619_s0 + $0x1f8] sm:$0x3]  ;;  %1878 = vrot.lane.b32.xlu0 %v1877_v15, %s2488_s10  ;;  %13 = vst [vmem:[#allocation0 + $0x7f0] sm:$0x3] %v2171_v16 }
  0xcf   :  { %v1886_v19 = vld [vmem:[#allocation0 + $0x5c1] ss:$8 sm:$0xf0]   ;;  %18 = vst [vmem:[#allocation0 + $0x7e8] sm:$0x3] %v2172_v17 }
  0xd0   :  { %23 = vst [vmem:[#allocation0 + $0x7e0] sm:$0x3] %v2173_v18  ;;  %v2174_v20 = vld [vmem:[%s3619_s0 + $0x1f6] sm:$0x3]  ;;  %v2175_v21 = vld [vmem:[%s3619_s0 + $0x1f4] sm:$0x3] }
  0xd1   :  { %28 = vst [vmem:[#allocation0 + $0x7d8] sm:$0x3] %v2174_v20  ;;  %v2176_v22 = vld [vmem:[%s3619_s0 + $0x1f2] sm:$0x3]  ;;  %v2177_v23 = vld [vmem:[%s3619_s0 + $0x1f0] sm:$0x3] }
  0xd2   :  { %v1884_v24 = vld [vmem:[#allocation0 + $0x5c1] ss:$8 sm:$0xf]   ;;  %33 = vst [vmem:[#allocation0 + $0x7d0] sm:$0x3] %v2175_v21 }
  0xd3   :  { %38 = vst [vmem:[#allocation0 + $0x7c8] sm:$0x3] %v2176_v22  ;;  %43 = vst [vmem:[#allocation0 + $0x7c0] sm:$0x3] %v2177_v23  ;;  %v1888_v26 = vsel %vm1282_vm0, %v1886_v19, %v1884_v24  ;;  %v1626_v24 = vpop.permute.xlu1 %1625  }
  0xd4   :  { %v1280_v25 = vld [vmem:[#allocation0] ss:$8 sm:$0xf]   ;;  %v1897_v27 = vld [vmem:[#allocation0 + $0x6c1] ss:$8 sm:$0xf0]   ;;  %1889 = vrot.lane.b32.xlu1 %v1888_v26, %s2488_s10 }
  0xd5   :  { %v1281_v29 = vld [vmem:[#allocation0] ss:$8 sm:$0xf0]   ;;  %v1895_v33 = vld [vmem:[#allocation0 + $0x6c1] ss:$8 sm:$0xf]  }
  0xd6   :  { %v1283_v30 = vsel %vm1282_vm0, %v1281_v29, %v1280_v25  ;;  %v1350_v31 = vld [vmem:[#allocation0 + $0x200] ss:$8 sm:$0xf]   ;;  %v1899_v36 = vsel %vm1282_vm0, %v1897_v27, %v1895_v33 }
  0xd7   :  { %v1352_v32 = vld [vmem:[#allocation0 + $0x200] ss:$8 sm:$0xf0]   ;;  %1285 = vst.msk [vmem:[%s3620_s1] sm:$0xff] %vm1284_vm1, %v1283_v30   ;;  %1900 = vrot.lane.b32.xlu0 %v1899_v36, %s2488_s10 }
  0xd8   :  { %v1354_v34 = vsel %vm1282_vm0, %v1352_v32, %v1350_v31  ;;  %v1314_v35 = vld [vmem:[#allocation0 + $0x100] ss:$8 sm:$0xf]   ;;  %1574 = vst.msk [vmem:[%s3620_s1] sm:$0xff] %vm1573_vm2, %v1572_v28  }
  0xd9   :  { %2432 = vst.msk [vmem:[%s3620_s1 + $0x40] sm:$0xff] %vm1284_vm1, %v1354_v34   ;;  %v1316_v38 = vld [vmem:[#allocation0 + $0x100] ss:$8 sm:$0xf0]   ;;  %v1637_v34 = vpop.permute.xlu0 %1636  }
  0xda   :  { %v1386_v39 = vld [vmem:[#allocation0 + $0x300] ss:$8 sm:$0xf]   ;;  %v1908_v40 = vld [vmem:[#allocation0 + $0x7c1] ss:$8 sm:$0xf0]   ;;  %v1318_v41 = vsel %vm1282_vm0, %v1316_v38, %v1314_v35 }
  0xdb   :  { %2457 = vst.msk [vmem:[%s3620_s1 + $0x40] sm:$0xff] %vm1573_vm2, %v1593_v37   ;;  %v1388_v42 = vld [vmem:[#allocation0 + $0x300] ss:$8 sm:$0xf0]  }
  0xdc   :  { %2428 = vst.msk [vmem:[%s3620_s1 + $0x20] sm:$0xff] %vm1284_vm1, %v1318_v41   ;;  %v1390_v43 = vsel %vm1282_vm0, %v1388_v42, %v1386_v39  ;;  %v1422_v44 = vld [vmem:[#allocation0 + $0x400] ss:$8 sm:$0xf]  }
  0xdd   :  { %v1424_v45 = vld [vmem:[#allocation0 + $0x400] ss:$8 sm:$0xf0]   ;;  %v1906_v46 = vld [vmem:[#allocation0 + $0x7c1] ss:$8 sm:$0xf]  }
  0xde   :  { %2436 = vst.msk [vmem:[%s3620_s1 + $0x60] sm:$0xff] %vm1284_vm1, %v1390_v43   ;;  %v1426_v48 = vsel %vm1282_vm0, %v1424_v45, %v1422_v44  ;;  %v1458_v49 = vld [vmem:[#allocation0 + $0x500] ss:$8 sm:$0xf]   ;;  %v1910_v50 = vsel %vm1282_vm0, %v1908_v40, %v1906_v46 }
  0xdf   :  { %2456 = vst.msk [vmem:[%s3620_s1 + $0x20] sm:$0xff] %vm1573_vm2, %v1582_v47   ;;  %v1460_v51 = vld [vmem:[#allocation0 + $0x500] ss:$8 sm:$0xf0]   ;;  %1911 = vrot.lane.b32.xlu1 %v1910_v50, %s2488_s10  ;;  %2458 = vst.msk [vmem:[%s3620_s1 + $0x60] sm:$0xff] %vm1573_vm2, %v1604_v59   ;;  %v1648_v47 = vpop.permute.xlu1 %1647  }
  0xe0   :  { %2440 = vst.msk [vmem:[%s3620_s1 + $0x80] sm:$0xff] %vm1284_vm1, %v1426_v48   ;;  %v1494_v52 = vld [vmem:[#allocation0 + $0x600] ss:$8 sm:$0xf]   ;;  %v1462_v53 = vsel %vm1282_vm0, %v1460_v51, %v1458_v49 }
  0xe1   :  { %v1496_v54 = vld [vmem:[#allocation0 + $0x600] ss:$8 sm:$0xf0]   ;;  %2444 = vst.msk [vmem:[%s3620_s1 + $0xa0] sm:$0xff] %vm1284_vm1, %v1462_v53  }
  0xe2   :  { %v1530_v55 = vld [vmem:[#allocation0 + $0x700] ss:$8 sm:$0xf]   ;;  %v1498_v56 = vsel %vm1282_vm0, %v1496_v54, %v1494_v52  ;;  %2459 = vst.msk [vmem:[%s3620_s1 + $0x80] sm:$0xff] %vm1573_vm2, %v1615_v11   ;;  %2460 = vst.msk [vmem:[%s3620_s1 + $0xa0] sm:$0xff] %vm1573_vm2, %v1626_v24  }
  0xe3   :  { %v1532_v57 = vld [vmem:[#allocation0 + $0x700] ss:$8 sm:$0xf0]   ;;  %2448 = vst.msk [vmem:[%s3620_s1 + $0xc0] sm:$0xff] %vm1284_vm1, %v1498_v56  }
  0xe4   :  { %v1287_v58 = vld [vmem:[#allocation0 + $0x40] ss:$8 sm:$0xf]   ;;  %v1534_v60 = vsel %vm1282_vm0, %v1532_v57, %v1530_v55  ;;  %2461 = vst.msk [vmem:[%s3620_s1 + $0xc0] sm:$0xff] %vm1573_vm2, %v1637_v34  }
  0xe5   :  { %v1289_v61 = vld [vmem:[#allocation0 + $0x40] ss:$8 sm:$0xf0]   ;;  %2452 = vst.msk [vmem:[%s3620_s1 + $0xe0] sm:$0xff] %vm1284_vm1, %v1534_v60  }
  0xe6   :  { %v1323_v62 = vld [vmem:[#allocation0 + $0x140] ss:$8 sm:$0xf]   ;;  %v1291_v63 = vsel %vm1282_vm0, %v1289_v61, %v1287_v58  ;;  %2462 = vst.msk [vmem:[%s3620_s1 + $0xe0] sm:$0xff] %vm1573_vm2, %v1648_v47  }
  0xe7   :  { %v1325_v0 = vld [vmem:[#allocation0 + $0x140] ss:$8 sm:$0xf0]   ;;  %2425 = vst.msk [vmem:[%s3620_s1 + $0x8] sm:$0xff] %vm1284_vm1, %v1291_v63   ;;  %v1659_v63 = vpop.permute.xlu0 %1658  }
  0xe8   :  { %v1359_v1 = vld [vmem:[#allocation0 + $0x240] ss:$8 sm:$0xf]   ;;  %v1327_v2 = vsel %vm1282_vm0, %v1325_v0, %v1323_v62  ;;  %2463 = vst.msk [vmem:[%s3620_s1 + $0x8] sm:$0xff] %vm1573_vm2, %v1659_v63  }
  0xe9   :  { %v1361_v3 = vld [vmem:[#allocation0 + $0x240] ss:$8 sm:$0xf0]   ;;  %2429 = vst.msk [vmem:[%s3620_s1 + $0x28] sm:$0xff] %vm1284_vm1, %v1327_v2  }
  0xea   :  { %v1395_v4 = vld [vmem:[#allocation0 + $0x340] ss:$8 sm:$0xf]   ;;  %v1363_v5 = vsel %vm1282_vm0, %v1361_v3, %v1359_v1 }
  0xeb   :  { %v1397_v6 = vld [vmem:[#allocation0 + $0x340] ss:$8 sm:$0xf0]   ;;  %2433 = vst.msk [vmem:[%s3620_s1 + $0x48] sm:$0xff] %vm1284_vm1, %v1363_v5  }
  0xec   :  { %v1431_v7 = vld [vmem:[#allocation0 + $0x440] ss:$8 sm:$0xf]   ;;  %v1399_v8 = vsel %vm1282_vm0, %v1397_v6, %v1395_v4 }
  0xed   :  { %v1433_v9 = vld [vmem:[#allocation0 + $0x440] ss:$8 sm:$0xf0]   ;;  %2437 = vst.msk [vmem:[%s3620_s1 + $0x68] sm:$0xff] %vm1284_vm1, %v1399_v8  }
  0xee   :  { %v1467_v10 = vld [vmem:[#allocation0 + $0x540] ss:$8 sm:$0xf]   ;;  %v1435_v12 = vsel %vm1282_vm0, %v1433_v9, %v1431_v7  ;;  %v1670_v9 = vpop.permute.xlu1 %1669  }
  0xef   :  { %v1469_v13 = vld [vmem:[#allocation0 + $0x540] ss:$8 sm:$0xf0]   ;;  %2441 = vst.msk [vmem:[%s3620_s1 + $0x88] sm:$0xff] %vm1284_vm1, %v1435_v12  }
  0xf0   :  { %v1503_v14 = vld [vmem:[#allocation0 + $0x640] ss:$8 sm:$0xf]   ;;  %v1471_v15 = vsel %vm1282_vm0, %v1469_v13, %v1467_v10  ;;  %2464 = vst.msk [vmem:[%s3620_s1 + $0x28] sm:$0xff] %vm1573_vm2, %v1670_v9   ;;  %v1681_v10 = vpop.permute.xlu0 %1680  }
  0xf1   :  { %v1505_v16 = vld [vmem:[#allocation0 + $0x640] ss:$8 sm:$0xf0]   ;;  %2445 = vst.msk [vmem:[%s3620_s1 + $0xa8] sm:$0xff] %vm1284_vm1, %v1471_v15  }
  0xf2   :  { %v1539_v17 = vld [vmem:[#allocation0 + $0x740] ss:$8 sm:$0xf]   ;;  %v1507_v18 = vsel %vm1282_vm0, %v1505_v16, %v1503_v14  ;;  %2465 = vst.msk [vmem:[%s3620_s1 + $0x48] sm:$0xff] %vm1573_vm2, %v1681_v10   ;;  %v1692_v11 = vpop.permute.xlu1 %1691  }
  0xf3   :  { %v1541_v19 = vld [vmem:[#allocation0 + $0x740] ss:$8 sm:$0xf0]   ;;  %2449 = vst.msk [vmem:[%s3620_s1 + $0xc8] sm:$0xff] %vm1284_vm1, %v1507_v18  }
  0xf4   :  { %v1296_v20 = vld [vmem:[#allocation0 + $0x80] ss:$8 sm:$0xf]   ;;  %v1543_v21 = vsel %vm1282_vm0, %v1541_v19, %v1539_v17  ;;  %2466 = vst.msk [vmem:[%s3620_s1 + $0x68] sm:$0xff] %vm1573_vm2, %v1692_v11   ;;  %v1703_v12 = vpop.permute.xlu0 %1702  }
  0xf5   :  { %v1298_v22 = vld [vmem:[#allocation0 + $0x80] ss:$8 sm:$0xf0]   ;;  %2453 = vst.msk [vmem:[%s3620_s1 + $0xe8] sm:$0xff] %vm1284_vm1, %v1543_v21  }
  0xf6   :  { %v1332_v23 = vld [vmem:[#allocation0 + $0x180] ss:$8 sm:$0xf]   ;;  %v1300_v25 = vsel %vm1282_vm0, %v1298_v22, %v1296_v20  ;;  %2467 = vst.msk [vmem:[%s3620_s1 + $0x88] sm:$0xff] %vm1573_vm2, %v1703_v12   ;;  %v1714_v13 = vpop.permute.xlu1 %1713  }
  0xf7   :  { %v1334_v26 = vld [vmem:[#allocation0 + $0x180] ss:$8 sm:$0xf0]   ;;  %2426 = vst.msk [vmem:[%s3620_s1 + $0x10] sm:$0xff] %vm1284_vm1, %v1300_v25  }
  0xf8   :  { %v1368_v27 = vld [vmem:[#allocation0 + $0x280] ss:$8 sm:$0xf]   ;;  %v1336_v28 = vsel %vm1282_vm0, %v1334_v26, %v1332_v23  ;;  %2468 = vst.msk [vmem:[%s3620_s1 + $0xa8] sm:$0xff] %vm1573_vm2, %v1714_v13   ;;  %v1725_v14 = vpop.permute.xlu0 %1724  }
  0xf9   :  { %v1370_v29 = vld [vmem:[#allocation0 + $0x280] ss:$8 sm:$0xf0]   ;;  %2430 = vst.msk [vmem:[%s3620_s1 + $0x30] sm:$0xff] %vm1284_vm1, %v1336_v28  }
  0xfa   :  { %v1404_v30 = vld [vmem:[#allocation0 + $0x380] ss:$8 sm:$0xf]   ;;  %v1372_v31 = vsel %vm1282_vm0, %v1370_v29, %v1368_v27  ;;  %2469 = vst.msk [vmem:[%s3620_s1 + $0xc8] sm:$0xff] %vm1573_vm2, %v1725_v14   ;;  %v1736_v15 = vpop.permute.xlu1 %1735  }
  0xfb   :  { %v1406_v32 = vld [vmem:[#allocation0 + $0x380] ss:$8 sm:$0xf0]   ;;  %2434 = vst.msk [vmem:[%s3620_s1 + $0x50] sm:$0xff] %vm1284_vm1, %v1372_v31  }
  0xfc   :  { %v1440_v33 = vld [vmem:[#allocation0 + $0x480] ss:$8 sm:$0xf]   ;;  %v1408_v35 = vsel %vm1282_vm0, %v1406_v32, %v1404_v30  ;;  %2470 = vst.msk [vmem:[%s3620_s1 + $0xe8] sm:$0xff] %vm1573_vm2, %v1736_v15   ;;  %v1747_v16 = vpop.permute.xlu0 %1746  }
  0xfd   :  { %v1442_v36 = vld [vmem:[#allocation0 + $0x480] ss:$8 sm:$0xf0]   ;;  %2438 = vst.msk [vmem:[%s3620_s1 + $0x70] sm:$0xff] %vm1284_vm1, %v1408_v35  }
  0xfe   :  { %v1476_v37 = vld [vmem:[#allocation0 + $0x580] ss:$8 sm:$0xf]   ;;  %v1444_v38 = vsel %vm1282_vm0, %v1442_v36, %v1440_v33  ;;  %2471 = vst.msk [vmem:[%s3620_s1 + $0x10] sm:$0xff] %vm1573_vm2, %v1747_v16   ;;  %v1758_v17 = vpop.permute.xlu1 %1757  }
  0xff   :  { %v1478_v39 = vld [vmem:[#allocation0 + $0x580] ss:$8 sm:$0xf0]   ;;  %2442 = vst.msk [vmem:[%s3620_s1 + $0x90] sm:$0xff] %vm1284_vm1, %v1444_v38  }
 0x100   :  { %v1512_v40 = vld [vmem:[#allocation0 + $0x680] ss:$8 sm:$0xf]   ;;  %v1480_v41 = vsel %vm1282_vm0, %v1478_v39, %v1476_v37  ;;  %2472 = vst.msk [vmem:[%s3620_s1 + $0x30] sm:$0xff] %vm1573_vm2, %v1758_v17   ;;  %v1769_v18 = vpop.permute.xlu0 %1768  }
 0x101   :  { %v1514_v42 = vld [vmem:[#allocation0 + $0x680] ss:$8 sm:$0xf0]   ;;  %2446 = vst.msk [vmem:[%s3620_s1 + $0xb0] sm:$0xff] %vm1284_vm1, %v1480_v41  }
 0x102   :  { %v1548_v43 = vld [vmem:[#allocation0 + $0x780] ss:$8 sm:$0xf]   ;;  %v1516_v44 = vsel %vm1282_vm0, %v1514_v42, %v1512_v40  ;;  %2473 = vst.msk [vmem:[%s3620_s1 + $0x50] sm:$0xff] %vm1573_vm2, %v1769_v18   ;;  %v1780_v19 = vpop.permute.xlu1 %1779  }
 0x103   :  { %v1550_v45 = vld [vmem:[#allocation0 + $0x780] ss:$8 sm:$0xf0]   ;;  %2450 = vst.msk [vmem:[%s3620_s1 + $0xd0] sm:$0xff] %vm1284_vm1, %v1516_v44  }
 0x104   :  { %v1305_v46 = vld [vmem:[#allocation0 + $0xc0] ss:$8 sm:$0xf]   ;;  %v1552_v48 = vsel %vm1282_vm0, %v1550_v45, %v1548_v43  ;;  %2474 = vst.msk [vmem:[%s3620_s1 + $0x70] sm:$0xff] %vm1573_vm2, %v1780_v19  }
 0x105   :  { %v1307_v49 = vld [vmem:[#allocation0 + $0xc0] ss:$8 sm:$0xf0]   ;;  %2454 = vst.msk [vmem:[%s3620_s1 + $0xf0] sm:$0xff] %vm1284_vm1, %v1552_v48  }
 0x106   :  { %v1341_v50 = vld [vmem:[#allocation0 + $0x1c0] ss:$8 sm:$0xf]   ;;  %v1309_v51 = vsel %vm1282_vm0, %v1307_v49, %v1305_v46 }
 0x107   :  { %v1343_v52 = vld [vmem:[#allocation0 + $0x1c0] ss:$8 sm:$0xf0]   ;;  %2427 = vst.msk [vmem:[%s3620_s1 + $0x18] sm:$0xff] %vm1284_vm1, %v1309_v51  }
 0x108   :  { %v1377_v53 = vld [vmem:[#allocation0 + $0x2c0] ss:$8 sm:$0xf]   ;;  %v1345_v54 = vsel %vm1282_vm0, %v1343_v52, %v1341_v50 }
 0x109   :  { %v1379_v55 = vld [vmem:[#allocation0 + $0x2c0] ss:$8 sm:$0xf0]   ;;  %2431 = vst.msk [vmem:[%s3620_s1 + $0x38] sm:$0xff] %vm1284_vm1, %v1345_v54  }
 0x10a   :  { %v1413_v56 = vld [vmem:[#allocation0 + $0x3c0] ss:$8 sm:$0xf]   ;;  %v1381_v57 = vsel %vm1282_vm0, %v1379_v55, %v1377_v53  ;;  %v1791_v20 = vpop.permute.xlu0 %1790  }
 0x10b   :  { %v1415_v58 = vld [vmem:[#allocation0 + $0x3c0] ss:$8 sm:$0xf0]   ;;  %2435 = vst.msk [vmem:[%s3620_s1 + $0x58] sm:$0xff] %vm1284_vm1, %v1381_v57  }
 0x10c   :  { %v1449_v59 = vld [vmem:[#allocation0 + $0x4c0] ss:$8 sm:$0xf]   ;;  %v1417_v60 = vsel %vm1282_vm0, %v1415_v58, %v1413_v56  ;;  %2475 = vst.msk [vmem:[%s3620_s1 + $0x90] sm:$0xff] %vm1573_vm2, %v1791_v20  }
 0x10d   :  { %v1451_v61 = vld [vmem:[#allocation0 + $0x4c0] ss:$8 sm:$0xf0]   ;;  %2439 = vst.msk [vmem:[%s3620_s1 + $0x78] sm:$0xff] %vm1284_vm1, %v1417_v60  }
 0x10e   :  { %v1485_v62 = vld [vmem:[#allocation0 + $0x5c0] ss:$8 sm:$0xf]   ;;  %v1453_v0 = vsel %vm1282_vm0, %v1451_v61, %v1449_v59 }
 0x10f   :  { %v1487_v1 = vld [vmem:[#allocation0 + $0x5c0] ss:$8 sm:$0xf0]   ;;  %2443 = vst.msk [vmem:[%s3620_s1 + $0x98] sm:$0xff] %vm1284_vm1, %v1453_v0  }
 0x110   :  { %v1521_v2 = vld [vmem:[#allocation0 + $0x6c0] ss:$8 sm:$0xf]   ;;  %v1489_v3 = vsel %vm1282_vm0, %v1487_v1, %v1485_v62 }
 0x111   :  { %v1523_v4 = vld [vmem:[#allocation0 + $0x6c0] ss:$8 sm:$0xf0]   ;;  %2447 = vst.msk [vmem:[%s3620_s1 + $0xb8] sm:$0xff] %vm1284_vm1, %v1489_v3   ;;  %v1802_v21 = vpop.permute.xlu1 %1801  }
 0x112   :  { %v1557_v5 = vld [vmem:[#allocation0 + $0x7c0] ss:$8 sm:$0xf]   ;;  %v1525_v6 = vsel %vm1282_vm0, %v1523_v4, %v1521_v2  ;;  %2476 = vst.msk [vmem:[%s3620_s1 + $0xb0] sm:$0xff] %vm1573_vm2, %v1802_v21  }
 0x113   :  { %v1559_v7 = vld [vmem:[#allocation0 + $0x7c0] ss:$8 sm:$0xf0]   ;;  %2451 = vst.msk [vmem:[%s3620_s1 + $0xd8] sm:$0xff] %vm1284_vm1, %v1525_v6  }
 0x114   :  { %v1561_v8 = vsel %vm1282_vm0, %v1559_v7, %v1557_v5 }
 0x115   :  { %2455 = vst.msk [vmem:[%s3620_s1 + $0xf8] sm:$0xff] %vm1284_vm1, %v1561_v8   ;;  %v1813_v22 = vpop.permute.xlu0 %1812  }
 0x116   :  { %2477 = vst.msk [vmem:[%s3620_s1 + $0xd0] sm:$0xff] %vm1573_vm2, %v1813_v22  }
 0x11c   :  { %v1824_v23 = vpop.permute.xlu1 %1823  }
 0x11d   :  { %2478 = vst.msk [vmem:[%s3620_s1 + $0xf0] sm:$0xff] %vm1573_vm2, %v1824_v23  }
 0x125   :  { %v1835_v24 = vpop.permute.xlu0 %1834  }
 0x126   :  { %2479 = vst.msk [vmem:[%s3620_s1 + $0x18] sm:$0xff] %vm1573_vm2, %v1835_v24  }
 0x12c   :  { %v1846_v25 = vpop.permute.xlu1 %1845  }
 0x12d   :  { %2480 = vst.msk [vmem:[%s3620_s1 + $0x38] sm:$0xff] %vm1573_vm2, %v1846_v25  }
 0x130   :  { %v1857_v26 = vpop.permute.xlu0 %1856  }
 0x131   :  { %2481 = vst.msk [vmem:[%s3620_s1 + $0x58] sm:$0xff] %vm1573_vm2, %v1857_v26  }
 0x137   :  { %v1868_v27 = vpop.permute.xlu1 %1867  }
 0x138   :  { %2482 = vst.msk [vmem:[%s3620_s1 + $0x78] sm:$0xff] %vm1573_vm2, %v1868_v27  }
 0x140   :  { %v1879_v28 = vpop.permute.xlu0 %1878  }
 0x141   :  { %2483 = vst.msk [vmem:[%s3620_s1 + $0x98] sm:$0xff] %vm1573_vm2, %v1879_v28  }
 0x146   :  { %v1890_v29 = vpop.permute.xlu1 %1889  }
 0x147   :  { %2484 = vst.msk [vmem:[%s3620_s1 + $0xb8] sm:$0xff] %vm1573_vm2, %v1890_v29  }
 0x149   :  { %v1901_v30 = vpop.permute.xlu0 %1900  }
 0x14a   :  { %2485 = vst.msk [vmem:[%s3620_s1 + $0xd8] sm:$0xff] %vm1573_vm2, %v1901_v30  }
 0x151   :  { %v1912_v31 = vpop.permute.xlu1 %1911  }
 0x152   :  { %2486 = vst.msk [vmem:[%s3620_s1 + $0xf8] sm:$0xff] %vm1573_vm2, %v1912_v31  }

// kernel: generator_forward.4
= control target key start
LH: loop header
LB: loop body
LE: loop exit
PB: predicated region body
PF: predicated region fallthrough
CT: control target
= control target key end

     0   :  { %s567_s0 = inlined_call_operand.vmem [shape: f32[8,128], index: 0, kind: input, shape index: {}]   ;;  %s568_s1 = inlined_call_operand.vmem [shape: f32[8,32,128], index: 1, kind: input, shape index: {}]   ;;  %s569_s2 = inlined_call_operand.vmem [shape: f32[32,1], index: 2, kind: input, shape index: {}]   ;;  %s570_s3 = inlined_call_operand.vmem [shape: f32[32,1], index: 3, kind: input, shape index: {}]   ;;  %s571_s4 = inlined_call_operand.vmem [shape: f32[32,128], index: 4, kind: output, shape index: {}]  }
   0x1   :  { %v284_v0 = vld [vmem:[%s567_s0] ss:$0 sm:$0xff]  ;;  %v20_v1 = vld [vmem:[%s568_s1 + $0x10] sm:$0xff]  ;;  %v289_v2 = vld [vmem:[%s567_s0 + $0x1] ss:$0 sm:$0xff] }
   0x2   :  { %v28_v3 = vmul.f32 %v284_v0, %v20_v1  ;;  %v287_v4 = vld [vmem:[%s568_s1 + $0x30] sm:$0xff]  ;;  %v294_v5 = vld [vmem:[%s567_s0 + $0x2] ss:$0 sm:$0xff]  ;;  %v378_v9 = vld [vmem:[%s567_s0 + $0x3] ss:$0 sm:$0xff] }
   0x3   :  { %v292_v6 = vld [vmem:[%s568_s1 + $0x50] sm:$0xff]  ;;  %v42_v7 = vmul.f32 %v289_v2, %v287_v4  ;;  %v386_v11 = vld [vmem:[%s567_s0 + $0x4] ss:$0 sm:$0xff]  ;;  %v395_v15 = vld [vmem:[%s567_s0 + $0x5] ss:$0 sm:$0xff] }
   0x4   :  { %v60_v8 = vmul.f32 %v294_v5, %v292_v6  ;;  %v297_v10 = vld [vmem:[%s568_s1 + $0x70] sm:$0xff]  ;;  %v403_v17 = vld [vmem:[%s567_s0 + $0x6] ss:$0 sm:$0xff]  ;;  %v418_v23 = vld [vmem:[%s567_s0 + $0x7] ss:$0 sm:$0xff] }
   0x5   :  { %v302_v12 = vld [vmem:[%s568_s1 + $0x90] sm:$0xff]  ;;  %v46_v13 = vadd.f32 %v42_v7, %v28_v3  ;;  %v78_v14 = vmul.f32 %v378_v9, %v297_v10  ;;  %v18_v19 = vld [vmem:[%s568_s1] sm:$0xff]  ;;  %v21_v36 = vld [vmem:[%s568_s1 + $0x18] sm:$0xff] }
   0x6   :  { %v307_v16 = vld [vmem:[%s568_s1 + $0xb0] sm:$0xff]  ;;  %v285_v20 = vld [vmem:[%s568_s1 + $0x20] sm:$0xff]  ;;  %v96_v22 = vmul.f32 %v386_v11, %v302_v12  ;;  %v26_v24 = vmul.f32 %v284_v0, %v18_v19  ;;  %v288_v37 = vld [vmem:[%s568_s1 + $0x38] sm:$0xff]  ;;  %v29_v39 = vmul.f32 %v284_v0, %v21_v36 }
   0x7   :  { %v312_v18 = vld [vmem:[%s568_s1 + $0xd0] sm:$0xff]  ;;  %v64_v21 = vadd.f32 %v60_v8, %v46_v13  ;;  %v40_v25 = vmul.f32 %v289_v2, %v285_v20  ;;  %v290_v26 = vld [vmem:[%s568_s1 + $0x40] sm:$0xff]  ;;  %v114_v33 = vmul.f32 %v395_v15, %v307_v16  ;;  %v293_v38 = vld [vmem:[%s568_s1 + $0x58] sm:$0xff]  ;;  %v43_v40 = vmul.f32 %v289_v2, %v288_v37 }
   0x8   :  { %v295_v27 = vld [vmem:[%s568_s1 + $0x60] sm:$0xff]  ;;  %v317_v28 = vld [vmem:[%s568_s1 + $0xf0] sm:$0xff]  ;;  %v58_v29 = vmul.f32 %v294_v5, %v290_v26  ;;  %v61_v41 = vmul.f32 %v294_v5, %v293_v38  ;;  %v298_v42 = vld [vmem:[%s568_s1 + $0x78] sm:$0xff]  ;;  %v132_v44 = vmul.f32 %v403_v17, %v312_v18 }
   0x9   :  { %v300_v30 = vld [vmem:[%s568_s1 + $0x80] sm:$0xff]  ;;  %v82_v32 = vadd.f32 %v78_v14, %v64_v21  ;;  %v44_v34 = vadd.f32 %v40_v25, %v26_v24  ;;  %v76_v35 = vmul.f32 %v378_v9, %v295_v27  ;;  %v303_v48 = vld [vmem:[%s568_s1 + $0x98] sm:$0xff]  ;;  %v19_v49 = vld [vmem:[%s568_s1 + $0x8] sm:$0xff]  ;;  %v150_v50 = vmul.f32 %v418_v23, %v317_v28 }
   0xa   :  { %v305_v31 = vld [vmem:[%s568_s1 + $0xa0] sm:$0xff]  ;;  %v94_v46 = vmul.f32 %v386_v11, %v300_v30  ;;  %v47_v52 = vadd.f32 %v43_v40, %v29_v39  ;;  %v79_v53 = vmul.f32 %v378_v9, %v298_v42  ;;  %v286_v54 = vld [vmem:[%s568_s1 + $0x28] sm:$0xff]  ;;  %v308_v60 = vld [vmem:[%s568_s1 + $0xb8] sm:$0xff]  ;;  %v27_v61 = vmul.f32 %v284_v0, %v19_v49 }
   0xb   :  { %v100_v43 = vadd.f32 %v96_v22, %v82_v32  ;;  %v62_v45 = vadd.f32 %v58_v29, %v44_v34  ;;  %v310_v47 = vld [vmem:[%s568_s1 + $0xc0] sm:$0xff]  ;;  %v112_v51 = vmul.f32 %v395_v15, %v305_v31  ;;  %v291_v55 = vld [vmem:[%s568_s1 + $0x48] sm:$0xff]  ;;  %v41_v62 = vmul.f32 %v289_v2, %v286_v54  ;;  %v313_v10 = vld [vmem:[%s568_s1 + $0xd8] sm:$0xff] }
   0xc   :  { %v296_v56 = vld [vmem:[%s568_s1 + $0x68] sm:$0xff]  ;;  %v315_v59 = vld [vmem:[%s568_s1 + $0xe0] sm:$0xff]  ;;  %v130_v63 = vmul.f32 %v403_v17, %v310_v47  ;;  %v65_v1 = vadd.f32 %v61_v41, %v47_v52  ;;  %v97_v3 = vmul.f32 %v386_v11, %v303_v48  ;;  %v59_v4 = vmul.f32 %v294_v5, %v291_v55  ;;  %v318_v19 = vld [vmem:[%s568_s1 + $0xf8] sm:$0xff] }
   0xd   :  { %v118_v57 = vadd.f32 %v114_v33, %v100_v43  ;;  %v80_v58 = vadd.f32 %v76_v35, %v62_v45  ;;  %v301_v6 = vld [vmem:[%s568_s1 + $0x88] sm:$0xff]  ;;  %v45_v12 = vadd.f32 %v41_v62, %v27_v61  ;;  %v77_v0 = vmul.f32 %v378_v9, %v296_v56 }
   0xe   :  { %v148_v2 = vmul.f32 %v418_v23, %v315_v59  ;;  %v83_v13 = vadd.f32 %v79_v53, %v65_v1  ;;  %v115_v14 = vmul.f32 %v395_v15, %v308_v60  ;;  %v306_v5 = vld [vmem:[%s568_s1 + $0xa8] sm:$0xff]  ;;  %v95_v21 = vmul.f32 %v386_v11, %v301_v6 }
   0xf   :  { %v136_v7 = vadd.f32 %v132_v44, %v118_v57  ;;  %v98_v8 = vadd.f32 %v94_v46, %v80_v58  ;;  %v63_v20 = vadd.f32 %v59_v4, %v45_v12  ;;  %v133_v22 = vmul.f32 %v403_v17, %v313_v10  ;;  %v311_v24 = vld [vmem:[%s568_s1 + $0xc8] sm:$0xff] }
  0x10   :  { %v101_v9 = vadd.f32 %v97_v3, %v83_v13  ;;  %v113_v27 = vmul.f32 %v395_v15, %v306_v5  ;;  %v151_v29 = vmul.f32 %v418_v23, %v318_v19  ;;  %v316_v11 = vld [vmem:[%s568_s1 + $0xe8] sm:$0xff]  ;;  %v131_v32 = vmul.f32 %v403_v17, %v311_v24  ;;  %v199_v24 = vld [vmem:[%s569_s2 + $0x18] sm:$0xff] }
  0x11   :  { %v492_v16 = vadd.f32 %v150_v50, %v136_v7  ;;  %v116_v18 = vadd.f32 %v112_v51, %v98_v8  ;;  %v81_v26 = vadd.f32 %v77_v0, %v63_v20  ;;  %v149_v35 = vmul.f32 %v418_v23, %v316_v11  ;;  %v198_v20 = vld [vmem:[%s569_s2 + $0x10] sm:$0xff]  ;;  %v213_v11 = vld [vmem:[%s570_s3 + $0x8] sm:$0xff] }
  0x12   :  { %v119_v28 = vadd.f32 %v115_v14, %v101_v9  ;;  %v331_v40 = vmov 0   ;;  %v196_v14 = vld [vmem:[%s569_s2] sm:$0xff] }
  0x13   :  { %160 = vadd.xlane.f32.xlu1 %v492_v16  ;;  %v134_v25 = vadd.f32 %v130_v63, %v116_v18  ;;  %v99_v31 = vadd.f32 %v95_v21, %v81_v26  ;;  %v166_v23 = vmul.f32 %v492_v16, %v492_v16  ;;  %321 = vset.pattern.permute.xlu0 %v331_v40 }
  0x14   :  { %v137_v33 = vadd.f32 %v133_v22, %v119_v28  ;;  %322 = vset.pattern.permute.xlu1 %v331_v40 }
  0x15   :  { %v508_v30 = vadd.f32 %v148_v2, %v134_v25  ;;  %v117_v34 = vadd.f32 %v113_v27, %v99_v31  ;;  %v197_v2 = vld [vmem:[%s569_s2 + $0x8] sm:$0xff]  ;;  %v212_v27 = vld [vmem:[%s570_s3] sm:$0xff] }
  0x16   :  { %v513_v36 = vadd.f32 %v151_v29, %v137_v33  ;;  %v214_v33 = vld [vmem:[%s570_s3 + $0x10] sm:$0xff] }
  0x17   :  { %156 = vadd.xlane.f32.xlu0 %v508_v30  ;;  %v135_v15 = vadd.f32 %v131_v32, %v117_v34  ;;  %v164_v17 = vmul.f32 %v508_v30, %v508_v30 }
  0x18   :  { %162 = vadd.xlane.f32.xlu1 %v513_v36  ;;  %v167_v39 = vmul.f32 %v513_v36, %v513_v36 }
  0x19   :  { %v516_v37 = vadd.f32 %v149_v35, %v135_v15  ;;  %v215_v15 = vld [vmem:[%s570_s3 + $0x18] sm:$0xff] }
  0x1b   :  { %158 = vadd.xlane.f32.xlu0 %v516_v37  ;;  %v165_v38 = vmul.f32 %v516_v37, %v516_v37 }
  0x1d   :  { %170 = vadd.xlane.f32.xlu1 %v165_v38 }
  0x1f   :  { %168 = vadd.xlane.f32.xlu0 %v164_v17 }
  0x21   :  { %174 = vadd.xlane.f32.xlu1 %v167_v39 }
  0x23   :  { %172 = vadd.xlane.f32.xlu0 %v166_v23 }
  0xa0   :  { %v161_v41 = vpop.xlane.xlu1 %160 }
  0xa1   :  { %v178_v51 = vmul.f32 0.0078125, %v161_v41 }
  0xa3   :  { %v186_v61 = vmul.f32 %v178_v51, %v178_v51 }
  0xa4   :  { %v157_v42 = vpop.xlane.xlu0 %156 }
  0xa5   :  { %v163_v43 = vpop.xlane.xlu1 %162  ;;  %v176_v45 = vmul.f32 0.0078125, %v157_v42 }
  0xa6   :  { %v179_v48 = vmul.f32 0.0078125, %v163_v43 }
  0xa7   :  { %v184_v53 = vmul.f32 %v176_v45, %v176_v45 }
  0xa8   :  { %v159_v44 = vpop.xlane.xlu0 %158  ;;  %v187_v57 = vmul.f32 %v179_v48, %v179_v48 }
  0xa9   :  { %v177_v46 = vmul.f32 0.0078125, %v159_v44 }
  0xaa   :  { %v171_v47 = vpop.xlane.xlu1 %170 }
  0xab   :  { %v185_v49 = vmul.f32 %v177_v46, %v177_v46  ;;  %v181_v50 = vmul.f32 0.0078125, %v171_v47 }
  0xac   :  { %v169_v52 = vpop.xlane.xlu0 %168 }
  0xad   :  { %v189_v54 = vsub.f32 %v181_v50, %v185_v49  ;;  %v180_v55 = vmul.f32 0.0078125, %v169_v52 }
  0xae   :  { %v175_v56 = vpop.xlane.xlu1 %174 }
  0xaf   :  { %v193_v58 = vmax.f32 %v189_v54, 0.0  ;;  %v188_v59 = vsub.f32 %v180_v55, %v184_v53  ;;  %v183_v60 = vmul.f32 0.0078125, %v175_v56 }
  0xb0   :  { %v173_v62 = vpop.xlane.xlu0 %172 }
  0xb1   :  { %v201_v63 = vadd.f32 1e-05, %v193_v58  ;;  %v192_v1 = vmax.f32 %v188_v59, 0.0  ;;  %v191_v3 = vsub.f32 %v183_v60, %v187_v57  ;;  %v182_v4 = vmul.f32 0.0078125, %v173_v62 }
  0xb3   :  { %323 = vrsqrt.f32 %v201_v63  ;;  %v200_v6 = vadd.f32 1e-05, %v192_v1  ;;  %v195_v7 = vmax.f32 %v191_v3, 0.0  ;;  %v190_v8 = vsub.f32 %v182_v4, %v186_v61 }
  0xb5   :  { %325 = vrsqrt.f32 %v200_v6  ;;  %v194_v10 = vmax.f32 %v190_v8, 0.0  ;;  %v203_v12 = vadd.f32 1e-05, %v195_v7 }
  0xb7   :  { %v202_v0 = vadd.f32 1e-05, %v194_v10 }
  0xb9   :  { %327 = vrsqrt.f32 %v202_v0 }
  0xba   :  { %329 = vrsqrt.f32 %v203_v12 }
  0xbd   :  { %v324_v13 = vpop.eup %323 }
  0xbe   :  { %v209_v5 = vmul.f32 %v324_v13, %v197_v2 }
  0xbf   :  { %v326_v18 = vpop.eup %325 }
  0xc0   :  { %231 = vperm.xlu1 %322, %v209_v5   ;;  %v208_v19 = vmul.f32 %v326_v18, %v196_v14  ;;  %v217_v29 = vmul.f32 %v209_v5, %v177_v46 }
  0xc2   :  { %226 = vperm.xlu0 %321, %v208_v19   ;;  %v216_v26 = vmul.f32 %v208_v19, %v176_v45  ;;  %v221_v31 = vsub.f32 %v213_v11, %v217_v29 }
  0xc3   :  { %v328_v21 = vpop.eup %327 }
  0xc4   :  { %v210_v9 = vmul.f32 %v328_v21, %v198_v20  ;;  %v330_v22 = vpop.eup %329  ;;  %v220_v28 = vsub.f32 %v212_v27, %v216_v26 }
  0xc5   :  { %v211_v25 = vmul.f32 %v330_v22, %v199_v24 }
  0xc6   :  { %236 = vperm.xlu1 %322, %v210_v9   ;;  %v218_v32 = vmul.f32 %v210_v9, %v178_v51 }
  0xc7   :  { %v219_v35 = vmul.f32 %v211_v25, %v179_v48 }
  0xc8   :  { %v222_v34 = vsub.f32 %v214_v33, %v218_v32 }
  0xc9   :  { %v223_v38 = vsub.f32 %v215_v15, %v219_v35 }
  0xca   :  { %241 = vperm.xlu1 %322, %v211_v25  }
  0xce   :  { %250 = vperm.xlu1 %322, %v220_v28  }
  0xd2   :  { %255 = vperm.xlu1 %322, %v221_v31  }
  0xd6   :  { %260 = vperm.xlu1 %322, %v222_v34  }
  0xda   :  { %265 = vperm.xlu1 %322, %v223_v38  }
 0x13f   :  { %v232_v17 = vpop.permute.xlu1 %231 }
 0x140   :  { %v245_v44 = vmul.f32 %v232_v17, %v516_v37 }
 0x141   :  { %v227_v23 = vpop.permute.xlu0 %226 }
 0x142   :  { %v244_v41 = vmul.f32 %v227_v23, %v508_v30 }
 0x145   :  { %v237_v39 = vpop.permute.xlu1 %236 }
 0x146   :  { %v246_v48 = vmul.f32 %v237_v39, %v492_v16 }
 0x149   :  { %v242_v40 = vpop.permute.xlu1 %241 }
 0x14a   :  { %v247_v51 = vmul.f32 %v242_v40, %v513_v36 }
 0x14d   :  { %v251_v42 = vpop.permute.xlu1 %250 }
 0x14e   :  { %v268_v43 = vadd.f32 %v251_v42, %v244_v41 }
 0x150   :  { %v272_v45 = vmax.f32 %v268_v43, 0.0 }
 0x151   :  { %v256_v46 = vpop.permute.xlu1 %255 }
 0x152   :  { %276 = vst [vmem:[%s571_s4] sm:$0xff] %v272_v45  ;;  %v269_v47 = vadd.f32 %v256_v46, %v245_v44 }
 0x154   :  { %v273_v49 = vmax.f32 %v269_v47, 0.0 }
 0x155   :  { %v261_v50 = vpop.permute.xlu1 %260 }
 0x156   :  { %277 = vst [vmem:[%s571_s4 + $0x8] sm:$0xff] %v273_v49  ;;  %v270_v30 = vadd.f32 %v261_v50, %v246_v48 }
 0x158   :  { %v274_v52 = vmax.f32 %v270_v30, 0.0 }
 0x159   :  { %v266_v37 = vpop.permute.xlu1 %265 }
 0x15a   :  { %278 = vst [vmem:[%s571_s4 + $0x10] sm:$0xff] %v274_v52  ;;  %v271_v53 = vadd.f32 %v266_v37, %v247_v51 }
 0x15c   :  { %v275_v54 = vmax.f32 %v271_v53, 0.0 }
 0x15e   :  { %279 = vst [vmem:[%s571_s4 + $0x18] sm:$0xff] %v275_v54 }

// kernel: generator_forward.5
= control target key start
LH: loop header
LB: loop body
LE: loop exit
PB: predicated region body
PF: predicated region fallthrough
CT: control target
= control target key end

     0   :  { %vm794_vm0 = vcmask 785408   ;;  %s2500_s0 = inlined_call_operand.vmem [shape: bf16[864,128], index: 0, kind: input, shape index: {}]   ;;  %s2501_s1 = inlined_call_operand.vmem [shape: bf16[128,864], index: 1, kind: input, shape index: {}]   ;;  %s2502_s2 = inlined_call_operand.vmem [shape: f32[16,1], index: 2, kind: input, shape index: {}]   ;;  %s2503_s3 = inlined_call_operand.vmem [shape: f32[16,1], index: 3, kind: input, shape index: {}]   ;;  %s2504_s4 = inlined_call_operand.vmem [shape: f32[128,128], index: 4, kind: output, shape index: {}]  }
   0x1   :  { %v1782_v0 = vld [vmem:[%s2500_s0 + $0x40] sm:$0xff]   ;;  %v1786_v4 = vld [vmem:[%s2500_s0 + $0x48] sm:$0xff]   ;;  %v1790_v8 = vld [vmem:[%s2500_s0 + $0x50] sm:$0xff]  }
   0x2   :  { %v1783_v1 = vld [vmem:[%s2500_s0 + $0xc0] sm:$0xff]   ;;  %1545 = vmatprep.subr.bf16.mxu0 %v1782_v0  ;;  %v1787_v5 = vld [vmem:[%s2500_s0 + $0xc8] sm:$0xff]   ;;  %v1791_v9 = vld [vmem:[%s2500_s0 + $0xd0] sm:$0xff]  }
   0x3   :  { %v1784_v2 = vld [vmem:[%s2500_s0] sm:$0xff]   ;;  %1609 = vmatprep.subr.bf16.mxu1 %v1783_v1  ;;  %v1788_v6 = vld [vmem:[%s2500_s0 + $0x8] sm:$0xff]   ;;  %v1792_v10 = vld [vmem:[%s2500_s0 + $0x10] sm:$0xff]  }
   0x4   :  { %v1785_v3 = vld [vmem:[%s2500_s0 + $0x80] sm:$0xff]   ;;  %1546 = vmatpush3.bf16.msra.mxu0 %v1784_v2  ;;  %v1789_v7 = vld [vmem:[%s2500_s0 + $0x88] sm:$0xff]   ;;  %v1793_v11 = vld [vmem:[%s2500_s0 + $0x90] sm:$0xff]  }
   0x5   :  { %1610 = vmatpush3.bf16.msra.mxu1 %v1785_v3  ;;  %1547 = vmatprep.subr.bf16.mxu0 %v1786_v4  ;;  %v1794_v12 = vld [vmem:[%s2500_s0 + $0x58] sm:$0xff]   ;;  %v1798_v16 = vld [vmem:[%s2500_s0 + $0x60] sm:$0xff]   ;;  %v1802_v20 = vld [vmem:[%s2500_s0 + $0x68] sm:$0xff]  }
   0x6   :  { %1611 = vmatprep.subr.bf16.mxu1 %v1787_v5  ;;  %v1795_v13 = vld [vmem:[%s2500_s0 + $0xd8] sm:$0xff]   ;;  %v1799_v17 = vld [vmem:[%s2500_s0 + $0xe0] sm:$0xff]   ;;  %v1803_v21 = vld [vmem:[%s2500_s0 + $0xe8] sm:$0xff]  }
   0x7   :  { %v1796_v14 = vld [vmem:[%s2500_s0 + $0x18] sm:$0xff]   ;;  %v1800_v18 = vld [vmem:[%s2500_s0 + $0x20] sm:$0xff]   ;;  %v1804_v22 = vld [vmem:[%s2500_s0 + $0x28] sm:$0xff]  }
   0x8   :  { %1548 = vmatpush3.bf16.msra.mxu0 %v1788_v6  ;;  %v1797_v15 = vld [vmem:[%s2500_s0 + $0x98] sm:$0xff]   ;;  %v1801_v19 = vld [vmem:[%s2500_s0 + $0xa0] sm:$0xff]   ;;  %v1805_v23 = vld [vmem:[%s2500_s0 + $0xa8] sm:$0xff]  }
   0x9   :  { %1612 = vmatpush3.bf16.msra.mxu1 %v1789_v7  ;;  %1549 = vmatprep.subr.bf16.mxu0 %v1790_v8  ;;  %v1806_v24 = vld [vmem:[%s2500_s0 + $0x70] sm:$0xff]   ;;  %v1810_v28 = vld [vmem:[%s2500_s0 + $0x78] sm:$0xff]   ;;  %v1816_v33 = vld [vmem:[%s2501_s1 + $0x4] ss:$28 sps:$4 sm:$0xff]  }
   0xa   :  { %1613 = vmatprep.subr.bf16.mxu1 %v1791_v9  ;;  %v1807_v25 = vld [vmem:[%s2500_s0 + $0xf0] sm:$0xff]   ;;  %v1811_v29 = vld [vmem:[%s2500_s0 + $0xf8] sm:$0xff]   ;;  %v1817_v34 = vld [vmem:[%s2501_s1 + $0x8] ss:$28 sps:$4 sm:$0xff]   ;;  %851 = vmatprep.mubr.bf16.mxu0 %v1816_v33 }
   0xb   :  { %v1808_v26 = vld [vmem:[%s2500_s0 + $0x30] sm:$0xff]   ;;  %v1812_v30 = vld [vmem:[%s2500_s0 + $0x38] sm:$0xff]   ;;  %v1819_v35 = vld [vmem:[%s2501_s1 + $0xc] ss:$28 sps:$4 sm:$0xff]  }
   0xc   :  { %1550 = vmatpush3.bf16.msra.mxu0 %v1792_v10  ;;  %v1809_v27 = vld [vmem:[%s2500_s0 + $0xb0] sm:$0xff]   ;;  %v1813_v31 = vld [vmem:[%s2500_s0 + $0xb8] sm:$0xff]   ;;  %v1820_v36 = vld [vmem:[%s2500_s0 + $0x140] sm:$0xff]   ;;  %948 = vmatprep.mubr.bf16.mxu1 %v1819_v35 }
   0xd   :  { %1614 = vmatpush3.bf16.msra.mxu1 %v1793_v11  ;;  %1551 = vmatprep.subr.bf16.mxu0 %v1794_v12  ;;  %v1814_v32 = vld [vmem:[%s2501_s1] ss:$28 sps:$4 sm:$0xff]   ;;  %v1827_v41 = vld [vmem:[%s2501_s1 + $0x38] ss:$28 sps:$4 sm:$0xff]   ;;  %v1829_v43 = vld [vmem:[%s2500_s0 + $0x148] sm:$0xff]  }
   0xe   :  { %1615 = vmatprep.subr.bf16.mxu1 %v1795_v13  ;;  %v1821_v37 = vld [vmem:[%s2500_s0 + $0x100] sm:$0xff]   ;;  %v1823_v39 = vld [vmem:[%s2501_s1 + $0x3c] ss:$28 sps:$4 sm:$0xff]   ;;  %v1830_v44 = vld [vmem:[%s2500_s0 + $0x108] sm:$0xff]  }
   0xf   :  { %v1822_v38 = vld [vmem:[%s2500_s0 + $0x180] sm:$0xff]   ;;  %v1831_v45 = vld [vmem:[%s2501_s1 + $0x74] ss:$28 sps:$4 sm:$0xff]   ;;  %v1833_v46 = vld [vmem:[%s2501_s1 + $0x7c] ss:$28 sps:$4 sm:$0xff]  }
  0x10   :  { %1552 = vmatpush3.bf16.msra.mxu0 %v1796_v14  ;;  %v1825_v40 = vld [vmem:[%s2501_s1 + $0x44] ss:$28 sps:$4 sm:$0xff]   ;;  %v1835_v47 = vld [vmem:[%s2500_s0 + $0x188] sm:$0xff]   ;;  %v1838_v49 = vld [vmem:[%s2500_s0 + $0x150] sm:$0xff]  }
  0x11   :  { %1616 = vmatpush3.bf16.msra.mxu1 %v1797_v15  ;;  %1553 = vmatprep.subr.bf16.mxu0 %v1798_v16  ;;  %v1828_v42 = vld [vmem:[%s2501_s1 + $0x40] ss:$28 sps:$4 sm:$0xff]   ;;  %v1836_v48 = vld [vmem:[%s2501_s1 + $0x70] ss:$28 sps:$4 sm:$0xff]   ;;  %v1837_v51 = vld [vmem:[%s2501_s1 + $0x78] ss:$28 sps:$4 sm:$0xff]  }
  0x12   :  { %1617 = vmatprep.subr.bf16.mxu1 %v1799_v17  ;;  %v1839_v50 = vld [vmem:[%s2500_s0 + $0x110] sm:$0xff]   ;;  %v1840_v52 = vld [vmem:[%s2501_s1 + $0xac] ss:$28 sps:$4 sm:$0xff]   ;;  %v1846_v54 = vld [vmem:[%s2500_s0 + $0x158] sm:$0xff]  }
  0x13   :  { %v1842_v53 = vld [vmem:[%s2501_s1 + $0xb4] ss:$28 sps:$4 sm:$0xff]   ;;  %v1847_v55 = vld [vmem:[%s2500_s0 + $0x118] sm:$0xff]   ;;  %v1844_v57 = vld [vmem:[%s2501_s1 + $0xa8] ss:$28 sps:$4 sm:$0xff]  }
  0x14   :  { %1554 = vmatpush3.bf16.msra.mxu0 %v1800_v18  ;;  %v1848_v56 = vld [vmem:[%s2500_s0 + $0x190] sm:$0xff]   ;;  %v1849_v59 = vld [vmem:[%s2501_s1 + $0xe4] ss:$28 sps:$4 sm:$0xff]   ;;  %v1851_v60 = vld [vmem:[%s2501_s1 + $0xec] ss:$28 sps:$4 sm:$0xff]  }
  0x15   :  { %1618 = vmatpush3.bf16.msra.mxu1 %v1801_v19  ;;  %1555 = vmatprep.subr.bf16.mxu0 %v1802_v20  ;;  %v1845_v58 = vld [vmem:[%s2501_s1 + $0xb0] ss:$28 sps:$4 sm:$0xff]   ;;  %v1855_v61 = vld [vmem:[%s2500_s0 + $0x160] sm:$0xff]   ;;  %v1857_v63 = vld [vmem:[%s2500_s0 + $0x198] sm:$0xff]  }
  0x16   :  { %1619 = vmatprep.subr.bf16.mxu1 %v1803_v21  ;;  %v1856_v62 = vld [vmem:[%s2500_s0 + $0x120] sm:$0xff]   ;;  %v1864_v1 = vld [vmem:[%s2500_s0 + $0x168] sm:$0xff]   ;;  %v1858_v4 = vld [vmem:[%s2501_s1 + $0x11c] ss:$28 sps:$4 sm:$0xff]  }
  0x17   :  { %v1853_v0 = vld [vmem:[%s2501_s1 + $0xe0] ss:$28 sps:$4 sm:$0xff]   ;;  %v1854_v2 = vld [vmem:[%s2501_s1 + $0xe8] ss:$28 sps:$4 sm:$0xff]   ;;  %v1873_v7 = vld [vmem:[%s2500_s0 + $0x170] sm:$0xff]  }
  0x18   :  { %1556 = vmatpush3.bf16.msra.mxu0 %v1804_v22  ;;  %v1865_v3 = vld [vmem:[%s2500_s0 + $0x128] sm:$0xff]   ;;  %v1860_v5 = vld [vmem:[%s2501_s1 + $0x124] ss:$28 sps:$4 sm:$0xff]   ;;  %v1874_v8 = vld [vmem:[%s2500_s0 + $0x130] sm:$0xff]  }
  0x19   :  { %1620 = vmatpush3.bf16.msra.mxu1 %v1805_v23  ;;  %1557 = vmatprep.subr.bf16.mxu0 %v1806_v24  ;;  %v1870_v6 = vld [vmem:[%s2500_s0 + $0x1a0] sm:$0xff]   ;;  %v1862_v9 = vld [vmem:[%s2501_s1 + $0x118] ss:$28 sps:$4 sm:$0xff]   ;;  %v1883_v15 = vld [vmem:[%s2500_s0 + $0x1a8] sm:$0xff]  }
  0x1a   :  { %1621 = vmatprep.subr.bf16.mxu1 %v1807_v25  ;;  %v1863_v10 = vld [vmem:[%s2501_s1 + $0x120] ss:$28 sps:$4 sm:$0xff]   ;;  %v1866_v11 = vld [vmem:[%s2501_s1 + $0x154] ss:$28 sps:$4 sm:$0xff]   ;;  %v1875_v18 = vld [vmem:[%s2501_s1 + $0x18c] ss:$28 sps:$4 sm:$0xff]  }
  0x1b   :  { %v1868_v12 = vld [vmem:[%s2501_s1 + $0x15c] ss:$28 sps:$4 sm:$0xff]   ;;  %v1871_v16 = vld [vmem:[%s2501_s1 + $0x150] ss:$28 sps:$4 sm:$0xff]   ;;  %v1879_v20 = vld [vmem:[%s2501_s1 + $0x188] ss:$28 sps:$4 sm:$0xff]  }
  0x1c   :  { %1558 = vmatpush3.bf16.msra.mxu0 %v1808_v26  ;;  %v1881_v13 = vld [vmem:[%s2500_s0 + $0x178] sm:$0xff]   ;;  %v1877_v19 = vld [vmem:[%s2501_s1 + $0x194] ss:$28 sps:$4 sm:$0xff]   ;;  %v1889_v26 = vld [vmem:[%s2501_s1 + $0x4c] ss:$28 sps:$4 sm:$0xff]  }
  0x1d   :  { %1622 = vmatpush3.bf16.msra.mxu1 %v1809_v27  ;;  %1559 = vmatprep.subr.bf16.mxu0 %v1810_v28  ;;  %v1882_v14 = vld [vmem:[%s2500_s0 + $0x138] sm:$0xff]   ;;  %v1880_v21 = vld [vmem:[%s2501_s1 + $0x190] ss:$28 sps:$4 sm:$0xff]   ;;  %v1895_v27 = vld [vmem:[%s2501_s1 + $0x88] ss:$28 sps:$4 sm:$0xff]  }
  0x1e   :  { %1623 = vmatprep.subr.bf16.mxu1 %v1811_v29  ;;  %v1872_v17 = vld [vmem:[%s2501_s1 + $0x158] ss:$28 sps:$4 sm:$0xff]   ;;  %v1884_v24 = vld [vmem:[%s2501_s1 + $0x10] ss:$28 sps:$4 sm:$0xff]   ;;  %v1891_v28 = vld [vmem:[%s2501_s1 + $0x48] ss:$28 sps:$4 sm:$0xff]  }
  0x1f   :  { %v1886_v22 = vld [vmem:[%s2501_s1 + $0x14] ss:$28 sps:$4 sm:$0xff]   ;;  %v1892_v29 = vld [vmem:[%s2501_s1 + $0x84] ss:$28 sps:$4 sm:$0xff]   ;;  %v1897_v33 = vld [vmem:[%s2501_s1 + $0xbc] ss:$28 sps:$4 sm:$0xff]  }
  0x20   :  { %1560 = vmatpush3.bf16.msra.mxu0 %v1812_v30  ;;  %v1887_v23 = vld [vmem:[%s2501_s1 + $0x18] ss:$28 sps:$4 sm:$0xff]   ;;  %v1888_v25 = vld [vmem:[%s2501_s1 + $0x50] ss:$28 sps:$4 sm:$0xff]   ;;  %v1896_v30 = vld [vmem:[%s2501_s1 + $0xc0] ss:$28 sps:$4 sm:$0xff]  }
  0x21   :  { %1624 = vmatpush3.bf16.msra.mxu1 %v1813_v31  ;;  %1673 = vmatprep.subr.bf16.mxu0 %v1820_v36  ;;  %v1903_v31 = vld [vmem:[%s2501_s1 + $0xf8] ss:$28 sps:$4 sm:$0xff]   ;;  %v1911_v35 = vld [vmem:[%s2501_s1 + $0x168] ss:$28 sps:$4 sm:$0xff]  }
  0x22   :  { %1751 = vmatprep.subr.bf16.mxu1 %v1822_v38  ;;  %v1899_v36 = vld [vmem:[%s2501_s1 + $0xb8] ss:$28 sps:$4 sm:$0xff]  }
  0x23   :  { %852 = vmatmul.mubr.bf16.vlgmr.msra.gmra.mrb[0].mxu0 %v1814_v32  ;;  %v1894_v32 = vld [vmem:[%s2501_s1 + $0x80] ss:$28 sps:$4 sm:$0xff]  }
  0x24   :  { %949 = vmatmul.mubr.bf16.vlgmr.msra.gmra.mrb[0].mxu1 %v1817_v34  ;;  %1674 = vmatpush3.bf16.msra.mxu0 %v1821_v37  ;;  %v1904_v34 = vld [vmem:[%s2501_s1 + $0x130] ss:$28 sps:$4 sm:$0xff]  }
  0x25   :  { %1752 = vmatpush3.bf16.msra.mxu1 %v1822_v38  ;;  %859 = vmatprep.mubr.bf16.mxu0 %v1823_v39  ;;  %v1900_v37 = vld [vmem:[%s2501_s1 + $0xf4] ss:$28 sps:$4 sm:$0xff]   ;;  %v1912_v38 = vld [vmem:[%s2501_s1 + $0x1a0] ss:$28 sps:$4 sm:$0xff]  }
  0x26   :  { %956 = vmatprep.mubr.bf16.mxu1 %v1825_v40  ;;  %1675 = vmatprep.subr.bf16.mxu0 %v1829_v43  ;;  %v1902_v39 = vld [vmem:[%s2501_s1 + $0xf0] ss:$28 sps:$4 sm:$0xff]   ;;  %v1910_v43 = vld [vmem:[%s2501_s1 + $0x160] ss:$28 sps:$4 sm:$0xff]  }
  0x27   :  { %1753 = vmatprep.subr.bf16.mxu1 %v1835_v47  ;;  %v1905_v40 = vld [vmem:[%s2501_s1 + $0x12c] ss:$28 sps:$4 sm:$0xff]  }
  0x28   :  { %1676 = vmatpush3.bf16.msra.mxu0 %v1830_v44  ;;  %v1913_v44 = vld [vmem:[%s2501_s1 + $0x19c] ss:$28 sps:$4 sm:$0xff]  }
  0x29   :  { %1677 = vmatprep.subr.bf16.mxu0 %v1838_v49  ;;  %1754 = vmatpush3.bf16.msra.mxu1 %v1835_v47 }
  0x2a   :  { %1755 = vmatprep.subr.bf16.mxu1 %v1848_v56 }
  0x2b   :  { %860 = vmatmul.mubr.bf16.gmra.mrb[4].mxu0 %v1827_v41  ;;  %v1907_v41 = vld [vmem:[%s2501_s1 + $0x128] ss:$28 sps:$4 sm:$0xff]  }
  0x2c   :  { %957 = vmatmul.mubr.bf16.gmra.mrb[4].mxu1 %v1828_v42  ;;  %867 = vmatprep.mubr.bf16.mxu0 %v1831_v45  ;;  %v1908_v42 = vld [vmem:[%s2501_s1 + $0x164] ss:$28 sps:$4 sm:$0xff]   ;;  %v1915_v45 = vld [vmem:[%s2501_s1 + $0x198] ss:$28 sps:$4 sm:$0xff]  }
  0x2d   :  { %964 = vmatprep.mubr.bf16.mxu1 %v1833_v46  ;;  %1678 = vmatpush3.bf16.msra.mxu0 %v1839_v50 }
  0x2e   :  { %1679 = vmatprep.subr.bf16.mxu0 %v1846_v54  ;;  %1756 = vmatpush3.bf16.msra.mxu1 %v1848_v56 }
  0x2f   :  { %1757 = vmatprep.subr.bf16.mxu1 %v1857_v63 }
  0x31   :  { %1680 = vmatpush3.bf16.msra.mxu0 %v1847_v55 }
  0x32   :  { %1681 = vmatprep.subr.bf16.mxu0 %v1855_v61  ;;  %1758 = vmatpush3.bf16.msra.mxu1 %v1857_v63 }
  0x33   :  { %868 = vmatmul.mubr.bf16.gmra.mrb[8].mxu0 %v1836_v48  ;;  %1759 = vmatprep.subr.bf16.mxu1 %v1870_v6 }
  0x34   :  { %965 = vmatmul.mubr.bf16.gmra.mrb[8].mxu1 %v1837_v51  ;;  %875 = vmatprep.mubr.bf16.mxu0 %v1840_v52 }
  0x35   :  { %972 = vmatprep.mubr.bf16.mxu1 %v1842_v53  ;;  %1682 = vmatpush3.bf16.msra.mxu0 %v1856_v62 }
  0x36   :  { %1683 = vmatprep.subr.bf16.mxu0 %v1864_v1  ;;  %1760 = vmatpush3.bf16.msra.mxu1 %v1870_v6 }
  0x37   :  { %1761 = vmatprep.subr.bf16.mxu1 %v1883_v15 }
  0x39   :  { %1684 = vmatpush3.bf16.msra.mxu0 %v1865_v3 }
  0x3a   :  { %1685 = vmatprep.subr.bf16.mxu0 %v1873_v7  ;;  %1762 = vmatpush3.bf16.msra.mxu1 %v1883_v15 }
  0x3b   :  { %876 = vmatmul.mubr.bf16.gmra.mrb[12].mxu0 %v1844_v57 }
  0x3c   :  { %973 = vmatmul.mubr.bf16.gmra.mrb[12].mxu1 %v1845_v58  ;;  %883 = vmatprep.mubr.bf16.mxu0 %v1849_v59 }
  0x3d   :  { %980 = vmatprep.mubr.bf16.mxu1 %v1851_v60  ;;  %1686 = vmatpush3.bf16.msra.mxu0 %v1874_v8 }
  0x3e   :  { %1687 = vmatprep.subr.bf16.mxu0 %v1881_v13 }
  0x41   :  { %1688 = vmatpush3.bf16.msra.mxu0 %v1882_v14 }
  0x43   :  { %884 = vmatmul.mubr.bf16.gmra.mrb[16].mxu0 %v1853_v0 }
  0x44   :  { %981 = vmatmul.mubr.bf16.gmra.mrb[16].mxu1 %v1854_v2  ;;  %891 = vmatprep.mubr.bf16.mxu0 %v1858_v4 }
  0x45   :  { %988 = vmatprep.mubr.bf16.mxu1 %v1860_v5 }
  0x4b   :  { %892 = vmatmul.mubr.bf16.gmra.mrb[20].mxu0 %v1862_v9 }
  0x4c   :  { %989 = vmatmul.mubr.bf16.gmra.mrb[20].mxu1 %v1863_v10  ;;  %899 = vmatprep.mubr.bf16.mxu0 %v1866_v11 }
  0x4d   :  { %996 = vmatprep.mubr.bf16.mxu1 %v1868_v12 }
  0x53   :  { %900 = vmatmul.mubr.bf16.gmra.mrb[24].mxu0 %v1871_v16 }
  0x54   :  { %997 = vmatmul.mubr.bf16.gmra.mrb[24].mxu1 %v1872_v17  ;;  %907 = vmatprep.mubr.bf16.mxu0 %v1875_v18 }
  0x55   :  { %1004 = vmatprep.mubr.bf16.mxu1 %v1877_v19 }
  0x5b   :  { %908 = vmatmul.mubr.bf16.gmra.mrb[28].mxu0 %v1879_v20 }
  0x5c   :  { %1005 = vmatmul.mubr.bf16.gmra.mrb[28].mxu1 %v1880_v21  ;;  %1045 = vmatprep.mubr.bf16.mxu0 %v1886_v22 }
  0x5d   :  { %1763 = vmatprep.mubr.msk.bf16.mxu1 %vm794_vm0, %v1887_v23 }
  0x63   :  { %1046 = vmatmul.mubr.bf16.vlgmr.msra.gmra.mrb[32].mxu0 %v1884_v24 }
  0x64   :  { %1764 = vmatmul.mubr.msk.bf16.vlgmr.msra.gmra.mrb[32].mxu1 %vm794_vm0, %v1888_v25  ;;  %1053 = vmatprep.mubr.bf16.mxu0 %v1889_v26 }
  0x65   :  { %1767 = vmatprep.mubr.msk.bf16.mxu1 %vm794_vm0, %v1895_v27 }
  0x6b   :  { %1054 = vmatmul.mubr.bf16.gmra.mrb[36].mxu0 %v1891_v28 }
  0x6c   :  { %1061 = vmatprep.mubr.bf16.mxu0 %v1892_v29  ;;  %1768 = vmatmul.mubr.msk.bf16.gmra.mrb[36].mxu1 %vm794_vm0, %v1896_v30 }
  0x6d   :  { %1771 = vmatprep.mubr.msk.bf16.mxu1 %vm794_vm0, %v1903_v31 }
  0x73   :  { %1062 = vmatmul.mubr.bf16.gmra.mrb[40].mxu0 %v1894_v32 }
  0x74   :  { %1069 = vmatprep.mubr.bf16.mxu0 %v1897_v33  ;;  %1772 = vmatmul.mubr.msk.bf16.gmra.mrb[40].mxu1 %vm794_vm0, %v1904_v34 }
  0x75   :  { %1775 = vmatprep.mubr.msk.bf16.mxu1 %vm794_vm0, %v1911_v35 }
  0x7b   :  { %1070 = vmatmul.mubr.bf16.gmra.mrb[44].mxu0 %v1899_v36 }
  0x7c   :  { %1077 = vmatprep.mubr.bf16.mxu0 %v1900_v37  ;;  %1776 = vmatmul.mubr.msk.bf16.gmra.mrb[44].mxu1 %vm794_vm0, %v1912_v38 }
  0x83   :  { %1078 = vmatmul.mubr.bf16.gmra.mrb[48].mxu0 %v1902_v39 }
  0x84   :  { %1085 = vmatprep.mubr.bf16.mxu0 %v1905_v40 }
  0x8b   :  { %1086 = vmatmul.mubr.bf16.gmra.mrb[52].mxu0 %v1907_v41 }
  0x8c   :  { %1093 = vmatprep.mubr.bf16.mxu0 %v1908_v42 }
  0x93   :  { %1094 = vmatmul.mubr.bf16.gmra.mrb[56].mxu0 %v1910_v43 }
  0x94   :  { %1101 = vmatprep.mubr.bf16.mxu0 %v1913_v44 }
  0x9b   :  { %1102 = vmatmul.mubr.bf16.gmra.mrb[60].mxu0 %v1915_v45 }
  0xf6   :  { %v1561_v46 = vpop.f32.mrb[0].mxu0 }
  0xf7   :  { %v1625_v47 = vpop.f32.mrb[0].mxu1  ;;  %v1562_v48 = vpop.f32.mrb[1].mxu0 }
  0xf8   :  { %v1563_v49 = vadd.f32 %v1562_v48, %v1561_v46  ;;  %v1626_v50 = vpop.f32.mrb[1].mxu1  ;;  %v1564_v51 = vpop.f32.mrb[2].mxu0 }
  0xf9   :  { %v1627_v52 = vadd.f32 %v1626_v50, %v1625_v47  ;;  %v1628_v53 = vpop.f32.mrb[2].mxu1  ;;  %v1565_v54 = vpop.f32.mrb[3].mxu0 }
  0xfa   :  { %v1566_v55 = vadd.f32 %v1565_v54, %v1564_v51  ;;  %v1629_v56 = vpop.f32.mrb[3].mxu1 }
  0xfb   :  { %v2284_v57 = vadd.f32 %v1627_v52, %v1563_v49  ;;  %v1630_v58 = vadd.f32 %v1629_v56, %v1628_v53 }
  0xfd   :  { %v2286_v59 = vadd.f32 %v1630_v58, %v1566_v55 }
  0xfe   :  { %v1567_v60 = vpop.f32.mrb[4].mxu0 }
  0xff   :  { %v1631_v61 = vpop.f32.mrb[4].mxu1  ;;  %v1568_v62 = vpop.f32.mrb[5].mxu0 }
 0x100   :  { %v1569_v63 = vadd.f32 %v1568_v62, %v1567_v60  ;;  %v1632_v0 = vpop.f32.mrb[5].mxu1  ;;  %v1570_v1 = vpop.f32.mrb[6].mxu0 }
 0x101   :  { %v1633_v2 = vadd.f32 %v1632_v0, %v1631_v61  ;;  %v1634_v3 = vpop.f32.mrb[6].mxu1  ;;  %v1571_v4 = vpop.f32.mrb[7].mxu0 }
 0x102   :  { %v1572_v5 = vadd.f32 %v1571_v4, %v1570_v1  ;;  %v1635_v6 = vpop.f32.mrb[7].mxu1 }
 0x103   :  { %v2288_v7 = vadd.f32 %v1633_v2, %v1569_v63  ;;  %v1636_v8 = vadd.f32 %v1635_v6, %v1634_v3 }
 0x105   :  { %v2290_v9 = vadd.f32 %v1636_v8, %v1572_v5 }
 0x106   :  { %v1573_v10 = vpop.f32.mrb[8].mxu0 }
 0x107   :  { %v1637_v11 = vpop.f32.mrb[8].mxu1  ;;  %v1574_v12 = vpop.f32.mrb[9].mxu0 }
 0x108   :  { %v1575_v13 = vadd.f32 %v1574_v12, %v1573_v10  ;;  %v1638_v14 = vpop.f32.mrb[9].mxu1  ;;  %v1576_v15 = vpop.f32.mrb[10].mxu0 }
 0x109   :  { %v1639_v16 = vadd.f32 %v1638_v14, %v1637_v11  ;;  %v1640_v17 = vpop.f32.mrb[10].mxu1  ;;  %v1577_v18 = vpop.f32.mrb[11].mxu0 }
 0x10a   :  { %v1578_v19 = vadd.f32 %v1577_v18, %v1576_v15  ;;  %v1641_v20 = vpop.f32.mrb[11].mxu1 }
 0x10b   :  { %v2292_v21 = vadd.f32 %v1639_v16, %v1575_v13  ;;  %v1642_v22 = vadd.f32 %v1641_v20, %v1640_v17 }
 0x10d   :  { %v2294_v23 = vadd.f32 %v1642_v22, %v1578_v19 }
 0x10e   :  { %v1579_v24 = vpop.f32.mrb[12].mxu0 }
 0x10f   :  { %v1643_v25 = vpop.f32.mrb[12].mxu1  ;;  %v1580_v26 = vpop.f32.mrb[13].mxu0 }
 0x110   :  { %v1581_v27 = vadd.f32 %v1580_v26, %v1579_v24  ;;  %v1644_v28 = vpop.f32.mrb[13].mxu1  ;;  %v1582_v29 = vpop.f32.mrb[14].mxu0 }
 0x111   :  { %v1645_v30 = vadd.f32 %v1644_v28, %v1643_v25  ;;  %v1646_v31 = vpop.f32.mrb[14].mxu1  ;;  %v1583_v32 = vpop.f32.mrb[15].mxu0 }
 0x112   :  { %v1584_v33 = vadd.f32 %v1583_v32, %v1582_v29  ;;  %v1647_v34 = vpop.f32.mrb[15].mxu1 }
 0x113   :  { %v2296_v35 = vadd.f32 %v1645_v30, %v1581_v27  ;;  %v1648_v36 = vadd.f32 %v1647_v34, %v1646_v31 }
 0x115   :  { %v2298_v37 = vadd.f32 %v1648_v36, %v1584_v33 }
 0x116   :  { %v1585_v38 = vpop.f32.mrb[16].mxu0 }
 0x117   :  { %v1649_v39 = vpop.f32.mrb[16].mxu1  ;;  %v1586_v40 = vpop.f32.mrb[17].mxu0 }
 0x118   :  { %v1587_v41 = vadd.f32 %v1586_v40, %v1585_v38  ;;  %v1650_v42 = vpop.f32.mrb[17].mxu1  ;;  %v1588_v43 = vpop.f32.mrb[18].mxu0 }
 0x119   :  { %v1651_v44 = vadd.f32 %v1650_v42, %v1649_v39  ;;  %v1652_v45 = vpop.f32.mrb[18].mxu1  ;;  %v1589_v46 = vpop.f32.mrb[19].mxu0 }
 0x11a   :  { %v1590_v47 = vadd.f32 %v1589_v46, %v1588_v43  ;;  %v1653_v48 = vpop.f32.mrb[19].mxu1 }
 0x11b   :  { %v2300_v49 = vadd.f32 %v1651_v44, %v1587_v41  ;;  %v1654_v50 = vadd.f32 %v1653_v48, %v1652_v45 }
 0x11d   :  { %v2302_v51 = vadd.f32 %v1654_v50, %v1590_v47 }
 0x11e   :  { %v1591_v52 = vpop.f32.mrb[20].mxu0 }
 0x11f   :  { %v1655_v53 = vpop.f32.mrb[20].mxu1  ;;  %v1592_v54 = vpop.f32.mrb[21].mxu0 }
 0x120   :  { %v1593_v55 = vadd.f32 %v1592_v54, %v1591_v52  ;;  %v1656_v56 = vpop.f32.mrb[21].mxu1  ;;  %v1594_v58 = vpop.f32.mrb[22].mxu0 }
 0x121   :  { %v1657_v60 = vadd.f32 %v1656_v56, %v1655_v53  ;;  %v1658_v61 = vpop.f32.mrb[22].mxu1  ;;  %v1595_v62 = vpop.f32.mrb[23].mxu0 }
 0x122   :  { %v1596_v63 = vadd.f32 %v1595_v62, %v1594_v58  ;;  %v1659_v0 = vpop.f32.mrb[23].mxu1 }
 0x123   :  { %v2304_v1 = vadd.f32 %v1657_v60, %v1593_v55  ;;  %v1660_v2 = vadd.f32 %v1659_v0, %v1658_v61 }
 0x125   :  { %v2306_v3 = vadd.f32 %v1660_v2, %v1596_v63 }
 0x126   :  { %v1597_v4 = vpop.f32.mrb[24].mxu0 }
 0x127   :  { %v1661_v5 = vpop.f32.mrb[24].mxu1  ;;  %v1598_v6 = vpop.f32.mrb[25].mxu0 }
 0x128   :  { %v1599_v8 = vadd.f32 %v1598_v6, %v1597_v4  ;;  %v1662_v10 = vpop.f32.mrb[25].mxu1  ;;  %v1600_v11 = vpop.f32.mrb[26].mxu0 }
 0x129   :  { %v1663_v12 = vadd.f32 %v1662_v10, %v1661_v5  ;;  %v1664_v13 = vpop.f32.mrb[26].mxu1  ;;  %v1601_v14 = vpop.f32.mrb[27].mxu0 }
 0x12a   :  { %v1602_v15 = vadd.f32 %v1601_v14, %v1600_v11  ;;  %v1665_v16 = vpop.f32.mrb[27].mxu1 }
 0x12b   :  { %v2308_v17 = vadd.f32 %v1663_v12, %v1599_v8  ;;  %v1666_v18 = vadd.f32 %v1665_v16, %v1664_v13 }
 0x12d   :  { %v2310_v19 = vadd.f32 %v1666_v18, %v1602_v15 }
 0x12e   :  { %v1603_v20 = vpop.f32.mrb[28].mxu0 }
 0x12f   :  { %v1667_v22 = vpop.f32.mrb[28].mxu1  ;;  %v1604_v24 = vpop.f32.mrb[29].mxu0 }
 0x130   :  { %v1605_v25 = vadd.f32 %v1604_v24, %v1603_v20  ;;  %v1668_v26 = vpop.f32.mrb[29].mxu1  ;;  %v1606_v27 = vpop.f32.mrb[30].mxu0 }
 0x131   :  { %v1669_v28 = vadd.f32 %v1668_v26, %v1667_v22  ;;  %v1670_v29 = vpop.f32.mrb[30].mxu1  ;;  %v1607_v30 = vpop.f32.mrb[31].mxu0 }
 0x132   :  { %v1608_v31 = vadd.f32 %v1607_v30, %v1606_v27  ;;  %v1671_v32 = vpop.f32.mrb[31].mxu1 }
 0x133   :  { %v2312_v33 = vadd.f32 %v1669_v28, %v1605_v25  ;;  %v1672_v34 = vadd.f32 %v1671_v32, %v1670_v29 }
 0x135   :  { %v2314_v36 = vadd.f32 %v1672_v34, %v1608_v31 }
 0x136   :  { %v1689_v38 = vpop.f32.mrb[32].mxu0 }
 0x137   :  { %v1690_v39 = vpop.f32.mrb[33].mxu0  ;;  %v1765_v40 = vpop.f32.mrb[32].mxu1 }
 0x138   :  { %v1691_v41 = vadd.f32 %v1690_v39, %v1689_v38  ;;  %v1692_v42 = vpop.f32.mrb[34].mxu0  ;;  %v1144_v43 = vpop.f32.mrb[33].mxu1 }
 0x139   :  { %v1693_v44 = vpop.f32.mrb[35].mxu0  ;;  %v1766_v45 = vpop.f32.mrb[34].mxu1 }
 0x13a   :  { %v1694_v46 = vadd.f32 %v1693_v44, %v1692_v42  ;;  %v1048_v47 = vadd.f32 %v1691_v41, %v2284_v57  ;;  %v1147_v48 = vpop.f32.mrb[35].mxu1 }
 0x13c   :  { %v2317_v50 = vadd.f32 %v1144_v43, %v1048_v47  ;;  %v1051_v52 = vadd.f32 %v1694_v46, %v2286_v59 }
 0x13e   :  { %v2320_v53 = vadd.f32 %v1147_v48, %v1051_v52  ;;  %v1695_v54 = vpop.f32.mrb[36].mxu0  ;;  %1207 = vadd.xlane.f32.xlu0 %v2317_v50  ;;  %v1239_v6 = vmul.f32 %v2317_v50, %v2317_v50 }
 0x13f   :  { %v1696_v55 = vpop.f32.mrb[37].mxu0  ;;  %v1769_v56 = vpop.f32.mrb[36].mxu1 }
 0x140   :  { %v1697_v58 = vadd.f32 %v1696_v55, %v1695_v54  ;;  %v1698_v60 = vpop.f32.mrb[38].mxu0  ;;  %v1240_v61 = vmul.f32 %v2320_v53, %v2320_v53  ;;  %v1160_v62 = vpop.f32.mrb[37].mxu1 }
 0x141   :  { %v1699_v63 = vpop.f32.mrb[39].mxu0  ;;  %v1770_v57 = vpop.f32.mrb[38].mxu1 }
 0x142   :  { %v1056_v0 = vadd.f32 %v1697_v58, %v2288_v7  ;;  %v1700_v2 = vadd.f32 %v1699_v63, %v1698_v60  ;;  %1257 = vadd.xlane.f32.xlu1 %v1240_v61  ;;  %1209 = vadd.xlane.f32.xlu0 %v2320_v53  ;;  %v1163_v59 = vpop.f32.mrb[39].mxu1 }
 0x144   :  { %v1059_v4 = vadd.f32 %v1700_v2, %v2290_v9  ;;  %v2328_v5 = vadd.f32 %v1765_v40, %v1056_v0 }
 0x146   :  { %v1701_v8 = vpop.f32.mrb[40].mxu0  ;;  %1211 = vadd.xlane.f32.xlu1 %v2328_v5  ;;  %1255 = vadd.xlane.f32.xlu0 %v1239_v6  ;;  %v2333_v10 = vadd.f32 %v1766_v45, %v1059_v4  ;;  %v1241_v14 = vmul.f32 %v2328_v5, %v2328_v5 }
 0x147   :  { %v1702_v11 = vpop.f32.mrb[41].mxu0  ;;  %v2335_v7 = vpop.f32.mrb[40].mxu1 }
 0x148   :  { %v1703_v12 = vadd.f32 %v1702_v11, %v1701_v8  ;;  %v1704_v13 = vpop.f32.mrb[42].mxu0  ;;  %v1176_v9 = vpop.f32.mrb[41].mxu1  ;;  %v1242_v26 = vmul.f32 %v2333_v10, %v2333_v10 }
 0x149   :  { %v1705_v15 = vpop.f32.mrb[43].mxu0  ;;  %v2339_v16 = vpop.f32.mrb[42].mxu1 }
 0x14a   :  { %v1706_v18 = vadd.f32 %v1705_v15, %v1704_v13  ;;  %1213 = vadd.xlane.f32.xlu1 %v2333_v10  ;;  %1259 = vadd.xlane.f32.xlu0 %v1241_v14  ;;  %v1064_v20 = vadd.f32 %v1703_v12, %v2292_v21  ;;  %v1179_v22 = vpop.f32.mrb[43].mxu1 }
 0x14c   :  { %v2343_v24 = vadd.f32 %v1160_v62, %v1064_v20  ;;  %v1067_v25 = vadd.f32 %v1706_v18, %v2294_v23 }
 0x14e   :  { %v2348_v27 = vadd.f32 %v1163_v59, %v1067_v25  ;;  %v1707_v28 = vpop.f32.mrb[44].mxu0  ;;  %1261 = vadd.xlane.f32.xlu1 %v1242_v26  ;;  %1215 = vadd.xlane.f32.xlu0 %v2343_v24  ;;  %v1243_v21 = vmul.f32 %v2343_v24, %v2343_v24 }
 0x14f   :  { %v1708_v29 = vpop.f32.mrb[45].mxu0  ;;  %v2351_v30 = vpop.f32.mrb[44].mxu1 }
 0x150   :  { %v1709_v31 = vadd.f32 %v1708_v29, %v1707_v28  ;;  %v1710_v32 = vpop.f32.mrb[46].mxu0  ;;  %v1192_v34 = vpop.f32.mrb[45].mxu1  ;;  %v1244_v43 = vmul.f32 %v2348_v27, %v2348_v27 }
 0x151   :  { %v1711_v38 = vpop.f32.mrb[47].mxu0  ;;  %v2355_v23 = vpop.f32.mrb[46].mxu1 }
 0x152   :  { %v1072_v39 = vadd.f32 %v1709_v31, %v2296_v35  ;;  %v1712_v40 = vadd.f32 %v1711_v38, %v1710_v32  ;;  %1217 = vadd.xlane.f32.xlu1 %v2348_v27  ;;  %1263 = vadd.xlane.f32.xlu0 %v1243_v21  ;;  %v1195_v41 = vpop.f32.mrb[47].mxu1 }
 0x154   :  { %v1075_v42 = vadd.f32 %v1712_v40, %v2298_v37  ;;  %v2362_v44 = vadd.f32 %v1769_v56, %v1072_v39  ;;  %v1920_v40 = vmov 0  }
 0x155   :  { %1780 = vset.pattern.permute.xlu0 %v1920_v40  ;;  %1781 = vset.pattern.permute.xlu1 %v1920_v40 }
 0x156   :  { %v1713_v45 = vpop.f32.mrb[48].mxu0  ;;  %1265 = vadd.xlane.f32.xlu1 %v1244_v43  ;;  %1219 = vadd.xlane.f32.xlu0 %v2362_v44  ;;  %v2365_v46 = vadd.f32 %v1770_v57, %v1075_v42  ;;  %v1245_v52 = vmul.f32 %v2362_v44, %v2362_v44 }
 0x157   :  { %v1714_v47 = vpop.f32.mrb[49].mxu0 }
 0x158   :  { %v1715_v35 = vadd.f32 %v1714_v47, %v1713_v45  ;;  %v1716_v48 = vpop.f32.mrb[50].mxu0  ;;  %v1246_v60 = vmul.f32 %v2365_v46, %v2365_v46 }
 0x159   :  { %v1717_v54 = vpop.f32.mrb[51].mxu0 }
 0x15a   :  { %v1718_v55 = vadd.f32 %v1717_v54, %v1716_v48  ;;  %1221 = vadd.xlane.f32.xlu1 %v2365_v46  ;;  %1267 = vadd.xlane.f32.xlu0 %v1245_v52  ;;  %v1080_v37 = vadd.f32 %v1715_v35, %v2300_v49 }
 0x15c   :  { %v2371_v56 = vadd.f32 %v1176_v9, %v1080_v37  ;;  %v1083_v58 = vadd.f32 %v1718_v55, %v2302_v51 }
 0x15e   :  { %v2376_v61 = vadd.f32 %v1179_v22, %v1083_v58  ;;  %v1719_v62 = vpop.f32.mrb[52].mxu0  ;;  %1269 = vadd.xlane.f32.xlu1 %v1246_v60  ;;  %1223 = vadd.xlane.f32.xlu0 %v2371_v56  ;;  %v1247_v2 = vmul.f32 %v2371_v56, %v2371_v56 }
 0x15f   :  { %v1720_v63 = vpop.f32.mrb[53].mxu0 }
 0x160   :  { %v1721_v57 = vadd.f32 %v1720_v63, %v1719_v62  ;;  %v1722_v0 = vpop.f32.mrb[54].mxu0  ;;  %v1248_v6 = vmul.f32 %v2376_v61, %v2376_v61 }
 0x161   :  { %v1723_v49 = vpop.f32.mrb[55].mxu0 }
 0x162   :  { %v1088_v59 = vadd.f32 %v1721_v57, %v2304_v1  ;;  %v1724_v4 = vadd.f32 %v1723_v49, %v1722_v0  ;;  %1225 = vadd.xlane.f32.xlu1 %v2376_v61  ;;  %1271 = vadd.xlane.f32.xlu0 %v1247_v2 }
 0x164   :  { %v1091_v51 = vadd.f32 %v1724_v4, %v2306_v3  ;;  %v2387_v8 = vadd.f32 %v2335_v7, %v1088_v59 }
 0x166   :  { %v1725_v11 = vpop.f32.mrb[56].mxu0  ;;  %1273 = vadd.xlane.f32.xlu1 %v1248_v6  ;;  %1227 = vadd.xlane.f32.xlu0 %v2387_v8  ;;  %v2391_v12 = vadd.f32 %v2339_v16, %v1091_v51  ;;  %v1249_v9 = vmul.f32 %v2387_v8, %v2387_v8 }
 0x167   :  { %v1726_v1 = vpop.f32.mrb[57].mxu0 }
 0x168   :  { %v1727_v13 = vadd.f32 %v1726_v1, %v1725_v11  ;;  %v1728_v14 = vpop.f32.mrb[58].mxu0  ;;  %v1250_v16 = vmul.f32 %v2391_v12, %v2391_v12 }
 0x169   :  { %v1729_v3 = vpop.f32.mrb[59].mxu0 }
 0x16a   :  { %v1730_v15 = vadd.f32 %v1729_v3, %v1728_v14  ;;  %1229 = vadd.xlane.f32.xlu1 %v2391_v12  ;;  %1275 = vadd.xlane.f32.xlu0 %v1249_v9  ;;  %v1096_v7 = vadd.f32 %v1727_v13, %v2308_v17 }
 0x16c   :  { %v2397_v18 = vadd.f32 %v1192_v34, %v1096_v7  ;;  %v1099_v20 = vadd.f32 %v1730_v15, %v2310_v19 }
 0x16e   :  { %v2402_v22 = vadd.f32 %v1195_v41, %v1099_v20  ;;  %v1731_v25 = vpop.f32.mrb[60].mxu0  ;;  %1277 = vadd.xlane.f32.xlu1 %v1250_v16  ;;  %1231 = vadd.xlane.f32.xlu0 %v2397_v18  ;;  %v1251_v31 = vmul.f32 %v2397_v18, %v2397_v18 }
 0x16f   :  { %v1732_v26 = vpop.f32.mrb[61].mxu0 }
 0x170   :  { %v1733_v28 = vadd.f32 %v1732_v26, %v1731_v25  ;;  %v1734_v29 = vpop.f32.mrb[62].mxu0  ;;  %v1252_v34 = vmul.f32 %v2402_v22, %v2402_v22 }
 0x171   :  { %v1735_v17 = vpop.f32.mrb[63].mxu0 }
 0x172   :  { %v1104_v32 = vadd.f32 %v1733_v28, %v2312_v33  ;;  %v1736_v21 = vadd.f32 %v1735_v17, %v1734_v29  ;;  %1233 = vadd.xlane.f32.xlu1 %v2402_v22  ;;  %1279 = vadd.xlane.f32.xlu0 %v1251_v31 }
 0x174   :  { %v1107_v19 = vadd.f32 %v1736_v21, %v2314_v36  ;;  %v2413_v38 = vadd.f32 %v2351_v30, %v1104_v32 }
 0x176   :  { %1281 = vadd.xlane.f32.xlu1 %v1252_v34  ;;  %1235 = vadd.xlane.f32.xlu0 %v2413_v38  ;;  %v2417_v39 = vadd.f32 %v2355_v23, %v1107_v19  ;;  %v1253_v33 = vmul.f32 %v2413_v38, %v2413_v38 }
 0x178   :  { %v1254_v36 = vmul.f32 %v2417_v39, %v2417_v39 }
 0x17a   :  { %1237 = vadd.xlane.f32.xlu1 %v2417_v39  ;;  %1283 = vadd.xlane.f32.xlu0 %v1253_v33 }
 0x17e   :  { %1285 = vadd.xlane.f32.xlu1 %v1254_v36 }
 0x1cb   :  { %v1208_v30 = vpop.xlane.xlu0 %1207 }
 0x1cf   :  { %v1258_v41 = vpop.xlane.xlu1 %1257  ;;  %v1210_v42 = vpop.xlane.xlu0 %1209 }
 0x1d3   :  { %v1212_v43 = vpop.xlane.xlu1 %1211  ;;  %v1256_v45 = vpop.xlane.xlu0 %1255 }
 0x1d4   :  { %v1287_v51 = vadd.f32 %v1212_v43, %v1208_v30 }
 0x1d7   :  { %v1214_v23 = vpop.xlane.xlu1 %1213  ;;  %v1260_v47 = vpop.xlane.xlu0 %1259 }
 0x1d8   :  { %v1288_v13 = vadd.f32 %v1214_v23, %v1210_v42  ;;  %v1289_v14 = vadd.f32 %v1260_v47, %v1256_v45 }
 0x1db   :  { %v1262_v35 = vpop.xlane.xlu1 %1261  ;;  %v1216_v48 = vpop.xlane.xlu0 %1215 }
 0x1dc   :  { %v1291_v6 = vadd.f32 %v1287_v51, %v1216_v48  ;;  %v1290_v25 = vadd.f32 %v1262_v35, %v1258_v41 }
 0x1df   :  { %v1218_v52 = vpop.xlane.xlu1 %1217  ;;  %v1264_v54 = vpop.xlane.xlu0 %1263 }
 0x1e0   :  { %v1292_v3 = vadd.f32 %v1288_v13, %v1218_v52  ;;  %v1293_v15 = vadd.f32 %v1289_v14, %v1264_v54  ;;  %v1326_v13 = vld [vmem:[%s2502_s2 + $0x8] sm:$0xff] }
 0x1e3   :  { %v1266_v55 = vpop.xlane.xlu1 %1265  ;;  %v1220_v37 = vpop.xlane.xlu0 %1219 }
 0x1e4   :  { %v1295_v9 = vadd.f32 %v1291_v6, %v1220_v37  ;;  %v1294_v31 = vadd.f32 %v1290_v25, %v1266_v55  ;;  %v1325_v6 = vld [vmem:[%s2502_s2] sm:$0xff] }
 0x1e7   :  { %v1222_v58 = vpop.xlane.xlu1 %1221  ;;  %v1268_v60 = vpop.xlane.xlu0 %1267 }
 0x1e8   :  { %v1296_v26 = vadd.f32 %v1292_v3, %v1222_v58  ;;  %v1297_v28 = vadd.f32 %v1293_v15, %v1268_v60  ;;  %v1333_v15 = vld [vmem:[%s2503_s3] sm:$0xff] }
 0x1eb   :  { %v1270_v62 = vpop.xlane.xlu1 %1269  ;;  %v1224_v63 = vpop.xlane.xlu0 %1223 }
 0x1ec   :  { %v1299_v7 = vadd.f32 %v1295_v9, %v1224_v63  ;;  %v1298_v33 = vadd.f32 %v1294_v31, %v1270_v62 }
 0x1ef   :  { %v1226_v57 = vpop.xlane.xlu1 %1225  ;;  %v1272_v0 = vpop.xlane.xlu0 %1271 }
 0x1f0   :  { %v1300_v17 = vadd.f32 %v1296_v26, %v1226_v57  ;;  %v1301_v32 = vadd.f32 %v1297_v28, %v1272_v0 }
 0x1f3   :  { %v1274_v2 = vpop.xlane.xlu1 %1273  ;;  %v1228_v49 = vpop.xlane.xlu0 %1227 }
 0x1f4   :  { %v1303_v29 = vadd.f32 %v1299_v7, %v1228_v49  ;;  %v1302_v42 = vadd.f32 %v1298_v33, %v1274_v2 }
 0x1f7   :  { %v1230_v59 = vpop.xlane.xlu1 %1229  ;;  %v1276_v4 = vpop.xlane.xlu0 %1275 }
 0x1f8   :  { %v1304_v36 = vadd.f32 %v1300_v17, %v1230_v59  ;;  %v1305_v40 = vadd.f32 %v1301_v32, %v1276_v4 }
 0x1fb   :  { %v1278_v11 = vpop.xlane.xlu1 %1277  ;;  %v1232_v1 = vpop.xlane.xlu0 %1231 }
 0x1fc   :  { %v1307_v21 = vadd.f32 %v1303_v29, %v1232_v1  ;;  %v1306_v41 = vadd.f32 %v1302_v42, %v1278_v11 }
 0x1ff   :  { %v1234_v20 = vpop.xlane.xlu1 %1233  ;;  %v1280_v16 = vpop.xlane.xlu0 %1279 }
 0x200   :  { %v1308_v43 = vadd.f32 %v1304_v36, %v1234_v20  ;;  %v1309_v45 = vadd.f32 %v1305_v40, %v1280_v16  ;;  %v1334_v16 = vld [vmem:[%s2503_s3 + $0x8] sm:$0xff] }
 0x203   :  { %v1282_v19 = vpop.xlane.xlu1 %1281  ;;  %v1236_v34 = vpop.xlane.xlu0 %1235 }
 0x204   :  { %v1311_v30 = vadd.f32 %v1307_v21, %v1236_v34  ;;  %v1310_v54 = vadd.f32 %v1306_v41, %v1282_v19 }
 0x206   :  { %v1315_v23 = vmul.f32 0.0009765625, %v1311_v30 }
 0x207   :  { %v1238_v47 = vpop.xlane.xlu1 %1237  ;;  %v1284_v48 = vpop.xlane.xlu0 %1283 }
 0x208   :  { %v1312_v35 = vadd.f32 %v1308_v43, %v1238_v47  ;;  %v1313_v52 = vadd.f32 %v1309_v45, %v1284_v48  ;;  %v1319_v55 = vmul.f32 %v1315_v23, %v1315_v23 }
 0x20a   :  { %v1316_v37 = vmul.f32 0.0009765625, %v1312_v35  ;;  %v1317_v58 = vmul.f32 0.0009765625, %v1313_v52 }
 0x20b   :  { %v1286_v60 = vpop.xlane.xlu1 %1285 }
 0x20c   :  { %v1321_v63 = vsub.f32 %v1317_v58, %v1319_v55  ;;  %v1314_v57 = vadd.f32 %v1310_v54, %v1286_v60  ;;  %v1320_v62 = vmul.f32 %v1316_v37, %v1316_v37 }
 0x20e   :  { %v1323_v0 = vmax.f32 %v1321_v63, 0.0  ;;  %v1318_v49 = vmul.f32 0.0009765625, %v1314_v57 }
 0x210   :  { %v1327_v59 = vadd.f32 1e-05, %v1323_v0  ;;  %v1322_v2 = vsub.f32 %v1318_v49, %v1320_v62 }
 0x212   :  { %1916 = vrsqrt.f32 %v1327_v59  ;;  %v1324_v4 = vmax.f32 %v1322_v2, 0.0 }
 0x214   :  { %v1328_v51 = vadd.f32 1e-05, %v1324_v4 }
 0x216   :  { %1918 = vrsqrt.f32 %v1328_v51 }
 0x21c   :  { %v1917_v11 = vpop.eup %1916 }
 0x21d   :  { %v1331_v1 = vmul.f32 %v1917_v11, %v1325_v6 }
 0x21f   :  { %1341 = vperm.xlu0 %1780, %v1331_v1   ;;  %v1335_v3 = vmul.f32 %v1331_v1, %v1315_v23 }
 0x220   :  { %v1919_v14 = vpop.eup %1918 }
 0x221   :  { %v1332_v9 = vmul.f32 %v1919_v14, %v1326_v13  ;;  %v1337_v7 = vsub.f32 %v1333_v15, %v1335_v3 }
 0x223   :  { %1346 = vperm.xlu1 %1781, %v1332_v9   ;;  %v1336_v20 = vmul.f32 %v1332_v9, %v1316_v37 }
 0x225   :  { %v1338_v25 = vsub.f32 %v1334_v16, %v1336_v20 }
 0x227   :  { %1353 = vperm.xlu1 %1781, %v1337_v7  }
 0x22b   :  { %1358 = vperm.xlu1 %1781, %v1338_v25  }
 0x29e   :  { %v1342_v26 = vpop.permute.xlu0 %1341 }
 0x29f   :  { %v1349_v29 = vmul.f32 %v1342_v26, %v2317_v50  ;;  %v1367_v31 = vmul.f32 %v1342_v26, %v2328_v5  ;;  %v1375_v17 = vmul.f32 %v1342_v26, %v2343_v24  ;;  %v1383_v32 = vmul.f32 %v1342_v26, %v2362_v44 }
 0x2a0   :  { %v1391_v21 = vmul.f32 %v1342_v26, %v2371_v56  ;;  %v1399_v19 = vmul.f32 %v1342_v26, %v2387_v8  ;;  %v1407_v34 = vmul.f32 %v1342_v26, %v2397_v18  ;;  %v1415_v33 = vmul.f32 %v1342_v26, %v2413_v38 }
 0x2a2   :  { %v1347_v28 = vpop.permute.xlu1 %1346 }
 0x2a3   :  { %v1350_v36 = vmul.f32 %v1347_v28, %v2320_v53  ;;  %v1368_v40 = vmul.f32 %v1347_v28, %v2333_v10  ;;  %v1376_v50 = vmul.f32 %v1347_v28, %v2348_v27  ;;  %v1384_v5 = vmul.f32 %v1347_v28, %v2365_v46 }
 0x2a4   :  { %v1392_v24 = vmul.f32 %v1347_v28, %v2376_v61  ;;  %v1400_v44 = vmul.f32 %v1347_v28, %v2391_v12  ;;  %v1408_v56 = vmul.f32 %v1347_v28, %v2402_v22  ;;  %v1416_v8 = vmul.f32 %v1347_v28, %v2417_v39 }
 0x2a6   :  { %v1354_v30 = vpop.permute.xlu1 %1353 }
 0x2a7   :  { %v1361_v18 = vadd.f32 %v1354_v30, %v1349_v29  ;;  %v1369_v42 = vadd.f32 %v1367_v31, %v1354_v30  ;;  %v1377_v38 = vadd.f32 %v1375_v17, %v1354_v30  ;;  %v1385_v43 = vadd.f32 %v1383_v32, %v1354_v30 }
 0x2a8   :  { %v1393_v53 = vadd.f32 %v1391_v21, %v1354_v30  ;;  %v1401_v45 = vadd.f32 %v1399_v19, %v1354_v30  ;;  %v1409_v10 = vadd.f32 %v1407_v34, %v1354_v30  ;;  %v1417_v23 = vadd.f32 %v1415_v33, %v1354_v30 }
 0x2a9   :  { %v1363_v27 = vmax.f32 %v1361_v18, 0.0  ;;  %v1371_v47 = vmax.f32 %v1369_v42, 0.0  ;;  %v1379_v46 = vmax.f32 %v1377_v38, 0.0  ;;  %v1387_v48 = vmax.f32 %v1385_v43, 0.0 }
 0x2aa   :  { %v1395_v41 = vmax.f32 %v1393_v53, 0.0  ;;  %v1403_v61 = vmax.f32 %v1401_v45, 0.0  ;;  %v1411_v35 = vmax.f32 %v1409_v10, 0.0  ;;  %v1419_v12 = vmax.f32 %v1417_v23, 0.0  ;;  %v1359_v52 = vpop.permute.xlu1 %1358 }
 0x2ab   :  { %1365 = vst [vmem:[%s2504_s4] sm:$0xff] %v1363_v27  ;;  %1373 = vst [vmem:[%s2504_s4 + $0x10] sm:$0xff] %v1371_v47  ;;  %v1362_v22 = vadd.f32 %v1359_v52, %v1350_v36  ;;  %v1370_v39 = vadd.f32 %v1368_v40, %v1359_v52  ;;  %v1378_v54 = vadd.f32 %v1376_v50, %v1359_v52 }
 0x2ac   :  { %1381 = vst [vmem:[%s2504_s4 + $0x20] sm:$0xff] %v1379_v46  ;;  %1389 = vst [vmem:[%s2504_s4 + $0x30] sm:$0xff] %v1387_v48  ;;  %v1386_v55 = vadd.f32 %v1384_v5, %v1359_v52  ;;  %v1394_v37 = vadd.f32 %v1392_v24, %v1359_v52  ;;  %v1402_v58 = vadd.f32 %v1400_v44, %v1359_v52 }
 0x2ad   :  { %1397 = vst [vmem:[%s2504_s4 + $0x40] sm:$0xff] %v1395_v41  ;;  %1405 = vst [vmem:[%s2504_s4 + $0x50] sm:$0xff] %v1403_v61  ;;  %v1410_v60 = vadd.f32 %v1408_v56, %v1359_v52  ;;  %v1418_v63 = vadd.f32 %v1416_v8, %v1359_v52  ;;  %v1364_v57 = vmax.f32 %v1362_v22, 0.0  ;;  %v1372_v62 = vmax.f32 %v1370_v39, 0.0 }
 0x2ae   :  { %1413 = vst [vmem:[%s2504_s4 + $0x60] sm:$0xff] %v1411_v35  ;;  %1421 = vst [vmem:[%s2504_s4 + $0x70] sm:$0xff] %v1419_v12  ;;  %v1380_v0 = vmax.f32 %v1378_v54, 0.0  ;;  %v1388_v49 = vmax.f32 %v1386_v55, 0.0  ;;  %v1396_v59 = vmax.f32 %v1394_v37, 0.0  ;;  %v1404_v2 = vmax.f32 %v1402_v58, 0.0 }
 0x2af   :  { %v1412_v4 = vmax.f32 %v1410_v60, 0.0  ;;  %v1420_v51 = vmax.f32 %v1418_v63, 0.0  ;;  %1366 = vst [vmem:[%s2504_s4 + $0x8] sm:$0xff] %v1364_v57  ;;  %1374 = vst [vmem:[%s2504_s4 + $0x18] sm:$0xff] %v1372_v62 }
 0x2b0   :  { %1382 = vst [vmem:[%s2504_s4 + $0x28] sm:$0xff] %v1380_v0  ;;  %1390 = vst [vmem:[%s2504_s4 + $0x38] sm:$0xff] %v1388_v49 }
 0x2b1   :  { %1398 = vst [vmem:[%s2504_s4 + $0x48] sm:$0xff] %v1396_v59  ;;  %1406 = vst [vmem:[%s2504_s4 + $0x58] sm:$0xff] %v1404_v2 }
 0x2b2   :  { %1414 = vst [vmem:[%s2504_s4 + $0x68] sm:$0xff] %v1412_v4  ;;  %1422 = vst [vmem:[%s2504_s4 + $0x78] sm:$0xff] %v1420_v51 }

// kernel: generator_forward.6
= control target key start
LH: loop header
LB: loop body
LE: loop exit
PB: predicated region body
PF: predicated region fallthrough
CT: control target
= control target key end

     0   :  { %vm1406_vm0 = vcmask 392192   ;;  %s4636_s0 = inlined_call_operand.vmem [shape: bf16[432,1024], index: 0, kind: input, shape index: {}]   ;;  %s4637_s1 = inlined_call_operand.vmem [shape: bf16[64,432], index: 1, kind: input, shape index: {}]   ;;  %s4638_s2 = inlined_call_operand.vmem [shape: f32[8,1], index: 2, kind: input, shape index: {}]   ;;  %s4639_s3 = inlined_call_operand.vmem [shape: f32[8,1], index: 3, kind: input, shape index: {}]   ;;  %s4640_s4 = inlined_call_operand.vmem [shape: f32[64,1024], index: 4, kind: output, shape index: {}]  }
   0x1   :  { %v34_v0 = vld [vmem:[%s4636_s0] sm:$0xff]  ;;  %v35_v2 = vld [vmem:[%s4636_s0 + $0x8] sm:$0xff] }
   0x2   :  { %v38_v1 = vld [vmem:[%s4636_s0 + $0x20] sm:$0xff]  ;;  %v39_v4 = vld [vmem:[%s4636_s0 + $0x28] sm:$0xff] }
   0x3   :  { %v2524_v3 = vcombine.high %v34_v0, %v38_v1  ;;  %v2523_v5 = vcombine.low %v34_v0, %v38_v1  ;;  %v42_v6 = vld [vmem:[%s4636_s0 + $0x40] sm:$0xff]  ;;  %v2526_v8 = vcombine.high %v35_v2, %v39_v4  ;;  %v2525_v9 = vcombine.low %v35_v2, %v39_v4  ;;  %v43_v11 = vld [vmem:[%s4636_s0 + $0x48] sm:$0xff] }
   0x4   :  { %v46_v7 = vld [vmem:[%s4636_s0 + $0x60] sm:$0xff]  ;;  %v47_v12 = vld [vmem:[%s4636_s0 + $0x68] sm:$0xff] }
   0x5   :  { %v2532_v10 = vcombine.high %v42_v6, %v46_v7  ;;  %v50_v13 = vld [vmem:[%s4636_s0 + $0x80] sm:$0xff]  ;;  %1419 = vmatprep.subr.bf16.mxu0 %v2524_v3  ;;  %v2534_v14 = vcombine.high %v43_v11, %v47_v12  ;;  %v51_v16 = vld [vmem:[%s4636_s0 + $0x88] sm:$0xff]  ;;  %1565 = vmatprep.subr.bf16.mxu1 %v2526_v8  ;;  %v2531_v18 = vcombine.low %v42_v6, %v46_v7 }
   0x6   :  { %v54_v15 = vld [vmem:[%s4636_s0 + $0xa0] sm:$0xff]  ;;  %v55_v17 = vld [vmem:[%s4636_s0 + $0xa8] sm:$0xff]  ;;  %1420 = vmatpush1.bf16.msra.mxu0 %v2523_v5  ;;  %1566 = vmatpush1.bf16.msra.mxu1 %v2525_v9  ;;  %v2533_v19 = vcombine.low %v43_v11, %v47_v12 }
   0x7   :  { %1421 = vmatprep.subr.bf16.mxu0 %v2532_v10  ;;  %v2540_v20 = vcombine.high %v50_v13, %v54_v15  ;;  %1567 = vmatprep.subr.bf16.mxu1 %v2534_v14  ;;  %v2542_v21 = vcombine.high %v51_v16, %v55_v17  ;;  %v58_v22 = vld [vmem:[%s4636_s0 + $0xc0] sm:$0xff]  ;;  %v59_v24 = vld [vmem:[%s4636_s0 + $0xc8] sm:$0xff]  ;;  %v2539_v26 = vcombine.low %v50_v13, %v54_v15 }
   0x8   :  { %v62_v23 = vld [vmem:[%s4636_s0 + $0xe0] sm:$0xff]  ;;  %v63_v25 = vld [vmem:[%s4636_s0 + $0xe8] sm:$0xff]  ;;  %v2541_v27 = vcombine.low %v51_v16, %v55_v17 }
   0x9   :  { %v2548_v28 = vcombine.high %v58_v22, %v62_v23  ;;  %v2550_v29 = vcombine.high %v59_v24, %v63_v25  ;;  %v66_v30 = vld [vmem:[%s4636_s0 + $0x100] sm:$0xff]  ;;  %v67_v32 = vld [vmem:[%s4636_s0 + $0x108] sm:$0xff]  ;;  %v2547_v34 = vcombine.low %v58_v22, %v62_v23  ;;  %v2549_v35 = vcombine.low %v59_v24, %v63_v25 }
   0xa   :  { %1422 = vmatpush1.bf16.msra.mxu0 %v2531_v18  ;;  %1568 = vmatpush1.bf16.msra.mxu1 %v2533_v19  ;;  %v70_v31 = vld [vmem:[%s4636_s0 + $0x120] sm:$0xff]  ;;  %v71_v33 = vld [vmem:[%s4636_s0 + $0x128] sm:$0xff] }
   0xb   :  { %1423 = vmatprep.subr.bf16.mxu0 %v2540_v20  ;;  %1569 = vmatprep.subr.bf16.mxu1 %v2542_v21  ;;  %v2556_v36 = vcombine.high %v66_v30, %v70_v31  ;;  %v2558_v37 = vcombine.high %v67_v32, %v71_v33  ;;  %v74_v38 = vld [vmem:[%s4636_s0 + $0x140] sm:$0xff]  ;;  %v75_v40 = vld [vmem:[%s4636_s0 + $0x148] sm:$0xff]  ;;  %v2555_v42 = vcombine.low %v66_v30, %v70_v31 }
   0xc   :  { %v78_v39 = vld [vmem:[%s4636_s0 + $0x160] sm:$0xff]  ;;  %v79_v41 = vld [vmem:[%s4636_s0 + $0x168] sm:$0xff]  ;;  %v2557_v43 = vcombine.low %v67_v32, %v71_v33 }
   0xd   :  { %v2564_v44 = vcombine.high %v74_v38, %v78_v39  ;;  %v2566_v45 = vcombine.high %v75_v40, %v79_v41  ;;  %v82_v46 = vld [vmem:[%s4636_s0 + $0x180] sm:$0xff]  ;;  %v83_v48 = vld [vmem:[%s4636_s0 + $0x188] sm:$0xff]  ;;  %v2563_v50 = vcombine.low %v74_v38, %v78_v39  ;;  %v2565_v51 = vcombine.low %v75_v40, %v79_v41 }
   0xe   :  { %1424 = vmatpush1.bf16.msra.mxu0 %v2539_v26  ;;  %1570 = vmatpush1.bf16.msra.mxu1 %v2541_v27  ;;  %v86_v47 = vld [vmem:[%s4636_s0 + $0x1a0] sm:$0xff]  ;;  %v87_v49 = vld [vmem:[%s4636_s0 + $0x1a8] sm:$0xff] }
   0xf   :  { %1425 = vmatprep.subr.bf16.mxu0 %v2548_v28  ;;  %1571 = vmatprep.subr.bf16.mxu1 %v2550_v29  ;;  %v2572_v52 = vcombine.high %v82_v46, %v86_v47  ;;  %v2574_v53 = vcombine.high %v83_v48, %v87_v49  ;;  %v90_v54 = vld [vmem:[%s4636_s0 + $0x1c0] sm:$0xff]  ;;  %v91_v57 = vld [vmem:[%s4636_s0 + $0x1c8] sm:$0xff]  ;;  %v2571_v59 = vcombine.low %v82_v46, %v86_v47 }
  0x10   :  { %v94_v55 = vld [vmem:[%s4636_s0 + $0x1e0] sm:$0xff]  ;;  %v95_v58 = vld [vmem:[%s4636_s0 + $0x1e8] sm:$0xff]  ;;  %v2573_v60 = vcombine.low %v83_v48, %v87_v49 }
  0x11   :  { %v2967_v56 = vld [vmem:[%s4637_s1 + $0x4] ss:$16 sps:$4 sm:$0xff]   ;;  %v2580_v61 = vcombine.high %v90_v54, %v94_v55  ;;  %v2582_v62 = vcombine.high %v91_v57, %v95_v58  ;;  %v99_v1 = vld [vmem:[%s4636_s0 + $0x208] sm:$0xff]  ;;  %v2579_v3 = vcombine.low %v90_v54, %v94_v55  ;;  %v2581_v4 = vcombine.low %v91_v57, %v95_v58 }
  0x12   :  { %1426 = vmatpush1.bf16.msra.mxu0 %v2547_v34  ;;  %1572 = vmatpush1.bf16.msra.mxu1 %v2549_v35  ;;  %v98_v63 = vld [vmem:[%s4636_s0 + $0x200] sm:$0xff]  ;;  %v103_v2 = vld [vmem:[%s4636_s0 + $0x228] sm:$0xff] }
  0x13   :  { %1427 = vmatprep.subr.bf16.mxu0 %v2556_v36  ;;  %1573 = vmatprep.subr.bf16.mxu1 %v2558_v37  ;;  %v102_v0 = vld [vmem:[%s4636_s0 + $0x220] sm:$0xff]  ;;  %v2590_v6 = vcombine.high %v99_v1, %v103_v2  ;;  %v107_v9 = vld [vmem:[%s4636_s0 + $0x248] sm:$0xff]  ;;  %v2589_v12 = vcombine.low %v99_v1, %v103_v2 }
  0x14   :  { %1451 = vmatprep.mubr.bf16.mxu0 %v2967_v56  ;;  %1597 = vmatprep.mubr.bf16.mxu1 %v2967_v56  ;;  %v2588_v5 = vcombine.high %v98_v63, %v102_v0  ;;  %v106_v7 = vld [vmem:[%s4636_s0 + $0x240] sm:$0xff]  ;;  %v111_v10 = vld [vmem:[%s4636_s0 + $0x268] sm:$0xff]  ;;  %v2587_v11 = vcombine.low %v98_v63, %v102_v0 }
  0x15   :  { %v110_v8 = vld [vmem:[%s4636_s0 + $0x260] sm:$0xff]  ;;  %v2598_v14 = vcombine.high %v107_v9, %v111_v10  ;;  %v115_v17 = vld [vmem:[%s4636_s0 + $0x288] sm:$0xff]  ;;  %v2597_v20 = vcombine.low %v107_v9, %v111_v10 }
  0x16   :  { %1428 = vmatpush1.bf16.msra.mxu0 %v2555_v42  ;;  %1574 = vmatpush1.bf16.msra.mxu1 %v2557_v43  ;;  %v2596_v13 = vcombine.high %v106_v7, %v110_v8  ;;  %v114_v15 = vld [vmem:[%s4636_s0 + $0x280] sm:$0xff]  ;;  %v119_v18 = vld [vmem:[%s4636_s0 + $0x2a8] sm:$0xff]  ;;  %v2595_v19 = vcombine.low %v106_v7, %v110_v8 }
  0x17   :  { %1429 = vmatprep.subr.bf16.mxu0 %v2564_v44  ;;  %1575 = vmatprep.subr.bf16.mxu1 %v2566_v45  ;;  %v118_v16 = vld [vmem:[%s4636_s0 + $0x2a0] sm:$0xff]  ;;  %v2606_v22 = vcombine.high %v115_v17, %v119_v18  ;;  %v123_v25 = vld [vmem:[%s4636_s0 + $0x2c8] sm:$0xff]  ;;  %v2605_v28 = vcombine.low %v115_v17, %v119_v18 }
  0x18   :  { %v2604_v21 = vcombine.high %v114_v15, %v118_v16  ;;  %v122_v23 = vld [vmem:[%s4636_s0 + $0x2c0] sm:$0xff]  ;;  %v127_v26 = vld [vmem:[%s4636_s0 + $0x2e8] sm:$0xff]  ;;  %v2603_v27 = vcombine.low %v114_v15, %v118_v16 }
  0x19   :  { %v126_v24 = vld [vmem:[%s4636_s0 + $0x2e0] sm:$0xff]  ;;  %v2614_v30 = vcombine.high %v123_v25, %v127_v26  ;;  %v131_v33 = vld [vmem:[%s4636_s0 + $0x308] sm:$0xff]  ;;  %v2613_v36 = vcombine.low %v123_v25, %v127_v26 }
  0x1a   :  { %1430 = vmatpush1.bf16.msra.mxu0 %v2563_v50  ;;  %1576 = vmatpush1.bf16.msra.mxu1 %v2565_v51  ;;  %v2612_v29 = vcombine.high %v122_v23, %v126_v24  ;;  %v130_v31 = vld [vmem:[%s4636_s0 + $0x300] sm:$0xff]  ;;  %v135_v34 = vld [vmem:[%s4636_s0 + $0x328] sm:$0xff]  ;;  %v2611_v35 = vcombine.low %v122_v23, %v126_v24 }
  0x1b   :  { %1431 = vmatprep.subr.bf16.mxu0 %v2572_v52  ;;  %1577 = vmatprep.subr.bf16.mxu1 %v2574_v53  ;;  %v134_v32 = vld [vmem:[%s4636_s0 + $0x320] sm:$0xff]  ;;  %v2622_v38 = vcombine.high %v131_v33, %v135_v34  ;;  %v139_v41 = vld [vmem:[%s4636_s0 + $0x348] sm:$0xff]  ;;  %v2621_v44 = vcombine.low %v131_v33, %v135_v34 }
  0x1c   :  { %v2620_v37 = vcombine.high %v130_v31, %v134_v32  ;;  %v138_v39 = vld [vmem:[%s4636_s0 + $0x340] sm:$0xff]  ;;  %v143_v42 = vld [vmem:[%s4636_s0 + $0x368] sm:$0xff]  ;;  %v2619_v43 = vcombine.low %v130_v31, %v134_v32 }
  0x1d   :  { %v142_v40 = vld [vmem:[%s4636_s0 + $0x360] sm:$0xff]  ;;  %v2630_v46 = vcombine.high %v139_v41, %v143_v42  ;;  %v147_v49 = vld [vmem:[%s4636_s0 + $0x388] sm:$0xff]  ;;  %v2629_v52 = vcombine.low %v139_v41, %v143_v42 }
  0x1e   :  { %1432 = vmatpush1.bf16.msra.mxu0 %v2571_v59  ;;  %1578 = vmatpush1.bf16.msra.mxu1 %v2573_v60  ;;  %v2628_v45 = vcombine.high %v138_v39, %v142_v40  ;;  %v146_v47 = vld [vmem:[%s4636_s0 + $0x380] sm:$0xff]  ;;  %v151_v50 = vld [vmem:[%s4636_s0 + $0x3a8] sm:$0xff]  ;;  %v2627_v51 = vcombine.low %v138_v39, %v142_v40 }
  0x1f   :  { %1433 = vmatprep.subr.bf16.mxu0 %v2580_v61  ;;  %1579 = vmatprep.subr.bf16.mxu1 %v2582_v62  ;;  %v150_v48 = vld [vmem:[%s4636_s0 + $0x3a0] sm:$0xff]  ;;  %v2638_v54 = vcombine.high %v147_v49, %v151_v50  ;;  %v155_v58 = vld [vmem:[%s4636_s0 + $0x3c8] sm:$0xff]  ;;  %v2637_v61 = vcombine.low %v147_v49, %v151_v50 }
  0x20   :  { %v2636_v53 = vcombine.high %v146_v47, %v150_v48  ;;  %v154_v55 = vld [vmem:[%s4636_s0 + $0x3c0] sm:$0xff]  ;;  %v159_v59 = vld [vmem:[%s4636_s0 + $0x3e8] sm:$0xff]  ;;  %v2635_v60 = vcombine.low %v146_v47, %v150_v48 }
  0x21   :  { %v158_v57 = vld [vmem:[%s4636_s0 + $0x3e0] sm:$0xff]  ;;  %v2646_v63 = vcombine.high %v155_v58, %v159_v59  ;;  %v163_v2 = vld [vmem:[%s4636_s0 + $0x408] sm:$0xff] }
  0x22   :  { %1434 = vmatpush1.bf16.msra.mxu0 %v2579_v3  ;;  %1580 = vmatpush1.bf16.msra.mxu1 %v2581_v4  ;;  %v2644_v62 = vcombine.high %v154_v55, %v158_v57  ;;  %v162_v0 = vld [vmem:[%s4636_s0 + $0x400] sm:$0xff]  ;;  %v167_v3 = vld [vmem:[%s4636_s0 + $0x428] sm:$0xff]  ;;  %v2643_v4 = vcombine.low %v154_v55, %v158_v57 }
  0x23   :  { %1435 = vmatprep.subr.bf16.mxu0 %v2588_v5  ;;  %1581 = vmatprep.subr.bf16.mxu1 %v2590_v6  ;;  %v166_v1 = vld [vmem:[%s4636_s0 + $0x420] sm:$0xff]  ;;  %v2645_v5 = vcombine.low %v155_v58, %v159_v59  ;;  %v2654_v7 = vcombine.high %v163_v2, %v167_v3  ;;  %v199_v39 = vld [vmem:[%s4636_s0 + $0x528] sm:$0xff] }
  0x24   :  { %v2652_v6 = vcombine.high %v162_v0, %v166_v1  ;;  %v170_v8 = vld [vmem:[%s4636_s0 + $0x440] sm:$0xff]  ;;  %v207_v47 = vld [vmem:[%s4636_s0 + $0x568] sm:$0xff] }
  0x25   :  { %v174_v9 = vld [vmem:[%s4636_s0 + $0x460] sm:$0xff]  ;;  %v211_v57 = vld [vmem:[%s4636_s0 + $0x588] sm:$0xff] }
  0x26   :  { %1436 = vmatpush1.bf16.msra.mxu0 %v2587_v11  ;;  %1582 = vmatpush1.bf16.msra.mxu1 %v2589_v12  ;;  %v3094_v10 = vld [vmem:[%s4637_s1] ss:$16 sps:$4 sm:$0xff]   ;;  %v171_v11 = vld [vmem:[%s4636_s0 + $0x448] sm:$0xff]  ;;  %v2660_v15 = vcombine.high %v170_v8, %v174_v9  ;;  %v3187_v55 = vld [vmem:[%s4637_s1 + $0x64] ss:$16 sps:$4 sm:$0xff]  }
  0x27   :  { %1437 = vmatprep.subr.bf16.mxu0 %v2596_v13  ;;  %1583 = vmatprep.subr.bf16.mxu1 %v2598_v14  ;;  %v175_v12 = vld [vmem:[%s4636_s0 + $0x468] sm:$0xff]  ;;  %v2651_v13 = vcombine.low %v162_v0, %v166_v1  ;;  %v2653_v14 = vcombine.low %v163_v2, %v167_v3  ;;  %v178_v17 = vld [vmem:[%s4636_s0 + $0x480] sm:$0xff] }
  0x28   :  { %v2662_v16 = vcombine.high %v171_v11, %v175_v12  ;;  %v182_v18 = vld [vmem:[%s4636_s0 + $0x4a0] sm:$0xff]  ;;  %v2661_v23 = vcombine.low %v171_v11, %v175_v12  ;;  %v215_v58 = vld [vmem:[%s4636_s0 + $0x5a8] sm:$0xff] }
  0x29   :  { %v2668_v24 = vcombine.high %v178_v17, %v182_v18  ;;  %v186_v26 = vld [vmem:[%s4636_s0 + $0x4c0] sm:$0xff]  ;;  %v2667_v31 = vcombine.low %v178_v17, %v182_v18  ;;  %v219_v1 = vld [vmem:[%s4636_s0 + $0x5c8] sm:$0xff] }
  0x2a   :  { %1438 = vmatpush1.bf16.msra.mxu0 %v2595_v19  ;;  %1584 = vmatpush1.bf16.msra.mxu1 %v2597_v20  ;;  %v3111_v19 = vld [vmem:[%s4637_s1 + $0x24] ss:$16 sps:$4 sm:$0xff]   ;;  %v179_v20 = vld [vmem:[%s4636_s0 + $0x488] sm:$0xff]  ;;  %v3176_v48 = vld [vmem:[%s4637_s1 + $0x40] ss:$16 sps:$4 sm:$0xff]  }
  0x2b   :  { %1439 = vmatprep.subr.bf16.mxu0 %v2604_v21  ;;  %1585 = vmatprep.subr.bf16.mxu1 %v2606_v22  ;;  %v183_v21 = vld [vmem:[%s4636_s0 + $0x4a8] sm:$0xff]  ;;  %v2659_v22 = vcombine.low %v170_v8, %v174_v9  ;;  %v222_v0 = vld [vmem:[%s4636_s0 + $0x5e0] sm:$0xff] }
  0x2c   :  { %v2670_v25 = vcombine.high %v179_v20, %v183_v21  ;;  %v2669_v32 = vcombine.low %v179_v20, %v183_v21  ;;  %v223_v2 = vld [vmem:[%s4636_s0 + $0x5e8] sm:$0xff]  ;;  %v3214_v3 = vld [vmem:[%s4637_s1 + $0x60] ss:$16 sps:$4 sm:$0xff]  }
  0x2d   :  { %v226_v8 = vld [vmem:[%s4636_s0 + $0x600] sm:$0xff]  ;;  %v3225_v11 = vld [vmem:[%s4637_s1 + $0xc] ss:$16 sps:$4 sm:$0xff]  }
  0x2e   :  { %1440 = vmatpush1.bf16.msra.mxu0 %v2603_v27  ;;  %1586 = vmatpush1.bf16.msra.mxu1 %v2605_v28  ;;  %v190_v27 = vld [vmem:[%s4636_s0 + $0x4e0] sm:$0xff]  ;;  %v187_v28 = vld [vmem:[%s4636_s0 + $0x4c8] sm:$0xff] }
  0x2f   :  { %1441 = vmatprep.subr.bf16.mxu0 %v2612_v29  ;;  %1587 = vmatprep.subr.bf16.mxu1 %v2614_v30  ;;  %v191_v29 = vld [vmem:[%s4636_s0 + $0x4e8] sm:$0xff]  ;;  %v3138_v30 = vld [vmem:[%s4637_s1 + $0x20] ss:$16 sps:$4 sm:$0xff]   ;;  %v2676_v33 = vcombine.high %v186_v26, %v190_v27  ;;  %v2675_v40 = vcombine.low %v186_v26, %v190_v27 }
  0x30   :  { %v2678_v34 = vcombine.high %v187_v28, %v191_v29  ;;  %v2677_v41 = vcombine.low %v187_v28, %v191_v29  ;;  %v230_v9 = vld [vmem:[%s4636_s0 + $0x620] sm:$0xff]  ;;  %v227_v12 = vld [vmem:[%s4636_s0 + $0x608] sm:$0xff] }
  0x31   :  { %v234_v18 = vld [vmem:[%s4636_s0 + $0x640] sm:$0xff]  ;;  %v235_v21 = vld [vmem:[%s4636_s0 + $0x648] sm:$0xff] }
  0x32   :  { %1442 = vmatpush1.bf16.msra.mxu0 %v2611_v35  ;;  %1588 = vmatpush1.bf16.msra.mxu1 %v2613_v36  ;;  %v194_v35 = vld [vmem:[%s4636_s0 + $0x500] sm:$0xff]  ;;  %v243_v29 = vld [vmem:[%s4636_s0 + $0x688] sm:$0xff] }
  0x33   :  { %1443 = vmatprep.subr.bf16.mxu0 %v2620_v37  ;;  %1589 = vmatprep.subr.bf16.mxu1 %v2622_v38  ;;  %v198_v36 = vld [vmem:[%s4636_s0 + $0x520] sm:$0xff]  ;;  %v195_v38 = vld [vmem:[%s4636_s0 + $0x508] sm:$0xff] }
  0x34   :  { %v3149_v37 = vld [vmem:[%s4637_s1 + $0x44] ss:$16 sps:$4 sm:$0xff]   ;;  %v2684_v42 = vcombine.high %v194_v35, %v198_v36  ;;  %v2683_v49 = vcombine.low %v194_v35, %v198_v36  ;;  %v2685_v50 = vcombine.low %v195_v38, %v199_v39 }
  0x35   :  { %v238_v20 = vld [vmem:[%s4636_s0 + $0x660] sm:$0xff]  ;;  %v36_v36 = vld [vmem:[%s4636_s0 + $0x10] sm:$0xff] }
  0x36   :  { %1444 = vmatpush1.bf16.msra.mxu0 %v2619_v43  ;;  %1590 = vmatpush1.bf16.msra.mxu1 %v2621_v44  ;;  %v2686_v43 = vcombine.high %v195_v38, %v199_v39  ;;  %v202_v44 = vld [vmem:[%s4636_s0 + $0x540] sm:$0xff]  ;;  %v40_v38 = vld [vmem:[%s4636_s0 + $0x30] sm:$0xff]  ;;  %v37_v39 = vld [vmem:[%s4636_s0 + $0x18] sm:$0xff] }
  0x37   :  { %1445 = vmatprep.subr.bf16.mxu0 %v2628_v45  ;;  %1591 = vmatprep.subr.bf16.mxu1 %v2630_v46  ;;  %v206_v45 = vld [vmem:[%s4636_s0 + $0x560] sm:$0xff]  ;;  %v203_v46 = vld [vmem:[%s4636_s0 + $0x548] sm:$0xff] }
  0x38   :  { %v2691_v59 = vcombine.low %v202_v44, %v206_v45  ;;  %v242_v27 = vld [vmem:[%s4636_s0 + $0x680] sm:$0xff] }
  0x39   :  { %v246_v28 = vld [vmem:[%s4636_s0 + $0x6a0] sm:$0xff] }
  0x3a   :  { %1446 = vmatpush1.bf16.msra.mxu0 %v2627_v51  ;;  %1592 = vmatpush1.bf16.msra.mxu1 %v2629_v52  ;;  %v2692_v51 = vcombine.high %v202_v44, %v206_v45  ;;  %v2694_v52 = vcombine.high %v203_v46, %v207_v47  ;;  %v44_v45 = vld [vmem:[%s4636_s0 + $0x50] sm:$0xff] }
  0x3b   :  { %1447 = vmatprep.subr.bf16.mxu0 %v2636_v53  ;;  %1593 = vmatprep.subr.bf16.mxu1 %v2638_v54  ;;  %v210_v53 = vld [vmem:[%s4636_s0 + $0x580] sm:$0xff] }
  0x3c   :  { %v214_v54 = vld [vmem:[%s4636_s0 + $0x5a0] sm:$0xff] }
  0x3e   :  { %1448 = vmatpush1.bf16.msra.mxu0 %v2635_v60  ;;  %1594 = vmatpush1.bf16.msra.mxu1 %v2637_v61  ;;  %v2693_v60 = vcombine.low %v203_v46, %v207_v47  ;;  %v2700_v61 = vcombine.high %v210_v53, %v214_v54  ;;  %v48_v46 = vld [vmem:[%s4636_s0 + $0x70] sm:$0xff]  ;;  %v3284_v47 = vld [vmem:[%s4637_s1 + $0x8] ss:$16 sps:$4 sm:$0xff]  }
  0x3f   :  { %1449 = vmatprep.subr.bf16.mxu0 %v2644_v62  ;;  %1595 = vmatprep.subr.bf16.mxu1 %v2646_v63  ;;  %v2702_v62 = vcombine.high %v211_v57, %v215_v58  ;;  %v218_v63 = vld [vmem:[%s4636_s0 + $0x5c0] sm:$0xff] }
  0x42   :  { %1450 = vmatpush1.bf16.msra.mxu0 %v2643_v4  ;;  %1596 = vmatpush1.bf16.msra.mxu1 %v2645_v5  ;;  %v2699_v4 = vcombine.low %v210_v53, %v214_v54  ;;  %v2701_v5 = vcombine.low %v211_v57, %v215_v58  ;;  %v2536_v53 = vcombine.high %v44_v45, %v48_v46  ;;  %v3295_v57 = vld [vmem:[%s4637_s1 + $0x2c] ss:$16 sps:$4 sm:$0xff]   ;;  %v52_v58 = vld [vmem:[%s4636_s0 + $0x90] sm:$0xff] }
  0x43   :  { %1492 = vmatprep.subr.bf16.mxu0 %v2652_v6  ;;  %1638 = vmatprep.subr.bf16.mxu1 %v2654_v7  ;;  %v2708_v6 = vcombine.high %v218_v63, %v222_v0  ;;  %v2710_v7 = vcombine.high %v219_v1, %v223_v2 }
  0x45   :  { %1452 = vmatmul.mubr.bf16.vlgmr.msra.gmra.mrb[0].mxu0 %v3094_v10  ;;  %1598 = vmatmul.mubr.bf16.vlgmr.msra.gmra.mrb[0].mxu1 %v3094_v10 }
  0x46   :  { %1493 = vmatpush1.bf16.msra.mxu0 %v2651_v13  ;;  %1639 = vmatpush1.bf16.msra.mxu1 %v2653_v14  ;;  %v231_v13 = vld [vmem:[%s4636_s0 + $0x628] sm:$0xff]  ;;  %v2707_v14 = vcombine.low %v218_v63, %v222_v0 }
  0x47   :  { %1494 = vmatprep.subr.bf16.mxu0 %v2660_v15  ;;  %1640 = vmatprep.subr.bf16.mxu1 %v2662_v16  ;;  %v2709_v15 = vcombine.low %v219_v1, %v223_v2  ;;  %v2716_v16 = vcombine.high %v226_v8, %v230_v9  ;;  %v2718_v17 = vcombine.high %v227_v12, %v231_v13  ;;  %v60_v2 = vld [vmem:[%s4636_s0 + $0xd0] sm:$0xff] }
  0x48   :  { %1461 = vmatprep.mubr.bf16.mxu0 %v3111_v19  ;;  %1607 = vmatprep.mubr.bf16.mxu1 %v3111_v19 }
  0x4a   :  { %1495 = vmatpush1.bf16.msra.mxu0 %v2659_v22  ;;  %1641 = vmatpush1.bf16.msra.mxu1 %v2661_v23  ;;  %v239_v22 = vld [vmem:[%s4636_s0 + $0x668] sm:$0xff]  ;;  %v2715_v23 = vcombine.low %v226_v8, %v230_v9 }
  0x4b   :  { %1496 = vmatprep.subr.bf16.mxu0 %v2668_v24  ;;  %1642 = vmatprep.subr.bf16.mxu1 %v2670_v25  ;;  %v2717_v24 = vcombine.low %v227_v12, %v231_v13  ;;  %v2724_v25 = vcombine.high %v234_v18, %v238_v20  ;;  %v2726_v26 = vcombine.high %v235_v21, %v239_v22 }
  0x4d   :  { %1462 = vmatmul.mubr.bf16.gmra.mrb[4].mxu0 %v3138_v30  ;;  %1608 = vmatmul.mubr.bf16.gmra.mrb[4].mxu1 %v3138_v30 }
  0x4e   :  { %1497 = vmatpush1.bf16.msra.mxu0 %v2667_v31  ;;  %1643 = vmatpush1.bf16.msra.mxu1 %v2669_v32  ;;  %v247_v31 = vld [vmem:[%s4636_s0 + $0x6a8] sm:$0xff]  ;;  %v2723_v32 = vcombine.low %v234_v18, %v238_v20  ;;  %v73_v18 = vld [vmem:[%s4636_s0 + $0x138] sm:$0xff] }
  0x4f   :  { %1498 = vmatprep.subr.bf16.mxu0 %v2676_v33  ;;  %1644 = vmatprep.subr.bf16.mxu1 %v2678_v34  ;;  %v2725_v33 = vcombine.low %v235_v21, %v239_v22  ;;  %v2732_v34 = vcombine.high %v242_v27, %v246_v28  ;;  %v2734_v35 = vcombine.high %v243_v29, %v247_v31 }
  0x50   :  { %1471 = vmatprep.mubr.bf16.mxu0 %v3149_v37  ;;  %1617 = vmatprep.mubr.bf16.mxu1 %v3149_v37 }
  0x52   :  { %1499 = vmatpush1.bf16.msra.mxu0 %v2675_v40  ;;  %1645 = vmatpush1.bf16.msra.mxu1 %v2677_v41  ;;  %v41_v40 = vld [vmem:[%s4636_s0 + $0x38] sm:$0xff]  ;;  %v2731_v41 = vcombine.low %v242_v27, %v246_v28 }
  0x53   :  { %1500 = vmatprep.subr.bf16.mxu0 %v2684_v42  ;;  %1646 = vmatprep.subr.bf16.mxu1 %v2686_v43  ;;  %v2733_v42 = vcombine.low %v243_v29, %v247_v31  ;;  %v2528_v43 = vcombine.high %v36_v36, %v40_v38  ;;  %v2530_v44 = vcombine.high %v37_v39, %v41_v40  ;;  %v77_v27 = vld [vmem:[%s4636_s0 + $0x158] sm:$0xff] }
  0x54   :  { %v81_v28 = vld [vmem:[%s4636_s0 + $0x178] sm:$0xff] }
  0x55   :  { %1472 = vmatmul.mubr.bf16.gmra.mrb[8].mxu0 %v3176_v48  ;;  %1618 = vmatmul.mubr.bf16.gmra.mrb[8].mxu1 %v3176_v48 }
  0x56   :  { %1501 = vmatpush1.bf16.msra.mxu0 %v2683_v49  ;;  %1647 = vmatpush1.bf16.msra.mxu1 %v2685_v50  ;;  %v45_v49 = vld [vmem:[%s4636_s0 + $0x58] sm:$0xff] }
  0x57   :  { %1502 = vmatprep.subr.bf16.mxu0 %v2692_v51  ;;  %1648 = vmatprep.subr.bf16.mxu1 %v2694_v52  ;;  %v49_v50 = vld [vmem:[%s4636_s0 + $0x78] sm:$0xff]  ;;  %v2527_v51 = vcombine.low %v36_v36, %v40_v38  ;;  %v2529_v52 = vcombine.low %v37_v39, %v41_v40  ;;  %v88_v36 = vld [vmem:[%s4636_s0 + $0x1b0] sm:$0xff] }
  0x58   :  { %1481 = vmatprep.mubr.bf16.mxu0 %v3187_v55  ;;  %1627 = vmatprep.mubr.bf16.mxu1 %v3187_v55  ;;  %v2538_v54 = vcombine.high %v45_v49, %v49_v50  ;;  %v2537_v63 = vcombine.low %v45_v49, %v49_v50  ;;  %v85_v38 = vld [vmem:[%s4636_s0 + $0x198] sm:$0xff] }
  0x59   :  { %v89_v39 = vld [vmem:[%s4636_s0 + $0x1b8] sm:$0xff] }
  0x5a   :  { %1503 = vmatpush1.bf16.msra.mxu0 %v2691_v59  ;;  %1649 = vmatpush1.bf16.msra.mxu1 %v2693_v60  ;;  %v56_v59 = vld [vmem:[%s4636_s0 + $0xb0] sm:$0xff]  ;;  %v53_v60 = vld [vmem:[%s4636_s0 + $0x98] sm:$0xff] }
  0x5b   :  { %1504 = vmatprep.subr.bf16.mxu0 %v2700_v61  ;;  %1650 = vmatprep.subr.bf16.mxu1 %v2702_v62  ;;  %v57_v61 = vld [vmem:[%s4636_s0 + $0xb8] sm:$0xff]  ;;  %v2535_v62 = vcombine.low %v44_v45, %v48_v46  ;;  %v2544_v0 = vcombine.high %v52_v58, %v56_v59  ;;  %v2543_v8 = vcombine.low %v52_v58, %v56_v59  ;;  %v96_v45 = vld [vmem:[%s4636_s0 + $0x1f0] sm:$0xff] }
  0x5c   :  { %v2546_v1 = vcombine.high %v53_v60, %v57_v61  ;;  %v2545_v9 = vcombine.low %v53_v60, %v57_v61  ;;  %v3404_v46 = vld [vmem:[%s4637_s1 + $0x68] ss:$16 sps:$4 sm:$0xff]   ;;  %v100_v58 = vld [vmem:[%s4636_s0 + $0x210] sm:$0xff] }
  0x5d   :  { %1482 = vmatmul.mubr.bf16.gmra.mrb[12].mxu0 %v3214_v3  ;;  %1628 = vmatmul.mubr.bf16.gmra.mrb[12].mxu1 %v3214_v3  ;;  %v93_v49 = vld [vmem:[%s4636_s0 + $0x1d8] sm:$0xff]  ;;  %v104_v59 = vld [vmem:[%s4636_s0 + $0x230] sm:$0xff] }
  0x5e   :  { %1505 = vmatpush1.bf16.msra.mxu0 %v2699_v4  ;;  %1651 = vmatpush1.bf16.msra.mxu1 %v2701_v5  ;;  %v64_v4 = vld [vmem:[%s4636_s0 + $0xf0] sm:$0xff]  ;;  %v3324_v5 = vld [vmem:[%s4637_s1 + $0x28] ss:$16 sps:$4 sm:$0xff]  }
  0x5f   :  { %1506 = vmatprep.subr.bf16.mxu0 %v2708_v6  ;;  %1652 = vmatprep.subr.bf16.mxu1 %v2710_v7  ;;  %v61_v6 = vld [vmem:[%s4636_s0 + $0xd8] sm:$0xff]  ;;  %v2552_v12 = vcombine.high %v60_v2, %v64_v4  ;;  %v2551_v20 = vcombine.low %v60_v2, %v64_v4  ;;  %v108_v2 = vld [vmem:[%s4636_s0 + $0x250] sm:$0xff] }
  0x60   :  { %2739 = vmatprep.mubr.msk.bf16.mxu0 %vm1406_vm0, %v3225_v11  ;;  %2743 = vmatprep.mubr.msk.bf16.mxu1 %vm1406_vm0, %v3225_v11  ;;  %v65_v7 = vld [vmem:[%s4636_s0 + $0xf8] sm:$0xff]  ;;  %v112_v4 = vld [vmem:[%s4636_s0 + $0x270] sm:$0xff] }
  0x61   :  { %v2554_v13 = vcombine.high %v61_v6, %v65_v7  ;;  %v2553_v21 = vcombine.low %v61_v6, %v65_v7  ;;  %v97_v50 = vld [vmem:[%s4636_s0 + $0x1f8] sm:$0xff] }
  0x62   :  { %1507 = vmatpush1.bf16.msra.mxu0 %v2707_v14  ;;  %1653 = vmatpush1.bf16.msra.mxu1 %v2709_v15  ;;  %v3335_v14 = vld [vmem:[%s4637_s1 + $0x4c] ss:$16 sps:$4 sm:$0xff]   ;;  %v68_v15 = vld [vmem:[%s4636_s0 + $0x110] sm:$0xff] }
  0x63   :  { %1508 = vmatprep.subr.bf16.mxu0 %v2716_v16  ;;  %1654 = vmatprep.subr.bf16.mxu1 %v2718_v17  ;;  %v72_v16 = vld [vmem:[%s4636_s0 + $0x130] sm:$0xff]  ;;  %v69_v17 = vld [vmem:[%s4636_s0 + $0x118] sm:$0xff] }
  0x64   :  { %v2560_v22 = vcombine.high %v68_v15, %v72_v16  ;;  %v2559_v29 = vcombine.low %v68_v15, %v72_v16  ;;  %v2561_v31 = vcombine.low %v69_v17, %v73_v18  ;;  %v101_v60 = vld [vmem:[%s4636_s0 + $0x218] sm:$0xff]  ;;  %v116_v15 = vld [vmem:[%s4636_s0 + $0x290] sm:$0xff] }
  0x65   :  { %v105_v61 = vld [vmem:[%s4636_s0 + $0x238] sm:$0xff]  ;;  %v120_v16 = vld [vmem:[%s4636_s0 + $0x2b0] sm:$0xff] }
  0x66   :  { %1509 = vmatpush1.bf16.msra.mxu0 %v2715_v23  ;;  %1655 = vmatpush1.bf16.msra.mxu1 %v2717_v24  ;;  %v2562_v23 = vcombine.high %v69_v17, %v73_v18  ;;  %v76_v24 = vld [vmem:[%s4636_s0 + $0x150] sm:$0xff]  ;;  %v109_v6 = vld [vmem:[%s4636_s0 + $0x258] sm:$0xff]  ;;  %v2599_v18 = vcombine.low %v108_v2, %v112_v4 }
  0x67   :  { %1510 = vmatprep.subr.bf16.mxu0 %v2724_v25  ;;  %1656 = vmatprep.subr.bf16.mxu1 %v2726_v26  ;;  %v80_v25 = vld [vmem:[%s4636_s0 + $0x170] sm:$0xff]  ;;  %v3364_v26 = vld [vmem:[%s4637_s1 + $0x48] ss:$16 sps:$4 sm:$0xff]  }
  0x68   :  { %v2567_v40 = vcombine.low %v76_v24, %v80_v25  ;;  %v113_v7 = vld [vmem:[%s4636_s0 + $0x278] sm:$0xff] }
  0x69   :  { %v121_v17 = vld [vmem:[%s4636_s0 + $0x2b8] sm:$0xff] }
  0x6a   :  { %1511 = vmatpush1.bf16.msra.mxu0 %v2723_v32  ;;  %1657 = vmatpush1.bf16.msra.mxu1 %v2725_v33  ;;  %v2568_v32 = vcombine.high %v76_v24, %v80_v25  ;;  %v2570_v33 = vcombine.high %v77_v27, %v81_v28  ;;  %v128_v24 = vld [vmem:[%s4636_s0 + $0x2f0] sm:$0xff]  ;;  %v125_v25 = vld [vmem:[%s4636_s0 + $0x2d8] sm:$0xff] }
  0x6b   :  { %1512 = vmatprep.subr.bf16.mxu0 %v2732_v34  ;;  %1658 = vmatprep.subr.bf16.mxu1 %v2734_v35  ;;  %v3375_v34 = vld [vmem:[%s4637_s1 + $0x6c] ss:$16 sps:$4 sm:$0xff]   ;;  %v84_v35 = vld [vmem:[%s4636_s0 + $0x190] sm:$0xff] }
  0x6e   :  { %1513 = vmatpush1.bf16.msra.mxu0 %v2731_v41  ;;  %1659 = vmatpush1.bf16.msra.mxu1 %v2733_v42  ;;  %v2569_v41 = vcombine.low %v77_v27, %v81_v28  ;;  %v2576_v42 = vcombine.high %v84_v35, %v88_v36  ;;  %v129_v27 = vld [vmem:[%s4636_s0 + $0x2f8] sm:$0xff]  ;;  %v2607_v28 = vcombine.low %v116_v15, %v120_v16 }
  0x6f   :  { %1711 = vmatprep.subr.bf16.mxu0 %v2528_v43  ;;  %1857 = vmatprep.subr.bf16.mxu1 %v2530_v44  ;;  %v2578_v43 = vcombine.high %v85_v38, %v89_v39  ;;  %v92_v44 = vld [vmem:[%s4636_s0 + $0x1d0] sm:$0xff] }
  0x71   :  { %1525 = vmatmul.mubr.bf16.vlgmr.msra.gmra.mrb[0].mxu0 %v3284_v47  ;;  %1671 = vmatmul.mubr.bf16.vlgmr.msra.gmra.mrb[0].mxu1 %v3284_v47 }
  0x72   :  { %1712 = vmatpush1.bf16.msra.mxu0 %v2527_v51  ;;  %1858 = vmatpush1.bf16.msra.mxu1 %v2529_v52  ;;  %v2575_v51 = vcombine.low %v84_v35, %v88_v36  ;;  %v2577_v52 = vcombine.low %v85_v38, %v89_v39  ;;  %v136_v35 = vld [vmem:[%s4636_s0 + $0x330] sm:$0xff]  ;;  %v133_v36 = vld [vmem:[%s4636_s0 + $0x318] sm:$0xff] }
  0x73   :  { %1713 = vmatprep.subr.bf16.mxu0 %v2536_v53  ;;  %1859 = vmatprep.subr.bf16.mxu1 %v2538_v54  ;;  %v2584_v53 = vcombine.high %v92_v44, %v96_v45  ;;  %v2586_v54 = vcombine.high %v93_v49, %v97_v50  ;;  %v137_v38 = vld [vmem:[%s4636_s0 + $0x338] sm:$0xff] }
  0x74   :  { %2740 = vmatprep.mubr.msk.bf16.mxu0 %vm1406_vm0, %v3295_v57  ;;  %2744 = vmatprep.mubr.msk.bf16.mxu1 %vm1406_vm0, %v3295_v57 }
  0x76   :  { %1714 = vmatpush1.bf16.msra.mxu0 %v2535_v62  ;;  %1860 = vmatpush1.bf16.msra.mxu1 %v2537_v63  ;;  %v2583_v62 = vcombine.low %v92_v44, %v96_v45  ;;  %v2585_v63 = vcombine.low %v93_v49, %v97_v50  ;;  %v144_v44 = vld [vmem:[%s4636_s0 + $0x370] sm:$0xff]  ;;  %v141_v45 = vld [vmem:[%s4636_s0 + $0x358] sm:$0xff] }
  0x77   :  { %1715 = vmatprep.subr.bf16.mxu0 %v2544_v0  ;;  %1861 = vmatprep.subr.bf16.mxu1 %v2546_v1  ;;  %v2592_v0 = vcombine.high %v100_v58, %v104_v59  ;;  %v2594_v1 = vcombine.high %v101_v60, %v105_v61  ;;  %v145_v49 = vld [vmem:[%s4636_s0 + $0x378] sm:$0xff] }
  0x79   :  { %1535 = vmatmul.mubr.bf16.gmra.mrb[4].mxu0 %v3324_v5  ;;  %1681 = vmatmul.mubr.bf16.gmra.mrb[4].mxu1 %v3324_v5 }
  0x7a   :  { %1716 = vmatpush1.bf16.msra.mxu0 %v2543_v8  ;;  %1862 = vmatpush1.bf16.msra.mxu1 %v2545_v9  ;;  %v2591_v8 = vcombine.low %v100_v58, %v104_v59  ;;  %v2593_v9 = vcombine.low %v101_v60, %v105_v61  ;;  %v152_v58 = vld [vmem:[%s4636_s0 + $0x3b0] sm:$0xff]  ;;  %v149_v59 = vld [vmem:[%s4636_s0 + $0x398] sm:$0xff] }
  0x7b   :  { %1717 = vmatprep.subr.bf16.mxu0 %v2552_v12  ;;  %1863 = vmatprep.subr.bf16.mxu1 %v2554_v13  ;;  %v2600_v12 = vcombine.high %v108_v2, %v112_v4  ;;  %v2602_v13 = vcombine.high %v109_v6, %v113_v7  ;;  %v153_v60 = vld [vmem:[%s4636_s0 + $0x3b8] sm:$0xff]  ;;  %v160_v2 = vld [vmem:[%s4636_s0 + $0x3f0] sm:$0xff] }
  0x7c   :  { %2741 = vmatprep.mubr.msk.bf16.mxu0 %vm1406_vm0, %v3335_v14  ;;  %2745 = vmatprep.mubr.msk.bf16.mxu1 %vm1406_vm0, %v3335_v14  ;;  %v157_v4 = vld [vmem:[%s4636_s0 + $0x3d8] sm:$0xff] }
  0x7e   :  { %1718 = vmatpush1.bf16.msra.mxu0 %v2551_v20  ;;  %1864 = vmatpush1.bf16.msra.mxu1 %v2553_v21  ;;  %v2601_v20 = vcombine.low %v109_v6, %v113_v7  ;;  %v2608_v21 = vcombine.high %v116_v15, %v120_v16  ;;  %v161_v6 = vld [vmem:[%s4636_s0 + $0x3f8] sm:$0xff]  ;;  %v168_v15 = vld [vmem:[%s4636_s0 + $0x430] sm:$0xff] }
  0x7f   :  { %1719 = vmatprep.subr.bf16.mxu0 %v2560_v22  ;;  %1865 = vmatprep.subr.bf16.mxu1 %v2562_v23  ;;  %v124_v23 = vld [vmem:[%s4636_s0 + $0x2d0] sm:$0xff]  ;;  %v165_v16 = vld [vmem:[%s4636_s0 + $0x418] sm:$0xff] }
  0x80   :  { %v2615_v39 = vcombine.low %v124_v23, %v128_v24 }
  0x81   :  { %1545 = vmatmul.mubr.bf16.gmra.mrb[8].mxu0 %v3364_v26  ;;  %1691 = vmatmul.mubr.bf16.gmra.mrb[8].mxu1 %v3364_v26 }
  0x82   :  { %1720 = vmatpush1.bf16.msra.mxu0 %v2559_v29  ;;  %1866 = vmatpush1.bf16.msra.mxu1 %v2561_v31  ;;  %v2616_v31 = vcombine.high %v124_v23, %v128_v24  ;;  %v176_v23 = vld [vmem:[%s4636_s0 + $0x470] sm:$0xff]  ;;  %v173_v24 = vld [vmem:[%s4636_s0 + $0x458] sm:$0xff] }
  0x83   :  { %1721 = vmatprep.subr.bf16.mxu0 %v2568_v32  ;;  %1867 = vmatprep.subr.bf16.mxu1 %v2570_v33  ;;  %v2618_v32 = vcombine.high %v125_v25, %v129_v27  ;;  %v132_v33 = vld [vmem:[%s4636_s0 + $0x310] sm:$0xff] }
  0x84   :  { %2742 = vmatprep.mubr.msk.bf16.mxu0 %vm1406_vm0, %v3375_v34  ;;  %2746 = vmatprep.mubr.msk.bf16.mxu1 %vm1406_vm0, %v3375_v34  ;;  %v2623_v50 = vcombine.low %v132_v33, %v136_v35 }
  0x86   :  { %1722 = vmatpush1.bf16.msra.mxu0 %v2567_v40  ;;  %1868 = vmatpush1.bf16.msra.mxu1 %v2569_v41  ;;  %v2617_v40 = vcombine.low %v125_v25, %v129_v27  ;;  %v2624_v41 = vcombine.high %v132_v33, %v136_v35  ;;  %v177_v25 = vld [vmem:[%s4636_s0 + $0x478] sm:$0xff]  ;;  %v184_v33 = vld [vmem:[%s4636_s0 + $0x4b0] sm:$0xff] }
  0x87   :  { %1723 = vmatprep.subr.bf16.mxu0 %v2576_v42  ;;  %1869 = vmatprep.subr.bf16.mxu1 %v2578_v43  ;;  %v2626_v42 = vcombine.high %v133_v36, %v137_v38  ;;  %v140_v43 = vld [vmem:[%s4636_s0 + $0x350] sm:$0xff]  ;;  %v181_v35 = vld [vmem:[%s4636_s0 + $0x498] sm:$0xff] }
  0x88   :  { %v2631_v61 = vcombine.low %v140_v43, %v144_v44 }
  0x89   :  { %1555 = vmatmul.mubr.bf16.gmra.mrb[12].mxu0 %v3404_v46  ;;  %1701 = vmatmul.mubr.bf16.gmra.mrb[12].mxu1 %v3404_v46 }
  0x8a   :  { %1724 = vmatpush1.bf16.msra.mxu0 %v2575_v51  ;;  %1870 = vmatpush1.bf16.msra.mxu1 %v2577_v52  ;;  %v2625_v51 = vcombine.low %v133_v36, %v137_v38  ;;  %v2632_v52 = vcombine.high %v140_v43, %v144_v44  ;;  %v185_v36 = vld [vmem:[%s4636_s0 + $0x4b8] sm:$0xff]  ;;  %v192_v43 = vld [vmem:[%s4636_s0 + $0x4f0] sm:$0xff] }
  0x8b   :  { %1725 = vmatprep.subr.bf16.mxu0 %v2584_v53  ;;  %1871 = vmatprep.subr.bf16.mxu1 %v2586_v54  ;;  %v2634_v53 = vcombine.high %v141_v45, %v145_v49  ;;  %v148_v54 = vld [vmem:[%s4636_s0 + $0x390] sm:$0xff]  ;;  %v193_v44 = vld [vmem:[%s4636_s0 + $0x4f8] sm:$0xff] }
  0x8c   :  { %1743 = vmatprep.mubr.bf16.mxu0 %v2967_v56  ;;  %1889 = vmatprep.mubr.bf16.mxu1 %v2967_v56  ;;  %v117_v56 = vld [vmem:[%s4636_s0 + $0x298] sm:$0xff]  ;;  %v2639_v7 = vcombine.low %v148_v54, %v152_v58 }
  0x8d   :  { %v2610_v22 = vcombine.high %v117_v56, %v121_v17  ;;  %v2609_v29 = vcombine.low %v117_v56, %v121_v17  ;;  %v169_v56 = vld [vmem:[%s4636_s0 + $0x438] sm:$0xff] }
  0x8e   :  { %1726 = vmatpush1.bf16.msra.mxu0 %v2583_v62  ;;  %1872 = vmatpush1.bf16.msra.mxu1 %v2585_v63  ;;  %v2633_v62 = vcombine.low %v141_v45, %v145_v49  ;;  %v2640_v63 = vcombine.high %v148_v54, %v152_v58  ;;  %v2673_v49 = vcombine.low %v181_v35, %v185_v36  ;;  %v201_v54 = vld [vmem:[%s4636_s0 + $0x538] sm:$0xff] }
  0x8f   :  { %1727 = vmatprep.subr.bf16.mxu0 %v2592_v0  ;;  %1873 = vmatprep.subr.bf16.mxu1 %v2594_v1  ;;  %v2642_v0 = vcombine.high %v149_v59, %v153_v60  ;;  %v156_v1 = vld [vmem:[%s4636_s0 + $0x3d0] sm:$0xff] }
  0x90   :  { %v2647_v17 = vcombine.low %v156_v1, %v160_v2 }
  0x92   :  { %1728 = vmatpush1.bf16.msra.mxu0 %v2591_v8  ;;  %1874 = vmatpush1.bf16.msra.mxu1 %v2593_v9  ;;  %v2641_v8 = vcombine.low %v149_v59, %v153_v60  ;;  %v2648_v9 = vcombine.high %v156_v1, %v160_v2 }
  0x93   :  { %1729 = vmatprep.subr.bf16.mxu0 %v2600_v12  ;;  %1875 = vmatprep.subr.bf16.mxu1 %v2602_v13  ;;  %v2650_v12 = vcombine.high %v157_v4, %v161_v6  ;;  %v164_v13 = vld [vmem:[%s4636_s0 + $0x410] sm:$0xff] }
  0x94   :  { %v2655_v27 = vcombine.low %v164_v13, %v168_v15 }
  0x96   :  { %1730 = vmatpush1.bf16.msra.mxu0 %v2599_v18  ;;  %1876 = vmatpush1.bf16.msra.mxu1 %v2601_v20  ;;  %v2649_v18 = vcombine.low %v157_v4, %v161_v6  ;;  %v2656_v20 = vcombine.high %v164_v13, %v168_v15 }
  0x97   :  { %1731 = vmatprep.subr.bf16.mxu0 %v2608_v21  ;;  %1877 = vmatprep.subr.bf16.mxu1 %v2610_v22  ;;  %v2658_v21 = vcombine.high %v165_v16, %v169_v56  ;;  %v172_v22 = vld [vmem:[%s4636_s0 + $0x450] sm:$0xff] }
  0x98   :  { %v2663_v38 = vcombine.low %v172_v22, %v176_v23 }
  0x9a   :  { %1732 = vmatpush1.bf16.msra.mxu0 %v2607_v28  ;;  %1878 = vmatpush1.bf16.msra.mxu1 %v2609_v29  ;;  %v2657_v28 = vcombine.low %v165_v16, %v169_v56  ;;  %v2664_v29 = vcombine.high %v172_v22, %v176_v23  ;;  %v220_v56 = vld [vmem:[%s4636_s0 + $0x5d0] sm:$0xff] }
  0x9b   :  { %1733 = vmatprep.subr.bf16.mxu0 %v2616_v31  ;;  %1879 = vmatprep.subr.bf16.mxu1 %v2618_v32  ;;  %v2666_v31 = vcombine.high %v173_v24, %v177_v25  ;;  %v180_v32 = vld [vmem:[%s4636_s0 + $0x490] sm:$0xff] }
  0x9c   :  { %v2671_v45 = vcombine.low %v180_v32, %v184_v33 }
  0x9e   :  { %1734 = vmatpush1.bf16.msra.mxu0 %v2615_v39  ;;  %1880 = vmatpush1.bf16.msra.mxu1 %v2617_v40  ;;  %v2665_v39 = vcombine.low %v173_v24, %v177_v25  ;;  %v2672_v40 = vcombine.high %v180_v32, %v184_v33  ;;  %v228_v24 = vld [vmem:[%s4636_s0 + $0x610] sm:$0xff] }
  0x9f   :  { %1735 = vmatprep.subr.bf16.mxu0 %v2624_v41  ;;  %1881 = vmatprep.subr.bf16.mxu1 %v2626_v42  ;;  %v2674_v41 = vcombine.high %v181_v35, %v185_v36  ;;  %v188_v42 = vld [vmem:[%s4636_s0 + $0x4d0] sm:$0xff]  ;;  %v241_v36 = vld [vmem:[%s4636_s0 + $0x678] sm:$0xff] }
  0xa0   :  { %v2679_v58 = vcombine.low %v188_v42, %v192_v43  ;;  %v232_v25 = vld [vmem:[%s4636_s0 + $0x630] sm:$0xff] }
  0xa1   :  { %v236_v33 = vld [vmem:[%s4636_s0 + $0x650] sm:$0xff] }
  0xa2   :  { %1736 = vmatpush1.bf16.msra.mxu0 %v2623_v50  ;;  %1882 = vmatpush1.bf16.msra.mxu1 %v2625_v51  ;;  %v2680_v50 = vcombine.high %v188_v42, %v192_v43  ;;  %v240_v35 = vld [vmem:[%s4636_s0 + $0x670] sm:$0xff] }
  0xa3   :  { %1737 = vmatprep.subr.bf16.mxu0 %v2632_v52  ;;  %1883 = vmatprep.subr.bf16.mxu1 %v2634_v53  ;;  %v196_v52 = vld [vmem:[%s4636_s0 + $0x510] sm:$0xff] }
  0xa4   :  { %v200_v53 = vld [vmem:[%s4636_s0 + $0x530] sm:$0xff] }
  0xa5   :  { %v2688_v60 = vcombine.high %v196_v52, %v200_v53  ;;  %v2687_v1 = vcombine.low %v196_v52, %v200_v53  ;;  %v244_v42 = vld [vmem:[%s4636_s0 + $0x690] sm:$0xff] }
  0xa6   :  { %1738 = vmatpush1.bf16.msra.mxu0 %v2631_v61  ;;  %1884 = vmatpush1.bf16.msra.mxu1 %v2633_v62  ;;  %v204_v62 = vld [vmem:[%s4636_s0 + $0x550] sm:$0xff] }
  0xa7   :  { %1739 = vmatprep.subr.bf16.mxu0 %v2640_v63  ;;  %1885 = vmatprep.subr.bf16.mxu1 %v2642_v0  ;;  %v208_v63 = vld [vmem:[%s4636_s0 + $0x570] sm:$0xff]  ;;  %v209_v0 = vld [vmem:[%s4636_s0 + $0x578] sm:$0xff] }
  0xa8   :  { %v2696_v4 = vcombine.high %v204_v62, %v208_v63  ;;  %v248_v43 = vld [vmem:[%s4636_s0 + $0x6b0] sm:$0xff] }
  0xaa   :  { %1740 = vmatpush1.bf16.msra.mxu0 %v2639_v7  ;;  %1886 = vmatpush1.bf16.msra.mxu1 %v2641_v8  ;;  %v212_v7 = vld [vmem:[%s4636_s0 + $0x590] sm:$0xff] }
  0xab   :  { %1741 = vmatprep.subr.bf16.mxu0 %v2648_v9  ;;  %1887 = vmatprep.subr.bf16.mxu1 %v2650_v12  ;;  %v216_v8 = vld [vmem:[%s4636_s0 + $0x5b0] sm:$0xff]  ;;  %v217_v9 = vld [vmem:[%s4636_s0 + $0x5b8] sm:$0xff]  ;;  %v2695_v12 = vcombine.low %v204_v62, %v208_v63 }
  0xac   :  { %v2704_v15 = vcombine.high %v212_v7, %v216_v8 }
  0xae   :  { %1742 = vmatpush1.bf16.msra.mxu0 %v2647_v17  ;;  %1888 = vmatpush1.bf16.msra.mxu1 %v2649_v18  ;;  %v224_v17 = vld [vmem:[%s4636_s0 + $0x5f0] sm:$0xff]  ;;  %v225_v18 = vld [vmem:[%s4636_s0 + $0x5f8] sm:$0xff] }
  0xaf   :  { %1784 = vmatprep.subr.bf16.mxu0 %v2656_v20  ;;  %1930 = vmatprep.subr.bf16.mxu1 %v2658_v21  ;;  %v2703_v20 = vcombine.low %v212_v7, %v216_v8  ;;  %v2712_v22 = vcombine.high %v220_v56, %v224_v17 }
  0xb1   :  { %1744 = vmatmul.mubr.bf16.vlgmr.msra.gmra.mrb[16].mxu0 %v3094_v10  ;;  %1890 = vmatmul.mubr.bf16.vlgmr.msra.gmra.mrb[16].mxu1 %v3094_v10  ;;  %v189_v10 = vld [vmem:[%s4636_s0 + $0x4d8] sm:$0xff] }
  0xb2   :  { %1785 = vmatpush1.bf16.msra.mxu0 %v2655_v27  ;;  %1931 = vmatpush1.bf16.msra.mxu1 %v2657_v28  ;;  %v2682_v51 = vcombine.high %v189_v10, %v193_v44  ;;  %v2681_v59 = vcombine.low %v189_v10, %v193_v44  ;;  %v233_v27 = vld [vmem:[%s4636_s0 + $0x638] sm:$0xff]  ;;  %v2711_v28 = vcombine.low %v220_v56, %v224_v17 }
  0xb3   :  { %1786 = vmatprep.subr.bf16.mxu0 %v2664_v29  ;;  %1932 = vmatprep.subr.bf16.mxu1 %v2666_v31  ;;  %v2720_v31 = vcombine.high %v228_v24, %v232_v25  ;;  %v249_v10 = vld [vmem:[%s4636_s0 + $0x6b8] sm:$0xff]  ;;  %v2727_v44 = vcombine.low %v236_v33, %v240_v35 }
  0xb4   :  { %1753 = vmatprep.mubr.bf16.mxu0 %v3111_v19  ;;  %1899 = vmatprep.mubr.bf16.mxu1 %v3111_v19  ;;  %v197_v19 = vld [vmem:[%s4636_s0 + $0x518] sm:$0xff] }
  0xb5   :  { %v2690_v61 = vcombine.high %v197_v19, %v201_v54  ;;  %v2689_v2 = vcombine.low %v197_v19, %v201_v54 }
  0xb6   :  { %1787 = vmatpush1.bf16.msra.mxu0 %v2663_v38  ;;  %1933 = vmatpush1.bf16.msra.mxu1 %v2665_v39  ;;  %v2719_v38 = vcombine.low %v228_v24, %v232_v25 }
  0xb7   :  { %1788 = vmatprep.subr.bf16.mxu0 %v2672_v40  ;;  %1934 = vmatprep.subr.bf16.mxu1 %v2674_v41  ;;  %v2728_v40 = vcombine.high %v236_v33, %v240_v35 }
  0xb9   :  { %1754 = vmatmul.mubr.bf16.gmra.mrb[20].mxu0 %v3138_v30  ;;  %1900 = vmatmul.mubr.bf16.gmra.mrb[20].mxu1 %v3138_v30  ;;  %v205_v30 = vld [vmem:[%s4636_s0 + $0x558] sm:$0xff] }
  0xba   :  { %1789 = vmatpush1.bf16.msra.mxu0 %v2671_v45  ;;  %1935 = vmatpush1.bf16.msra.mxu1 %v2673_v49  ;;  %v2698_v6 = vcombine.high %v205_v30, %v209_v0  ;;  %v2697_v13 = vcombine.low %v205_v30, %v209_v0  ;;  %v2736_v49 = vcombine.high %v244_v42, %v248_v43 }
  0xbb   :  { %1790 = vmatprep.subr.bf16.mxu0 %v2680_v50  ;;  %1936 = vmatprep.subr.bf16.mxu1 %v2682_v51  ;;  %v2735_v51 = vcombine.low %v244_v42, %v248_v43 }
  0xbc   :  { %1763 = vmatprep.mubr.bf16.mxu0 %v3149_v37  ;;  %1909 = vmatprep.mubr.bf16.mxu1 %v3149_v37  ;;  %v213_v37 = vld [vmem:[%s4636_s0 + $0x598] sm:$0xff] }
  0xbd   :  { %v2706_v16 = vcombine.high %v213_v37, %v217_v9  ;;  %v2705_v21 = vcombine.low %v213_v37, %v217_v9 }
  0xbe   :  { %1791 = vmatpush1.bf16.msra.mxu0 %v2679_v58  ;;  %1937 = vmatpush1.bf16.msra.mxu1 %v2681_v59 }
  0xbf   :  { %1792 = vmatprep.subr.bf16.mxu0 %v2688_v60  ;;  %1938 = vmatprep.subr.bf16.mxu1 %v2690_v61 }
  0xc1   :  { %1764 = vmatmul.mubr.bf16.gmra.mrb[24].mxu0 %v3176_v48  ;;  %1910 = vmatmul.mubr.bf16.gmra.mrb[24].mxu1 %v3176_v48  ;;  %v221_v48 = vld [vmem:[%s4636_s0 + $0x5d8] sm:$0xff] }
  0xc2   :  { %1793 = vmatpush1.bf16.msra.mxu0 %v2687_v1  ;;  %1939 = vmatpush1.bf16.msra.mxu1 %v2689_v2  ;;  %v2714_v23 = vcombine.high %v221_v48, %v225_v18  ;;  %v2713_v29 = vcombine.low %v221_v48, %v225_v18 }
  0xc3   :  { %1794 = vmatprep.subr.bf16.mxu0 %v2696_v4  ;;  %1940 = vmatprep.subr.bf16.mxu1 %v2698_v6 }
  0xc4   :  { %1773 = vmatprep.mubr.bf16.mxu0 %v3187_v55  ;;  %1919 = vmatprep.mubr.bf16.mxu1 %v3187_v55  ;;  %v229_v55 = vld [vmem:[%s4636_s0 + $0x618] sm:$0xff] }
  0xc5   :  { %v2722_v32 = vcombine.high %v229_v55, %v233_v27  ;;  %v2721_v39 = vcombine.low %v229_v55, %v233_v27 }
  0xc6   :  { %1795 = vmatpush1.bf16.msra.mxu0 %v2695_v12  ;;  %1941 = vmatpush1.bf16.msra.mxu1 %v2697_v13 }
  0xc7   :  { %1796 = vmatprep.subr.bf16.mxu0 %v2704_v15  ;;  %1942 = vmatprep.subr.bf16.mxu1 %v2706_v16 }
  0xc9   :  { %1774 = vmatmul.mubr.bf16.gmra.mrb[28].mxu0 %v3214_v3  ;;  %1920 = vmatmul.mubr.bf16.gmra.mrb[28].mxu1 %v3214_v3  ;;  %v237_v3 = vld [vmem:[%s4636_s0 + $0x658] sm:$0xff] }
  0xca   :  { %1797 = vmatpush1.bf16.msra.mxu0 %v2703_v20  ;;  %1943 = vmatpush1.bf16.msra.mxu1 %v2705_v21  ;;  %v2730_v41 = vcombine.high %v237_v3, %v241_v36  ;;  %v2729_v45 = vcombine.low %v237_v3, %v241_v36 }
  0xcb   :  { %1798 = vmatprep.subr.bf16.mxu0 %v2712_v22  ;;  %1944 = vmatprep.subr.bf16.mxu1 %v2714_v23 }
  0xcc   :  { %2747 = vmatprep.mubr.msk.bf16.mxu0 %vm1406_vm0, %v3225_v11  ;;  %2751 = vmatprep.mubr.msk.bf16.mxu1 %vm1406_vm0, %v3225_v11  ;;  %v245_v11 = vld [vmem:[%s4636_s0 + $0x698] sm:$0xff] }
  0xcd   :  { %v2738_v50 = vcombine.high %v245_v11, %v249_v10  ;;  %v2737_v52 = vcombine.low %v245_v11, %v249_v10 }
  0xce   :  { %1799 = vmatpush1.bf16.msra.mxu0 %v2711_v28  ;;  %1945 = vmatpush1.bf16.msra.mxu1 %v2713_v29 }
  0xcf   :  { %1800 = vmatprep.subr.bf16.mxu0 %v2720_v31  ;;  %1946 = vmatprep.subr.bf16.mxu1 %v2722_v32 }
  0xd2   :  { %1801 = vmatpush1.bf16.msra.mxu0 %v2719_v38  ;;  %1947 = vmatpush1.bf16.msra.mxu1 %v2721_v39 }
  0xd3   :  { %1802 = vmatprep.subr.bf16.mxu0 %v2728_v40  ;;  %1948 = vmatprep.subr.bf16.mxu1 %v2730_v41 }
  0xd6   :  { %1803 = vmatpush1.bf16.msra.mxu0 %v2727_v44  ;;  %1949 = vmatpush1.bf16.msra.mxu1 %v2729_v45 }
  0xd7   :  { %1804 = vmatprep.subr.bf16.mxu0 %v2736_v49  ;;  %1950 = vmatprep.subr.bf16.mxu1 %v2738_v50 }
  0xda   :  { %1805 = vmatpush1.bf16.msra.mxu0 %v2735_v51  ;;  %1951 = vmatpush1.bf16.msra.mxu1 %v2737_v52 }
  0xdd   :  { %1817 = vmatmul.mubr.bf16.vlgmr.msra.gmra.mrb[16].mxu0 %v3284_v47  ;;  %1963 = vmatmul.mubr.bf16.vlgmr.msra.gmra.mrb[16].mxu1 %v3284_v47 }
  0xde   :  { %2748 = vmatprep.mubr.msk.bf16.mxu0 %vm1406_vm0, %v3295_v57  ;;  %2752 = vmatprep.mubr.msk.bf16.mxu1 %vm1406_vm0, %v3295_v57 }
  0xe5   :  { %1827 = vmatmul.mubr.bf16.gmra.mrb[20].mxu0 %v3324_v5  ;;  %1973 = vmatmul.mubr.bf16.gmra.mrb[20].mxu1 %v3324_v5 }
  0xe6   :  { %2749 = vmatprep.mubr.msk.bf16.mxu0 %vm1406_vm0, %v3335_v14  ;;  %2753 = vmatprep.mubr.msk.bf16.mxu1 %vm1406_vm0, %v3335_v14 }
  0xed   :  { %1837 = vmatmul.mubr.bf16.gmra.mrb[24].mxu0 %v3364_v26  ;;  %1983 = vmatmul.mubr.bf16.gmra.mrb[24].mxu1 %v3364_v26 }
  0xee   :  { %2750 = vmatprep.mubr.msk.bf16.mxu0 %vm1406_vm0, %v3375_v34  ;;  %2754 = vmatprep.mubr.msk.bf16.mxu1 %vm1406_vm0, %v3375_v34 }
  0xf5   :  { %1847 = vmatmul.mubr.bf16.gmra.mrb[28].mxu0 %v3404_v46  ;;  %1993 = vmatmul.mubr.bf16.gmra.mrb[28].mxu1 %v3404_v46 }
 0x144   :  { %v3682_v47 = vpop.f32.mrb[0].mxu0  ;;  %v3686_v5 = vpop.f32.mrb[0].mxu1 }
 0x145   :  { %v2075_v57 = vmul.f32 %v3682_v47, %v3682_v47  ;;  %v3688_v14 = vpop.f32.mrb[1].mxu0  ;;  %v3694_v34 = vpop.f32.mrb[1].mxu1  ;;  %v2077_v59 = vmul.f32 %v3686_v5, %v3686_v5 }
 0x146   :  { %v2003_v26 = vadd.f32 %v3688_v14, %v3682_v47  ;;  %v2076_v53 = vmul.f32 %v3688_v14, %v3688_v14  ;;  %v3696_v19 = vpop.f32.mrb[2].mxu0  ;;  %v3700_v54 = vpop.f32.mrb[2].mxu1  ;;  %v2078_v1 = vmul.f32 %v3694_v34, %v3694_v34 }
 0x147   :  { %v2083_v46 = vmul.f32 %v3696_v19, %v3696_v19  ;;  %v3702_v58 = vpop.f32.mrb[3].mxu0  ;;  %v3709_v63 = vpop.f32.mrb[3].mxu1  ;;  %v2085_v6 = vmul.f32 %v3700_v54, %v3700_v54 }
 0x148   :  { %v2139_v60 = vadd.f32 %v2076_v53, %v2075_v57  ;;  %v2004_v61 = vadd.f32 %v2003_v26, %v3686_v5  ;;  %v2012_v62 = vadd.f32 %v3702_v58, %v3696_v19  ;;  %v2084_v30 = vmul.f32 %v3702_v58, %v3702_v58 }
 0x149   :  { %v2086_v12 = vmul.f32 %v3709_v63, %v3709_v63 }
 0x14a   :  { %v3714_v0 = vadd.f32 %v2004_v61, %v3694_v34  ;;  %v2140_v2 = vadd.f32 %v2139_v60, %v2077_v59  ;;  %v2013_v4 = vadd.f32 %v2012_v62, %v3700_v54  ;;  %v2148_v7 = vadd.f32 %v2084_v30, %v2083_v46 }
 0x14c   :  { %v3721_v8 = vadd.f32 %v2140_v2, %v2078_v1  ;;  %v3724_v37 = vadd.f32 %v2013_v4, %v3709_v63  ;;  %v3726_v9 = vpop.f32.mrb[4].mxu0  ;;  %v2149_v13 = vadd.f32 %v2148_v7, %v2085_v6  ;;  %v3732_v16 = vpop.f32.mrb[4].mxu1 }
 0x14d   :  { %v2091_v15 = vmul.f32 %v3726_v9, %v3726_v9  ;;  %v3734_v56 = vpop.f32.mrb[5].mxu0  ;;  %v3740_v18 = vpop.f32.mrb[5].mxu1  ;;  %v2093_v25 = vmul.f32 %v3732_v16, %v3732_v16 }
 0x14e   :  { %v2021_v17 = vadd.f32 %v3734_v56, %v3726_v9  ;;  %v2092_v48 = vmul.f32 %v3734_v56, %v3734_v56  ;;  %v3742_v20 = vpop.f32.mrb[6].mxu0  ;;  %v3744_v21 = vadd.f32 %v2149_v13, %v2086_v12  ;;  %v3748_v23 = vpop.f32.mrb[6].mxu1  ;;  %v2094_v33 = vmul.f32 %v3740_v18, %v3740_v18 }
 0x14f   :  { %v2099_v22 = vmul.f32 %v3742_v20, %v3742_v20  ;;  %v3750_v24 = vpop.f32.mrb[7].mxu0  ;;  %v3757_v29 = vpop.f32.mrb[7].mxu1  ;;  %v2101_v36 = vmul.f32 %v3748_v23, %v3748_v23 }
 0x150   :  { %v2157_v55 = vadd.f32 %v2092_v48, %v2091_v15  ;;  %v2022_v27 = vadd.f32 %v2021_v17, %v3732_v16  ;;  %v2030_v28 = vadd.f32 %v3750_v24, %v3742_v20  ;;  %v2100_v31 = vmul.f32 %v3750_v24, %v3750_v24 }
 0x151   :  { %v2102_v42 = vmul.f32 %v3757_v29, %v3757_v29 }
 0x152   :  { %v3762_v32 = vadd.f32 %v2022_v27, %v3740_v18  ;;  %v2158_v35 = vadd.f32 %v2157_v55, %v2093_v25  ;;  %v2031_v3 = vadd.f32 %v2030_v28, %v3748_v23  ;;  %v2166_v38 = vadd.f32 %v2100_v31, %v2099_v22 }
 0x154   :  { %v3769_v39 = vadd.f32 %v2158_v35, %v2094_v33  ;;  %v3772_v40 = vadd.f32 %v2031_v3, %v3757_v29  ;;  %v3774_v41 = vpop.f32.mrb[8].mxu0  ;;  %v2167_v43 = vadd.f32 %v2166_v38, %v2101_v36  ;;  %v3780_v10 = vpop.f32.mrb[8].mxu1 }
 0x155   :  { %v2107_v11 = vmul.f32 %v3774_v41, %v3774_v41  ;;  %v3782_v44 = vpop.f32.mrb[9].mxu0  ;;  %v3788_v50 = vpop.f32.mrb[9].mxu1  ;;  %v2109_v46 = vmul.f32 %v3780_v10, %v3780_v10 }
 0x156   :  { %v2039_v45 = vadd.f32 %v3782_v44, %v3774_v41  ;;  %v2108_v49 = vmul.f32 %v3782_v44, %v3782_v44  ;;  %4670 = vst [vmem:[#allocation2_spill] sm:$0xff] %v3788_v50  ;;  %v3790_v51 = vpop.f32.mrb[10].mxu0  ;;  %v3792_v52 = vadd.f32 %v2167_v43, %v2102_v42  ;;  %v3796_v26 = vpop.f32.mrb[10].mxu1  ;;  %v2110_v2 = vmul.f32 %v3788_v50, %v3788_v50 }
 0x157   :  { %4671 = vst [vmem:[#allocation3_spill] sm:$0xff] %v3790_v51  ;;  %v2115_v57 = vmul.f32 %v3790_v51, %v3790_v51  ;;  %4672 = vst [vmem:[#allocation4_spill] sm:$0xff] %v3796_v26  ;;  %v3798_v53 = vpop.f32.mrb[11].mxu0  ;;  %v3805_v62 = vpop.f32.mrb[11].mxu1  ;;  %v2117_v7 = vmul.f32 %v3796_v26, %v3796_v26 }
 0x158   :  { %4673 = vst [vmem:[#allocation5_spill] sm:$0xff] %v3798_v53  ;;  %v2175_v59 = vadd.f32 %v2108_v49, %v2107_v11  ;;  %v2040_v60 = vadd.f32 %v2039_v45, %v3780_v10  ;;  %v2048_v61 = vadd.f32 %v3798_v53, %v3790_v51  ;;  %4674 = vst [vmem:[#allocation6_spill] sm:$0xff] %v3805_v62 }
 0x159   :  { %v2116_v30 = vmul.f32 %v3798_v53, %v3798_v53  ;;  %v2118_v48 = vmul.f32 %v3805_v62, %v3805_v62 }
 0x15a   :  { %v3810_v1 = vadd.f32 %v2040_v60, %v3788_v50  ;;  %v2176_v4 = vadd.f32 %v2175_v59, %v2109_v46  ;;  %v2049_v6 = vadd.f32 %v2048_v61, %v3796_v26 }
 0x15b   :  { %v2184_v12 = vadd.f32 %v2116_v30, %v2115_v57 }
 0x15c   :  { %v3817_v13 = vadd.f32 %v2176_v4, %v2110_v2  ;;  %v3820_v15 = vadd.f32 %v2049_v6, %v3805_v62  ;;  %v3822_v17 = vpop.f32.mrb[12].mxu0  ;;  %v3828_v55 = vpop.f32.mrb[12].mxu1 }
 0x15d   :  { %4675 = vst [vmem:[#allocation7_spill] sm:$0xff] %v3822_v17  ;;  %v2185_v22 = vadd.f32 %v2184_v12, %v2117_v7  ;;  %v2123_v25 = vmul.f32 %v3822_v17, %v3822_v17  ;;  %4676 = vst [vmem:[#allocation8_spill] sm:$0xff] %v3828_v55  ;;  %v3830_v27 = vpop.f32.mrb[13].mxu0  ;;  %v3836_v33 = vpop.f32.mrb[13].mxu1  ;;  %v2125_v43 = vmul.f32 %v3828_v55, %v3828_v55 }
 0x15e   :  { %4677 = vst [vmem:[#allocation9_spill] sm:$0xff] %v3830_v27  ;;  %v2057_v28 = vadd.f32 %v3830_v27, %v3822_v17  ;;  %v2124_v31 = vmul.f32 %v3830_v27, %v3830_v27  ;;  %4678 = vst [vmem:[#allocation10_spill] sm:$0xff] %v3836_v33  ;;  %v3838_v35 = vpop.f32.mrb[14].mxu0  ;;  %v3844_v38 = vpop.f32.mrb[14].mxu1  ;;  %v2126_v60 = vmul.f32 %v3836_v33, %v3836_v33 }
 0x15f   :  { %4679 = vst [vmem:[#allocation11_spill] sm:$0xff] %v3838_v35  ;;  %v3840_v3 = vadd.f32 %v2185_v22, %v2118_v48  ;;  %v2131_v36 = vmul.f32 %v3838_v35, %v3838_v35  ;;  %4680 = vst [vmem:[#allocation12_spill] sm:$0xff] %v3844_v38  ;;  %v3846_v42 = vpop.f32.mrb[15].mxu0  ;;  %v3853_v57 = vpop.f32.mrb[15].mxu1  ;;  %v2133_v2 = vmul.f32 %v3844_v38, %v3844_v38 }
 0x160   :  { %4681 = vst [vmem:[#allocation13_spill] sm:$0xff] %v3846_v42  ;;  %v2193_v11 = vadd.f32 %v2124_v31, %v2123_v25  ;;  %v2058_v45 = vadd.f32 %v2057_v28, %v3828_v55  ;;  %v2066_v49 = vadd.f32 %v3846_v42, %v3838_v35  ;;  %4682 = vst [vmem:[#allocation14_spill] sm:$0xff] %v3853_v57 }
 0x161   :  { %v2132_v46 = vmul.f32 %v3846_v42, %v3846_v42  ;;  %v2134_v12 = vmul.f32 %v3853_v57, %v3853_v57 }
 0x162   :  { %v3858_v59 = vadd.f32 %v2058_v45, %v3836_v33  ;;  %v2194_v61 = vadd.f32 %v2193_v11, %v2125_v43  ;;  %v2067_v30 = vadd.f32 %v2066_v49, %v3844_v38 }
 0x163   :  { %v2202_v4 = vadd.f32 %v2132_v46, %v2131_v36 }
 0x164   :  { %v3865_v6 = vadd.f32 %v2194_v61, %v2126_v60  ;;  %v3868_v7 = vadd.f32 %v2067_v30, %v3853_v57 }
 0x165   :  { %v2203_v48 = vadd.f32 %v2202_v4, %v2133_v2 }
 0x167   :  { %v3872_v22 = vadd.f32 %v2203_v48, %v2134_v12 }
 0x1b0   :  { %v3874_v25 = vpop.f32.mrb[16].mxu0  ;;  %v3880_v36 = vpop.f32.mrb[16].mxu1 }
 0x1b1   :  { %v2006_v28 = vadd.f32 %v3714_v0, %v3874_v25  ;;  %v2079_v31 = vmul.f32 %v3874_v25, %v3874_v25  ;;  %v3882_v43 = vpop.f32.mrb[17].mxu0  ;;  %v3886_v45 = vpop.f32.mrb[17].mxu1  ;;  %v2081_v4 = vmul.f32 %v3880_v36, %v3880_v36 }
 0x1b2   :  { %v2080_v11 = vmul.f32 %v3882_v43, %v3882_v43  ;;  %v3888_v49 = vpop.f32.mrb[18].mxu0  ;;  %v3896_v30 = vpop.f32.mrb[18].mxu1  ;;  %v2082_v57 = vmul.f32 %v3886_v45, %v3886_v45 }
 0x1b3   :  { %v2142_v46 = vadd.f32 %v3721_v8, %v2079_v31  ;;  %v2007_v60 = vadd.f32 %v2006_v28, %v3882_v43  ;;  %v2015_v0 = vadd.f32 %v3724_v37, %v3888_v49  ;;  %v2087_v61 = vmul.f32 %v3888_v49, %v3888_v49  ;;  %v3898_v2 = vpop.f32.mrb[19].mxu0  ;;  %v3904_v48 = vpop.f32.mrb[19].mxu1 }
 0x1b4   :  { %v2088_v12 = vmul.f32 %v3898_v2, %v3898_v2  ;;  %v2089_v55 = vmul.f32 %v3896_v30, %v3896_v30 }
 0x1b5   :  { %v2151_v8 = vadd.f32 %v3744_v21, %v2087_v61  ;;  %v2016_v28 = vadd.f32 %v2015_v0, %v3898_v2  ;;  %v2008_v37 = vadd.f32 %v2007_v60, %v3880_v36  ;;  %v2143_v31 = vadd.f32 %v2142_v46, %v2080_v11 }
 0x1b7   :  { %v2009_v38 = vadd.f32 %v2008_v37, %v3886_v45  ;;  %v2144_v42 = vadd.f32 %v2143_v31, %v2081_v4  ;;  %v2017_v35 = vadd.f32 %v2016_v28, %v3896_v30  ;;  %v2152_v33 = vadd.f32 %v2151_v8, %v2088_v12 }
 0x1b8   :  { %v3915_v27 = vpop.f32.mrb[20].mxu0  ;;  %v3921_v46 = vpop.f32.mrb[20].mxu1 }
 0x1b9   :  { %v2024_v21 = vadd.f32 %v3762_v32, %v3915_v27  ;;  %v2095_v11 = vmul.f32 %v3915_v27, %v3915_v27  ;;  %2010 = vadd.xlane.f32.xlu0 %v2009_v38  ;;  %v3923_v60 = vpop.f32.mrb[21].mxu0  ;;  %v2145_v0 = vadd.f32 %v2144_v42, %v2082_v57  ;;  %v2018_v61 = vadd.f32 %v2017_v35, %v3904_v48  ;;  %v3926_v4 = vpop.f32.mrb[21].mxu1 }
 0x1ba   :  { %v2096_v12 = vmul.f32 %v3923_v60, %v3923_v60  ;;  %v3930_v8 = vpop.f32.mrb[22].mxu0  ;;  %v2090_v32 = vmul.f32 %v3904_v48, %v3904_v48  ;;  %v2153_v28 = vadd.f32 %v2152_v33, %v2089_v55  ;;  %v3940_v57 = vpop.f32.mrb[22].mxu1  ;;  %v2097_v17 = vmul.f32 %v3921_v46, %v3921_v46 }
 0x1bb   :  { %v2160_v37 = vadd.f32 %v3769_v39, %v2095_v11  ;;  %v2025_v38 = vadd.f32 %v2024_v21, %v3923_v60  ;;  %v2033_v42 = vadd.f32 %v3772_v40, %v3930_v8  ;;  %v2103_v35 = vmul.f32 %v3930_v8, %v3930_v8  ;;  %2146 = vadd.xlane.f32.xlu1 %v2145_v0  ;;  %v3942_v31 = vpop.f32.mrb[23].mxu0  ;;  %v3946_v62 = vpop.f32.mrb[23].mxu1 }
 0x1bc   :  { %v2104_v39 = vmul.f32 %v3942_v31, %v3942_v31  ;;  %v2154_v55 = vadd.f32 %v2153_v28, %v2090_v32  ;;  %v2098_v0 = vmul.f32 %v3926_v4, %v3926_v4  ;;  %v2105_v32 = vmul.f32 %v3940_v57, %v3940_v57 }
 0x1bd   :  { %v2169_v33 = vadd.f32 %v3792_v52, %v2103_v35  ;;  %v2034_v40 = vadd.f32 %v2033_v42, %v3942_v31  ;;  %2019 = vadd.xlane.f32.xlu0 %v2018_v61  ;;  %v2026_v21 = vadd.f32 %v2025_v38, %v3921_v46  ;;  %v2161_v11 = vadd.f32 %v2160_v37, %v2096_v12 }
 0x1bf   :  { %v2027_v26 = vadd.f32 %v2026_v21, %v3926_v4  ;;  %v2162_v53 = vadd.f32 %v2161_v11, %v2097_v17  ;;  %v2035_v51 = vadd.f32 %v2034_v40, %v3940_v57  ;;  %v2170_v50 = vadd.f32 %v2169_v33, %v2104_v39 }
 0x1c0   :  { %v3959_v28 = vpop.f32.mrb[24].mxu0  ;;  %v3965_v12 = vpop.f32.mrb[24].mxu1 }
 0x1c1   :  { %4683 = vst [vmem:[#allocation15_spill] sm:$0xff] %v3959_v28  ;;  %v2042_v52 = vadd.f32 %v3810_v1, %v3959_v28  ;;  %v2111_v61 = vmul.f32 %v3959_v28, %v3959_v28  ;;  %4684 = vst [vmem:[#allocation16_spill] sm:$0xff] %v3965_v12  ;;  %2155 = vadd.xlane.f32.xlu0 %v2154_v55  ;;  %2028 = vadd.xlane.f32.xlu1 %v2027_v26  ;;  %v3967_v37 = vpop.f32.mrb[25].mxu0  ;;  %v3969_v38 = vpop.f32.mrb[25].mxu1 }
 0x1c2   :  { %4685 = vst [vmem:[#allocation17_spill] sm:$0xff] %v3967_v37  ;;  %v2163_v17 = vadd.f32 %v2162_v53, %v2098_v0  ;;  %4686 = vst [vmem:[#allocation18_spill] sm:$0xff] %v3969_v38  ;;  %v2112_v42 = vmul.f32 %v3967_v37, %v3967_v37  ;;  %v3973_v35 = vpop.f32.mrb[26].mxu0  ;;  %v2036_v39 = vadd.f32 %v2035_v51, %v3946_v62  ;;  %v3984_v21 = vpop.f32.mrb[26].mxu1 }
 0x1c3   :  { %4687 = vst [vmem:[#allocation19_spill] sm:$0xff] %v3973_v35  ;;  %v2106_v1 = vmul.f32 %v3946_v62, %v3946_v62  ;;  %v2171_v33 = vadd.f32 %v2170_v50, %v2105_v32  ;;  %v2178_v40 = vadd.f32 %v3817_v13, %v2111_v61  ;;  %v2043_v26 = vadd.f32 %v2042_v52, %v3967_v37  ;;  %v3986_v11 = vpop.f32.mrb[27].mxu0  ;;  %v3990_v0 = vpop.f32.mrb[27].mxu1 }
 0x1c4   :  { %v2051_v53 = vadd.f32 %v3820_v15, %v3973_v35  ;;  %v2119_v55 = vmul.f32 %v3973_v35, %v3973_v35  ;;  %4688 = vst [vmem:[#allocation20_spill] sm:$0xff] %v3984_v21  ;;  %4689 = vst [vmem:[#allocation21_spill] sm:$0xff] %v3986_v11  ;;  %v2120_v51 = vmul.f32 %v3986_v11, %v3986_v11 }
 0x1c5   :  { %4690 = vst [vmem:[#allocation22_spill] sm:$0xff] %v3990_v0  ;;  %v2172_v50 = vadd.f32 %v2171_v33, %v2106_v1  ;;  %2164 = vadd.xlane.f32.xlu0 %v2163_v17  ;;  %2037 = vadd.xlane.f32.xlu1 %v2036_v39  ;;  %v2044_v15 = vadd.f32 %v2043_v26, %v3965_v12 }
 0x1c6   :  { %v2187_v13 = vadd.f32 %v3840_v3, %v2119_v55  ;;  %v2052_v32 = vadd.f32 %v2051_v53, %v3986_v11  ;;  %v2113_v52 = vmul.f32 %v3965_v12, %v3965_v12  ;;  %v2179_v61 = vadd.f32 %v2178_v40, %v2112_v42 }
 0x1c7   :  { %v2045_v35 = vadd.f32 %v2044_v15, %v3969_v38  ;;  %v2121_v1 = vmul.f32 %v3984_v21, %v3984_v21  ;;  %v2114_v3 = vmul.f32 %v3969_v38, %v3969_v38 }
 0x1c8   :  { %v2053_v37 = vadd.f32 %v2052_v32, %v3984_v21  ;;  %v2188_v28 = vadd.f32 %v2187_v13, %v2120_v51  ;;  %v4001_v33 = vpop.f32.mrb[28].mxu0  ;;  %v2180_v17 = vadd.f32 %v2179_v61, %v2113_v52  ;;  %v4009_v40 = vpop.f32.mrb[28].mxu1 }
 0x1c9   :  { %4691 = vst [vmem:[#allocation23_spill] sm:$0xff] %v4001_v33  ;;  %v2060_v39 = vadd.f32 %v3858_v59, %v4001_v33  ;;  %v2127_v42 = vmul.f32 %v4001_v33, %v4001_v33  ;;  %4692 = vst [vmem:[#allocation24_spill] sm:$0xff] %v4009_v40  ;;  %2173 = vadd.xlane.f32.xlu0 %v2172_v50  ;;  %2046 = vadd.xlane.f32.xlu1 %v2045_v35  ;;  %v4011_v26 = vpop.f32.mrb[29].mxu0  ;;  %v4014_v55 = vpop.f32.mrb[29].mxu1 }
 0x1ca   :  { %4693 = vst [vmem:[#allocation25_spill] sm:$0xff] %v4011_v26  ;;  %v2054_v53 = vadd.f32 %v2053_v37, %v3990_v0  ;;  %4694 = vst [vmem:[#allocation26_spill] sm:$0xff] %v4014_v55  ;;  %v2128_v51 = vmul.f32 %v4011_v26, %v4011_v26  ;;  %v4018_v13 = vpop.f32.mrb[30].mxu0  ;;  %v2181_v32 = vadd.f32 %v2180_v17, %v2114_v3  ;;  %v4028_v61 = vpop.f32.mrb[30].mxu1 }
 0x1cb   :  { %4695 = vst [vmem:[#allocation27_spill] sm:$0xff] %v4018_v13  ;;  %v2122_v59 = vmul.f32 %v3990_v0, %v3990_v0  ;;  %v2189_v15 = vadd.f32 %v2188_v28, %v2121_v1  ;;  %v2196_v52 = vadd.f32 %v3865_v6, %v2127_v42  ;;  %v2061_v35 = vadd.f32 %v2060_v39, %v4011_v26  ;;  %v4030_v33 = vpop.f32.mrb[31].mxu0  ;;  %v4034_v17 = vpop.f32.mrb[31].mxu1 }
 0x1cc   :  { %v2069_v50 = vadd.f32 %v3868_v7, %v4018_v13  ;;  %v2135_v37 = vmul.f32 %v4018_v13, %v4018_v13  ;;  %4696 = vst [vmem:[#allocation28_spill] sm:$0xff] %v4028_v61  ;;  %4697 = vst [vmem:[#allocation29_spill] sm:$0xff] %v4030_v33  ;;  %v2136_v3 = vmul.f32 %v4030_v33, %v4030_v33 }
 0x1cd   :  { %4698 = vst [vmem:[#allocation30_spill] sm:$0xff] %v4034_v17  ;;  %v2190_v28 = vadd.f32 %v2189_v15, %v2122_v59  ;;  %2182 = vadd.xlane.f32.xlu0 %v2181_v32  ;;  %2055 = vadd.xlane.f32.xlu1 %v2054_v53  ;;  %v2129_v7 = vmul.f32 %v4009_v40, %v4009_v40 }
 0x1ce   :  { %v2205_v6 = vadd.f32 %v3872_v22, %v2135_v37  ;;  %v2070_v1 = vadd.f32 %v2069_v50, %v4030_v33  ;;  %v2062_v39 = vadd.f32 %v2061_v35, %v4009_v40  ;;  %v2197_v42 = vadd.f32 %v2196_v52, %v2128_v51 }
 0x1cf   :  { %v2137_v13 = vmul.f32 %v4028_v61, %v4028_v61  ;;  %v2130_v22 = vmul.f32 %v4014_v55, %v4014_v55  ;;  %v2138_v53 = vmul.f32 %v4034_v17, %v4034_v17  ;;  %v2848_v50 = vmov 0  }
 0x1d0   :  { %v2206_v26 = vadd.f32 %v2205_v6, %v2136_v3  ;;  %v2071_v0 = vadd.f32 %v2070_v1, %v4028_v61  ;;  %v2063_v59 = vadd.f32 %v2062_v39, %v4014_v55  ;;  %v2198_v15 = vadd.f32 %v2197_v42, %v2129_v7  ;;  %2820 = vset.pattern.permute.xlu0 %v2848_v50 }
 0x1d1   :  { %2191 = vadd.xlane.f32.xlu0 %v2190_v28  ;;  %2821 = vset.pattern.permute.xlu1 %v2848_v50 }
 0x1d2   :  { %v2072_v32 = vadd.f32 %v2071_v0, %v4034_v17  ;;  %v2207_v35 = vadd.f32 %v2206_v26, %v2137_v13  ;;  %2064 = vadd.xlane.f32.xlu1 %v2063_v59  ;;  %v2199_v51 = vadd.f32 %v2198_v15, %v2130_v22 }
 0x1d4   :  { %v2208_v52 = vadd.f32 %v2207_v35, %v2138_v53 }
 0x1d5   :  { %2200 = vadd.xlane.f32.xlu0 %v2199_v51 }
 0x1d6   :  { %2073 = vadd.xlane.f32.xlu1 %v2072_v32 }
 0x1da   :  { %2209 = vadd.xlane.f32.xlu1 %v2208_v52 }
 0x246   :  { %v2011_v37 = vpop.xlane.xlu0 %2010 }
 0x248   :  { %v2147_v3 = vpop.xlane.xlu1 %2146 }
 0x24a   :  { %v2020_v6 = vpop.xlane.xlu0 %2019 }
 0x24b   :  { %v2211_v0 = vadd.f32 %v2020_v6, %v2011_v37 }
 0x24e   :  { %v2156_v1 = vpop.xlane.xlu0 %2155  ;;  %v2029_v7 = vpop.xlane.xlu1 %2028 }
 0x24f   :  { %v2213_v26 = vadd.f32 %v2211_v0, %v2029_v7  ;;  %v2212_v22 = vadd.f32 %v2156_v1, %v2147_v3 }
 0x252   :  { %v2165_v39 = vpop.xlane.xlu0 %2164  ;;  %v2038_v42 = vpop.xlane.xlu1 %2037 }
 0x253   :  { %v2215_v15 = vadd.f32 %v2213_v26, %v2038_v42  ;;  %v2214_v53 = vadd.f32 %v2212_v22, %v2165_v39  ;;  %v4701_v22 = vld [vmem:[#allocation17_spill] sm:$0xff] }
 0x256   :  { %v2174_v28 = vpop.xlane.xlu0 %2173  ;;  %v2047_v61 = vpop.xlane.xlu1 %2046 }
 0x257   :  { %v2217_v32 = vadd.f32 %v2215_v15, %v2047_v61  ;;  %v2216_v52 = vadd.f32 %v2214_v53, %v2174_v28  ;;  %v2230_v61 = vld [vmem:[%s4638_s2] sm:$0xff]  ;;  %v4702_v15 = vld [vmem:[#allocation16_spill] sm:$0xff] }
 0x258   :  { %v4703_v53 = vld [vmem:[#allocation18_spill] sm:$0xff] }
 0x25a   :  { %v2183_v13 = vpop.xlane.xlu0 %2182  ;;  %v2056_v59 = vpop.xlane.xlu1 %2055 }
 0x25b   :  { %v2219_v50 = vadd.f32 %v2217_v32, %v2056_v59  ;;  %v2218_v17 = vadd.f32 %v2216_v52, %v2183_v13  ;;  %v4699_v13 = vld [vmem:[#allocation2_spill] sm:$0xff]  ;;  %v4700_v59 = vld [vmem:[#allocation15_spill] sm:$0xff] }
 0x25c   :  { %v4704_v32 = vld [vmem:[#allocation3_spill] sm:$0xff] }
 0x25e   :  { %v2192_v35 = vpop.xlane.xlu0 %2191 }
 0x25f   :  { %v2065_v51 = vpop.xlane.xlu1 %2064  ;;  %v2220_v21 = vadd.f32 %v2218_v17, %v2192_v35 }
 0x260   :  { %v2221_v33 = vadd.f32 %v2219_v50, %v2065_v51  ;;  %v4705_v51 = vld [vmem:[#allocation5_spill] sm:$0xff]  ;;  %v4706_v50 = vld [vmem:[#allocation4_spill] sm:$0xff] }
 0x262   :  { %v2201_v55 = vpop.xlane.xlu0 %2200 }
 0x263   :  { %v2074_v40 = vpop.xlane.xlu1 %2073  ;;  %v2222_v38 = vadd.f32 %v2220_v21, %v2201_v55 }
 0x264   :  { %v2223_v11 = vadd.f32 %v2221_v33, %v2074_v40  ;;  %v2234_v33 = vld [vmem:[%s4639_s3] sm:$0xff] }
 0x266   :  { %v2225_v12 = vmul.f32 0.00012207031, %v2223_v11 }
 0x267   :  { %v2210_v37 = vpop.xlane.xlu1 %2209 }
 0x268   :  { %v2224_v6 = vadd.f32 %v2222_v38, %v2210_v37  ;;  %v2227_v7 = vmul.f32 %v2225_v12, %v2225_v12 }
 0x26a   :  { %v2226_v0 = vmul.f32 0.00012207031, %v2224_v6  ;;  %v4707_v6 = vld [vmem:[#allocation6_spill] sm:$0xff] }
 0x26c   :  { %v2228_v3 = vsub.f32 %v2226_v0, %v2227_v7  ;;  %v4708_v0 = vld [vmem:[#allocation19_spill] sm:$0xff] }
 0x26e   :  { %v2229_v1 = vmax.f32 %v2228_v3, 0.0 }
 0x270   :  { %v2231_v39 = vadd.f32 1e-05, %v2229_v1  ;;  %v4709_v1 = vld [vmem:[#allocation21_spill] sm:$0xff] }
 0x272   :  { %2846 = vrsqrt.f32 %v2231_v39 }
 0x27c   :  { %v2847_v42 = vpop.eup %2846 }
 0x27d   :  { %v2233_v28 = vmul.f32 %v2847_v42, %v2230_v61  ;;  %v4710_v61 = vld [vmem:[#allocation20_spill] sm:$0xff] }
 0x27f   :  { %2239 = vperm.xlu0 %2820, %v2233_v28   ;;  %v2235_v21 = vmul.f32 %v2233_v28, %v2225_v12  ;;  %v4711_v28 = vld [vmem:[#allocation22_spill] sm:$0xff] }
 0x281   :  { %v2236_v11 = vsub.f32 %v2234_v33, %v2235_v21  ;;  %v4712_v21 = vld [vmem:[#allocation7_spill] sm:$0xff] }
 0x283   :  { %2252 = vperm.xlu1 %2821, %v2236_v11  }
 0x2fe   :  { %v4056_v38 = vpop.permute.xlu0 %2239 }
 0x2ff   :  { %v4060_v40 = vmul.f32 %v4056_v38, %v3682_v47  ;;  %v4064_v55 = vmul.f32 %v4056_v38, %v3688_v14  ;;  %v4068_v17 = vmul.f32 %v4056_v38, %v3686_v5  ;;  %v4072_v26 = vmul.f32 %v4056_v38, %v3694_v34 }
 0x300   :  { %v4076_v12 = vmul.f32 %v4056_v38, %v3874_v25  ;;  %v4080_v47 = vmul.f32 %v4056_v38, %v3882_v43  ;;  %v4084_v14 = vmul.f32 %v4056_v38, %v3880_v36  ;;  %v4088_v5 = vmul.f32 %v4056_v38, %v3886_v45 }
 0x301   :  { %v4092_v34 = vmul.f32 %v4056_v38, %v3696_v19  ;;  %v4096_v25 = vmul.f32 %v4056_v38, %v3702_v58  ;;  %v4100_v43 = vmul.f32 %v4056_v38, %v3700_v54  ;;  %v4104_v36 = vmul.f32 %v4056_v38, %v3709_v63 }
 0x302   :  { %v4108_v45 = vmul.f32 %v4056_v38, %v3888_v49  ;;  %v4112_v19 = vmul.f32 %v4056_v38, %v3898_v2  ;;  %v4116_v58 = vmul.f32 %v4056_v38, %v3896_v30  ;;  %v4120_v54 = vmul.f32 %v4056_v38, %v3904_v48 }
 0x303   :  { %v4124_v63 = vmul.f32 %v4056_v38, %v3726_v9  ;;  %v4128_v49 = vmul.f32 %v4056_v38, %v3734_v56  ;;  %v4132_v2 = vmul.f32 %v4056_v38, %v3732_v16  ;;  %v4136_v30 = vmul.f32 %v4056_v38, %v3740_v18 }
 0x304   :  { %v4140_v48 = vmul.f32 %v4056_v38, %v3915_v27  ;;  %v4144_v9 = vmul.f32 %v4056_v38, %v3923_v60  ;;  %v4148_v56 = vmul.f32 %v4056_v38, %v3921_v46  ;;  %v4152_v16 = vmul.f32 %v4056_v38, %v3926_v4 }
 0x305   :  { %v4156_v18 = vmul.f32 %v4056_v38, %v3742_v20  ;;  %v4160_v27 = vmul.f32 %v4056_v38, %v3750_v24  ;;  %v4164_v60 = vmul.f32 %v4056_v38, %v3748_v23  ;;  %v4168_v46 = vmul.f32 %v4056_v38, %v3757_v29 }
 0x306   :  { %v4172_v4 = vmul.f32 %v4056_v38, %v3930_v8  ;;  %v4176_v20 = vmul.f32 %v4056_v38, %v3942_v31  ;;  %v4180_v24 = vmul.f32 %v4056_v38, %v3940_v57  ;;  %v4184_v23 = vmul.f32 %v4056_v38, %v3946_v62 }
 0x307   :  { %v4188_v29 = vmul.f32 %v4056_v38, %v3774_v41  ;;  %v4192_v8 = vmul.f32 %v4056_v38, %v3782_v44  ;;  %v4196_v31 = vmul.f32 %v4056_v38, %v3780_v10  ;;  %v4200_v57 = vmul.f32 %v4056_v38, %v4699_v13  ;;  %v4713_v13 = vld [vmem:[#allocation9_spill] sm:$0xff] }
 0x308   :  { %v4204_v62 = vmul.f32 %v4056_v38, %v4700_v59  ;;  %v4208_v41 = vmul.f32 %v4056_v38, %v4701_v22  ;;  %v4212_v44 = vmul.f32 %v4056_v38, %v4702_v15  ;;  %v4216_v10 = vmul.f32 %v4056_v38, %v4703_v53  ;;  %v4714_v22 = vld [vmem:[#allocation8_spill] sm:$0xff]  ;;  %v4715_v53 = vld [vmem:[#allocation10_spill] sm:$0xff] }
 0x309   :  { %v4220_v35 = vmul.f32 %v4056_v38, %v4704_v32  ;;  %v4224_v52 = vmul.f32 %v4056_v38, %v4705_v51  ;;  %v4228_v37 = vmul.f32 %v4056_v38, %v4706_v50  ;;  %v4232_v7 = vmul.f32 %v4056_v38, %v4707_v6  ;;  %v4717_v51 = vld [vmem:[#allocation23_spill] sm:$0xff]  ;;  %v4719_v6 = vld [vmem:[#allocation25_spill] sm:$0xff] }
 0x30a   :  { %v4236_v3 = vmul.f32 %v4056_v38, %v4708_v0  ;;  %v4240_v39 = vmul.f32 %v4056_v38, %v4709_v1  ;;  %v4244_v42 = vmul.f32 %v4056_v38, %v4710_v61  ;;  %v4248_v33 = vmul.f32 %v4056_v38, %v4711_v28  ;;  %v4721_v1 = vld [vmem:[#allocation24_spill] sm:$0xff]  ;;  %v4723_v28 = vld [vmem:[#allocation26_spill] sm:$0xff] }
 0x30b   :  { %v4252_v11 = vmul.f32 %v4056_v38, %v4712_v21  ;;  %v4256_v59 = vmul.f32 %v4056_v38, %v4713_v13  ;;  %v4260_v15 = vmul.f32 %v4056_v38, %v4714_v22  ;;  %v4264_v32 = vmul.f32 %v4056_v38, %v4715_v53  ;;  %v4282_v13 = vpop.permute.xlu1 %2252  ;;  %v4725_v22 = vld [vmem:[#allocation11_spill] sm:$0xff] }
 0x30c   :  { %v4268_v50 = vmul.f32 %v4056_v38, %v4717_v51  ;;  %v4272_v0 = vmul.f32 %v4056_v38, %v4719_v6  ;;  %v4276_v61 = vmul.f32 %v4056_v38, %v4721_v1  ;;  %v4280_v21 = vmul.f32 %v4056_v38, %v4723_v28  ;;  %v4727_v51 = vld [vmem:[#allocation13_spill] sm:$0xff]  ;;  %v4729_v6 = vld [vmem:[#allocation12_spill] sm:$0xff]  ;;  %v4731_v1 = vld [vmem:[#allocation14_spill] sm:$0xff] }
 0x30d   :  { %4716 = vst [vmem:[#allocation2_spill] sm:$0xff] %v4264_v32  ;;  %v4286_v53 = vmul.f32 %v4056_v38, %v4725_v22  ;;  %v4733_v28 = vld [vmem:[#allocation27_spill] sm:$0xff]  ;;  %v4735_v32 = vld [vmem:[#allocation29_spill] sm:$0xff] }
 0x30e   :  { %4718 = vst [vmem:[#allocation15_spill] sm:$0xff] %v4268_v50  ;;  %4720 = vst [vmem:[#allocation17_spill] sm:$0xff] %v4272_v0  ;;  %v4290_v50 = vmul.f32 %v4056_v38, %v4727_v51  ;;  %v4294_v0 = vmul.f32 %v4056_v38, %v4729_v6  ;;  %v4306_v22 = vmul.f32 %v4056_v38, %v4735_v32 }
 0x30f   :  { %4722 = vst [vmem:[#allocation16_spill] sm:$0xff] %v4276_v61  ;;  %4724 = vst [vmem:[#allocation18_spill] sm:$0xff] %v4280_v21  ;;  %v4298_v61 = vmul.f32 %v4056_v38, %v4731_v1  ;;  %v4302_v21 = vmul.f32 %v4056_v38, %v4733_v28  ;;  %v2255_v1 = vadd.f32 %v4282_v13, %v4060_v40 }
 0x310   :  { %4726 = vst [vmem:[#allocation3_spill] sm:$0xff] %v4286_v53  ;;  %4728 = vst [vmem:[#allocation5_spill] sm:$0xff] %v4290_v50  ;;  %v4737_v53 = vld [vmem:[#allocation28_spill] sm:$0xff]  ;;  %v4739_v50 = vld [vmem:[#allocation30_spill] sm:$0xff]  ;;  %v2257_v28 = vadd.f32 %v4282_v13, %v4068_v17  ;;  %v2258_v32 = vadd.f32 %v4282_v13, %v4072_v26  ;;  %v2262_v40 = vadd.f32 %v4282_v13, %v4088_v5 }
 0x311   :  { %4730 = vst [vmem:[#allocation4_spill] sm:$0xff] %v4294_v0  ;;  %4732 = vst [vmem:[#allocation6_spill] sm:$0xff] %v4298_v61  ;;  %v4310_v51 = vmul.f32 %v4056_v38, %v4737_v53  ;;  %v4314_v6 = vmul.f32 %v4056_v38, %v4739_v50  ;;  %v2256_v61 = vadd.f32 %v4282_v13, %v4064_v55  ;;  %v2263_v50 = vmax.f32 %v2255_v1, 0.0 }
 0x312   :  { %4734 = vst [vmem:[#allocation19_spill] sm:$0xff] %v4302_v21  ;;  %4736 = vst [vmem:[#allocation21_spill] sm:$0xff] %v4306_v22  ;;  %v2259_v53 = vadd.f32 %v4282_v13, %v4076_v12  ;;  %v2261_v38 = vadd.f32 %v4282_v13, %v4084_v14  ;;  %v2266_v22 = vmax.f32 %v2258_v32, 0.0  ;;  %v2270_v26 = vmax.f32 %v2262_v40, 0.0 }
 0x313   :  { %4738 = vst [vmem:[#allocation20_spill] sm:$0xff] %v4310_v51  ;;  %4740 = vst [vmem:[#allocation22_spill] sm:$0xff] %v4314_v6  ;;  %v2260_v51 = vadd.f32 %v4282_v13, %v4080_v47  ;;  %v2264_v55 = vmax.f32 %v2256_v61, 0.0  ;;  %v2265_v6 = vmax.f32 %v2257_v28, 0.0  ;;  %v2287_v12 = vadd.f32 %v4092_v34, %v4282_v13 }
 0x314   :  { %v2267_v17 = vmax.f32 %v2259_v53, 0.0  ;;  %v2269_v0 = vmax.f32 %v2261_v38, 0.0  ;;  %2271 = vst [vmem:[%s4640_s4] sm:$0xff] %v2263_v50  ;;  %2274 = vst [vmem:[%s4640_s4 + $0x18] sm:$0xff] %v2266_v22  ;;  %v2288_v47 = vadd.f32 %v4096_v25, %v4282_v13  ;;  %v2289_v14 = vadd.f32 %v4100_v43, %v4282_v13 }
 0x315   :  { %v2268_v21 = vmax.f32 %v2260_v51, 0.0  ;;  %2272 = vst [vmem:[%s4640_s4 + $0x8] sm:$0xff] %v2264_v55  ;;  %2273 = vst [vmem:[%s4640_s4 + $0x10] sm:$0xff] %v2265_v6  ;;  %v2290_v5 = vadd.f32 %v4104_v36, %v4282_v13  ;;  %v2291_v34 = vadd.f32 %v4108_v45, %v4282_v13  ;;  %v2292_v25 = vadd.f32 %v4112_v19, %v4282_v13 }
 0x316   :  { %2275 = vst [vmem:[%s4640_s4 + $0x20] sm:$0xff] %v2267_v17  ;;  %2277 = vst [vmem:[%s4640_s4 + $0x30] sm:$0xff] %v2269_v0  ;;  %v2293_v43 = vadd.f32 %v4116_v58, %v4282_v13  ;;  %v2294_v36 = vadd.f32 %v4120_v54, %v4282_v13  ;;  %v2295_v61 = vmax.f32 %v2287_v12, 0.0  ;;  %v2297_v22 = vmax.f32 %v2289_v14, 0.0 }
 0x317   :  { %2276 = vst [vmem:[%s4640_s4 + $0x28] sm:$0xff] %v2268_v21  ;;  %2278 = vst [vmem:[%s4640_s4 + $0x38] sm:$0xff] %v2270_v26  ;;  %v2296_v21 = vmax.f32 %v2288_v47, 0.0  ;;  %v2298_v0 = vmax.f32 %v2290_v5, 0.0  ;;  %v2299_v51 = vmax.f32 %v2291_v34, 0.0  ;;  %v2300_v6 = vmax.f32 %v2292_v25, 0.0 }
 0x318   :  { %v2301_v1 = vmax.f32 %v2293_v43, 0.0  ;;  %v2302_v28 = vmax.f32 %v2294_v36, 0.0  ;;  %2303 = vst [vmem:[%s4640_s4 + $0x40] sm:$0xff] %v2295_v61  ;;  %2305 = vst [vmem:[%s4640_s4 + $0x50] sm:$0xff] %v2297_v22  ;;  %v2319_v45 = vadd.f32 %v4124_v63, %v4282_v13  ;;  %v2320_v19 = vadd.f32 %v4128_v49, %v4282_v13 }
 0x319   :  { %2304 = vst [vmem:[%s4640_s4 + $0x48] sm:$0xff] %v2296_v21  ;;  %2306 = vst [vmem:[%s4640_s4 + $0x58] sm:$0xff] %v2298_v0  ;;  %v2321_v58 = vadd.f32 %v4132_v2, %v4282_v13  ;;  %v2322_v54 = vadd.f32 %v4136_v30, %v4282_v13  ;;  %v2323_v63 = vadd.f32 %v4140_v48, %v4282_v13 }
 0x31a   :  { %2307 = vst [vmem:[%s4640_s4 + $0x60] sm:$0xff] %v2299_v51  ;;  %2308 = vst [vmem:[%s4640_s4 + $0x68] sm:$0xff] %v2300_v6  ;;  %v2324_v49 = vadd.f32 %v4144_v9, %v4282_v13  ;;  %v2325_v2 = vadd.f32 %v4148_v56, %v4282_v13  ;;  %v2326_v30 = vadd.f32 %v4152_v16, %v4282_v13  ;;  %v2327_v32 = vmax.f32 %v2319_v45, 0.0 }
 0x31b   :  { %2309 = vst [vmem:[%s4640_s4 + $0x70] sm:$0xff] %v2301_v1  ;;  %2310 = vst [vmem:[%s4640_s4 + $0x78] sm:$0xff] %v2302_v28  ;;  %v2328_v53 = vmax.f32 %v2320_v19, 0.0  ;;  %v2329_v38 = vmax.f32 %v2321_v58, 0.0  ;;  %v2330_v40 = vmax.f32 %v2322_v54, 0.0  ;;  %v2331_v50 = vmax.f32 %v2323_v63, 0.0 }
 0x31c   :  { %v2332_v55 = vmax.f32 %v2324_v49, 0.0  ;;  %v2333_v17 = vmax.f32 %v2325_v2, 0.0  ;;  %v2334_v26 = vmax.f32 %v2326_v30, 0.0  ;;  %2335 = vst [vmem:[%s4640_s4 + $0x80] sm:$0xff] %v2327_v32  ;;  %v2351_v48 = vadd.f32 %v4156_v18, %v4282_v13 }
 0x31d   :  { %2336 = vst [vmem:[%s4640_s4 + $0x88] sm:$0xff] %v2328_v53  ;;  %2337 = vst [vmem:[%s4640_s4 + $0x90] sm:$0xff] %v2329_v38  ;;  %v2352_v9 = vadd.f32 %v4160_v27, %v4282_v13  ;;  %v2353_v56 = vadd.f32 %v4164_v60, %v4282_v13  ;;  %v2354_v16 = vadd.f32 %v4168_v46, %v4282_v13  ;;  %v4744_v38 = vld [vmem:[#allocation16_spill] sm:$0xff] }
 0x31e   :  { %2338 = vst [vmem:[%s4640_s4 + $0x98] sm:$0xff] %v2330_v40  ;;  %2339 = vst [vmem:[%s4640_s4 + $0xa0] sm:$0xff] %v2331_v50  ;;  %v2355_v18 = vadd.f32 %v4172_v4, %v4282_v13  ;;  %v2356_v27 = vadd.f32 %v4176_v20, %v4282_v13  ;;  %v2357_v60 = vadd.f32 %v4180_v24, %v4282_v13  ;;  %v2359_v12 = vmax.f32 %v2351_v48, 0.0  ;;  %v4745_v50 = vld [vmem:[#allocation18_spill] sm:$0xff] }
 0x31f   :  { %2340 = vst [vmem:[%s4640_s4 + $0xa8] sm:$0xff] %v2332_v55  ;;  %2341 = vst [vmem:[%s4640_s4 + $0xb0] sm:$0xff] %v2333_v17  ;;  %v2358_v46 = vadd.f32 %v4184_v23, %v4282_v13  ;;  %v2360_v47 = vmax.f32 %v2352_v9, 0.0  ;;  %v2361_v14 = vmax.f32 %v2353_v56, 0.0  ;;  %v2362_v5 = vmax.f32 %v2354_v16, 0.0 }
 0x320   :  { %2342 = vst [vmem:[%s4640_s4 + $0xb8] sm:$0xff] %v2334_v26  ;;  %v2363_v34 = vmax.f32 %v2355_v18, 0.0  ;;  %v2364_v25 = vmax.f32 %v2356_v27, 0.0  ;;  %v2365_v43 = vmax.f32 %v2357_v60, 0.0  ;;  %2367 = vst [vmem:[%s4640_s4 + $0xc0] sm:$0xff] %v2359_v12  ;;  %v2383_v4 = vadd.f32 %v4188_v29, %v4282_v13  ;;  %v4746_v60 = vld [vmem:[#allocation3_spill] sm:$0xff] }
 0x321   :  { %v2366_v36 = vmax.f32 %v2358_v46, 0.0  ;;  %2368 = vst [vmem:[%s4640_s4 + $0xc8] sm:$0xff] %v2360_v47  ;;  %2369 = vst [vmem:[%s4640_s4 + $0xd0] sm:$0xff] %v2361_v14  ;;  %v2384_v20 = vadd.f32 %v4192_v8, %v4282_v13  ;;  %v2385_v24 = vadd.f32 %v4196_v31, %v4282_v13  ;;  %v2386_v23 = vadd.f32 %v4200_v57, %v4282_v13  ;;  %v4747_v12 = vld [vmem:[#allocation5_spill] sm:$0xff]  ;;  %v4748_v14 = vld [vmem:[#allocation4_spill] sm:$0xff] }
 0x322   :  { %2370 = vst [vmem:[%s4640_s4 + $0xd8] sm:$0xff] %v2362_v5  ;;  %2371 = vst [vmem:[%s4640_s4 + $0xe0] sm:$0xff] %v2363_v34  ;;  %v2387_v29 = vadd.f32 %v4204_v62, %v4282_v13  ;;  %v2388_v8 = vadd.f32 %v4208_v41, %v4282_v13  ;;  %v2389_v31 = vadd.f32 %v4212_v44, %v4282_v13  ;;  %v2391_v61 = vmax.f32 %v2383_v4, 0.0  ;;  %v4749_v34 = vld [vmem:[#allocation6_spill] sm:$0xff]  ;;  %v4751_v4 = vld [vmem:[#allocation21_spill] sm:$0xff] }
 0x323   :  { %2372 = vst [vmem:[%s4640_s4 + $0xe8] sm:$0xff] %v2364_v25  ;;  %2373 = vst [vmem:[%s4640_s4 + $0xf0] sm:$0xff] %v2365_v43  ;;  %v2390_v57 = vadd.f32 %v4216_v10, %v4282_v13  ;;  %v2392_v21 = vmax.f32 %v2384_v20, 0.0  ;;  %v2393_v22 = vmax.f32 %v2385_v24, 0.0  ;;  %v2394_v0 = vmax.f32 %v2386_v23, 0.0  ;;  %v4750_v43 = vld [vmem:[#allocation19_spill] sm:$0xff] }
 0x324   :  { %2374 = vst [vmem:[%s4640_s4 + $0xf8] sm:$0xff] %v2366_v36  ;;  %v2395_v51 = vmax.f32 %v2387_v29, 0.0  ;;  %v2396_v6 = vmax.f32 %v2388_v8, 0.0  ;;  %v2397_v1 = vmax.f32 %v2389_v31, 0.0  ;;  %2399 = vst [vmem:[%s4640_s4 + $0x100] sm:$0xff] %v2391_v61  ;;  %v2415_v62 = vadd.f32 %v4220_v35, %v4282_v13  ;;  %v4752_v24 = vld [vmem:[#allocation20_spill] sm:$0xff] }
 0x325   :  { %v2398_v28 = vmax.f32 %v2390_v57, 0.0  ;;  %2400 = vst [vmem:[%s4640_s4 + $0x108] sm:$0xff] %v2392_v21  ;;  %2401 = vst [vmem:[%s4640_s4 + $0x110] sm:$0xff] %v2393_v22  ;;  %v2416_v41 = vadd.f32 %v4224_v52, %v4282_v13  ;;  %v2417_v44 = vadd.f32 %v4228_v37, %v4282_v13  ;;  %v2418_v10 = vadd.f32 %v4232_v7, %v4282_v13  ;;  %v4753_v29 = vld [vmem:[#allocation22_spill] sm:$0xff] }
 0x326   :  { %2402 = vst [vmem:[%s4640_s4 + $0x118] sm:$0xff] %v2394_v0  ;;  %2403 = vst [vmem:[%s4640_s4 + $0x120] sm:$0xff] %v2395_v51  ;;  %v2419_v35 = vadd.f32 %v4236_v3, %v4282_v13  ;;  %v2420_v52 = vadd.f32 %v4240_v39, %v4282_v13  ;;  %v2421_v37 = vadd.f32 %v4244_v42, %v4282_v13  ;;  %v2423_v45 = vmax.f32 %v2415_v62, 0.0 }
 0x327   :  { %2404 = vst [vmem:[%s4640_s4 + $0x128] sm:$0xff] %v2396_v6  ;;  %2405 = vst [vmem:[%s4640_s4 + $0x130] sm:$0xff] %v2397_v1  ;;  %v2422_v7 = vadd.f32 %v4248_v33, %v4282_v13  ;;  %v2424_v19 = vmax.f32 %v2416_v41, 0.0  ;;  %v2425_v58 = vmax.f32 %v2417_v44, 0.0  ;;  %v2426_v54 = vmax.f32 %v2418_v10, 0.0  ;;  %v4741_v33 = vld [vmem:[#allocation2_spill] sm:$0xff] }
 0x328   :  { %2406 = vst [vmem:[%s4640_s4 + $0x138] sm:$0xff] %v2398_v28  ;;  %v2427_v63 = vmax.f32 %v2419_v35, 0.0  ;;  %v2428_v49 = vmax.f32 %v2420_v52, 0.0  ;;  %v2429_v2 = vmax.f32 %v2421_v37, 0.0  ;;  %2431 = vst [vmem:[%s4640_s4 + $0x140] sm:$0xff] %v2423_v45  ;;  %v2447_v3 = vadd.f32 %v4252_v11, %v4282_v13  ;;  %v4742_v11 = vld [vmem:[#allocation15_spill] sm:$0xff] }
 0x329   :  { %v2430_v30 = vmax.f32 %v2422_v7, 0.0  ;;  %2432 = vst [vmem:[%s4640_s4 + $0x148] sm:$0xff] %v2424_v19  ;;  %2433 = vst [vmem:[%s4640_s4 + $0x150] sm:$0xff] %v2425_v58  ;;  %v2448_v39 = vadd.f32 %v4256_v59, %v4282_v13  ;;  %v2449_v42 = vadd.f32 %v4260_v15, %v4282_v13  ;;  %v2450_v32 = vadd.f32 %v4741_v33, %v4282_v13  ;;  %v4743_v15 = vld [vmem:[#allocation17_spill] sm:$0xff] }
 0x32a   :  { %2434 = vst [vmem:[%s4640_s4 + $0x158] sm:$0xff] %v2426_v54  ;;  %2435 = vst [vmem:[%s4640_s4 + $0x160] sm:$0xff] %v2427_v63  ;;  %v2451_v59 = vadd.f32 %v4742_v11, %v4282_v13  ;;  %v2452_v53 = vadd.f32 %v4743_v15, %v4282_v13  ;;  %v2453_v40 = vadd.f32 %v4744_v38, %v4282_v13  ;;  %v2455_v17 = vmax.f32 %v2447_v3, 0.0 }
 0x32b   :  { %2436 = vst [vmem:[%s4640_s4 + $0x168] sm:$0xff] %v2428_v49  ;;  %2437 = vst [vmem:[%s4640_s4 + $0x170] sm:$0xff] %v2429_v2  ;;  %v2454_v55 = vadd.f32 %v4745_v50, %v4282_v13  ;;  %v2456_v26 = vmax.f32 %v2448_v39, 0.0  ;;  %v2457_v48 = vmax.f32 %v2449_v42, 0.0  ;;  %v2458_v9 = vmax.f32 %v2450_v32, 0.0 }
 0x32c   :  { %2438 = vst [vmem:[%s4640_s4 + $0x178] sm:$0xff] %v2430_v30  ;;  %v2459_v56 = vmax.f32 %v2451_v59, 0.0  ;;  %v2460_v16 = vmax.f32 %v2452_v53, 0.0  ;;  %v2461_v18 = vmax.f32 %v2453_v40, 0.0  ;;  %2463 = vst [vmem:[%s4640_s4 + $0x180] sm:$0xff] %v2455_v17  ;;  %v2479_v46 = vadd.f32 %v4746_v60, %v4282_v13 }
 0x32d   :  { %v2462_v27 = vmax.f32 %v2454_v55, 0.0  ;;  %2464 = vst [vmem:[%s4640_s4 + $0x188] sm:$0xff] %v2456_v26  ;;  %2465 = vst [vmem:[%s4640_s4 + $0x190] sm:$0xff] %v2457_v48  ;;  %v2480_v47 = vadd.f32 %v4747_v12, %v4282_v13  ;;  %v2481_v5 = vadd.f32 %v4748_v14, %v4282_v13  ;;  %v2482_v25 = vadd.f32 %v4749_v34, %v4282_v13 }
 0x32e   :  { %2466 = vst [vmem:[%s4640_s4 + $0x198] sm:$0xff] %v2458_v9  ;;  %2467 = vst [vmem:[%s4640_s4 + $0x1a0] sm:$0xff] %v2459_v56  ;;  %v2483_v36 = vadd.f32 %v4750_v43, %v4282_v13  ;;  %v2484_v20 = vadd.f32 %v4751_v4, %v4282_v13  ;;  %v2485_v23 = vadd.f32 %v4752_v24, %v4282_v13  ;;  %v2487_v31 = vmax.f32 %v2479_v46, 0.0 }
 0x32f   :  { %2468 = vst [vmem:[%s4640_s4 + $0x1a8] sm:$0xff] %v2460_v16  ;;  %2469 = vst [vmem:[%s4640_s4 + $0x1b0] sm:$0xff] %v2461_v18  ;;  %v2486_v8 = vadd.f32 %v4753_v29, %v4282_v13  ;;  %v2488_v57 = vmax.f32 %v2480_v47, 0.0  ;;  %v2489_v61 = vmax.f32 %v2481_v5, 0.0  ;;  %v2490_v21 = vmax.f32 %v2482_v25, 0.0 }
 0x330   :  { %2470 = vst [vmem:[%s4640_s4 + $0x1b8] sm:$0xff] %v2462_v27  ;;  %v2491_v22 = vmax.f32 %v2483_v36, 0.0  ;;  %v2492_v0 = vmax.f32 %v2484_v20, 0.0  ;;  %v2493_v51 = vmax.f32 %v2485_v23, 0.0  ;;  %2495 = vst [vmem:[%s4640_s4 + $0x1c0] sm:$0xff] %v2487_v31 }
 0x331   :  { %v2494_v6 = vmax.f32 %v2486_v8, 0.0  ;;  %2496 = vst [vmem:[%s4640_s4 + $0x1c8] sm:$0xff] %v2488_v57  ;;  %2497 = vst [vmem:[%s4640_s4 + $0x1d0] sm:$0xff] %v2489_v61 }
 0x332   :  { %2498 = vst [vmem:[%s4640_s4 + $0x1d8] sm:$0xff] %v2490_v21  ;;  %2499 = vst [vmem:[%s4640_s4 + $0x1e0] sm:$0xff] %v2491_v22 }
 0x333   :  { %2500 = vst [vmem:[%s4640_s4 + $0x1e8] sm:$0xff] %v2492_v0  ;;  %2501 = vst [vmem:[%s4640_s4 + $0x1f0] sm:$0xff] %v2493_v51 }
 0x334   :  { %2502 = vst [vmem:[%s4640_s4 + $0x1f8] sm:$0xff] %v2494_v6 }

// kernel: generator_forward.7
= control target key start
LH: loop header
LB: loop body
LE: loop exit
PB: predicated region body
PF: predicated region fallthrough
CT: control target
= control target key end

     0   :  { %7 = vsyncpa [#allocation3], 0  ;;  %s2905_s0 = inlined_call_operand.hbm [shape: bf16[216,8192], index: 0, kind: input, shape index: {}]   ;;  %s2906_s1 = inlined_call_operand.vmem [shape: bf16[8,216], index: 1, kind: input, shape index: {}]   ;;  %s2907_s2 = inlined_call_operand.vmem [shape: f32[8,8192], index: 2, kind: output, shape index: {}]  }
   0x1   :  { %9 = vsyncpa [#allocation3 + $0x1], 0  ;;  %s2511_s9 = smov 0   ;;  %s2513_s10 = smov 0  }
   0x2   :  { %s2515_s11 = smov 0   ;;  %s2517_s12 = smov 0  }
   0x3 LB: > { %s2030_s13 = sadd.s32 4294967295, %s2490_s12   ;;  %s2531_s14 = sadd.s32 1, %s2490_s12   ;;  %s2490_s12 = sphi %s2517_s12, %s2913_s12   ;;  %s2486_s11 = sphi %s2515_s11, %s2912_s11   ;;  %s2482_s10 = sphi %s2513_s10, %s2911_s10   ;;  %s2478_s9 = sphi %s2511_s9, %s2910_s9  }
   0x4   : > { %s19_s15 = ssub.s32 %s2490_s12, %s2531_s14  ;;  %s22_s16 = sadd.s32 1, %s2486_s11 }
   0x5   : > { %p20_p0 = scmp.eq.s32.totalorder %s19_s15, 0  ;;  %p29_p1 = scmp.ne.s32.totalorder %s2486_s11, %s2482_s10 }
   0x6   : > { %p30_p2 = scmp.eq.s32.totalorder %s2490_s12, 0  ;;  %p35_p3 = scmp.ne.s32.totalorder %s2482_s10, %s2478_s9 }
   0x7   : > { %s2541_s17 = scalar_select %p20_p0, %s2486_s11, %s22_s16  }
   0x8   : > { %p31_p4 = por %p30_p2, %p29_p1  ;;  %p36_p5 = scmp.eq.s32.totalorder %s2030_s13, 0 }
   0x9   : > { %p2308_p6 = scmp.lt.s32.totalorder %s2490_s12, 4  ;;  %s109_s19 = sand.u32 1, %s2486_s11  }
   0xa   : > { %p2546_p7 = por %p36_p5, %p35_p3  ;;  %s2300_s20 = smul.u32 1728, %s109_s19 }
   0xb   : > { %s2299_s21 = sshll.u32 %s2490_s12, 10  ;;  %p2552_p8 = pnand %p2308_p6, %p31_p4 }
   0xc   : > { %s2559_s25 = scalar_lea.hbm %s2905_s0, %s2299_s21  ;;  %s113_s26 = scalar_lea.vmem [#allocation2], %s2300_s20 }
   0xd   : > { %s120_s27 = sshll.u32 %s113_s26, 4  ;;  %s2563_s28 = scalar_lea.sflag [#allocation3], %s109_s19  ;;  %s2561_s27 = int_to_ptr.vmem [resolvable:$true] %s120_s27 }
   0xe   : > { %s2426_s29 = scalar_lea.hbm %s2559_s25, 27648  ;;  %p2428_p10 = pneg %p2552_p8 }
   0xf   : > { %p2427_p9 = scmp.ne.s32.totalorder %s2559_s25, %s2426_s29  ;;  %s2431_s4 = scalar_lea.hbm %s2905_s0, 110592 }
  0x10   : > { %p2432_p13 = scmp.lt.u32.totalorder %s2559_s25, %s2905_s0  ;;  %p2433_p0 = scmp.lt.u32.totalorder %s2431_s4, %s2426_s29 }
  0x11   : > { %p2429_p11 = pnand %p2428_p10, %p2427_p9  ;;  %p2435_p2 = scmp.lt.u32.totalorder %s2426_s29, %s2559_s25 }
  0x12   : > { %p2434_p1 = por %p2433_p0, %p2432_p13 }
  0x13   : > { %p2430_p12 = pneg %p2429_p11 }
  0x14   : > { %p2436_p3 = por %p2435_p2, %p2434_p1 }
  0x16   : > { %p2437_p4 = pnand %p2436_p3, %p2430_p12 }
  0x18   : > { %2440 = shalt.err (!%p2437_p4)
}
  0x19   : > { %s2441_s7 = scalar_lea.vmem %s2561_s27, 27648  ;;  %s2492_s8 = smov [#allocation2]  }
  0x1a   : > { %p2442_p5 = scmp.ne.s32.totalorder %s2561_s27, %s2441_s7  ;;  %s2446_s9 = sshll.u32 %s2492_s8, 4  ;;  %s2447_s9 = int_to_ptr.vmem [resolvable:$false] %s2446_s9 }
  0x1b   : > { %s2448_s15 = scalar_lea.vmem %s2447_s9, 55296  ;;  %p2449_p11 = scmp.lt.s32.totalorder %s2561_s27, %s2447_s9 }
  0x1c   : > { %p2444_p6 = pnand %p2442_p5, %p2428_p10  ;;  %p2450_p13 = scmp.lt.s32.totalorder %s2448_s15, %s2441_s7 }
  0x1e   : > { %p2445_p9 = pneg %p2444_p6  ;;  %p2451_p0 = por %p2450_p13, %p2449_p11 }
  0x20   : > { %p2452_p1 = pnand %p2451_p0, %p2445_p9 }
  0x22   : > { %2455 = shalt.err (!%p2452_p1)
}
  0x23   : > { %s2493_s16 = smov 4096   ;;  %s2494_s19 = smov 1024  }
  0x24   : > { %s2495_s20 = smov 64   ;;  %p2036_p10 = scmp.ge.s32.totalorder %s2490_s12, 1 }
  0x25   : > { %2307 = dma.hbm_to_vmem [thread:$0]  (!%p2552_p8), %s2559_s25, 27648, %s2561_s27, %s2563_s28, %s2493_s16, %s2494_s19, %s2495_s20  }
  0x26   : > { %p128_p12 = scmp.lt.s32.totalorder %s2490_s12, 5 }
  0x28   : > { %p129_p2 = pnand %p2036_p10, %p128_p12 }
  0x29   : > { %s134_s21 = sand.u32 (!%p129_p2), 1, %s2482_s10  }
  0x2a   : > { %132 = sbr.rel (%p129_p2) target bundleno = 520 (0x208), region = 28  ;;  %s135_s24 = scalar_lea.sflag (!%p129_p2), [#allocation3], %s134_s21 }
  0x2b   : > { %s2301_s23 = smul.u32 (!%p129_p2), 1728, %s134_s21 }
  0x2d   : > { %s2594_s26 = scalar_lea.vmem (!%p129_p2), [#allocation2], %s2301_s23 }
  0x31   : > { %2473 = dma.done.wait (%p2546_p7), %s135_s24, 27648  }
  0x32   : > { %2475 = vsyncadd (%p2546_p7), %s135_s24, 4294939648  ;;  %v168_v0 = vld [vmem:[%s2594_s26] sm:$0xff]  ;;  %v169_v2 = vld [vmem:[%s2594_s26 + $0x8] sm:$0xff]  ;;  %vm1470_vm0 = vcmask 719872   ;;  %vm1474_vm1 = vcmask 1043456   ;;  %s2037_s25 = sshll.u32 %s2030_s13, 4 }
  0x33   : > { %v176_v1 = vld [vmem:[%s2594_s26 + $0x40] sm:$0xff]  ;;  %v177_v4 = vld [vmem:[%s2594_s26 + $0x48] sm:$0xff]  ;;  %p161_p7 = scmp.lt.s32.totalorder %s2037_s25, 63 }
  0x34   : > { %v2042_v3 = vcombine.high %v168_v0, %v176_v1  ;;  %v2041_v5 = vcombine.low %v168_v0, %v176_v1  ;;  %v184_v6 = vld [vmem:[%s2594_s26 + $0x80] sm:$0xff]  ;;  %v2044_v8 = vcombine.high %v169_v2, %v177_v4  ;;  %v2043_v9 = vcombine.low %v169_v2, %v177_v4  ;;  %v185_v11 = vld [vmem:[%s2594_s26 + $0x88] sm:$0xff] }
  0x35   : > { %v192_v7 = vld [vmem:[%s2594_s26 + $0xc0] sm:$0xff]  ;;  %v193_v12 = vld [vmem:[%s2594_s26 + $0xc8] sm:$0xff]  ;;  %s2915_s25 = smov (!%p161_p7, %s2037_s25), 63 }
  0x36   : > { %v2058_v10 = vcombine.high %v184_v6, %v192_v7  ;;  %v200_v13 = vld [vmem:[%s2594_s26 + $0x100] sm:$0xff]  ;;  %1523 = vmatprep.subr.bf16.mxu0 %v2042_v3  ;;  %v2060_v14 = vcombine.high %v185_v11, %v193_v12  ;;  %v201_v16 = vld [vmem:[%s2594_s26 + $0x108] sm:$0xff]  ;;  %1564 = vmatprep.subr.bf16.mxu1 %v2044_v8  ;;  %v2057_v18 = vcombine.low %v184_v6, %v192_v7  ;;  %s2038_s27 = sshll.u32 %s2915_s25, 3 }
  0x37   : > { %v208_v15 = vld [vmem:[%s2594_s26 + $0x140] sm:$0xff]  ;;  %v209_v17 = vld [vmem:[%s2594_s26 + $0x148] sm:$0xff]  ;;  %1524 = vmatpush1.bf16.msra.mxu0 %v2041_v5  ;;  %1565 = vmatpush1.bf16.msra.mxu1 %v2043_v9  ;;  %v2059_v19 = vcombine.low %v185_v11, %v193_v12  ;;  %s2874_s12 = scalar_lea.vmem %s2907_s2, %s2038_s27 }
  0x38   : > { %1525 = vmatprep.subr.bf16.mxu0 %v2058_v10  ;;  %v2074_v20 = vcombine.high %v200_v13, %v208_v15  ;;  %1566 = vmatprep.subr.bf16.mxu1 %v2060_v14  ;;  %v2076_v21 = vcombine.high %v201_v16, %v209_v17  ;;  %v216_v22 = vld [vmem:[%s2594_s26 + $0x180] sm:$0xff]  ;;  %v217_v24 = vld [vmem:[%s2594_s26 + $0x188] sm:$0xff]  ;;  %v2073_v26 = vcombine.low %v200_v13, %v208_v15 }
  0x39   : > { %v224_v23 = vld [vmem:[%s2594_s26 + $0x1c0] sm:$0xff]  ;;  %v225_v25 = vld [vmem:[%s2594_s26 + $0x1c8] sm:$0xff]  ;;  %v2075_v27 = vcombine.low %v201_v16, %v209_v17 }
  0x3a   : > { %v2090_v28 = vcombine.high %v216_v22, %v224_v23  ;;  %v2092_v29 = vcombine.high %v217_v24, %v225_v25  ;;  %v232_v30 = vld [vmem:[%s2594_s26 + $0x200] sm:$0xff]  ;;  %v233_v32 = vld [vmem:[%s2594_s26 + $0x208] sm:$0xff]  ;;  %v2089_v34 = vcombine.low %v216_v22, %v224_v23  ;;  %v2091_v35 = vcombine.low %v217_v24, %v225_v25 }
  0x3b   : > { %1526 = vmatpush1.bf16.msra.mxu0 %v2057_v18  ;;  %1567 = vmatpush1.bf16.msra.mxu1 %v2059_v19  ;;  %v240_v31 = vld [vmem:[%s2594_s26 + $0x240] sm:$0xff]  ;;  %v241_v33 = vld [vmem:[%s2594_s26 + $0x248] sm:$0xff] }
  0x3c   : > { %1527 = vmatprep.subr.bf16.mxu0 %v2074_v20  ;;  %1568 = vmatprep.subr.bf16.mxu1 %v2076_v21  ;;  %v2106_v36 = vcombine.high %v232_v30, %v240_v31  ;;  %v2108_v37 = vcombine.high %v233_v32, %v241_v33  ;;  %v248_v38 = vld [vmem:[%s2594_s26 + $0x280] sm:$0xff]  ;;  %v249_v40 = vld [vmem:[%s2594_s26 + $0x288] sm:$0xff]  ;;  %v2105_v42 = vcombine.low %v232_v30, %v240_v31 }
  0x3d   : > { %v256_v39 = vld [vmem:[%s2594_s26 + $0x2c0] sm:$0xff]  ;;  %v257_v41 = vld [vmem:[%s2594_s26 + $0x2c8] sm:$0xff]  ;;  %v2107_v43 = vcombine.low %v233_v32, %v241_v33 }
  0x3e   : > { %v2122_v44 = vcombine.high %v248_v38, %v256_v39  ;;  %v2124_v45 = vcombine.high %v249_v40, %v257_v41  ;;  %v264_v46 = vld [vmem:[%s2594_s26 + $0x300] sm:$0xff]  ;;  %v265_v49 = vld [vmem:[%s2594_s26 + $0x308] sm:$0xff]  ;;  %v2121_v52 = vcombine.low %v248_v38, %v256_v39  ;;  %v2123_v53 = vcombine.low %v249_v40, %v257_v41 }
  0x3f   : > { %1528 = vmatpush1.bf16.msra.mxu0 %v2073_v26  ;;  %1569 = vmatpush1.bf16.msra.mxu1 %v2075_v27  ;;  %v272_v47 = vld [vmem:[%s2594_s26 + $0x340] sm:$0xff]  ;;  %v273_v50 = vld [vmem:[%s2594_s26 + $0x348] sm:$0xff] }
  0x40   : > { %1529 = vmatprep.subr.bf16.mxu0 %v2090_v28  ;;  %1570 = vmatprep.subr.bf16.mxu1 %v2092_v29  ;;  %v2629_v48 = vld [vmem:[%s2906_s1] sm:$0xff]  ;;  %v2138_v54 = vcombine.high %v264_v46, %v272_v47  ;;  %v2140_v55 = vcombine.high %v265_v49, %v273_v50  ;;  %v281_v58 = vld [vmem:[%s2594_s26 + $0x388] sm:$0xff]  ;;  %v2137_v60 = vcombine.low %v264_v46, %v272_v47 }
  0x41   : > { %v2635_v51 = vcombine.high %v2629_v48, %v2629_v48  ;;  %v280_v56 = vld [vmem:[%s2594_s26 + $0x380] sm:$0xff]  ;;  %v289_v59 = vld [vmem:[%s2594_s26 + $0x3c8] sm:$0xff]  ;;  %v2139_v61 = vcombine.low %v265_v49, %v273_v50  ;;  %v170_v49 = vld [vmem:[%s2594_s26 + $0x10] sm:$0xff] }
  0x42   : > { %v288_v57 = vld [vmem:[%s2594_s26 + $0x3c0] sm:$0xff]  ;;  %v2156_v63 = vcombine.high %v281_v58, %v289_v59  ;;  %v297_v2 = vld [vmem:[%s2594_s26 + $0x408] sm:$0xff]  ;;  %v2155_v5 = vcombine.low %v281_v58, %v289_v59  ;;  %v178_v50 = vld [vmem:[%s2594_s26 + $0x50] sm:$0xff] }
  0x43   : > { %1530 = vmatpush1.bf16.msra.mxu0 %v2089_v34  ;;  %1571 = vmatpush1.bf16.msra.mxu1 %v2091_v35  ;;  %v2154_v62 = vcombine.high %v280_v56, %v288_v57  ;;  %v296_v0 = vld [vmem:[%s2594_s26 + $0x400] sm:$0xff]  ;;  %v305_v3 = vld [vmem:[%s2594_s26 + $0x448] sm:$0xff]  ;;  %v2153_v4 = vcombine.low %v280_v56, %v288_v57  ;;  %v186_v58 = vld [vmem:[%s2594_s26 + $0x90] sm:$0xff] }
  0x44   : > { %1531 = vmatprep.subr.bf16.mxu0 %v2106_v36  ;;  %1572 = vmatprep.subr.bf16.mxu1 %v2108_v37  ;;  %v304_v1 = vld [vmem:[%s2594_s26 + $0x440] sm:$0xff]  ;;  %v2172_v7 = vcombine.high %v297_v2, %v305_v3  ;;  %v313_v10 = vld [vmem:[%s2594_s26 + $0x488] sm:$0xff]  ;;  %v2171_v13 = vcombine.low %v297_v2, %v305_v3  ;;  %v194_v59 = vld [vmem:[%s2594_s26 + $0xd0] sm:$0xff] }
  0x45   : > { %2266 = vmatprep.mubr.msk.bf16.mxu0 %vm1470_vm0, %v2635_v51  ;;  %2268 = vmatprep.mubr.msk.bf16.mxu1 %vm1470_vm0, %v2635_v51  ;;  %v2170_v6 = vcombine.high %v296_v0, %v304_v1  ;;  %v312_v8 = vld [vmem:[%s2594_s26 + $0x480] sm:$0xff]  ;;  %v321_v11 = vld [vmem:[%s2594_s26 + $0x4c8] sm:$0xff]  ;;  %v2169_v12 = vcombine.low %v296_v0, %v304_v1  ;;  %v2062_v1 = vcombine.high %v186_v58, %v194_v59  ;;  %v202_v3 = vld [vmem:[%s2594_s26 + $0x110] sm:$0xff] }
  0x46   : > { %v320_v9 = vld [vmem:[%s2594_s26 + $0x4c0] sm:$0xff]  ;;  %v2188_v15 = vcombine.high %v313_v10, %v321_v11  ;;  %v329_v18 = vld [vmem:[%s2594_s26 + $0x508] sm:$0xff]  ;;  %v2187_v21 = vcombine.low %v313_v10, %v321_v11  ;;  %v218_v10 = vld [vmem:[%s2594_s26 + $0x190] sm:$0xff] }
  0x47   : > { %1532 = vmatpush1.bf16.msra.mxu0 %v2105_v42  ;;  %1573 = vmatpush1.bf16.msra.mxu1 %v2107_v43  ;;  %v2186_v14 = vcombine.high %v312_v8, %v320_v9  ;;  %v328_v16 = vld [vmem:[%s2594_s26 + $0x500] sm:$0xff]  ;;  %v337_v19 = vld [vmem:[%s2594_s26 + $0x548] sm:$0xff]  ;;  %v2185_v20 = vcombine.low %v312_v8, %v320_v9  ;;  %v226_v11 = vld [vmem:[%s2594_s26 + $0x1d0] sm:$0xff] }
  0x48   : > { %1533 = vmatprep.subr.bf16.mxu0 %v2122_v44  ;;  %1574 = vmatprep.subr.bf16.mxu1 %v2124_v45  ;;  %v336_v17 = vld [vmem:[%s2594_s26 + $0x540] sm:$0xff]  ;;  %v2204_v23 = vcombine.high %v329_v18, %v337_v19  ;;  %v345_v26 = vld [vmem:[%s2594_s26 + $0x588] sm:$0xff]  ;;  %v2203_v29 = vcombine.low %v329_v18, %v337_v19  ;;  %v234_v18 = vld [vmem:[%s2594_s26 + $0x210] sm:$0xff] }
  0x49   : > { %v2202_v22 = vcombine.high %v328_v16, %v336_v17  ;;  %v344_v24 = vld [vmem:[%s2594_s26 + $0x580] sm:$0xff]  ;;  %v353_v27 = vld [vmem:[%s2594_s26 + $0x5c8] sm:$0xff]  ;;  %v2201_v28 = vcombine.low %v328_v16, %v336_v17  ;;  %v2094_v16 = vcombine.high %v218_v10, %v226_v11  ;;  %v242_v19 = vld [vmem:[%s2594_s26 + $0x250] sm:$0xff] }
  0x4a   : > { %v352_v25 = vld [vmem:[%s2594_s26 + $0x5c0] sm:$0xff]  ;;  %v2220_v31 = vcombine.high %v345_v26, %v353_v27  ;;  %v361_v34 = vld [vmem:[%s2594_s26 + $0x608] sm:$0xff]  ;;  %v2219_v37 = vcombine.low %v345_v26, %v353_v27  ;;  %v250_v26 = vld [vmem:[%s2594_s26 + $0x290] sm:$0xff] }
  0x4b   : > { %1534 = vmatpush1.bf16.msra.mxu0 %v2121_v52  ;;  %1575 = vmatpush1.bf16.msra.mxu1 %v2123_v53  ;;  %v2218_v30 = vcombine.high %v344_v24, %v352_v25  ;;  %v360_v32 = vld [vmem:[%s2594_s26 + $0x600] sm:$0xff]  ;;  %v369_v35 = vld [vmem:[%s2594_s26 + $0x648] sm:$0xff]  ;;  %v2217_v36 = vcombine.low %v344_v24, %v352_v25  ;;  %v171_v52 = vld [vmem:[%s2594_s26 + $0x18] sm:$0xff]  ;;  %v2110_v24 = vcombine.high %v234_v18, %v242_v19 }
  0x4c   : > { %1535 = vmatprep.subr.bf16.mxu0 %v2138_v54  ;;  %1576 = vmatprep.subr.bf16.mxu1 %v2140_v55  ;;  %v368_v33 = vld [vmem:[%s2594_s26 + $0x640] sm:$0xff]  ;;  %v2236_v39 = vcombine.high %v361_v34, %v369_v35  ;;  %v377_v41 = vld [vmem:[%s2594_s26 + $0x688] sm:$0xff]  ;;  %v2235_v43 = vcombine.low %v361_v34, %v369_v35  ;;  %v179_v53 = vld [vmem:[%s2594_s26 + $0x58] sm:$0xff]  ;;  %v2046_v55 = vcombine.high %v170_v49, %v178_v50 }
  0x4d   : > { %v2234_v38 = vcombine.high %v360_v32, %v368_v33  ;;  %v376_v40 = vld [vmem:[%s2594_s26 + $0x680] sm:$0xff]  ;;  %v2233_v42 = vcombine.low %v360_v32, %v368_v33  ;;  %v2252_v46 = vcombine.high %v377_v41, %v377_v41  ;;  %v2251_v47 = vcombine.low %v377_v41, %v377_v41  ;;  %v258_v27 = vld [vmem:[%s2594_s26 + $0x2d0] sm:$0xff] }
  0x4e   : > { %v2250_v44 = vcombine.high %v376_v40, %v376_v40  ;;  %v2249_v45 = vcombine.low %v376_v40, %v376_v40  ;;  %v2048_v57 = vcombine.high %v171_v52, %v179_v53  ;;  %v2047_v0 = vcombine.low %v171_v52, %v179_v53  ;;  %v266_v34 = vld [vmem:[%s2594_s26 + $0x310] sm:$0xff] }
  0x4f   : > { %1536 = vmatpush1.bf16.msra.mxu0 %v2137_v60  ;;  %1577 = vmatpush1.bf16.msra.mxu1 %v2139_v61  ;;  %v1482_v56 = vsel %vm1474_vm1, %v2251_v47, 0  ;;  %v2679_v60 = vcombine.low %v2629_v48, %v2629_v48  ;;  %v187_v61 = vld [vmem:[%s2594_s26 + $0x98] sm:$0xff]  ;;  %v2126_v32 = vcombine.high %v250_v26, %v258_v27  ;;  %v274_v35 = vld [vmem:[%s2594_s26 + $0x350] sm:$0xff] }
  0x50   : > { %1537 = vmatprep.subr.bf16.mxu0 %v2154_v62  ;;  %1578 = vmatprep.subr.bf16.mxu1 %v2156_v63  ;;  %v1476_v54 = vsel %vm1474_vm1, %v2249_v45, 0  ;;  %v195_v62 = vld [vmem:[%s2594_s26 + $0xd8] sm:$0xff]  ;;  %v2045_v63 = vcombine.low %v170_v49, %v178_v50  ;;  %v2142_v40 = vcombine.high %v266_v34, %v274_v35  ;;  %v298_v52 = vld [vmem:[%s2594_s26 + $0x410] sm:$0xff] }
  0x51   : > { %v2064_v2 = vcombine.high %v187_v61, %v195_v62  ;;  %v203_v48 = vld [vmem:[%s2594_s26 + $0x118] sm:$0xff]  ;;  %v306_v53 = vld [vmem:[%s2594_s26 + $0x450] sm:$0xff] }
  0x52   : > { %v291_v45 = vld [vmem:[%s2594_s26 + $0x3d8] sm:$0xff] }
  0x53   : > { %1538 = vmatpush1.bf16.msra.mxu0 %v2153_v4  ;;  %1579 = vmatpush1.bf16.msra.mxu1 %v2155_v5  ;;  %v210_v4 = vld [vmem:[%s2594_s26 + $0x150] sm:$0xff]  ;;  %v211_v5 = vld [vmem:[%s2594_s26 + $0x158] sm:$0xff] }
  0x54   : > { %1539 = vmatprep.subr.bf16.mxu0 %v2170_v6  ;;  %1580 = vmatprep.subr.bf16.mxu1 %v2172_v7  ;;  %v2061_v6 = vcombine.low %v186_v58, %v194_v59  ;;  %v2063_v7 = vcombine.low %v187_v61, %v195_v62  ;;  %v2078_v8 = vcombine.high %v202_v3, %v210_v4  ;;  %v314_v61 = vld [vmem:[%s2594_s26 + $0x490] sm:$0xff] }
  0x55   : > { %v2080_v9 = vcombine.high %v203_v48, %v211_v5  ;;  %v2174_v58 = vcombine.high %v298_v52, %v306_v53  ;;  %v322_v62 = vld [vmem:[%s2594_s26 + $0x4d0] sm:$0xff] }
  0x57   : > { %1540 = vmatpush1.bf16.msra.mxu0 %v2169_v12  ;;  %1581 = vmatpush1.bf16.msra.mxu1 %v2171_v13  ;;  %v219_v12 = vld [vmem:[%s2594_s26 + $0x198] sm:$0xff] }
  0x58   : > { %1541 = vmatprep.subr.bf16.mxu0 %v2186_v14  ;;  %1582 = vmatprep.subr.bf16.mxu1 %v2188_v15  ;;  %v227_v13 = vld [vmem:[%s2594_s26 + $0x1d8] sm:$0xff]  ;;  %v2077_v14 = vcombine.low %v202_v3, %v210_v4  ;;  %v2079_v15 = vcombine.low %v203_v48, %v211_v5  ;;  %v2190_v3 = vcombine.high %v314_v61, %v322_v62  ;;  %v330_v48 = vld [vmem:[%s2594_s26 + $0x510] sm:$0xff] }
  0x59   : > { %v2096_v17 = vcombine.high %v219_v12, %v227_v13  ;;  %v338_v5 = vld [vmem:[%s2594_s26 + $0x550] sm:$0xff] }
  0x5b   : > { %1542 = vmatpush1.bf16.msra.mxu0 %v2185_v20  ;;  %1583 = vmatpush1.bf16.msra.mxu1 %v2187_v21  ;;  %v235_v20 = vld [vmem:[%s2594_s26 + $0x218] sm:$0xff] }
  0x5c   : > { %1543 = vmatprep.subr.bf16.mxu0 %v2202_v22  ;;  %1584 = vmatprep.subr.bf16.mxu1 %v2204_v23  ;;  %v243_v21 = vld [vmem:[%s2594_s26 + $0x258] sm:$0xff]  ;;  %v2093_v22 = vcombine.low %v218_v10, %v226_v11  ;;  %v2095_v23 = vcombine.low %v219_v12, %v227_v13  ;;  %v2206_v10 = vcombine.high %v330_v48, %v338_v5  ;;  %v346_v12 = vld [vmem:[%s2594_s26 + $0x590] sm:$0xff] }
  0x5d   : > { %v2112_v25 = vcombine.high %v235_v20, %v243_v21  ;;  %v354_v13 = vld [vmem:[%s2594_s26 + $0x5d0] sm:$0xff] }
  0x5f   : > { %1544 = vmatpush1.bf16.msra.mxu0 %v2201_v28  ;;  %1585 = vmatpush1.bf16.msra.mxu1 %v2203_v29  ;;  %v251_v28 = vld [vmem:[%s2594_s26 + $0x298] sm:$0xff] }
  0x60   : > { %1545 = vmatprep.subr.bf16.mxu0 %v2218_v30  ;;  %1586 = vmatprep.subr.bf16.mxu1 %v2220_v31  ;;  %v259_v29 = vld [vmem:[%s2594_s26 + $0x2d8] sm:$0xff]  ;;  %v2109_v30 = vcombine.low %v234_v18, %v242_v19  ;;  %v2111_v31 = vcombine.low %v235_v20, %v243_v21  ;;  %v2222_v18 = vcombine.high %v346_v12, %v354_v13  ;;  %v362_v20 = vld [vmem:[%s2594_s26 + $0x610] sm:$0xff] }
  0x61   : > { %v2128_v33 = vcombine.high %v251_v28, %v259_v29  ;;  %v370_v21 = vld [vmem:[%s2594_s26 + $0x650] sm:$0xff] }
  0x63   : > { %1546 = vmatpush1.bf16.msra.mxu0 %v2217_v36  ;;  %1587 = vmatpush1.bf16.msra.mxu1 %v2219_v37  ;;  %v267_v36 = vld [vmem:[%s2594_s26 + $0x318] sm:$0xff] }
  0x64   : > { %1547 = vmatprep.subr.bf16.mxu0 %v2234_v38  ;;  %1588 = vmatprep.subr.bf16.mxu1 %v2236_v39  ;;  %v275_v37 = vld [vmem:[%s2594_s26 + $0x358] sm:$0xff]  ;;  %v2125_v38 = vcombine.low %v250_v26, %v258_v27  ;;  %v2127_v39 = vcombine.low %v251_v28, %v259_v29  ;;  %v2238_v26 = vcombine.high %v362_v20, %v370_v21  ;;  %v378_v28 = vld [vmem:[%s2594_s26 + $0x690] sm:$0xff] }
  0x65   : > { %v2144_v41 = vcombine.high %v267_v36, %v275_v37  ;;  %v2143_v47 = vcombine.low %v267_v36, %v275_v37  ;;  %v379_v29 = vld [vmem:[%s2594_s26 + $0x698] sm:$0xff]  ;;  %v172_v36 = vld [vmem:[%s2594_s26 + $0x20] sm:$0xff] }
  0x66   : > { %v180_v37 = vld [vmem:[%s2594_s26 + $0x60] sm:$0xff] }
  0x67   : > { %1548 = vmatpush1.bf16.msra.mxu0 %v2233_v42  ;;  %1589 = vmatpush1.bf16.msra.mxu1 %v2235_v43  ;;  %v282_v42 = vld [vmem:[%s2594_s26 + $0x390] sm:$0xff] }
  0x68   : > { %2265 = vmatprep.subr.msk.bf16.mxu0 %vm1474_vm1, %v2250_v44  ;;  %2267 = vmatprep.subr.msk.bf16.mxu1 %vm1474_vm1, %v2252_v46  ;;  %v290_v43 = vld [vmem:[%s2594_s26 + $0x3d0] sm:$0xff]  ;;  %v283_v44 = vld [vmem:[%s2594_s26 + $0x398] sm:$0xff]  ;;  %v2141_v46 = vcombine.low %v266_v34, %v274_v35  ;;  %v2256_v34 = vcombine.high %v379_v29, %v379_v29  ;;  %v2255_v35 = vcombine.low %v379_v29, %v379_v29 }
  0x69   : > { %v2158_v49 = vcombine.high %v282_v42, %v290_v43  ;;  %v2160_v50 = vcombine.high %v283_v44, %v291_v45 }
  0x6b   : > { %1550 = vmatpush1.bf16.msra.mxu0 %v1476_v54  ;;  %1591 = vmatpush1.bf16.msra.mxu1 %v1482_v56  ;;  %v299_v54 = vld [vmem:[%s2594_s26 + $0x418] sm:$0xff]  ;;  %v2157_v56 = vcombine.low %v282_v42, %v290_v43  ;;  %v1494_v42 = vsel %vm1474_vm1, %v2255_v35, 0 }
  0x6c   : > { %1605 = vmatprep.subr.bf16.mxu0 %v2046_v55  ;;  %1646 = vmatprep.subr.bf16.mxu1 %v2048_v57  ;;  %v307_v55 = vld [vmem:[%s2594_s26 + $0x458] sm:$0xff]  ;;  %v2159_v57 = vcombine.low %v283_v44, %v291_v45  ;;  %v188_v44 = vld [vmem:[%s2594_s26 + $0xa0] sm:$0xff] }
  0x6d   : > { %v2176_v59 = vcombine.high %v299_v54, %v307_v55  ;;  %v196_v45 = vld [vmem:[%s2594_s26 + $0xe0] sm:$0xff] }
  0x6e   : > { %1556 = vmatmul.mubr.bf16.vlgmr.msra.gmra.mrb[0].mxu0 %v2679_v60  ;;  %1597 = vmatmul.mubr.bf16.vlgmr.msra.gmra.mrb[0].mxu1 %v2679_v60 }
  0x6f   : > { %1606 = vmatpush1.bf16.msra.mxu0 %v2045_v63  ;;  %1647 = vmatpush1.bf16.msra.mxu1 %v2047_v0  ;;  %v315_v63 = vld [vmem:[%s2594_s26 + $0x498] sm:$0xff] }
  0x70   : > { %1607 = vmatprep.subr.bf16.mxu0 %v2062_v1  ;;  %1648 = vmatprep.subr.bf16.mxu1 %v2064_v2  ;;  %v323_v0 = vld [vmem:[%s2594_s26 + $0x4d8] sm:$0xff]  ;;  %v2173_v1 = vcombine.low %v298_v52, %v306_v53  ;;  %v2175_v2 = vcombine.low %v299_v54, %v307_v55  ;;  %v2066_v52 = vcombine.high %v188_v44, %v196_v45  ;;  %v204_v54 = vld [vmem:[%s2594_s26 + $0x120] sm:$0xff] }
  0x71   : > { %2270 = vmatprep.mubr.msk.bf16.mxu0 %vm1470_vm0, %v2635_v51  ;;  %2272 = vmatprep.mubr.msk.bf16.mxu1 %vm1470_vm0, %v2635_v51  ;;  %v2192_v4 = vcombine.high %v315_v63, %v323_v0  ;;  %v212_v55 = vld [vmem:[%s2594_s26 + $0x160] sm:$0xff] }
  0x73   : > { %1608 = vmatpush1.bf16.msra.mxu0 %v2061_v6  ;;  %1649 = vmatpush1.bf16.msra.mxu1 %v2063_v7  ;;  %v331_v6 = vld [vmem:[%s2594_s26 + $0x518] sm:$0xff] }
  0x74   : > { %1609 = vmatprep.subr.bf16.mxu0 %v2078_v8  ;;  %1650 = vmatprep.subr.bf16.mxu1 %v2080_v9  ;;  %v339_v7 = vld [vmem:[%s2594_s26 + $0x558] sm:$0xff]  ;;  %v2189_v8 = vcombine.low %v314_v61, %v322_v62  ;;  %v2191_v9 = vcombine.low %v315_v63, %v323_v0  ;;  %v2082_v61 = vcombine.high %v204_v54, %v212_v55  ;;  %v220_v63 = vld [vmem:[%s2594_s26 + $0x1a0] sm:$0xff] }
  0x75   : > { %v2208_v11 = vcombine.high %v331_v6, %v339_v7  ;;  %v228_v0 = vld [vmem:[%s2594_s26 + $0x1e0] sm:$0xff] }
  0x77   : > { %1610 = vmatpush1.bf16.msra.mxu0 %v2077_v14  ;;  %1651 = vmatpush1.bf16.msra.mxu1 %v2079_v15  ;;  %v347_v14 = vld [vmem:[%s2594_s26 + $0x598] sm:$0xff] }
  0x78   : > { %1611 = vmatprep.subr.bf16.mxu0 %v2094_v16  ;;  %1652 = vmatprep.subr.bf16.mxu1 %v2096_v17  ;;  %v355_v15 = vld [vmem:[%s2594_s26 + $0x5d8] sm:$0xff]  ;;  %v2205_v16 = vcombine.low %v330_v48, %v338_v5  ;;  %v2207_v17 = vcombine.low %v331_v6, %v339_v7  ;;  %v2098_v48 = vcombine.high %v220_v63, %v228_v0  ;;  %v236_v6 = vld [vmem:[%s2594_s26 + $0x220] sm:$0xff] }
  0x79   : > { %v2224_v19 = vcombine.high %v347_v14, %v355_v15  ;;  %v244_v7 = vld [vmem:[%s2594_s26 + $0x260] sm:$0xff] }
  0x7b   : > { %1612 = vmatpush1.bf16.msra.mxu0 %v2093_v22  ;;  %1653 = vmatpush1.bf16.msra.mxu1 %v2095_v23  ;;  %v363_v22 = vld [vmem:[%s2594_s26 + $0x618] sm:$0xff] }
  0x7c   : > { %1613 = vmatprep.subr.bf16.mxu0 %v2110_v24  ;;  %1654 = vmatprep.subr.bf16.mxu1 %v2112_v25  ;;  %v371_v23 = vld [vmem:[%s2594_s26 + $0x658] sm:$0xff]  ;;  %v2221_v24 = vcombine.low %v346_v12, %v354_v13  ;;  %v2223_v25 = vcombine.low %v347_v14, %v355_v15  ;;  %v2114_v12 = vcombine.high %v236_v6, %v244_v7  ;;  %v252_v14 = vld [vmem:[%s2594_s26 + $0x2a0] sm:$0xff] }
  0x7d   : > { %v2240_v27 = vcombine.high %v363_v22, %v371_v23  ;;  %v260_v15 = vld [vmem:[%s2594_s26 + $0x2e0] sm:$0xff] }
  0x7f   : > { %1614 = vmatpush1.bf16.msra.mxu0 %v2109_v30  ;;  %1655 = vmatpush1.bf16.msra.mxu1 %v2111_v31  ;;  %v2237_v30 = vcombine.low %v362_v20, %v370_v21  ;;  %v2239_v31 = vcombine.low %v363_v22, %v371_v23  ;;  %v2130_v20 = vcombine.high %v252_v14, %v260_v15  ;;  %v268_v22 = vld [vmem:[%s2594_s26 + $0x320] sm:$0xff] }
  0x80   : > { %1615 = vmatprep.subr.bf16.mxu0 %v2126_v32  ;;  %1656 = vmatprep.subr.bf16.mxu1 %v2128_v33  ;;  %v2254_v32 = vcombine.high %v378_v28, %v378_v28  ;;  %v2253_v33 = vcombine.low %v378_v28, %v378_v28  ;;  %v276_v23 = vld [vmem:[%s2594_s26 + $0x360] sm:$0xff] }
  0x81   : > { %v2146_v28 = vcombine.high %v268_v22, %v276_v23 }
  0x83   : > { %1616 = vmatpush1.bf16.msra.mxu0 %v2125_v38  ;;  %1657 = vmatpush1.bf16.msra.mxu1 %v2127_v39  ;;  %v173_v38 = vld [vmem:[%s2594_s26 + $0x28] sm:$0xff] }
  0x84   : > { %1617 = vmatprep.subr.bf16.mxu0 %v2142_v40  ;;  %1658 = vmatprep.subr.bf16.mxu1 %v2144_v41  ;;  %v181_v39 = vld [vmem:[%s2594_s26 + $0x68] sm:$0xff]  ;;  %v1488_v40 = vsel %vm1474_vm1, %v2253_v33, 0  ;;  %v2050_v41 = vcombine.high %v172_v36, %v180_v37 }
  0x85   : > { %v2052_v43 = vcombine.high %v173_v38, %v181_v39  ;;  %v293_v33 = vld [vmem:[%s2594_s26 + $0x3e8] sm:$0xff] }
  0x87   : > { %1618 = vmatpush1.bf16.msra.mxu0 %v2141_v46  ;;  %1659 = vmatpush1.bf16.msra.mxu1 %v2143_v47  ;;  %v189_v46 = vld [vmem:[%s2594_s26 + $0xa8] sm:$0xff] }
  0x88   : > { %1619 = vmatprep.subr.bf16.mxu0 %v2158_v49  ;;  %1660 = vmatprep.subr.bf16.mxu1 %v2160_v50  ;;  %v197_v47 = vld [vmem:[%s2594_s26 + $0xe8] sm:$0xff]  ;;  %v2049_v49 = vcombine.low %v172_v36, %v180_v37  ;;  %v2051_v50 = vcombine.low %v173_v38, %v181_v39  ;;  %v300_v38 = vld [vmem:[%s2594_s26 + $0x420] sm:$0xff] }
  0x89   : > { %v2068_v53 = vcombine.high %v189_v46, %v197_v47  ;;  %v308_v39 = vld [vmem:[%s2594_s26 + $0x460] sm:$0xff] }
  0x8b   : > { %1620 = vmatpush1.bf16.msra.mxu0 %v2157_v56  ;;  %1661 = vmatpush1.bf16.msra.mxu1 %v2159_v57  ;;  %v205_v56 = vld [vmem:[%s2594_s26 + $0x128] sm:$0xff] }
  0x8c   : > { %1621 = vmatprep.subr.bf16.mxu0 %v2174_v58  ;;  %1662 = vmatprep.subr.bf16.mxu1 %v2176_v59  ;;  %v213_v57 = vld [vmem:[%s2594_s26 + $0x168] sm:$0xff]  ;;  %v2065_v58 = vcombine.low %v188_v44, %v196_v45  ;;  %v2067_v59 = vcombine.low %v189_v46, %v197_v47  ;;  %v2178_v44 = vcombine.high %v300_v38, %v308_v39  ;;  %v316_v46 = vld [vmem:[%s2594_s26 + $0x4a0] sm:$0xff] }
  0x8d   : > { %v2084_v62 = vcombine.high %v205_v56, %v213_v57  ;;  %v324_v47 = vld [vmem:[%s2594_s26 + $0x4e0] sm:$0xff] }
  0x8f   : > { %1622 = vmatpush1.bf16.msra.mxu0 %v2173_v1  ;;  %1663 = vmatpush1.bf16.msra.mxu1 %v2175_v2  ;;  %v221_v1 = vld [vmem:[%s2594_s26 + $0x1a8] sm:$0xff] }
  0x90   : > { %1623 = vmatprep.subr.bf16.mxu0 %v2190_v3  ;;  %1664 = vmatprep.subr.bf16.mxu1 %v2192_v4  ;;  %v229_v2 = vld [vmem:[%s2594_s26 + $0x1e8] sm:$0xff]  ;;  %v2081_v3 = vcombine.low %v204_v54, %v212_v55  ;;  %v2083_v4 = vcombine.low %v205_v56, %v213_v57  ;;  %v2194_v54 = vcombine.high %v316_v46, %v324_v47  ;;  %v332_v56 = vld [vmem:[%s2594_s26 + $0x520] sm:$0xff] }
  0x91   : > { %v2100_v5 = vcombine.high %v221_v1, %v229_v2  ;;  %v340_v57 = vld [vmem:[%s2594_s26 + $0x560] sm:$0xff] }
  0x93   : > { %1624 = vmatpush1.bf16.msra.mxu0 %v2189_v8  ;;  %1665 = vmatpush1.bf16.msra.mxu1 %v2191_v9  ;;  %v237_v8 = vld [vmem:[%s2594_s26 + $0x228] sm:$0xff] }
  0x94   : > { %1625 = vmatprep.subr.bf16.mxu0 %v2206_v10  ;;  %1666 = vmatprep.subr.bf16.mxu1 %v2208_v11  ;;  %v245_v9 = vld [vmem:[%s2594_s26 + $0x268] sm:$0xff]  ;;  %v2097_v10 = vcombine.low %v220_v63, %v228_v0  ;;  %v2099_v11 = vcombine.low %v221_v1, %v229_v2  ;;  %v2210_v63 = vcombine.high %v332_v56, %v340_v57  ;;  %v348_v1 = vld [vmem:[%s2594_s26 + $0x5a0] sm:$0xff] }
  0x95   : > { %v2116_v13 = vcombine.high %v237_v8, %v245_v9  ;;  %v356_v2 = vld [vmem:[%s2594_s26 + $0x5e0] sm:$0xff] }
  0x97   : > { %1626 = vmatpush1.bf16.msra.mxu0 %v2205_v16  ;;  %1667 = vmatpush1.bf16.msra.mxu1 %v2207_v17  ;;  %v253_v16 = vld [vmem:[%s2594_s26 + $0x2a8] sm:$0xff] }
  0x98   : > { %1627 = vmatprep.subr.bf16.mxu0 %v2222_v18  ;;  %1668 = vmatprep.subr.bf16.mxu1 %v2224_v19  ;;  %v261_v17 = vld [vmem:[%s2594_s26 + $0x2e8] sm:$0xff]  ;;  %v2113_v18 = vcombine.low %v236_v6, %v244_v7  ;;  %v2115_v19 = vcombine.low %v237_v8, %v245_v9  ;;  %v2226_v6 = vcombine.high %v348_v1, %v356_v2  ;;  %v364_v8 = vld [vmem:[%s2594_s26 + $0x620] sm:$0xff] }
  0x99   : > { %v2132_v21 = vcombine.high %v253_v16, %v261_v17  ;;  %v372_v9 = vld [vmem:[%s2594_s26 + $0x660] sm:$0xff] }
  0x9b   : > { %1628 = vmatpush1.bf16.msra.mxu0 %v2221_v24  ;;  %1669 = vmatpush1.bf16.msra.mxu1 %v2223_v25  ;;  %v269_v24 = vld [vmem:[%s2594_s26 + $0x328] sm:$0xff] }
  0x9c   : > { %1629 = vmatprep.subr.bf16.mxu0 %v2238_v26  ;;  %1670 = vmatprep.subr.bf16.mxu1 %v2240_v27  ;;  %v277_v25 = vld [vmem:[%s2594_s26 + $0x368] sm:$0xff]  ;;  %v2129_v26 = vcombine.low %v252_v14, %v260_v15  ;;  %v2131_v27 = vcombine.low %v253_v16, %v261_v17  ;;  %v2242_v14 = vcombine.high %v364_v8, %v372_v9  ;;  %v380_v16 = vld [vmem:[%s2594_s26 + $0x6a0] sm:$0xff] }
  0x9d   : > { %v2148_v29 = vcombine.high %v269_v24, %v277_v25  ;;  %v2147_v35 = vcombine.low %v269_v24, %v277_v25  ;;  %v381_v17 = vld [vmem:[%s2594_s26 + $0x6a8] sm:$0xff]  ;;  %v174_v24 = vld [vmem:[%s2594_s26 + $0x30] sm:$0xff] }
  0x9e   : > { %v182_v25 = vld [vmem:[%s2594_s26 + $0x70] sm:$0xff] }
  0x9f   : > { %1630 = vmatpush1.bf16.msra.mxu0 %v2237_v30  ;;  %1671 = vmatpush1.bf16.msra.mxu1 %v2239_v31  ;;  %v284_v30 = vld [vmem:[%s2594_s26 + $0x3a0] sm:$0xff] }
  0xa0   : > { %2269 = vmatprep.subr.msk.bf16.mxu0 %vm1474_vm1, %v2254_v32  ;;  %2271 = vmatprep.subr.msk.bf16.mxu1 %vm1474_vm1, %v2256_v34  ;;  %v292_v31 = vld [vmem:[%s2594_s26 + $0x3e0] sm:$0xff]  ;;  %v285_v32 = vld [vmem:[%s2594_s26 + $0x3a8] sm:$0xff]  ;;  %v2145_v34 = vcombine.low %v268_v22, %v276_v23  ;;  %v2260_v22 = vcombine.high %v381_v17, %v381_v17  ;;  %v2259_v23 = vcombine.low %v381_v17, %v381_v17  ;;  %v286_v17 = vld [vmem:[%s2594_s26 + $0x3b0] sm:$0xff] }
  0xa1   : > { %v2162_v36 = vcombine.high %v284_v30, %v292_v31  ;;  %v2164_v37 = vcombine.high %v285_v32, %v293_v33 }
  0xa3   : > { %1632 = vmatpush1.bf16.msra.mxu0 %v1488_v40  ;;  %1673 = vmatpush1.bf16.msra.mxu1 %v1494_v42  ;;  %v301_v40 = vld [vmem:[%s2594_s26 + $0x428] sm:$0xff]  ;;  %v2161_v42 = vcombine.low %v284_v30, %v292_v31  ;;  %v1506_v30 = vsel %vm1474_vm1, %v2259_v23, 0 }
  0xa4   : > { %1687 = vmatprep.subr.bf16.mxu0 %v2050_v41  ;;  %1728 = vmatprep.subr.bf16.mxu1 %v2052_v43  ;;  %v309_v41 = vld [vmem:[%s2594_s26 + $0x468] sm:$0xff]  ;;  %v2163_v43 = vcombine.low %v285_v32, %v293_v33  ;;  %v190_v32 = vld [vmem:[%s2594_s26 + $0xb0] sm:$0xff] }
  0xa5   : > { %v2180_v45 = vcombine.high %v301_v40, %v309_v41  ;;  %v198_v33 = vld [vmem:[%s2594_s26 + $0xf0] sm:$0xff] }
  0xa6   : > { %1638 = vmatmul.mubr.bf16.vlgmr.msra.gmra.mrb[4].mxu0 %v2679_v60  ;;  %1679 = vmatmul.mubr.bf16.vlgmr.msra.gmra.mrb[4].mxu1 %v2679_v60 }
  0xa7   : > { %1688 = vmatpush1.bf16.msra.mxu0 %v2049_v49  ;;  %1729 = vmatpush1.bf16.msra.mxu1 %v2051_v50  ;;  %v317_v49 = vld [vmem:[%s2594_s26 + $0x4a8] sm:$0xff] }
  0xa8   : > { %1689 = vmatprep.subr.bf16.mxu0 %v2066_v52  ;;  %1730 = vmatprep.subr.bf16.mxu1 %v2068_v53  ;;  %v325_v50 = vld [vmem:[%s2594_s26 + $0x4e8] sm:$0xff]  ;;  %v2177_v52 = vcombine.low %v300_v38, %v308_v39  ;;  %v2179_v53 = vcombine.low %v301_v40, %v309_v41  ;;  %v2070_v38 = vcombine.high %v190_v32, %v198_v33  ;;  %v206_v40 = vld [vmem:[%s2594_s26 + $0x130] sm:$0xff] }
  0xa9   : > { %2274 = vmatprep.mubr.msk.bf16.mxu0 %vm1470_vm0, %v2635_v51  ;;  %2276 = vmatprep.mubr.msk.bf16.mxu1 %vm1470_vm0, %v2635_v51  ;;  %v2196_v55 = vcombine.high %v317_v49, %v325_v50  ;;  %v214_v41 = vld [vmem:[%s2594_s26 + $0x170] sm:$0xff] }
  0xab   : > { %1690 = vmatpush1.bf16.msra.mxu0 %v2065_v58  ;;  %1731 = vmatpush1.bf16.msra.mxu1 %v2067_v59  ;;  %v333_v58 = vld [vmem:[%s2594_s26 + $0x528] sm:$0xff] }
  0xac   : > { %1691 = vmatprep.subr.bf16.mxu0 %v2082_v61  ;;  %1732 = vmatprep.subr.bf16.mxu1 %v2084_v62  ;;  %v341_v59 = vld [vmem:[%s2594_s26 + $0x568] sm:$0xff]  ;;  %v2193_v61 = vcombine.low %v316_v46, %v324_v47  ;;  %v2195_v62 = vcombine.low %v317_v49, %v325_v50  ;;  %v2086_v46 = vcombine.high %v206_v40, %v214_v41  ;;  %v222_v49 = vld [vmem:[%s2594_s26 + $0x1b0] sm:$0xff] }
  0xad   : > { %v2212_v0 = vcombine.high %v333_v58, %v341_v59  ;;  %v230_v50 = vld [vmem:[%s2594_s26 + $0x1f0] sm:$0xff] }
  0xaf   : > { %1692 = vmatpush1.bf16.msra.mxu0 %v2081_v3  ;;  %1733 = vmatpush1.bf16.msra.mxu1 %v2083_v4  ;;  %v349_v3 = vld [vmem:[%s2594_s26 + $0x5a8] sm:$0xff] }
  0xb0   : > { %1693 = vmatprep.subr.bf16.mxu0 %v2098_v48  ;;  %1734 = vmatprep.subr.bf16.mxu1 %v2100_v5  ;;  %v357_v4 = vld [vmem:[%s2594_s26 + $0x5e8] sm:$0xff]  ;;  %v2209_v48 = vcombine.low %v332_v56, %v340_v57  ;;  %v2211_v5 = vcombine.low %v333_v58, %v341_v59  ;;  %v2102_v56 = vcombine.high %v222_v49, %v230_v50  ;;  %v238_v58 = vld [vmem:[%s2594_s26 + $0x230] sm:$0xff] }
  0xb1   : > { %v2228_v7 = vcombine.high %v349_v3, %v357_v4  ;;  %v246_v59 = vld [vmem:[%s2594_s26 + $0x270] sm:$0xff] }
  0xb3   : > { %1694 = vmatpush1.bf16.msra.mxu0 %v2097_v10  ;;  %1735 = vmatpush1.bf16.msra.mxu1 %v2099_v11  ;;  %v365_v10 = vld [vmem:[%s2594_s26 + $0x628] sm:$0xff] }
  0xb4   : > { %1695 = vmatprep.subr.bf16.mxu0 %v2114_v12  ;;  %1736 = vmatprep.subr.bf16.mxu1 %v2116_v13  ;;  %v373_v11 = vld [vmem:[%s2594_s26 + $0x668] sm:$0xff]  ;;  %v2225_v12 = vcombine.low %v348_v1, %v356_v2  ;;  %v2227_v13 = vcombine.low %v349_v3, %v357_v4  ;;  %v254_v2 = vld [vmem:[%s2594_s26 + $0x2b0] sm:$0xff]  ;;  %v255_v4 = vld [vmem:[%s2594_s26 + $0x2b8] sm:$0xff] }
  0xb5   : > { %v2244_v15 = vcombine.high %v365_v10, %v373_v11  ;;  %v262_v3 = vld [vmem:[%s2594_s26 + $0x2f0] sm:$0xff] }
  0xb7   : > { %1696 = vmatpush1.bf16.msra.mxu0 %v2113_v18  ;;  %1737 = vmatpush1.bf16.msra.mxu1 %v2115_v19  ;;  %v2241_v18 = vcombine.low %v364_v8, %v372_v9  ;;  %v2243_v19 = vcombine.low %v365_v10, %v373_v11  ;;  %v270_v9 = vld [vmem:[%s2594_s26 + $0x330] sm:$0xff]  ;;  %v271_v11 = vld [vmem:[%s2594_s26 + $0x338] sm:$0xff] }
  0xb8   : > { %1697 = vmatprep.subr.bf16.mxu0 %v2130_v20  ;;  %1738 = vmatprep.subr.bf16.mxu1 %v2132_v21  ;;  %v2258_v20 = vcombine.high %v380_v16, %v380_v16  ;;  %v2257_v21 = vcombine.low %v380_v16, %v380_v16  ;;  %v278_v10 = vld [vmem:[%s2594_s26 + $0x370] sm:$0xff] }
  0xbb   : > { %1698 = vmatpush1.bf16.msra.mxu0 %v2129_v26  ;;  %1739 = vmatpush1.bf16.msra.mxu1 %v2131_v27  ;;  %v175_v26 = vld [vmem:[%s2594_s26 + $0x38] sm:$0xff] }
  0xbc   : > { %1699 = vmatprep.subr.bf16.mxu0 %v2146_v28  ;;  %1740 = vmatprep.subr.bf16.mxu1 %v2148_v29  ;;  %v183_v27 = vld [vmem:[%s2594_s26 + $0x78] sm:$0xff]  ;;  %v1500_v28 = vsel %vm1474_vm1, %v2257_v21, 0  ;;  %v2054_v29 = vcombine.high %v174_v24, %v182_v25  ;;  %v2149_v21 = vcombine.low %v270_v9, %v278_v10 }
  0xbd   : > { %v2056_v31 = vcombine.high %v175_v26, %v183_v27 }
  0xbf   : > { %1700 = vmatpush1.bf16.msra.mxu0 %v2145_v34  ;;  %1741 = vmatpush1.bf16.msra.mxu1 %v2147_v35  ;;  %v191_v34 = vld [vmem:[%s2594_s26 + $0xb8] sm:$0xff] }
  0xc0   : > { %1701 = vmatprep.subr.bf16.mxu0 %v2162_v36  ;;  %1742 = vmatprep.subr.bf16.mxu1 %v2164_v37  ;;  %v199_v35 = vld [vmem:[%s2594_s26 + $0xf8] sm:$0xff]  ;;  %v2053_v36 = vcombine.low %v174_v24, %v182_v25  ;;  %v2055_v37 = vcombine.low %v175_v26, %v183_v27  ;;  %v302_v25 = vld [vmem:[%s2594_s26 + $0x430] sm:$0xff] }
  0xc1   : > { %v2072_v39 = vcombine.high %v191_v34, %v199_v35  ;;  %v310_v26 = vld [vmem:[%s2594_s26 + $0x470] sm:$0xff]  ;;  %v303_v27 = vld [vmem:[%s2594_s26 + $0x438] sm:$0xff] }
  0xc3   : > { %1702 = vmatpush1.bf16.msra.mxu0 %v2161_v42  ;;  %1743 = vmatpush1.bf16.msra.mxu1 %v2163_v43  ;;  %v207_v42 = vld [vmem:[%s2594_s26 + $0x138] sm:$0xff] }
  0xc4   : > { %1703 = vmatprep.subr.bf16.mxu0 %v2178_v44  ;;  %1744 = vmatprep.subr.bf16.mxu1 %v2180_v45  ;;  %v215_v43 = vld [vmem:[%s2594_s26 + $0x178] sm:$0xff]  ;;  %v2069_v44 = vcombine.low %v190_v32, %v198_v33  ;;  %v2071_v45 = vcombine.low %v191_v34, %v199_v35  ;;  %v318_v33 = vld [vmem:[%s2594_s26 + $0x4b0] sm:$0xff] }
  0xc5   : > { %v2088_v47 = vcombine.high %v207_v42, %v215_v43  ;;  %v326_v34 = vld [vmem:[%s2594_s26 + $0x4f0] sm:$0xff]  ;;  %v319_v35 = vld [vmem:[%s2594_s26 + $0x4b8] sm:$0xff] }
  0xc7   : > { %1704 = vmatpush1.bf16.msra.mxu0 %v2177_v52  ;;  %1745 = vmatpush1.bf16.msra.mxu1 %v2179_v53  ;;  %v223_v52 = vld [vmem:[%s2594_s26 + $0x1b8] sm:$0xff] }
  0xc8   : > { %1705 = vmatprep.subr.bf16.mxu0 %v2194_v54  ;;  %1746 = vmatprep.subr.bf16.mxu1 %v2196_v55  ;;  %v231_v53 = vld [vmem:[%s2594_s26 + $0x1f8] sm:$0xff]  ;;  %v2085_v54 = vcombine.low %v206_v40, %v214_v41  ;;  %v2087_v55 = vcombine.low %v207_v42, %v215_v43  ;;  %v334_v41 = vld [vmem:[%s2594_s26 + $0x530] sm:$0xff] }
  0xc9   : > { %v2104_v57 = vcombine.high %v223_v52, %v231_v53  ;;  %v342_v42 = vld [vmem:[%s2594_s26 + $0x570] sm:$0xff]  ;;  %v335_v43 = vld [vmem:[%s2594_s26 + $0x538] sm:$0xff] }
  0xcb   : > { %1706 = vmatpush1.bf16.msra.mxu0 %v2193_v61  ;;  %1747 = vmatpush1.bf16.msra.mxu1 %v2195_v62  ;;  %v239_v61 = vld [vmem:[%s2594_s26 + $0x238] sm:$0xff] }
  0xcc   : > { %1707 = vmatprep.subr.bf16.mxu0 %v2210_v63  ;;  %1748 = vmatprep.subr.bf16.mxu1 %v2212_v0  ;;  %v247_v62 = vld [vmem:[%s2594_s26 + $0x278] sm:$0xff]  ;;  %v2101_v63 = vcombine.low %v222_v49, %v230_v50  ;;  %v2118_v0 = vcombine.high %v238_v58, %v246_v59  ;;  %v350_v50 = vld [vmem:[%s2594_s26 + $0x5b0] sm:$0xff] }
  0xcd   : > { %v2120_v1 = vcombine.high %v239_v61, %v247_v62 }
  0xcf   : > { %1708 = vmatpush1.bf16.msra.mxu0 %v2209_v48  ;;  %1749 = vmatpush1.bf16.msra.mxu1 %v2211_v5  ;;  %v263_v48 = vld [vmem:[%s2594_s26 + $0x2f8] sm:$0xff]  ;;  %v2117_v5 = vcombine.low %v238_v58, %v246_v59  ;;  %v366_v59 = vld [vmem:[%s2594_s26 + $0x630] sm:$0xff] }
  0xd0   : > { %1709 = vmatprep.subr.bf16.mxu0 %v2226_v6  ;;  %1750 = vmatprep.subr.bf16.mxu1 %v2228_v7  ;;  %v2119_v6 = vcombine.low %v239_v61, %v247_v62  ;;  %v2134_v7 = vcombine.high %v254_v2, %v262_v3  ;;  %v2136_v8 = vcombine.high %v255_v4, %v263_v48  ;;  %v374_v61 = vld [vmem:[%s2594_s26 + $0x670] sm:$0xff]  ;;  %v367_v62 = vld [vmem:[%s2594_s26 + $0x638] sm:$0xff] }
  0xd3   : > { %1710 = vmatpush1.bf16.msra.mxu0 %v2225_v12  ;;  %1751 = vmatpush1.bf16.msra.mxu1 %v2227_v13  ;;  %v279_v12 = vld [vmem:[%s2594_s26 + $0x378] sm:$0xff]  ;;  %v2133_v13 = vcombine.low %v254_v2, %v262_v3  ;;  %v382_v3 = vld [vmem:[%s2594_s26 + $0x6b0] sm:$0xff] }
  0xd4   : > { %1711 = vmatprep.subr.bf16.mxu0 %v2242_v14  ;;  %1752 = vmatprep.subr.bf16.mxu1 %v2244_v15  ;;  %v2135_v14 = vcombine.low %v255_v4, %v263_v48  ;;  %v2150_v15 = vcombine.high %v270_v9, %v278_v10  ;;  %v2152_v16 = vcombine.high %v271_v11, %v279_v12  ;;  %v383_v4 = vld [vmem:[%s2594_s26 + $0x6b8] sm:$0xff] }
  0xd5   : > { %v2245_v48 = vcombine.low %v366_v59, %v374_v61  ;;  %v2263_v9 = vcombine.low %v383_v4, %v383_v4 }
  0xd7   : > { %1712 = vmatpush1.bf16.msra.mxu0 %v2241_v18  ;;  %1753 = vmatpush1.bf16.msra.mxu1 %v2243_v19  ;;  %v294_v18 = vld [vmem:[%s2594_s26 + $0x3f0] sm:$0xff]  ;;  %v287_v19 = vld [vmem:[%s2594_s26 + $0x3b8] sm:$0xff] }
  0xd8   : > { %2273 = vmatprep.subr.msk.bf16.mxu0 %vm1474_vm1, %v2258_v20  ;;  %2275 = vmatprep.subr.msk.bf16.mxu1 %vm1474_vm1, %v2260_v22  ;;  %v295_v20 = vld [vmem:[%s2594_s26 + $0x3f8] sm:$0xff]  ;;  %v2151_v22 = vcombine.low %v271_v11, %v279_v12  ;;  %v2166_v23 = vcombine.high %v286_v17, %v294_v18  ;;  %v1518_v11 = vsel %vm1474_vm1, %v2263_v9, 0 }
  0xd9   : > { %v2168_v24 = vcombine.high %v287_v19, %v295_v20 }
  0xdb   : > { %1714 = vmatpush1.bf16.msra.mxu0 %v1500_v28  ;;  %1755 = vmatpush1.bf16.msra.mxu1 %v1506_v30  ;;  %v311_v28 = vld [vmem:[%s2594_s26 + $0x478] sm:$0xff]  ;;  %v2167_v30 = vcombine.low %v287_v19, %v295_v20 }
  0xdc   : > { %1769 = vmatprep.subr.bf16.mxu0 %v2054_v29  ;;  %1810 = vmatprep.subr.bf16.mxu1 %v2056_v31  ;;  %v2165_v29 = vcombine.low %v286_v17, %v294_v18  ;;  %v2182_v31 = vcombine.high %v302_v25, %v310_v26  ;;  %v2184_v32 = vcombine.high %v303_v27, %v311_v28 }
  0xde   : > { %1720 = vmatmul.mubr.bf16.vlgmr.msra.gmra.mrb[8].mxu0 %v2679_v60  ;;  %1761 = vmatmul.mubr.bf16.vlgmr.msra.gmra.mrb[8].mxu1 %v2679_v60 }
  0xdf   : > { %1770 = vmatpush1.bf16.msra.mxu0 %v2053_v36  ;;  %1811 = vmatpush1.bf16.msra.mxu1 %v2055_v37  ;;  %v327_v36 = vld [vmem:[%s2594_s26 + $0x4f8] sm:$0xff]  ;;  %v2181_v37 = vcombine.low %v302_v25, %v310_v26 }
  0xe0   : > { %1771 = vmatprep.subr.bf16.mxu0 %v2070_v38  ;;  %1812 = vmatprep.subr.bf16.mxu1 %v2072_v39  ;;  %v2183_v38 = vcombine.low %v303_v27, %v311_v28  ;;  %v2198_v39 = vcombine.high %v318_v33, %v326_v34  ;;  %v2200_v40 = vcombine.high %v319_v35, %v327_v36 }
  0xe1   : > { %2278 = vmatprep.mubr.msk.bf16.mxu0 %vm1470_vm0, %v2635_v51  ;;  %2280 = vmatprep.mubr.msk.bf16.mxu1 %vm1470_vm0, %v2635_v51  ;;  %v2103_v51 = vcombine.low %v223_v52, %v231_v53  ;;  %v358_v52 = vld [vmem:[%s2594_s26 + $0x5f0] sm:$0xff]  ;;  %v351_v53 = vld [vmem:[%s2594_s26 + $0x5b8] sm:$0xff] }
  0xe3   : > { %1772 = vmatpush1.bf16.msra.mxu0 %v2069_v44  ;;  %1813 = vmatpush1.bf16.msra.mxu1 %v2071_v45  ;;  %v343_v44 = vld [vmem:[%s2594_s26 + $0x578] sm:$0xff]  ;;  %v2197_v45 = vcombine.low %v318_v33, %v326_v34 }
  0xe4   : > { %1773 = vmatprep.subr.bf16.mxu0 %v2086_v46  ;;  %1814 = vmatprep.subr.bf16.mxu1 %v2088_v47  ;;  %v2199_v46 = vcombine.low %v319_v35, %v327_v36  ;;  %v2214_v47 = vcombine.high %v334_v41, %v342_v42  ;;  %v2216_v49 = vcombine.high %v335_v43, %v343_v44 }
  0xe7   : > { %1774 = vmatpush1.bf16.msra.mxu0 %v2085_v54  ;;  %1815 = vmatpush1.bf16.msra.mxu1 %v2087_v55  ;;  %v359_v54 = vld [vmem:[%s2594_s26 + $0x5f8] sm:$0xff]  ;;  %v2213_v55 = vcombine.low %v334_v41, %v342_v42 }
  0xe8   : > { %1775 = vmatprep.subr.bf16.mxu0 %v2102_v56  ;;  %1816 = vmatprep.subr.bf16.mxu1 %v2104_v57  ;;  %v2215_v56 = vcombine.low %v335_v43, %v343_v44  ;;  %v2230_v57 = vcombine.high %v350_v50, %v358_v52  ;;  %v2232_v58 = vcombine.high %v351_v53, %v359_v54 }
  0xeb   : > { %1776 = vmatpush1.bf16.msra.mxu0 %v2101_v63  ;;  %1817 = vmatpush1.bf16.msra.mxu1 %v2103_v51  ;;  %v375_v63 = vld [vmem:[%s2594_s26 + $0x678] sm:$0xff]  ;;  %v2229_v51 = vcombine.low %v350_v50, %v358_v52 }
  0xec   : > { %1777 = vmatprep.subr.bf16.mxu0 %v2118_v0  ;;  %1818 = vmatprep.subr.bf16.mxu1 %v2120_v1  ;;  %v2231_v0 = vcombine.low %v351_v53, %v359_v54  ;;  %v2246_v1 = vcombine.high %v366_v59, %v374_v61  ;;  %v2248_v2 = vcombine.high %v367_v62, %v375_v63 }
  0xef   : > { %1778 = vmatpush1.bf16.msra.mxu0 %v2117_v5  ;;  %1819 = vmatpush1.bf16.msra.mxu1 %v2119_v6  ;;  %v2247_v5 = vcombine.low %v367_v62, %v375_v63  ;;  %v2262_v6 = vcombine.high %v382_v3, %v382_v3 }
  0xf0   : > { %1779 = vmatprep.subr.bf16.mxu0 %v2134_v7  ;;  %1820 = vmatprep.subr.bf16.mxu1 %v2136_v8  ;;  %v2261_v7 = vcombine.low %v382_v3, %v382_v3  ;;  %v2264_v8 = vcombine.high %v383_v4, %v383_v4 }
  0xf2   : > { %v1512_v10 = vsel %vm1474_vm1, %v2261_v7, 0 }
  0xf3   : > { %1780 = vmatpush1.bf16.msra.mxu0 %v2133_v13  ;;  %1821 = vmatpush1.bf16.msra.mxu1 %v2135_v14 }
  0xf4   : > { %1781 = vmatprep.subr.bf16.mxu0 %v2150_v15  ;;  %1822 = vmatprep.subr.bf16.mxu1 %v2152_v16 }
  0xf7   : > { %1782 = vmatpush1.bf16.msra.mxu0 %v2149_v21  ;;  %1823 = vmatpush1.bf16.msra.mxu1 %v2151_v22 }
  0xf8   : > { %1783 = vmatprep.subr.bf16.mxu0 %v2166_v23  ;;  %1824 = vmatprep.subr.bf16.mxu1 %v2168_v24 }
  0xfb   : > { %1784 = vmatpush1.bf16.msra.mxu0 %v2165_v29  ;;  %1825 = vmatpush1.bf16.msra.mxu1 %v2167_v30 }
  0xfc   : > { %1785 = vmatprep.subr.bf16.mxu0 %v2182_v31  ;;  %1826 = vmatprep.subr.bf16.mxu1 %v2184_v32 }
  0xff   : > { %1786 = vmatpush1.bf16.msra.mxu0 %v2181_v37  ;;  %1827 = vmatpush1.bf16.msra.mxu1 %v2183_v38 }
 0x100   : > { %1787 = vmatprep.subr.bf16.mxu0 %v2198_v39  ;;  %1828 = vmatprep.subr.bf16.mxu1 %v2200_v40 }
 0x103   : > { %1788 = vmatpush1.bf16.msra.mxu0 %v2197_v45  ;;  %1829 = vmatpush1.bf16.msra.mxu1 %v2199_v46 }
 0x104   : > { %1789 = vmatprep.subr.bf16.mxu0 %v2214_v47  ;;  %1830 = vmatprep.subr.bf16.mxu1 %v2216_v49 }
 0x107   : > { %1790 = vmatpush1.bf16.msra.mxu0 %v2213_v55  ;;  %1831 = vmatpush1.bf16.msra.mxu1 %v2215_v56 }
 0x108   : > { %1791 = vmatprep.subr.bf16.mxu0 %v2230_v57  ;;  %1832 = vmatprep.subr.bf16.mxu1 %v2232_v58 }
 0x10b   : > { %1792 = vmatpush1.bf16.msra.mxu0 %v2229_v51  ;;  %1833 = vmatpush1.bf16.msra.mxu1 %v2231_v0 }
 0x10c   : > { %1793 = vmatprep.subr.bf16.mxu0 %v2246_v1  ;;  %1834 = vmatprep.subr.bf16.mxu1 %v2248_v2 }
 0x10f   : > { %1794 = vmatpush1.bf16.msra.mxu0 %v2245_v48  ;;  %1835 = vmatpush1.bf16.msra.mxu1 %v2247_v5 }
 0x110   : > { %2277 = vmatprep.subr.msk.bf16.mxu0 %vm1474_vm1, %v2262_v6  ;;  %2279 = vmatprep.subr.msk.bf16.mxu1 %vm1474_vm1, %v2264_v8 }
 0x113   : > { %1796 = vmatpush1.bf16.msra.mxu0 %v1512_v10  ;;  %1837 = vmatpush1.bf16.msra.mxu1 %v1518_v11 }
 0x116   : > { %1802 = vmatmul.mubr.bf16.vlgmr.msra.gmra.mrb[12].mxu0 %v2679_v60  ;;  %1843 = vmatmul.mubr.bf16.vlgmr.msra.gmra.mrb[12].mxu1 %v2679_v60 }
 0x141   : > { %v1557_v12 = vpop.f32.mrb[0].mxu0  ;;  %v1598_v14 = vpop.f32.mrb[0].mxu1 }
 0x142   : > { %v2281_v13 = vmul.f32 -1.442695, %v1557_v12  ;;  %v1559_v15 = vpop.f32.mrb[1].mxu0  ;;  %v2283_v16 = vmul.f32 -1.442695, %v1598_v14  ;;  %v1600_v18 = vpop.f32.mrb[1].mxu1 }
 0x143   : > { %v2282_v17 = vmul.f32 -1.442695, %v1559_v15  ;;  %v1561_v19 = vpop.f32.mrb[2].mxu0  ;;  %v2284_v20 = vmul.f32 -1.442695, %v1600_v18  ;;  %v1602_v21 = vpop.f32.mrb[2].mxu1 }
 0x144   : > { %2362 = vpow2.f32 %v2281_v13  ;;  %v1562_v22 = vpop.f32.mrb[3].mxu0  ;;  %v1603_v23 = vpop.f32.mrb[3].mxu1 }
 0x145   : > { %2364 = vpow2.f32 %v2283_v16 }
 0x146   : > { %2366 = vpow2.f32 %v2282_v17 }
 0x147   : > { %2368 = vpow2.f32 %v2284_v20 }
 0x14e   : > { %v2363_v60 = vpop.eup %2362 }
 0x14f   : > { %v2365_v24 = vpop.eup %2364  ;;  %v1899_v25 = vadd.f32 1.0, %v2363_v60 }
 0x150   : > { %v2367_v26 = vpop.eup %2366  ;;  %v1901_v27 = vadd.f32 1.0, %v2365_v24 }
 0x151   : > { %v2369_v28 = vpop.eup %2368  ;;  %2370 = vrcp.f32 %v1899_v25  ;;  %v1900_v29 = vadd.f32 1.0, %v2367_v26 }
 0x152   : > { %2372 = vrcp.f32 %v1901_v27  ;;  %v1902_v30 = vadd.f32 1.0, %v2369_v28 }
 0x153   : > { %2374 = vrcp.f32 %v1900_v29 }
 0x154   : > { %2376 = vrcp.f32 %v1902_v30 }
 0x15b   : > { %v2371_v31 = vpop.eup %2370 }
 0x15c   : > { %v2373_v32 = vpop.eup %2372  ;;  %1947 = vst [vmem:[%s2874_s12] sm:$0xff] %v2371_v31 }
 0x15d   : > { %v2375_v33 = vpop.eup %2374  ;;  %1949 = vst [vmem:[%s2874_s12 + $0x10] sm:$0xff] %v2373_v32 }
 0x15e   : > { %v2377_v34 = vpop.eup %2376  ;;  %1948 = vst [vmem:[%s2874_s12 + $0x8] sm:$0xff] %v2375_v33 }
 0x15f   : > { %1950 = vst [vmem:[%s2874_s12 + $0x18] sm:$0xff] %v2377_v34 }
 0x179   : > { %v1639_v35 = vpop.f32.mrb[4].mxu0  ;;  %v1680_v37 = vpop.f32.mrb[4].mxu1 }
 0x17a   : > { %v2285_v36 = vmul.f32 -1.442695, %v1639_v35  ;;  %v1641_v38 = vpop.f32.mrb[5].mxu0  ;;  %v2287_v39 = vmul.f32 -1.442695, %v1680_v37  ;;  %v1682_v41 = vpop.f32.mrb[5].mxu1 }
 0x17b   : > { %v2286_v40 = vmul.f32 -1.442695, %v1641_v38  ;;  %v1643_v42 = vpop.f32.mrb[6].mxu0  ;;  %v2288_v43 = vmul.f32 -1.442695, %v1682_v41  ;;  %v1684_v44 = vpop.f32.mrb[6].mxu1 }
 0x17c   : > { %2378 = vpow2.f32 %v2285_v36  ;;  %v1644_v45 = vpop.f32.mrb[7].mxu0  ;;  %v1685_v46 = vpop.f32.mrb[7].mxu1 }
 0x17d   : > { %2380 = vpow2.f32 %v2287_v39 }
 0x17e   : > { %2382 = vpow2.f32 %v2286_v40 }
 0x17f   : > { %2384 = vpow2.f32 %v2288_v43 }
 0x186   : > { %v2379_v47 = vpop.eup %2378 }
 0x187   : > { %v2381_v49 = vpop.eup %2380  ;;  %v1903_v50 = vadd.f32 1.0, %v2379_v47 }
 0x188   : > { %v2383_v52 = vpop.eup %2382  ;;  %v1905_v53 = vadd.f32 1.0, %v2381_v49 }
 0x189   : > { %v2385_v54 = vpop.eup %2384  ;;  %2386 = vrcp.f32 %v1903_v50  ;;  %v1904_v55 = vadd.f32 1.0, %v2383_v52 }
 0x18a   : > { %2388 = vrcp.f32 %v1905_v53  ;;  %v1906_v56 = vadd.f32 1.0, %v2385_v54 }
 0x18b   : > { %2390 = vrcp.f32 %v1904_v55 }
 0x18c   : > { %2392 = vrcp.f32 %v1906_v56 }
 0x193   : > { %v2387_v57 = vpop.eup %2386 }
 0x194   : > { %v2389_v58 = vpop.eup %2388  ;;  %1951 = vst [vmem:[%s2874_s12 + $0x20] sm:$0xff] %v2387_v57 }
 0x195   : > { %v2391_v59 = vpop.eup %2390  ;;  %1953 = vst [vmem:[%s2874_s12 + $0x30] sm:$0xff] %v2389_v58 }
 0x196   : > { %v2393_v61 = vpop.eup %2392  ;;  %1952 = vst [vmem:[%s2874_s12 + $0x28] sm:$0xff] %v2391_v59 }
 0x197   : > { %1954 = vst [vmem:[%s2874_s12 + $0x38] sm:$0xff] %v2393_v61 }
 0x1b1   : > { %v1721_v62 = vpop.f32.mrb[8].mxu0  ;;  %v1762_v51 = vpop.f32.mrb[8].mxu1 }
 0x1b2   : > { %v2289_v63 = vmul.f32 -1.442695, %v1721_v62  ;;  %v1723_v0 = vpop.f32.mrb[9].mxu0  ;;  %v2291_v1 = vmul.f32 -1.442695, %v1762_v51  ;;  %v1764_v3 = vpop.f32.mrb[9].mxu1 }
 0x1b3   : > { %v2290_v2 = vmul.f32 -1.442695, %v1723_v0  ;;  %v1725_v4 = vpop.f32.mrb[10].mxu0  ;;  %v2292_v48 = vmul.f32 -1.442695, %v1764_v3  ;;  %v1766_v5 = vpop.f32.mrb[10].mxu1 }
 0x1b4   : > { %2394 = vpow2.f32 %v2289_v63  ;;  %v1726_v6 = vpop.f32.mrb[11].mxu0  ;;  %v1767_v7 = vpop.f32.mrb[11].mxu1 }
 0x1b5   : > { %2396 = vpow2.f32 %v2291_v1 }
 0x1b6   : > { %2398 = vpow2.f32 %v2290_v2 }
 0x1b7   : > { %2400 = vpow2.f32 %v2292_v48 }
 0x1be   : > { %v2395_v8 = vpop.eup %2394 }
 0x1bf   : > { %v2397_v9 = vpop.eup %2396  ;;  %v1907_v10 = vadd.f32 1.0, %v2395_v8 }
 0x1c0   : > { %v2399_v11 = vpop.eup %2398  ;;  %v1909_v12 = vadd.f32 1.0, %v2397_v9 }
 0x1c1   : > { %v2401_v13 = vpop.eup %2400  ;;  %2402 = vrcp.f32 %v1907_v10  ;;  %v1908_v14 = vadd.f32 1.0, %v2399_v11 }
 0x1c2   : > { %2404 = vrcp.f32 %v1909_v12  ;;  %v1910_v15 = vadd.f32 1.0, %v2401_v13 }
 0x1c3   : > { %2406 = vrcp.f32 %v1908_v14 }
 0x1c4   : > { %2408 = vrcp.f32 %v1910_v15 }
 0x1cb   : > { %v2403_v16 = vpop.eup %2402 }
 0x1cc   : > { %v2405_v17 = vpop.eup %2404  ;;  %1955 = vst [vmem:[%s2874_s12 + $0x40] sm:$0xff] %v2403_v16 }
 0x1cd   : > { %v2407_v18 = vpop.eup %2406  ;;  %1957 = vst [vmem:[%s2874_s12 + $0x50] sm:$0xff] %v2405_v17 }
 0x1ce   : > { %v2409_v19 = vpop.eup %2408  ;;  %1956 = vst [vmem:[%s2874_s12 + $0x48] sm:$0xff] %v2407_v18 }
 0x1cf   : > { %1958 = vst [vmem:[%s2874_s12 + $0x58] sm:$0xff] %v2409_v19 }
 0x1e9   : > { %v1803_v20 = vpop.f32.mrb[12].mxu0  ;;  %v1844_v22 = vpop.f32.mrb[12].mxu1 }
 0x1ea   : > { %v2293_v21 = vmul.f32 -1.442695, %v1803_v20  ;;  %v1805_v23 = vpop.f32.mrb[13].mxu0  ;;  %v2295_v60 = vmul.f32 -1.442695, %v1844_v22  ;;  %v1846_v25 = vpop.f32.mrb[13].mxu1 }
 0x1eb   : > { %v2294_v24 = vmul.f32 -1.442695, %v1805_v23  ;;  %v1807_v26 = vpop.f32.mrb[14].mxu0  ;;  %v2296_v27 = vmul.f32 -1.442695, %v1846_v25  ;;  %v1848_v28 = vpop.f32.mrb[14].mxu1 }
 0x1ec   : > { %2410 = vpow2.f32 %v2293_v21  ;;  %v1808_v29 = vpop.f32.mrb[15].mxu0  ;;  %v1849_v30 = vpop.f32.mrb[15].mxu1 }
 0x1ed   : > { %2412 = vpow2.f32 %v2295_v60 }
 0x1ee   : > { %2414 = vpow2.f32 %v2294_v24 }
 0x1ef   : > { %2416 = vpow2.f32 %v2296_v27 }
 0x1f6   : > { %v2411_v31 = vpop.eup %2410 }
 0x1f7   : > { %v2413_v32 = vpop.eup %2412  ;;  %v1911_v33 = vadd.f32 1.0, %v2411_v31 }
 0x1f8   : > { %v2415_v34 = vpop.eup %2414  ;;  %v1913_v35 = vadd.f32 1.0, %v2413_v32 }
 0x1f9   : > { %v2417_v36 = vpop.eup %2416  ;;  %2418 = vrcp.f32 %v1911_v33  ;;  %v1912_v37 = vadd.f32 1.0, %v2415_v34 }
 0x1fa   : > { %2420 = vrcp.f32 %v1913_v35  ;;  %v1914_v38 = vadd.f32 1.0, %v2417_v36 }
 0x1fb   : > { %2422 = vrcp.f32 %v1912_v37 }
 0x1fc   : > { %2424 = vrcp.f32 %v1914_v38 }
 0x203   : > { %v2419_v39 = vpop.eup %2418 }
 0x204   : > { %v2421_v40 = vpop.eup %2420  ;;  %1959 = vst [vmem:[%s2874_s12 + $0x60] sm:$0xff] %v2419_v39 }
 0x205   : > { %v2423_v41 = vpop.eup %2422  ;;  %1961 = vst [vmem:[%s2874_s12 + $0x70] sm:$0xff] %v2421_v40 }
 0x206   : > { %v2425_v42 = vpop.eup %2424  ;;  %1960 = vst [vmem:[%s2874_s12 + $0x68] sm:$0xff] %v2423_v41 }
 0x207   : > { %1962 = vst [vmem:[%s2874_s12 + $0x78] sm:$0xff] %v2425_v42 }
 0x208 PF: > { %p12_p8 = scmp.ge.s32.totalorder %s2531_s14, 6   ;;  %s2910_s9 = smov %s2482_s10 }
 0x209   : > { %s2911_s10 = smov %s2486_s11  ;;  %s2912_s11 = smov %s2541_s17 }
 0x20a   : > { %s2913_s12 = smov %s2531_s14  ;;  %14 = sbr.rel (!%p12_p8) target bundleno = 3 (0x3), region = 68 }
 0x211   :  { %1985 = vsyncpa [#allocation3], 1 }
 0x212   :  { %1987 = vsyncpa [#allocation3 + $0x1], 1 }

</bundles_post_ra>
